<compile_context>
chip_gen: v7x
topology: tpu7x:2x2x1
jax: 0.10.0
libtpu: 0.0.40
codegen_flags: <defaults>
</compile_context>

<pallas_src>
import jax
import jax.numpy as jnp
from jax import lax
from jax.experimental import pallas as pl
from jax.experimental.pallas import tpu as pltpu

EPS = 1e-5
BF16_MIN_CIN = 64          # cast MXU inputs to bf16 only for larger channel counts
IM2COL_MAX_CIN = 128       # beyond this, use 9 accumulated dots instead of im2col
VMEM_LIMIT_BYTES = 48 * 1024 * 1024   # fits every generation (v7x physical = 64 MiB)


def _largest_tile(total, target, align=8):
    """Largest divisor of `total` that is <= target and a multiple of `align`,
    else `total` itself (block == full dim is always legal)."""
    t = min(total, target)
    for cand in range(t, 0, -1):
        if total % cand == 0 and cand % align == 0:
            return cand
    return total


# ---------------------------------------------------------------------------
# Shared kernel tail: 3x3 conv (im2col matmul or 9 accumulated dots) + per-step
# partial BN statistics.
# ---------------------------------------------------------------------------
def _conv_bn_stats_body(xp, w_ref, b_ref, y_ref, sum_ref, sq_ref):
    # xp: (H+2, W+2, Cin) padded input tile (value, already in vregs)
    # w_ref: (9*Cin, Cout) reshaped HWIO weights, b_ref: (1, Cout)
    # y_ref: (1, H, W, Cout); sum_ref/sq_ref: (1, 1, Cout) per-batch partials
    H, W, Cout = y_ref.shape[1], y_ref.shape[2], y_ref.shape[3]
    Cin = xp.shape[2]
    wdt = w_ref.dtype   # bf16 for large channel counts (set in the wrapper)

    if Cin <= IM2COL_MAX_CIN:
        # Small Cin: one K=9*Cin matmul (im2col) instead of 9 tiny ones.
        patches = jnp.concatenate(
            [xp[dy:dy + H, dx:dx + W, :].reshape(H * W, Cin)
             for dy in range(3) for dx in range(3)],
            axis=1)                                              # (H*W, 9*Cin)
        acc = jnp.dot(patches.astype(wdt), w_ref[...],
                      preferred_element_type=jnp.float32)
    else:
        # Large Cin: 9 accumulated dots (each K=Cin is already MXU-efficient)
        # avoids the ~9x im2col VMEM blow-up that OOMs v7x's 64 MiB VMEM.
        acc = jnp.zeros((H * W, Cout), jnp.float32)
        k = 0
        for dy in range(3):
            for dx in range(3):
                view = xp[dy:dy + H, dx:dx + W, :].reshape(H * W, Cin)
                acc = acc + jnp.dot(view.astype(wdt),
                                    w_ref[k * Cin:(k + 1) * Cin, :],
                                    preferred_element_type=jnp.float32)
                k += 1

    acc = acc + b_ref[...]                 # (1, Cout) broadcasts directly
    y_ref[0] = acc.reshape(H, W, Cout)
    # Per-batch partial BN statistics (summed in XLA); no cross-step
    # accumulator so the batch grid axis can be megacore-parallel.
    sum_ref[0] = jnp.sum(acc, axis=0)[None, :]
    sq_ref[0] = jnp.sum(acc * acc, axis=0)[None, :]


# ---------------------------------------------------------------------------
# Kernel A: (H-axis upsample) + concat + pad + conv3x3 + BN1 partial stats.
# ---------------------------------------------------------------------------
def _conv1_kernel(x1_ref, x2_ref, w_ref, b_ref,
                  y_ref, sum_ref, sq_ref, xpad_ref):
    H, W = y_ref.shape[1], y_ref.shape[2]
    h, C1 = x1_ref.shape[1], x1_ref.shape[3]
    Cin = xpad_ref.shape[2]

    # Zero the padded scratch every step (required for correctness when the
    # batch axis is sharded across TensorCores); the interior is overwritten.
    xpad_ref[...] = jnp.zeros_like(xpad_ref)

    # Nearest-upsample along H in VMEM: x1 arrives with W already doubled, so
    # only a leading-dim repeat is needed (layout-safe reshape: last two dims
    # untouched).  Fused channel-concat + zero-pad via two interior stores.
    x1t = x1_ref[0]                                       # (h, W, C1)
    x1u = jnp.broadcast_to(x1t[:, None], (h, 2, W, C1)).reshape(H, W, C1)
    xpad_ref[1:H + 1, 1:W + 1, 0:C1] = x1u
    xpad_ref[1:H + 1, 1:W + 1, C1:Cin] = x2_ref[0]

    _conv_bn_stats_body(xpad_ref[...], w_ref, b_ref, y_ref, sum_ref, sq_ref)


def conv1_fused(x1w, x2, w, b):
    N, h, W, C1 = x1w.shape
    H = 2 * h
    C2 = x2.shape[3]
    Cin = C1 + C2
    Cout = w.shape[1]
    return pl.pallas_call(
        _conv1_kernel,
        out_shape=(jax.ShapeDtypeStruct((N, H, W, Cout), jnp.float32),
                   jax.ShapeDtypeStruct((N, 1, Cout), jnp.float32),
                   jax.ShapeDtypeStruct((N, 1, Cout), jnp.float32)),
        grid=(N,),
        in_specs=[pl.BlockSpec((1, h, W, C1), lambda n: (n, 0, 0, 0)),
                  pl.BlockSpec((1, H, W, C2), lambda n: (n, 0, 0, 0)),
                  pl.BlockSpec((9 * Cin, Cout), lambda n: (0, 0)),
                  pl.BlockSpec((1, Cout), lambda n: (0, 0))],
        out_specs=(pl.BlockSpec((1, H, W, Cout), lambda n: (n, 0, 0, 0)),
                   pl.BlockSpec((1, 1, Cout), lambda n: (n, 0, 0)),
                   pl.BlockSpec((1, 1, Cout), lambda n: (n, 0, 0))),
        scratch_shapes=[pltpu.VMEM((H + 2, W + 2, Cin), jnp.float32)],
        compiler_params=pltpu.CompilerParams(
            dimension_semantics=("parallel",),         # per-batch partial stats
            vmem_limit_bytes=VMEM_LIMIT_BYTES),
    )(x1w, x2, w, b)


# ---------------------------------------------------------------------------
# Kernel B: BN1-affine + ReLU (on the input tile) + pad + conv3x3 + BN2 stats.
# ---------------------------------------------------------------------------
def _conv2_kernel(y1_ref, scale_ref, shift_ref, w_ref, b_ref,
                  y_ref, sum_ref, sq_ref, xpad_ref):
    H, W = y_ref.shape[1], y_ref.shape[2]

    xpad_ref[...] = jnp.zeros_like(xpad_ref)

    # Fused BN-affine + ReLU of the previous conv output, applied right after
    # the tile lands in VMEM (no intermediate activation round-trip to HBM).
    a = jnp.maximum(y1_ref[0] * scale_ref[...] + shift_ref[...], 0.0)
    xpad_ref[1:H + 1, 1:W + 1, :] = a

    _conv_bn_stats_body(xpad_ref[...], w_ref, b_ref, y_ref, sum_ref, sq_ref)


def conv2_fused(y1, scale, shift, w, b):
    N, H, W, Cin = y1.shape
    Cout = w.shape[1]
    return pl.pallas_call(
        _conv2_kernel,
        out_shape=(jax.ShapeDtypeStruct((N, H, W, Cout), jnp.float32),
                   jax.ShapeDtypeStruct((N, 1, Cout), jnp.float32),
                   jax.ShapeDtypeStruct((N, 1, Cout), jnp.float32)),
        grid=(N,),
        in_specs=[pl.BlockSpec((1, H, W, Cin), lambda n: (n, 0, 0, 0)),
                  pl.BlockSpec((1, Cin), lambda n: (0, 0)),
                  pl.BlockSpec((1, Cin), lambda n: (0, 0)),
                  pl.BlockSpec((9 * Cin, Cout), lambda n: (0, 0)),
                  pl.BlockSpec((1, Cout), lambda n: (0, 0))],
        out_specs=(pl.BlockSpec((1, H, W, Cout), lambda n: (n, 0, 0, 0)),
                   pl.BlockSpec((1, 1, Cout), lambda n: (n, 0, 0)),
                   pl.BlockSpec((1, 1, Cout), lambda n: (n, 0, 0))),
        scratch_shapes=[pltpu.VMEM((H + 2, W + 2, Cin), jnp.float32)],
        compiler_params=pltpu.CompilerParams(
            dimension_semantics=("parallel",),
            vmem_limit_bytes=VMEM_LIMIT_BYTES),
    )(y1, scale, shift, w, b)


# ---------------------------------------------------------------------------
# Kernel C: final BN-affine + ReLU, lane-dense 2D view when possible.
# ---------------------------------------------------------------------------
def _bnrelu_flat_kernel(x_ref, scale_ref, shift_ref, o_ref):
    # x_ref/o_ref: (TR, L); scale/shift: (1, L) per-lane pattern
    o_ref[...] = jnp.maximum(x_ref[...] * scale_ref[...] + shift_ref[...], 0.0)


def _bnrelu_nhwc_kernel(x_ref, scale_ref, shift_ref, o_ref):
    o_ref[0] = jnp.maximum(x_ref[0] * scale_ref[...] + shift_ref[...], 0.0)


def bn_relu_apply(y, scale, shift):
    N, H, W, C = y.shape
    total = N * H * W * C

    lane_dense = (C % 128 == 0) or (128 % C == 0 and total % 128 == 0)
    if lane_dense:
        if C % 128 == 0:
            # Channels already span >= one full lane group: rows = pixels.
            R, L = N * H * W, C
            s, t = scale, shift                            # (1, C)
        else:
            # 128 % C == 0: flatten fully; channel pattern tiles into 128 lanes.
            R, L = total // 128, 128
            reps = 128 // C
            s = jnp.tile(scale[0], reps)[None, :]
            t = jnp.tile(shift[0], reps)[None, :]
        yf = y.reshape(R, L)                               # contiguous reshape
        TR = _largest_tile(R, 1024, align=8)
        out = pl.pallas_call(
            _bnrelu_flat_kernel,
            out_shape=jax.ShapeDtypeStruct((R, L), jnp.float32),
            grid=(R // TR,),
            in_specs=[pl.BlockSpec((TR, L), lambda r: (r, 0)),
                      pl.BlockSpec((1, L), lambda r: (0, 0)),
                      pl.BlockSpec((1, L), lambda r: (0, 0))],
            out_specs=pl.BlockSpec((TR, L), lambda r: (r, 0)),
            compiler_params=pltpu.CompilerParams(
                dimension_semantics=("parallel",),
                vmem_limit_bytes=VMEM_LIMIT_BYTES),
        )(yf, s, t)
        return out.reshape(N, H, W, C)

    # Fallback: channels-last elementwise, tiled over H so blocks stay small.
    TH = _largest_tile(H, 256, align=1)
    return pl.pallas_call(
        _bnrelu_nhwc_kernel,
        out_shape=jax.ShapeDtypeStruct((N, H, W, C), jnp.float32),
        grid=(N, H // TH),
        in_specs=[pl.BlockSpec((1, TH, W, C), lambda n, i: (n, i, 0, 0)),
                  pl.BlockSpec((1, C), lambda n, i: (0, 0)),
                  pl.BlockSpec((1, C), lambda n, i: (0, 0))],
        out_specs=pl.BlockSpec((1, TH, W, C), lambda n, i: (n, i, 0, 0)),
        compiler_params=pltpu.CompilerParams(
            dimension_semantics=("parallel", "parallel"),
            vmem_limit_bytes=VMEM_LIMIT_BYTES),
    )(y, scale, shift)


# ---------------------------------------------------------------------------
# BN scalar epilogue: per-batch partial (sum, sumsq) -> per-channel (scale, shift).
# ---------------------------------------------------------------------------
def _bn_scale_shift(sum_parts, sq_parts, cnt, gamma, beta):
    s = jnp.sum(sum_parts, axis=0)[0]          # (Cout,)
    sq = jnp.sum(sq_parts, axis=0)[0]
    mean = s / cnt
    var = jnp.maximum(sq / cnt - mean * mean, 0.0)   # biased var (training BN)
    scale = gamma / jnp.sqrt(var + EPS)
    shift = beta - mean * scale
    return scale[None, :], shift[None, :]


# ---------------------------------------------------------------------------
# Full Up.forward
# ---------------------------------------------------------------------------
@jax.jit
def up_forward(x1, x2, params):
    # x1: (N, C1, H, W), x2: (N, C2, 2H, 2W) -> (N, Cout, 2H, 2W)   (NCHW)
    (w1, b1, g1, be1), (w2, b2, g2, be2) = params
    N, C1 = x1.shape[0], x1.shape[1]
    C2 = x2.shape[1]
    Cin = C1 + C2
    Cout = w1.shape[-1]

    # NCHW -> NHWC boundary transposes (kept in XLA, see TODO at top).
    x1 = jnp.transpose(x1, (0, 2, 3, 1))
    x2 = jnp.transpose(x2, (0, 2, 3, 1))
    # Only the W-axis half of the nearest-upsample is materialized (half the
    # HBM traffic of a full upsample); the H-axis repeat happens in kernel A.
    x1w = jnp.repeat(x1, 2, axis=2)

    # Conv weights (HWIO) reshaped once for the K=9*Cin formulation; bf16 MXU
    # inputs only at larger channel counts (v6e/v7x win, keeps small-channel
    # test numerics bit-comparable to the f32 reference).
    w1r = w1.reshape(9 * Cin, Cout)
    w2r = w2.reshape(9 * Cout, Cout)
    if Cin >= BF16_MIN_CIN:
        w1r = w1r.astype(jnp.bfloat16)
    if Cout >= BF16_MIN_CIN:
        w2r = w2r.astype(jnp.bfloat16)
    b1r = b1.reshape(1, Cout)
    b2r = b2.reshape(1, Cout)

    # Stage 1: upsample(H) + concat + pad + conv + BN1 partial stats.
    y1, s1, sq1 = conv1_fused(x1w, x2, w1r, b1r)
    cnt = float(N * y1.shape[1] * y1.shape[2])
    scale1, shift1 = _bn_scale_shift(s1, sq1, cnt, g1, be1)

    # Stage 2: BN1-affine + ReLU + pad + conv + BN2 partial stats.
    y2, s2, sq2 = conv2_fused(y1, scale1, shift1, w2r, b2r)
    scale2, shift2 = _bn_scale_shift(s2, sq2, cnt, g2, be2)

    # Stage 3: final BN-affine + ReLU (lane-dense elementwise).
    out = bn_relu_apply(y2, scale2, shift2)
    return jnp.transpose(out, (0, 3, 1, 2))                   # NHWC -> NCHW


# ---------------------------------------------------------------------------
# Pure-JAX reference (same math) for a correctness check.
# ---------------------------------------------------------------------------
def ref_forward(x1, x2, params):
    (w1, b1, g1, be1), (w2, b2, g2, be2) = params
    x1u = jnp.repeat(jnp.repeat(x1, 2, axis=2), 2, axis=3)
    x = jnp.concatenate([x1u, x2], axis=1)
    x = jnp.transpose(x, (0, 2, 3, 1))

    def conv(x, w, b):
        return lax.conv_general_dilated(
            x, w, (1, 1), "SAME",
            dimension_numbers=("NHWC", "HWIO", "NHWC"),
            precision=lax.Precision.HIGHEST) + b

    def bn_relu(x, gamma, beta):
        mean = jnp.mean(x, axis=(0, 1, 2))
        var = jnp.mean((x - mean) ** 2, axis=(0, 1, 2))
        y = (x - mean) / jnp.sqrt(var + EPS) * gamma + beta
        return jnp.maximum(y, 0.0)

    x = bn_relu(conv(x, w1, b1), g1, be1)
    x = bn_relu(conv(x, w2, b2), g2, be2)
    return jnp.transpose(x, (0, 3, 1, 2))


def init_params(key, in_channel, out_channel):
    # Deterministic synthetic init.  Conv weights stored in HWIO layout.
    k1, k2, k3, k4 = jax.random.split(key, 4)
    s1 = 1.0 / (3.0 * jnp.sqrt(float(in_channel)))
    s2 = 1.0 / (3.0 * jnp.sqrt(float(out_channel)))
    w1 = jax.random.normal(k1, (3, 3, in_channel, out_channel), jnp.float32) * s1
    b1 = jax.random.normal(k2, (1, out_channel), jnp.float32) * 0.1
    w2 = jax.random.normal(k3, (3, 3, out_channel, out_channel), jnp.float32) * s2
    b2 = jax.random.normal(k4, (1, out_channel), jnp.float32) * 0.1
    g1 = jnp.ones((out_channel,), jnp.float32)    # BatchNorm weight init
    be1 = jnp.zeros((out_channel,), jnp.float32)  # BatchNorm bias init
    g2 = jnp.ones((out_channel,), jnp.float32)
    be2 = jnp.zeros((out_channel,), jnp.float32)
    return ((w1, b1, g1, be1), (w2, b2, g2, be2))


if __name__ == "__main__":
    key = jax.random.PRNGKey(0)
    kx1, kx2, kp = jax.random.split(key, 3)

    N, C1, C2 = 2, 4, 4          # in_channel = C1 + C2 = 8
    H, W = 8, 8                  # x2 spatial = 2H x 2W = 16 x 16
    in_channel, out_channel = C1 + C2, 4

    x1 = jax.random.normal(kx1, (N, C1, H, W), jnp.float32)
    x2 = jax.random.normal(kx2, (N, C2, 2 * H, 2 * W), jnp.float32)
    params = init_params(kp, in_channel, out_channel)

    out = up_forward(x1, x2, params)
    out = jax.block_until_ready(out)

    ref = ref_forward(x1, x2, params)
    assert out.shape == (N, out_channel, 2 * H, 2 * W), out.shape
    assert jnp.allclose(out, ref, rtol=1e-3, atol=1e-3), (
        float(jnp.max(jnp.abs(out - ref))))

    print("KERNEL_OK")
</pallas_src>

<mosaic_0001>
module attributes {stable_mosaic.version = 11 : i64} {
  func.func @_conv1_kernel(%arg0: i32, %arg1: memref<1x8x16x4xf32, #tpu.memory_space<vmem>>, %arg2: memref<1x16x16x4xf32, #tpu.memory_space<vmem>>, %arg3: memref<72x4xf32, #tpu.memory_space<vmem>>, %arg4: memref<1x4xf32, #tpu.memory_space<vmem>>, %arg5: memref<1x16x16x4xf32, #tpu.memory_space<vmem>>, %arg6: memref<1x1x4xf32, #tpu.memory_space<vmem>>, %arg7: memref<1x1x4xf32, #tpu.memory_space<vmem>>, %arg8: memref<18x18x8xf32, #tpu.memory_space<vmem>>) attributes {dimension_semantics = [#tpu.dimension_semantics<parallel>], iteration_bounds = array<i64: 2>, scalar_prefetch = 0 : i64, scratch_operands = 1 : i64, tpu.core_type = #tpu.core_type<tc>, window_params = [{transform_indices = @transform_0, window_bounds = array<i64: 1, 8, 16, 4>}, {transform_indices = @transform_1, window_bounds = array<i64: 1, 16, 16, 4>}, {pipeline_mode = #tpu.pipeline_mode<synchronous>, transform_indices = @transform_2, window_bounds = array<i64: 72, 4>}, {pipeline_mode = #tpu.pipeline_mode<synchronous>, transform_indices = @transform_3, window_bounds = array<i64: 1, 4>}, {transform_indices = @transform_4, window_bounds = array<i64: 1, 16, 16, 4>}, {transform_indices = @transform_5, window_bounds = array<i64: 1, 1, 4>}, {transform_indices = @transform_6, window_bounds = array<i64: 1, 1, 4>}]} {
    %cst = arith.constant 0.000000e+00 : f32
    %0 = vector.broadcast %cst : f32 to vector<18x18x8xf32>
    %c0 = arith.constant 0 : index
    %c0_0 = arith.constant 0 : index
    %c0_1 = arith.constant 0 : index
    %1 = vector.load %arg8[%c0, %c0_0, %c0_1] : memref<18x18x8xf32, #tpu.memory_space<vmem>>, vector<18x18x8xf32>
    tpu.vector_store %arg8[%c0, %c0_0, %c0_1], %0 {strides = array<i32>} : memref<18x18x8xf32, #tpu.memory_space<vmem>>, vector<18x18x8xf32>,
    %c0_2 = arith.constant 0 : index
    %c0_3 = arith.constant 0 : index
    %c0_4 = arith.constant 0 : index
    %c0_5 = arith.constant 0 : index
    %2 = vector.load %arg1[%c0_2, %c0_3, %c0_4, %c0_5] : memref<1x8x16x4xf32, #tpu.memory_space<vmem>>, vector<1x8x16x4xf32>
    %3 = vector.shape_cast %2 : vector<1x8x16x4xf32> to vector<8x16x4xf32>
    %4 = vector.shape_cast %3 : vector<8x16x4xf32> to vector<8x1x16x4xf32>
    %5 = vector.shape_cast %4 : vector<8x1x16x4xf32> to vector<8x1x16x4xf32>
    %6 = vector.broadcast %5 : vector<8x1x16x4xf32> to vector<8x2x16x4xf32>
    %7 = vector.shape_cast %6 : vector<8x2x16x4xf32> to vector<16x16x4xf32>
    %c1 = arith.constant 1 : index
    %c1_6 = arith.constant 1 : index
    %c0_7 = arith.constant 0 : index
    %8 = vector.load %arg8[%c1, %c1_6, %c0_7] : memref<18x18x8xf32, #tpu.memory_space<vmem>>, vector<16x16x4xf32>
    tpu.vector_store %arg8[%c1, %c1_6, %c0_7], %7 {strides = array<i32>} : memref<18x18x8xf32, #tpu.memory_space<vmem>>, vector<16x16x4xf32>,
    %c0_8 = arith.constant 0 : index
    %c0_9 = arith.constant 0 : index
    %c0_10 = arith.constant 0 : index
    %c0_11 = arith.constant 0 : index
    %9 = vector.load %arg2[%c0_8, %c0_9, %c0_10, %c0_11] : memref<1x16x16x4xf32, #tpu.memory_space<vmem>>, vector<1x16x16x4xf32>
    %10 = vector.shape_cast %9 : vector<1x16x16x4xf32> to vector<16x16x4xf32>
    %c1_12 = arith.constant 1 : index
    %c1_13 = arith.constant 1 : index
    %c4 = arith.constant 4 : index
    %11 = vector.load %arg8[%c1_12, %c1_13, %c4] : memref<18x18x8xf32, #tpu.memory_space<vmem>>, vector<16x16x4xf32>
    tpu.vector_store %arg8[%c1_12, %c1_13, %c4], %10 {strides = array<i32>} : memref<18x18x8xf32, #tpu.memory_space<vmem>>, vector<16x16x4xf32>,
    %c0_14 = arith.constant 0 : index
    %c0_15 = arith.constant 0 : index
    %c0_16 = arith.constant 0 : index
    %12 = vector.load %arg8[%c0_14, %c0_15, %c0_16] : memref<18x18x8xf32, #tpu.memory_space<vmem>>, vector<18x18x8xf32>
    %13 = vector.extract_strided_slice %12 {offsets = [0, 0, 0], sizes = [16, 16, 8], strides = [1, 1, 1]} : vector<18x18x8xf32> to vector<16x16x8xf32>
    %14 = vector.shape_cast %13 : vector<16x16x8xf32> to vector<256x8xf32>
    %15 = vector.extract_strided_slice %12 {offsets = [0, 1, 0], sizes = [16, 16, 8], strides = [1, 1, 1]} : vector<18x18x8xf32> to vector<16x16x8xf32>
    %16 = vector.shape_cast %15 : vector<16x16x8xf32> to vector<256x8xf32>
    %17 = vector.extract_strided_slice %12 {offsets = [0, 2, 0], sizes = [16, 16, 8], strides = [1, 1, 1]} : vector<18x18x8xf32> to vector<16x16x8xf32>
    %18 = vector.shape_cast %17 : vector<16x16x8xf32> to vector<256x8xf32>
    %19 = vector.extract_strided_slice %12 {offsets = [1, 0, 0], sizes = [16, 16, 8], strides = [1, 1, 1]} : vector<18x18x8xf32> to vector<16x16x8xf32>
    %20 = vector.shape_cast %19 : vector<16x16x8xf32> to vector<256x8xf32>
    %21 = vector.extract_strided_slice %12 {offsets = [1, 1, 0], sizes = [16, 16, 8], strides = [1, 1, 1]} : vector<18x18x8xf32> to vector<16x16x8xf32>
    %22 = vector.shape_cast %21 : vector<16x16x8xf32> to vector<256x8xf32>
    %23 = vector.extract_strided_slice %12 {offsets = [1, 2, 0], sizes = [16, 16, 8], strides = [1, 1, 1]} : vector<18x18x8xf32> to vector<16x16x8xf32>
    %24 = vector.shape_cast %23 : vector<16x16x8xf32> to vector<256x8xf32>
    %25 = vector.extract_strided_slice %12 {offsets = [2, 0, 0], sizes = [16, 16, 8], strides = [1, 1, 1]} : vector<18x18x8xf32> to vector<16x16x8xf32>
    %26 = vector.shape_cast %25 : vector<16x16x8xf32> to vector<256x8xf32>
    %27 = vector.extract_strided_slice %12 {offsets = [2, 1, 0], sizes = [16, 16, 8], strides = [1, 1, 1]} : vector<18x18x8xf32> to vector<16x16x8xf32>
    %28 = vector.shape_cast %27 : vector<16x16x8xf32> to vector<256x8xf32>
    %29 = vector.extract_strided_slice %12 {offsets = [2, 2, 0], sizes = [16, 16, 8], strides = [1, 1, 1]} : vector<18x18x8xf32> to vector<16x16x8xf32>
    %30 = vector.shape_cast %29 : vector<16x16x8xf32> to vector<256x8xf32>
    %31 = tpu.concatenate %14, %16, %18, %20, %22, %24, %26, %28, %30 in 1 : vector<256x8xf32>, vector<256x8xf32>, vector<256x8xf32>, vector<256x8xf32>, vector<256x8xf32>, vector<256x8xf32>, vector<256x8xf32>, vector<256x8xf32>, vector<256x8xf32> -> vector<256x72xf32>
    %c0_17 = arith.constant 0 : index
    %c0_18 = arith.constant 0 : index
    %32 = vector.load %arg3[%c0_17, %c0_18] : memref<72x4xf32, #tpu.memory_space<vmem>>, vector<72x4xf32>
    %cst_19 = arith.constant dense<0.000000e+00> : vector<256x4xf32>
    %33 = tpu.matmul %31, %32, %cst_19 {dimension_numbers = #tpu.dot_dimension_numbers<[1], [0], [0], [1], [0, 0, 1, 1], [], []>} : vector<256x72xf32>, vector<72x4xf32>, vector<256x4xf32> -> vector<256x4xf32>
    %c0_20 = arith.constant 0 : index
    %c0_21 = arith.constant 0 : index
    %34 = vector.load %arg4[%c0_20, %c0_21] : memref<1x4xf32, #tpu.memory_space<vmem>>, vector<1x4xf32>
    %35 = vector.broadcast %34 : vector<1x4xf32> to vector<256x4xf32>
    %36 = arith.addf %33, %35 : vector<256x4xf32>
    %37 = vector.shape_cast %36 : vector<256x4xf32> to vector<16x16x4xf32>
    %c0_22 = arith.constant 0 : index
    %c0_23 = arith.constant 0 : index
    %c0_24 = arith.constant 0 : index
    %c0_25 = arith.constant 0 : index
    %38 = vector.load %arg5[%c0_22, %c0_23, %c0_24, %c0_25] : memref<1x16x16x4xf32, #tpu.memory_space<vmem>>, vector<1x16x16x4xf32>
    %39 = vector.shape_cast %38 : vector<1x16x16x4xf32> to vector<16x16x4xf32>
    %40 = vector.shape_cast %37 : vector<16x16x4xf32> to vector<1x16x16x4xf32>
    tpu.vector_store %arg5[%c0_22, %c0_23, %c0_24, %c0_25], %40 {strides = array<i32>} : memref<1x16x16x4xf32, #tpu.memory_space<vmem>>, vector<1x16x16x4xf32>,
    %cst_26 = arith.constant dense<0.000000e+00> : vector<4xf32>
    %41 = vector.multi_reduction <add>, %36, %cst_26 [0] : vector<256x4xf32> to vector<4xf32>
    %42 = vector.shape_cast %41 : vector<4xf32> to vector<1x4xf32>
    %c0_27 = arith.constant 0 : index
    %c0_28 = arith.constant 0 : index
    %c0_29 = arith.constant 0 : index
    %43 = vector.load %arg6[%c0_27, %c0_28, %c0_29] : memref<1x1x4xf32, #tpu.memory_space<vmem>>, vector<1x1x4xf32>
    %44 = vector.shape_cast %43 : vector<1x1x4xf32> to vector<1x4xf32>
    %45 = vector.shape_cast %42 : vector<1x4xf32> to vector<1x1x4xf32>
    tpu.vector_store %arg6[%c0_27, %c0_28, %c0_29], %45 {strides = array<i32>} : memref<1x1x4xf32, #tpu.memory_space<vmem>>, vector<1x1x4xf32>,
    %46 = arith.mulf %36, %36 : vector<256x4xf32>
    %cst_30 = arith.constant dense<0.000000e+00> : vector<4xf32>
    %47 = vector.multi_reduction <add>, %46, %cst_30 [0] : vector<256x4xf32> to vector<4xf32>
    %48 = vector.shape_cast %47 : vector<4xf32> to vector<1x4xf32>
    %c0_31 = arith.constant 0 : index
    %c0_32 = arith.constant 0 : index
    %c0_33 = arith.constant 0 : index
    %49 = vector.load %arg7[%c0_31, %c0_32, %c0_33] : memref<1x1x4xf32, #tpu.memory_space<vmem>>, vector<1x1x4xf32>
    %50 = vector.shape_cast %49 : vector<1x1x4xf32> to vector<1x4xf32>
    %51 = vector.shape_cast %48 : vector<1x4xf32> to vector<1x1x4xf32>
    tpu.vector_store %arg7[%c0_31, %c0_32, %c0_33], %51 {strides = array<i32>} : memref<1x1x4xf32, #tpu.memory_space<vmem>>, vector<1x1x4xf32>,
    return
  }
  func.func @transform_0(%arg0: i32) -> (i32, i32, i32, i32) {
    %c0_i32 = arith.constant 0 : i32
    %c0_i32_0 = arith.constant 0 : i32
    %c0_i32_1 = arith.constant 0 : i32
    %c0_i32_2 = arith.constant 0 : i32
    return %arg0, %c0_i32, %c0_i32_0, %c0_i32_1 : i32, i32, i32, i32
  }
  func.func @transform_1(%arg0: i32) -> (i32, i32, i32, i32) {
    %c0_i32 = arith.constant 0 : i32
    %c0_i32_0 = arith.constant 0 : i32
    %c0_i32_1 = arith.constant 0 : i32
    %c0_i32_2 = arith.constant 0 : i32
    return %arg0, %c0_i32, %c0_i32_0, %c0_i32_1 : i32, i32, i32, i32
  }
  func.func @transform_2(%arg0: i32) -> (i32, i32) {
    %c0_i32 = arith.constant 0 : i32
    %c0_i32_0 = arith.constant 0 : i32
    %c0_i32_1 = arith.constant 0 : i32
    return %c0_i32, %c0_i32_0 : i32, i32
  }
  func.func @transform_3(%arg0: i32) -> (i32, i32) {
    %c0_i32 = arith.constant 0 : i32
    %c0_i32_0 = arith.constant 0 : i32
    %c0_i32_1 = arith.constant 0 : i32
    return %c0_i32, %c0_i32_0 : i32, i32
  }
  func.func @transform_4(%arg0: i32) -> (i32, i32, i32, i32) {
    %c0_i32 = arith.constant 0 : i32
    %c0_i32_0 = arith.constant 0 : i32
    %c0_i32_1 = arith.constant 0 : i32
    %c0_i32_2 = arith.constant 0 : i32
    return %arg0, %c0_i32, %c0_i32_0, %c0_i32_1 : i32, i32, i32, i32
  }
  func.func @transform_5(%arg0: i32) -> (i32, i32, i32) {
    %c0_i32 = arith.constant 0 : i32
    %c0_i32_0 = arith.constant 0 : i32
    %c0_i32_1 = arith.constant 0 : i32
    return %arg0, %c0_i32, %c0_i32_0 : i32, i32, i32
  }
  func.func @transform_6(%arg0: i32) -> (i32, i32, i32) {
    %c0_i32 = arith.constant 0 : i32
    %c0_i32_0 = arith.constant 0 : i32
    %c0_i32_1 = arith.constant 0 : i32
    return %arg0, %c0_i32, %c0_i32_0 : i32, i32, i32
  }
}

module attributes {stable_mosaic.version = 11 : i64} {
  func.func @_bnrelu_flat_kernel(%arg0: i32, %arg1: memref<16x128xf32, #tpu.memory_space<vmem>>, %arg2: memref<1x128xf32, #tpu.memory_space<vmem>>, %arg3: memref<1x128xf32, #tpu.memory_space<vmem>>, %arg4: memref<16x128xf32, #tpu.memory_space<vmem>>) attributes {dimension_semantics = [#tpu.dimension_semantics<parallel>], iteration_bounds = array<i64: 1>, scalar_prefetch = 0 : i64, scratch_operands = 0 : i64, tpu.core_type = #tpu.core_type<tc>, window_params = [{transform_indices = @transform_0, window_bounds = array<i64: 16, 128>}, {pipeline_mode = #tpu.pipeline_mode<synchronous>, transform_indices = @transform_1, window_bounds = array<i64: 1, 128>}, {pipeline_mode = #tpu.pipeline_mode<synchronous>, transform_indices = @transform_2, window_bounds = array<i64: 1, 128>}, {transform_indices = @transform_3, window_bounds = array<i64: 16, 128>}]} {
    %c0 = arith.constant 0 : index
    %c0_0 = arith.constant 0 : index
    %0 = vector.load %arg1[%c0, %c0_0] : memref<16x128xf32, #tpu.memory_space<vmem>>, vector<16x128xf32>
    %c0_1 = arith.constant 0 : index
    %c0_2 = arith.constant 0 : index
    %1 = vector.load %arg2[%c0_1, %c0_2] : memref<1x128xf32, #tpu.memory_space<vmem>>, vector<1x128xf32>
    %2 = vector.broadcast %1 : vector<1x128xf32> to vector<16x128xf32>
    %3 = arith.mulf %0, %2 : vector<16x128xf32>
    %c0_3 = arith.constant 0 : index
    %c0_4 = arith.constant 0 : index
    %4 = vector.load %arg3[%c0_3, %c0_4] : memref<1x128xf32, #tpu.memory_space<vmem>>, vector<1x128xf32>
    %5 = vector.broadcast %4 : vector<1x128xf32> to vector<16x128xf32>
    %6 = arith.addf %3, %5 : vector<16x128xf32>
    %cst = arith.constant 0.000000e+00 : f32
    %7 = vector.broadcast %cst : f32 to vector<16x128xf32>
    %8 = arith.maximumf %6, %7 : vector<16x128xf32>
    %c0_5 = arith.constant 0 : index
    %c0_6 = arith.constant 0 : index
    %9 = vector.load %arg4[%c0_5, %c0_6] : memref<16x128xf32, #tpu.memory_space<vmem>>, vector<16x128xf32>
    tpu.vector_store %arg4[%c0_5, %c0_6], %8 {strides = array<i32>} : memref<16x128xf32, #tpu.memory_space<vmem>>, vector<16x128xf32>,
    return
  }
  func.func @transform_0(%arg0: i32) -> (i32, i32) {
    %c0_i32 = arith.constant 0 : i32
    %c0_i32_0 = arith.constant 0 : i32
    return %arg0, %c0_i32 : i32, i32
  }
  func.func @transform_1(%arg0: i32) -> (i32, i32) {
    %c0_i32 = arith.constant 0 : i32
    %c0_i32_0 = arith.constant 0 : i32
    %c0_i32_1 = arith.constant 0 : i32
    return %c0_i32, %c0_i32_0 : i32, i32
  }
  func.func @transform_2(%arg0: i32) -> (i32, i32) {
    %c0_i32 = arith.constant 0 : i32
    %c0_i32_0 = arith.constant 0 : i32
    %c0_i32_1 = arith.constant 0 : i32
    return %c0_i32, %c0_i32_0 : i32, i32
  }
  func.func @transform_3(%arg0: i32) -> (i32, i32) {
    %c0_i32 = arith.constant 0 : i32
    %c0_i32_0 = arith.constant 0 : i32
    return %arg0, %c0_i32 : i32, i32
  }
}

module attributes {stable_mosaic.version = 11 : i64} {
  func.func @_conv2_kernel(%arg0: i32, %arg1: memref<1x16x16x4xf32, #tpu.memory_space<vmem>>, %arg2: memref<1x4xf32, #tpu.memory_space<vmem>>, %arg3: memref<1x4xf32, #tpu.memory_space<vmem>>, %arg4: memref<36x4xf32, #tpu.memory_space<vmem>>, %arg5: memref<1x4xf32, #tpu.memory_space<vmem>>, %arg6: memref<1x16x16x4xf32, #tpu.memory_space<vmem>>, %arg7: memref<1x1x4xf32, #tpu.memory_space<vmem>>, %arg8: memref<1x1x4xf32, #tpu.memory_space<vmem>>, %arg9: memref<18x18x4xf32, #tpu.memory_space<vmem>>) attributes {dimension_semantics = [#tpu.dimension_semantics<parallel>], iteration_bounds = array<i64: 2>, scalar_prefetch = 0 : i64, scratch_operands = 1 : i64, tpu.core_type = #tpu.core_type<tc>, window_params = [{transform_indices = @transform_0, window_bounds = array<i64: 1, 16, 16, 4>}, {pipeline_mode = #tpu.pipeline_mode<synchronous>, transform_indices = @transform_1, window_bounds = array<i64: 1, 4>}, {pipeline_mode = #tpu.pipeline_mode<synchronous>, transform_indices = @transform_2, window_bounds = array<i64: 1, 4>}, {pipeline_mode = #tpu.pipeline_mode<synchronous>, transform_indices = @transform_3, window_bounds = array<i64: 36, 4>}, {pipeline_mode = #tpu.pipeline_mode<synchronous>, transform_indices = @transform_4, window_bounds = array<i64: 1, 4>}, {transform_indices = @transform_5, window_bounds = array<i64: 1, 16, 16, 4>}, {transform_indices = @transform_6, window_bounds = array<i64: 1, 1, 4>}, {transform_indices = @transform_7, window_bounds = array<i64: 1, 1, 4>}]} {
    %cst = arith.constant 0.000000e+00 : f32
    %0 = vector.broadcast %cst : f32 to vector<18x18x4xf32>
    %c0 = arith.constant 0 : index
    %c0_0 = arith.constant 0 : index
    %c0_1 = arith.constant 0 : index
    %1 = vector.load %arg9[%c0, %c0_0, %c0_1] : memref<18x18x4xf32, #tpu.memory_space<vmem>>, vector<18x18x4xf32>
    tpu.vector_store %arg9[%c0, %c0_0, %c0_1], %0 {strides = array<i32>} : memref<18x18x4xf32, #tpu.memory_space<vmem>>, vector<18x18x4xf32>,
    %c0_2 = arith.constant 0 : index
    %c0_3 = arith.constant 0 : index
    %c0_4 = arith.constant 0 : index
    %c0_5 = arith.constant 0 : index
    %2 = vector.load %arg1[%c0_2, %c0_3, %c0_4, %c0_5] : memref<1x16x16x4xf32, #tpu.memory_space<vmem>>, vector<1x16x16x4xf32>
    %3 = vector.shape_cast %2 : vector<1x16x16x4xf32> to vector<16x16x4xf32>
    %c0_6 = arith.constant 0 : index
    %c0_7 = arith.constant 0 : index
    %4 = vector.load %arg2[%c0_6, %c0_7] : memref<1x4xf32, #tpu.memory_space<vmem>>, vector<1x4xf32>
    %5 = vector.shape_cast %4 : vector<1x4xf32> to vector<1x1x4xf32>
    %6 = vector.broadcast %5 : vector<1x1x4xf32> to vector<16x16x4xf32>
    %7 = arith.mulf %3, %6 : vector<16x16x4xf32>
    %c0_8 = arith.constant 0 : index
    %c0_9 = arith.constant 0 : index
    %8 = vector.load %arg3[%c0_8, %c0_9] : memref<1x4xf32, #tpu.memory_space<vmem>>, vector<1x4xf32>
    %9 = vector.shape_cast %8 : vector<1x4xf32> to vector<1x1x4xf32>
    %10 = vector.broadcast %9 : vector<1x1x4xf32> to vector<16x16x4xf32>
    %11 = arith.addf %7, %10 : vector<16x16x4xf32>
    %cst_10 = arith.constant 0.000000e+00 : f32
    %12 = vector.broadcast %cst_10 : f32 to vector<16x16x4xf32>
    %13 = arith.maximumf %11, %12 : vector<16x16x4xf32>
    %c1 = arith.constant 1 : index
    %c1_11 = arith.constant 1 : index
    %c0_12 = arith.constant 0 : index
    %14 = vector.load %arg9[%c1, %c1_11, %c0_12] : memref<18x18x4xf32, #tpu.memory_space<vmem>>, vector<16x16x4xf32>
    tpu.vector_store %arg9[%c1, %c1_11, %c0_12], %13 {strides = array<i32>} : memref<18x18x4xf32, #tpu.memory_space<vmem>>, vector<16x16x4xf32>,
    %c0_13 = arith.constant 0 : index
    %c0_14 = arith.constant 0 : index
    %c0_15 = arith.constant 0 : index
    %15 = vector.load %arg9[%c0_13, %c0_14, %c0_15] : memref<18x18x4xf32, #tpu.memory_space<vmem>>, vector<18x18x4xf32>
    %16 = vector.extract_strided_slice %15 {offsets = [0, 0, 0], sizes = [16, 16, 4], strides = [1, 1, 1]} : vector<18x18x4xf32> to vector<16x16x4xf32>
    %17 = vector.shape_cast %16 : vector<16x16x4xf32> to vector<256x4xf32>
    %18 = vector.extract_strided_slice %15 {offsets = [0, 1, 0], sizes = [16, 16, 4], strides = [1, 1, 1]} : vector<18x18x4xf32> to vector<16x16x4xf32>
    %19 = vector.shape_cast %18 : vector<16x16x4xf32> to vector<256x4xf32>
    %20 = vector.extract_strided_slice %15 {offsets = [0, 2, 0], sizes = [16, 16, 4], strides = [1, 1, 1]} : vector<18x18x4xf32> to vector<16x16x4xf32>
    %21 = vector.shape_cast %20 : vector<16x16x4xf32> to vector<256x4xf32>
    %22 = vector.extract_strided_slice %15 {offsets = [1, 0, 0], sizes = [16, 16, 4], strides = [1, 1, 1]} : vector<18x18x4xf32> to vector<16x16x4xf32>
    %23 = vector.shape_cast %22 : vector<16x16x4xf32> to vector<256x4xf32>
    %24 = vector.extract_strided_slice %15 {offsets = [1, 1, 0], sizes = [16, 16, 4], strides = [1, 1, 1]} : vector<18x18x4xf32> to vector<16x16x4xf32>
    %25 = vector.shape_cast %24 : vector<16x16x4xf32> to vector<256x4xf32>
    %26 = vector.extract_strided_slice %15 {offsets = [1, 2, 0], sizes = [16, 16, 4], strides = [1, 1, 1]} : vector<18x18x4xf32> to vector<16x16x4xf32>
    %27 = vector.shape_cast %26 : vector<16x16x4xf32> to vector<256x4xf32>
    %28 = vector.extract_strided_slice %15 {offsets = [2, 0, 0], sizes = [16, 16, 4], strides = [1, 1, 1]} : vector<18x18x4xf32> to vector<16x16x4xf32>
    %29 = vector.shape_cast %28 : vector<16x16x4xf32> to vector<256x4xf32>
    %30 = vector.extract_strided_slice %15 {offsets = [2, 1, 0], sizes = [16, 16, 4], strides = [1, 1, 1]} : vector<18x18x4xf32> to vector<16x16x4xf32>
    %31 = vector.shape_cast %30 : vector<16x16x4xf32> to vector<256x4xf32>
    %32 = vector.extract_strided_slice %15 {offsets = [2, 2, 0], sizes = [16, 16, 4], strides = [1, 1, 1]} : vector<18x18x4xf32> to vector<16x16x4xf32>
    %33 = vector.shape_cast %32 : vector<16x16x4xf32> to vector<256x4xf32>
    %34 = tpu.concatenate %17, %19, %21, %23, %25, %27, %29, %31, %33 in 1 : vector<256x4xf32>, vector<256x4xf32>, vector<256x4xf32>, vector<256x4xf32>, vector<256x4xf32>, vector<256x4xf32>, vector<256x4xf32>, vector<256x4xf32>, vector<256x4xf32> -> vector<256x36xf32>
    %c0_16 = arith.constant 0 : index
    %c0_17 = arith.constant 0 : index
    %35 = vector.load %arg4[%c0_16, %c0_17] : memref<36x4xf32, #tpu.memory_space<vmem>>, vector<36x4xf32>
    %cst_18 = arith.constant dense<0.000000e+00> : vector<256x4xf32>
    %36 = tpu.matmul %34, %35, %cst_18 {dimension_numbers = #tpu.dot_dimension_numbers<[1], [0], [0], [1], [0, 0, 1, 1], [], []>} : vector<256x36xf32>, vector<36x4xf32>, vector<256x4xf32> -> vector<256x4xf32>
    %c0_19 = arith.constant 0 : index
    %c0_20 = arith.constant 0 : index
    %37 = vector.load %arg5[%c0_19, %c0_20] : memref<1x4xf32, #tpu.memory_space<vmem>>, vector<1x4xf32>
    %38 = vector.broadcast %37 : vector<1x4xf32> to vector<256x4xf32>
    %39 = arith.addf %36, %38 : vector<256x4xf32>
    %40 = vector.shape_cast %39 : vector<256x4xf32> to vector<16x16x4xf32>
    %c0_21 = arith.constant 0 : index
    %c0_22 = arith.constant 0 : index
    %c0_23 = arith.constant 0 : index
    %c0_24 = arith.constant 0 : index
    %41 = vector.load %arg6[%c0_21, %c0_22, %c0_23, %c0_24] : memref<1x16x16x4xf32, #tpu.memory_space<vmem>>, vector<1x16x16x4xf32>
    %42 = vector.shape_cast %41 : vector<1x16x16x4xf32> to vector<16x16x4xf32>
    %43 = vector.shape_cast %40 : vector<16x16x4xf32> to vector<1x16x16x4xf32>
    tpu.vector_store %arg6[%c0_21, %c0_22, %c0_23, %c0_24], %43 {strides = array<i32>} : memref<1x16x16x4xf32, #tpu.memory_space<vmem>>, vector<1x16x16x4xf32>,
    %cst_25 = arith.constant dense<0.000000e+00> : vector<4xf32>
    %44 = vector.multi_reduction <add>, %39, %cst_25 [0] : vector<256x4xf32> to vector<4xf32>
    %45 = vector.shape_cast %44 : vector<4xf32> to vector<1x4xf32>
    %c0_26 = arith.constant 0 : index
    %c0_27 = arith.constant 0 : index
    %c0_28 = arith.constant 0 : index
    %46 = vector.load %arg7[%c0_26, %c0_27, %c0_28] : memref<1x1x4xf32, #tpu.memory_space<vmem>>, vector<1x1x4xf32>
    %47 = vector.shape_cast %46 : vector<1x1x4xf32> to vector<1x4xf32>
    %48 = vector.shape_cast %45 : vector<1x4xf32> to vector<1x1x4xf32>
    tpu.vector_store %arg7[%c0_26, %c0_27, %c0_28], %48 {strides = array<i32>} : memref<1x1x4xf32, #tpu.memory_space<vmem>>, vector<1x1x4xf32>,
    %49 = arith.mulf %39, %39 : vector<256x4xf32>
    %cst_29 = arith.constant dense<0.000000e+00> : vector<4xf32>
    %50 = vector.multi_reduction <add>, %49, %cst_29 [0] : vector<256x4xf32> to vector<4xf32>
    %51 = vector.shape_cast %50 : vector<4xf32> to vector<1x4xf32>
    %c0_30 = arith.constant 0 : index
    %c0_31 = arith.constant 0 : index
    %c0_32 = arith.constant 0 : index
    %52 = vector.load %arg8[%c0_30, %c0_31, %c0_32] : memref<1x1x4xf32, #tpu.memory_space<vmem>>, vector<1x1x4xf32>
    %53 = vector.shape_cast %52 : vector<1x1x4xf32> to vector<1x4xf32>
    %54 = vector.shape_cast %51 : vector<1x4xf32> to vector<1x1x4xf32>
    tpu.vector_store %arg8[%c0_30, %c0_31, %c0_32], %54 {strides = array<i32>} : memref<1x1x4xf32, #tpu.memory_space<vmem>>, vector<1x1x4xf32>,
    return
  }
  func.func @transform_0(%arg0: i32) -> (i32, i32, i32, i32) {
    %c0_i32 = arith.constant 0 : i32
    %c0_i32_0 = arith.constant 0 : i32
    %c0_i32_1 = arith.constant 0 : i32
    %c0_i32_2 = arith.constant 0 : i32
    return %arg0, %c0_i32, %c0_i32_0, %c0_i32_1 : i32, i32, i32, i32
  }
  func.func @transform_1(%arg0: i32) -> (i32, i32) {
    %c0_i32 = arith.constant 0 : i32
    %c0_i32_0 = arith.constant 0 : i32
    %c0_i32_1 = arith.constant 0 : i32
    return %c0_i32, %c0_i32_0 : i32, i32
  }
  func.func @transform_2(%arg0: i32) -> (i32, i32) {
    %c0_i32 = arith.constant 0 : i32
    %c0_i32_0 = arith.constant 0 : i32
    %c0_i32_1 = arith.constant 0 : i32
    return %c0_i32, %c0_i32_0 : i32, i32
  }
  func.func @transform_3(%arg0: i32) -> (i32, i32) {
    %c0_i32 = arith.constant 0 : i32
    %c0_i32_0 = arith.constant 0 : i32
    %c0_i32_1 = arith.constant 0 : i32
    return %c0_i32, %c0_i32_0 : i32, i32
  }
  func.func @transform_4(%arg0: i32) -> (i32, i32) {
    %c0_i32 = arith.constant 0 : i32
    %c0_i32_0 = arith.constant 0 : i32
    %c0_i32_1 = arith.constant 0 : i32
    return %c0_i32, %c0_i32_0 : i32, i32
  }
  func.func @transform_5(%arg0: i32) -> (i32, i32, i32, i32) {
    %c0_i32 = arith.constant 0 : i32
    %c0_i32_0 = arith.constant 0 : i32
    %c0_i32_1 = arith.constant 0 : i32
    %c0_i32_2 = arith.constant 0 : i32
    return %arg0, %c0_i32, %c0_i32_0, %c0_i32_1 : i32, i32, i32, i32
  }
  func.func @transform_6(%arg0: i32) -> (i32, i32, i32) {
    %c0_i32 = arith.constant 0 : i32
    %c0_i32_0 = arith.constant 0 : i32
    %c0_i32_1 = arith.constant 0 : i32
    return %arg0, %c0_i32, %c0_i32_0 : i32, i32, i32
  }
  func.func @transform_7(%arg0: i32) -> (i32, i32, i32) {
    %c0_i32 = arith.constant 0 : i32
    %c0_i32_0 = arith.constant 0 : i32
    %c0_i32_1 = arith.constant 0 : i32
    return %arg0, %c0_i32, %c0_i32_0 : i32, i32, i32
  }
}

</mosaic_0001>

<bundles_post_ra>
// kernel: tile.10
= control target key start
LH: loop header
LB: loop body
LE: loop exit
PB: predicated region body
PF: predicated region fallthrough
CT: control target
= control target key end

     0   :  { %s40_s0 = inlined_call_operand.vmem [shape: f32[4], index: 0, kind: input, shape index: {}]   ;;  %s41_s1 = inlined_call_operand.vmem [shape: f32[32,4], index: 1, kind: output, shape index: {}]  }
   0x1   :  { %v4_v0 = vld [vmem:[%s40_s0] ss:$0 sm:$0xff] }
   0x2   :  { %5 = vst [vmem:[%s41_s1] sm:$0xff] %v4_v0  ;;  %12 = vst [vmem:[%s41_s1 + $0x8] sm:$0xff] %v4_v0 }
   0x3   :  { %13 = vst [vmem:[%s41_s1 + $0x10] sm:$0xff] %v4_v0  ;;  %14 = vst [vmem:[%s41_s1 + $0x18] sm:$0xff] %v4_v0 }

// kernel: tile.11
= control target key start
LH: loop header
LB: loop body
LE: loop exit
PB: predicated region body
PF: predicated region fallthrough
CT: control target
= control target key end

     0   :  { %s259_s10 = smov 124   ;;  %s260_s11 = smov 116   ;;  %vm3_vm0 = vcmask 31744   ;;  %vm9_vm1 = vcmask 1048544   ;;  %vm15_vm2 = vcmask 1015744   ;;  %vm21_vm3 = vcmask 982944   ;;  %s399_s0 = inlined_call_operand.vmem [shape: f32[32,4], index: 0, kind: input, shape index: {}]   ;;  %s400_s1 = inlined_call_operand.vmem [shape: f32[1,128], index: 1, kind: output, shape index: {}]  }
   0x1   :  { %v197_v0 = vld [vmem:[%s399_s0 + $0x1f] sm:$0x1]   ;;  %v199_v1 = vld [vmem:[%s399_s0 + $0x1d] sm:$0x1]   ;;  %v198_v2 = vld [vmem:[%s399_s0 + $0x1e] sm:$0x1]  }
   0x2   :  { %7 = vrot.lane.b32.xlu0 %v197_v0, %s259_s10  ;;  %19 = vrot.lane.b32.xlu1 %v199_v1, %s260_s11  ;;  %v200_v3 = vld [vmem:[%s399_s0 + $0x1c] sm:$0x1]   ;;  %s261_s16 = smov 120   ;;  %s262_s17 = smov 112   ;;  %v201_v4 = vld [vmem:[%s399_s0 + $0x1b] sm:$0x1]  }
   0x3   :  { %v202_v5 = vld [vmem:[%s399_s0 + $0x1a] sm:$0x1]   ;;  %s263_s22 = smov 108   ;;  %s264_s23 = smov 104   ;;  %v203_v6 = vld [vmem:[%s399_s0 + $0x19] sm:$0x1]  }
   0x4   :  { %v204_v7 = vld [vmem:[%s399_s0 + $0x18] sm:$0x1]   ;;  %s265_s28 = smov 100   ;;  %s266_s29 = smov 96   ;;  %v205_v8 = vld [vmem:[%s399_s0 + $0x17] sm:$0x1]  }
   0x5   :  { %v206_v9 = vld [vmem:[%s399_s0 + $0x16] sm:$0x1]   ;;  %v2_v10 = vld [vmem:[%s399_s0] sm:$0x1]   ;;  %s267_s7 = smov 92   ;;  %s268_s8 = smov 88  }
   0x6   :  { %13 = vrot.lane.b32.xlu0 %v198_v2, %s261_s16  ;;  %25 = vrot.lane.b32.xlu1 %v200_v3, %s262_s17  ;;  %4 = vst.msk [vmem:[#allocation0] sm:$0x1] %vm3_vm0, %v2_v10   ;;  %v207_v11 = vld [vmem:[%s399_s0 + $0x15] sm:$0x1]   ;;  %v208_v12 = vld [vmem:[%s399_s0 + $0x14] sm:$0x1]  }
   0x7   :  { %s269_s13 = smov 84   ;;  %s270_s14 = smov 80   ;;  %v209_v13 = vld [vmem:[%s399_s0 + $0x13] sm:$0x1]   ;;  %v210_v14 = vld [vmem:[%s399_s0 + $0x12] sm:$0x1]  }
   0x8   :  { %s271_s19 = smov 76   ;;  %s272_s20 = smov 72   ;;  %v211_v15 = vld [vmem:[%s399_s0 + $0x11] sm:$0x1]   ;;  %v212_v16 = vld [vmem:[%s399_s0 + $0x10] sm:$0x1]  }
   0x9   :  { %s273_s25 = smov 68   ;;  %s274_s26 = smov 64   ;;  %v213_v17 = vld [vmem:[%s399_s0 + $0xf] sm:$0x1]   ;;  %v214_v18 = vld [vmem:[%s399_s0 + $0xe] sm:$0x1]  }
   0xa   :  { %31 = vrot.lane.b32.xlu0 %v201_v4, %s263_s22  ;;  %37 = vrot.lane.b32.xlu1 %v202_v5, %s264_s23  ;;  %s275_s2 = smov 60   ;;  %s276_s3 = smov 56   ;;  %v215_v19 = vld [vmem:[%s399_s0 + $0xd] sm:$0x1]   ;;  %v216_v20 = vld [vmem:[%s399_s0 + $0xc] sm:$0x1]  }
   0xb   :  { %s278_s9 = smov 48   ;;  %v217_v21 = vld [vmem:[%s399_s0 + $0xb] sm:$0x1]   ;;  %v218_v22 = vld [vmem:[%s399_s0 + $0xa] sm:$0x1]   ;;  %s280_s15 = smov 40  }
   0xc   :  { %v219_v23 = vld [vmem:[%s399_s0 + $0x9] sm:$0x1]   ;;  %v220_v24 = vld [vmem:[%s399_s0 + $0x8] sm:$0x1]   ;;  %s282_s21 = smov 32   ;;  %s284_s27 = smov 24  }
   0xd   :  { %v221_v25 = vld [vmem:[%s399_s0 + $0x7] sm:$0x1]   ;;  %v222_v26 = vld [vmem:[%s399_s0 + $0x6] sm:$0x1]   ;;  %v223_v27 = vld [vmem:[%s399_s0 + $0x5] sm:$0x1]  }
   0xe   :  { %43 = vrot.lane.b32.xlu0 %v203_v6, %s265_s28  ;;  %49 = vrot.lane.b32.xlu1 %v204_v7, %s266_s29  ;;  %v224_v28 = vld [vmem:[%s399_s0 + $0x4] sm:$0x1]   ;;  %s286_s4 = smov 16   ;;  %v225_v29 = vld [vmem:[%s399_s0 + $0x3] sm:$0x1]   ;;  %s288_s10 = smov 8  }
   0xf   :  { %v226_v30 = vld [vmem:[%s399_s0 + $0x2] sm:$0x1]   ;;  %v227_v31 = vld [vmem:[%s399_s0 + $0x1] sm:$0x1]   ;;  %s289_s0 = smov 4   ;;  %vm27_vm4 = vcmask 950144  }
  0x10   :  { %vm33_vm5 = vcmask 917344   ;;  %vm39_vm6 = vcmask 884544   ;;  %vm45_vm7 = vcmask 851744   ;;  %vm51_vm8 = vcmask 818944  }
  0x11   :  { %vm57_vm9 = vcmask 786144   ;;  %vm63_vm10 = vcmask 753344   ;;  %vm69_vm11 = vcmask 720544   ;;  %vm75_vm12 = vcmask 687744  }
  0x12   :  { %55 = vrot.lane.b32.xlu0 %v205_v8, %s267_s7  ;;  %61 = vrot.lane.b32.xlu1 %v206_v9, %s268_s8  ;;  %s277_s8 = smov 52   ;;  %vm81_vm13 = vcmask 654944   ;;  %vm87_vm14 = vcmask 622144   ;;  %vm93_vm15 = vcmask 589344   ;;  %vm99_vm0 = vcmask 556544  }
  0x16   :  { %67 = vrot.lane.b32.xlu0 %v207_v11, %s269_s13  ;;  %73 = vrot.lane.b32.xlu1 %v208_v12, %s270_s14  ;;  %s279_s14 = smov 44  }
  0x1a   :  { %79 = vrot.lane.b32.xlu0 %v209_v13, %s271_s19  ;;  %85 = vrot.lane.b32.xlu1 %v210_v14, %s272_s20  ;;  %s281_s20 = smov 36  }
  0x1e   :  { %91 = vrot.lane.b32.xlu0 %v211_v15, %s273_s25  ;;  %97 = vrot.lane.b32.xlu1 %v212_v16, %s274_s26  ;;  %s283_s26 = smov 28  }
  0x22   :  { %103 = vrot.lane.b32.xlu0 %v213_v17, %s275_s2  ;;  %109 = vrot.lane.b32.xlu1 %v214_v18, %s276_s3  ;;  %s285_s3 = smov 20  }
  0x26   :  { %115 = vrot.lane.b32.xlu0 %v215_v19, %s277_s8  ;;  %121 = vrot.lane.b32.xlu1 %v216_v20, %s278_s9  ;;  %s287_s9 = smov 12  }
  0x2a   :  { %127 = vrot.lane.b32.xlu0 %v217_v21, %s279_s14  ;;  %133 = vrot.lane.b32.xlu1 %v218_v22, %s280_s15 }
  0x2e   :  { %139 = vrot.lane.b32.xlu0 %v219_v23, %s281_s20  ;;  %145 = vrot.lane.b32.xlu1 %v220_v24, %s282_s21 }
  0x32   :  { %151 = vrot.lane.b32.xlu0 %v221_v25, %s283_s26  ;;  %157 = vrot.lane.b32.xlu1 %v222_v26, %s284_s27 }
  0x36   :  { %163 = vrot.lane.b32.xlu0 %v223_v27, %s285_s3  ;;  %169 = vrot.lane.b32.xlu1 %v224_v28, %s286_s4 }
  0x3a   :  { %175 = vrot.lane.b32.xlu0 %v225_v29, %s287_s9  ;;  %181 = vrot.lane.b32.xlu1 %v226_v30, %s288_s10 }
  0x3e   :  { %187 = vrot.lane.b32.xlu0 %v227_v31, %s289_s0 }
  0x74   :  { %v8_v32 = vpop.permute.xlu0 %7   ;;  %v20_v33 = vpop.permute.xlu1 %19  }
  0x75   :  { %10 = vst.msk [vmem:[#allocation0] sm:$0x1] %vm9_vm1, %v8_v32   ;;  %vm105_vm1 = vcmask 523744  }
  0x78   :  { %v14_v34 = vpop.permute.xlu0 %13   ;;  %v26_v35 = vpop.permute.xlu1 %25  }
  0x79   :  { %16 = vst.msk [vmem:[#allocation0] sm:$0x1] %vm15_vm2, %v14_v34   ;;  %vm111_vm2 = vcmask 490944  }
  0x7a   :  { %22 = vst.msk [vmem:[#allocation0] sm:$0x1] %vm21_vm3, %v20_v33   ;;  %vm117_vm3 = vcmask 458144  }
  0x7b   :  { %28 = vst.msk [vmem:[#allocation0] sm:$0x1] %vm27_vm4, %v26_v35   ;;  %vm123_vm4 = vcmask 425344  }
  0x7c   :  { %v32_v36 = vpop.permute.xlu0 %31   ;;  %v38_v37 = vpop.permute.xlu1 %37  }
  0x7d   :  { %34 = vst.msk [vmem:[#allocation0] sm:$0x1] %vm33_vm5, %v32_v36   ;;  %vm129_vm5 = vcmask 392544  }
  0x7e   :  { %40 = vst.msk [vmem:[#allocation0] sm:$0x1] %vm39_vm6, %v38_v37   ;;  %vm135_vm6 = vcmask 359744  }
  0x80   :  { %v44_v38 = vpop.permute.xlu0 %43   ;;  %v50_v39 = vpop.permute.xlu1 %49  }
  0x81   :  { %46 = vst.msk [vmem:[#allocation0] sm:$0x1] %vm45_vm7, %v44_v38   ;;  %vm141_vm7 = vcmask 326944  }
  0x82   :  { %52 = vst.msk [vmem:[#allocation0] sm:$0x1] %vm51_vm8, %v50_v39   ;;  %vm147_vm8 = vcmask 294144  }
  0x84   :  { %v56_v40 = vpop.permute.xlu0 %55   ;;  %v62_v41 = vpop.permute.xlu1 %61  }
  0x85   :  { %58 = vst.msk [vmem:[#allocation0] sm:$0x1] %vm57_vm9, %v56_v40   ;;  %vm153_vm9 = vcmask 261344  }
  0x86   :  { %64 = vst.msk [vmem:[#allocation0] sm:$0x1] %vm63_vm10, %v62_v41   ;;  %vm159_vm10 = vcmask 228544  }
  0x88   :  { %v68_v42 = vpop.permute.xlu0 %67   ;;  %v74_v43 = vpop.permute.xlu1 %73  }
  0x89   :  { %70 = vst.msk [vmem:[#allocation0] sm:$0x1] %vm69_vm11, %v68_v42   ;;  %vm165_vm11 = vcmask 195744  }
  0x8a   :  { %76 = vst.msk [vmem:[#allocation0] sm:$0x1] %vm75_vm12, %v74_v43   ;;  %vm171_vm12 = vcmask 162944  }
  0x8c   :  { %v80_v44 = vpop.permute.xlu0 %79   ;;  %v86_v45 = vpop.permute.xlu1 %85  }
  0x8d   :  { %82 = vst.msk [vmem:[#allocation0] sm:$0x1] %vm81_vm13, %v80_v44   ;;  %vm177_vm13 = vcmask 130144  }
  0x8e   :  { %88 = vst.msk [vmem:[#allocation0] sm:$0x1] %vm87_vm14, %v86_v45   ;;  %vm183_vm14 = vcmask 97344  }
  0x90   :  { %v92_v46 = vpop.permute.xlu0 %91   ;;  %v98_v47 = vpop.permute.xlu1 %97  }
  0x91   :  { %94 = vst.msk [vmem:[#allocation0] sm:$0x1] %vm93_vm15, %v92_v46   ;;  %vm189_vm15 = vcmask 64544  }
  0x92   :  { %100 = vst.msk [vmem:[#allocation0] sm:$0x1] %vm99_vm0, %v98_v47  }
  0x94   :  { %v104_v48 = vpop.permute.xlu0 %103   ;;  %v110_v49 = vpop.permute.xlu1 %109  }
  0x95   :  { %106 = vst.msk [vmem:[#allocation0] sm:$0x1] %vm105_vm1, %v104_v48  }
  0x96   :  { %112 = vst.msk [vmem:[#allocation0] sm:$0x1] %vm111_vm2, %v110_v49  }
  0x98   :  { %v116_v50 = vpop.permute.xlu0 %115   ;;  %v122_v51 = vpop.permute.xlu1 %121  }
  0x99   :  { %118 = vst.msk [vmem:[#allocation0] sm:$0x1] %vm117_vm3, %v116_v50  }
  0x9a   :  { %124 = vst.msk [vmem:[#allocation0] sm:$0x1] %vm123_vm4, %v122_v51  }
  0x9c   :  { %v128_v52 = vpop.permute.xlu0 %127   ;;  %v134_v53 = vpop.permute.xlu1 %133  }
  0x9d   :  { %130 = vst.msk [vmem:[#allocation0] sm:$0x1] %vm129_vm5, %v128_v52  }
  0x9e   :  { %136 = vst.msk [vmem:[#allocation0] sm:$0x1] %vm135_vm6, %v134_v53  }
  0xa0   :  { %v140_v54 = vpop.permute.xlu0 %139   ;;  %v146_v55 = vpop.permute.xlu1 %145  }
  0xa1   :  { %142 = vst.msk [vmem:[#allocation0] sm:$0x1] %vm141_vm7, %v140_v54  }
  0xa2   :  { %148 = vst.msk [vmem:[#allocation0] sm:$0x1] %vm147_vm8, %v146_v55  }
  0xa4   :  { %v152_v56 = vpop.permute.xlu0 %151   ;;  %v158_v57 = vpop.permute.xlu1 %157  }
  0xa5   :  { %154 = vst.msk [vmem:[#allocation0] sm:$0x1] %vm153_vm9, %v152_v56  }
  0xa6   :  { %160 = vst.msk [vmem:[#allocation0] sm:$0x1] %vm159_vm10, %v158_v57  }
  0xa8   :  { %v164_v58 = vpop.permute.xlu0 %163   ;;  %v170_v59 = vpop.permute.xlu1 %169  }
  0xa9   :  { %166 = vst.msk [vmem:[#allocation0] sm:$0x1] %vm165_vm11, %v164_v58  }
  0xaa   :  { %172 = vst.msk [vmem:[#allocation0] sm:$0x1] %vm171_vm12, %v170_v59  }
  0xac   :  { %v176_v60 = vpop.permute.xlu0 %175   ;;  %v182_v61 = vpop.permute.xlu1 %181  }
  0xad   :  { %178 = vst.msk [vmem:[#allocation0] sm:$0x1] %vm177_vm13, %v176_v60  }
  0xae   :  { %184 = vst.msk [vmem:[#allocation0] sm:$0x1] %vm183_vm14, %v182_v61  }
  0xb0   :  { %v188_v62 = vpop.permute.xlu0 %187  }
  0xb1   :  { %190 = vst.msk [vmem:[#allocation0] sm:$0x1] %vm189_vm15, %v188_v62  }
  0xb8   :  { %v194_v63 = vld [vmem:[#allocation0] sm:$0x1] }
  0xb9   :  { %196 = vst [vmem:[%s400_s1] sm:$0x1] %v194_v63 }

// kernel: up_forward.5
= control target key start
LH: loop header
LB: loop body
LE: loop exit
PB: predicated region body
PF: predicated region fallthrough
CT: control target
= control target key end

     0   :  { %s82_s0 = inlined_call_operand.vmem [shape: f32[16,128], index: 0, kind: input, shape index: {}]   ;;  %s83_s1 = inlined_call_operand.vmem [shape: f32[1,128], index: 1, kind: input, shape index: {}]   ;;  %s84_s2 = inlined_call_operand.vmem [shape: f32[1,128], index: 2, kind: input, shape index: {}]   ;;  %s85_s3 = inlined_call_operand.vmem [shape: f32[16,128], index: 3, kind: output, shape index: {}]  }
   0x1   :  { %v14_v0 = vld [vmem:[%s82_s0] sm:$0xff]  ;;  %v15_v4 = vld [vmem:[%s82_s0 + $0x8] sm:$0xff] }
   0x2   :  { %v42_v1 = vld [vmem:[%s83_s1] ss:$0 sm:$0xff] }
   0x3   :  { %v43_v2 = vld [vmem:[%s84_s2] ss:$0 sm:$0xff]  ;;  %v23_v3 = vmul.f32 %v42_v1, %v14_v0  ;;  %v24_v5 = vmul.f32 %v42_v1, %v15_v4 }
   0x5   :  { %v32_v6 = vadd.f32 %v43_v2, %v23_v3  ;;  %v33_v7 = vadd.f32 %v43_v2, %v24_v5 }
   0x7   :  { %v34_v8 = vmax.f32 %v32_v6, 0.0  ;;  %v35_v9 = vmax.f32 %v33_v7, 0.0 }
   0x9   :  { %36 = vst [vmem:[%s85_s3] sm:$0xff] %v34_v8  ;;  %37 = vst [vmem:[%s85_s3 + $0x8] sm:$0xff] %v35_v9 }

// kernel: up_forward.3
= control target key start
LH: loop header
LB: loop body
LE: loop exit
PB: predicated region body
PF: predicated region fallthrough
CT: control target
= control target key end

     0   :  { %s2854_s21 = smov 0   ;;  %s4746_s0 = inlined_call_operand.vmem [shape: f32[2,8,16,4], index: 0, kind: input, shape index: {}]   ;;  %s4747_s1 = inlined_call_operand.vmem [shape: f32[2,16,16,4], index: 1, kind: input, shape index: {}]   ;;  %s4748_s2 = inlined_call_operand.vmem [shape: f32[72,4], index: 2, kind: input, shape index: {}]   ;;  %s4749_s3 = inlined_call_operand.vmem [shape: f32[1,4], index: 3, kind: input, shape index: {}]   ;;  %s4750_s4 = inlined_call_operand.vmem [shape: f32[2,16,16,4], index: 4, kind: output, shape index: {0}]   ;;  %s4751_s5 = inlined_call_operand.vmem [shape: f32[2,1,4], index: 5, kind: output, shape index: {1}]   ;;  %s4752_s6 = inlined_call_operand.vmem [shape: f32[2,1,4], index: 6, kind: output, shape index: {2}]  }
   0x1 LB: > { %s2569_s22 = sadd.s32 4294967295, %s2807_s21   ;;  %p2573_p0 = scmp.ge.s32.totalorder %s2807_s21, 1  ;;  %s2807_s21 = sphi %s2854_s21, %s17_s21  }
   0x2   : > { %p227_p1 = scmp.lt.s32.totalorder %s2807_s21, 3 }
   0x4   : > { %p228_p2 = pnand %p2573_p0, %p227_p1 }
   0x6   : > { %231 = sbr.rel (%p228_p2) target bundleno = 1001 (0x3e9), region = 36 }
   0xd   : > { %p2864_p3 = scmp.lt.s32.totalorder %s2569_s22, 1  ;;  %vm289_vm0 = vcmask 64512   ;;  %v2809_v0 = vmov 0.0   ;;  %vm292_vm1 = vcmask 58368   ;;  %s2810_s28 = smov 4   ;;  %vm362_vm2 = vcmask 31744  }
   0xe   : > { %297 = vst.msk [vmem:[#allocation2 + $0x30] sm:$0xff] %vm289_vm0, %v2809_v0  ;;  %298 = vst.msk [vmem:[#allocation2 + $0x38] sm:$0xff] %vm289_vm0, %v2809_v0  ;;  %vm690_vm3 = vcmask 1046528   ;;  %vm771_vm4 = vcmask 1045504   ;;  %s2811_s9 = smov 8   ;;  %s2812_s10 = smov 16  }
   0xf   : > { %290 = vst.msk [vmem:[#allocation2] sm:$0xff] %vm289_vm0, %v2809_v0  ;;  %291 = vst.msk [vmem:[#allocation2 + $0x8] sm:$0xff] %vm289_vm0, %v2809_v0  ;;  %s4977_s22 = smov (!%p2864_p3, %s2569_s22), 1  ;;  %vm555_vm5 = vcmask 64544   ;;  %s2813_s11 = smov 24   ;;  %vm1678_vm6 = vcmask 130048  }
  0x10   : > { %294 = vst.msk [vmem:[#allocation2 + $0x18] sm:$0xff] %vm289_vm0, %v2809_v0  ;;  %295 = vst.msk [vmem:[#allocation2 + $0x20] sm:$0xff] %vm289_vm0, %v2809_v0  ;;  %s2616_s24 = sshll.u32 %s4977_s22, 8  ;;  %s2615_s29 = sshll.u32 %s4977_s22, 7  ;;  %vm1711_vm7 = vcmask 195584   ;;  %vm1744_vm8 = vcmask 261120  }
  0x11   : > { %300 = vst.msk [vmem:[#allocation2 + $0x48] sm:$0xff] %vm289_vm0, %v2809_v0  ;;  %301 = vst.msk [vmem:[#allocation2 + $0x50] sm:$0xff] %vm289_vm0, %v2809_v0  ;;  %s2934_s27 = scalar_lea.vmem %s4747_s1, %s2616_s24  ;;  %s2950_s8 = scalar_lea.vmem %s4746_s0, %s2615_s29  ;;  %vm1777_vm9 = vcmask 326656   ;;  %vm1810_vm10 = vcmask 392192   ;;  %vm1843_vm11 = vcmask 457728   ;;  %vm1876_vm12 = vcmask 523264  }
  0x12   : > { %303 = vst.msk [vmem:[#allocation2 + $0x60] sm:$0xff] %vm289_vm0, %v2809_v0  ;;  %304 = vst.msk [vmem:[#allocation2 + $0x68] sm:$0xff] %vm289_vm0, %v2809_v0  ;;  %v397_v1 = vld [vmem:[%s2934_s27 + $0x10] sm:$0xff]  ;;  %v395_v2 = vld [vmem:[%s2934_s27] sm:$0xff]  ;;  %s2814_s20 = smov 32   ;;  %s2817_s13 = smov 56  }
  0x13   : > { %306 = vst.msk [vmem:[#allocation2 + $0x78] sm:$0xff] %vm289_vm0, %v2809_v0  ;;  %307 = vst.msk [vmem:[#allocation2 + $0x80] sm:$0xff] %vm289_vm0, %v2809_v0  ;;  %463 = vrot.lane.b32.xlu1 %v397_v1, %s2810_s28  ;;  %459 = vrot.lane.b32.xlu0 %v395_v2, %s2810_s28  ;;  %v398_v3 = vld [vmem:[%s2934_s27 + $0x18] sm:$0xff]  ;;  %v396_v4 = vld [vmem:[%s2934_s27 + $0x8] sm:$0xff]  ;;  %s2818_s14 = smov 64   ;;  %vm1925_vm13 = vcmask 588800   ;;  %s4414_s18 = scalar_lea.vmem %s4750_s4, %s2616_s24 }
  0x14   : > { %309 = vst.msk [vmem:[#allocation2 + $0x90] sm:$0xff] %vm289_vm0, %v2809_v0  ;;  %310 = vst.msk [vmem:[#allocation2 + $0x98] sm:$0xff] %vm289_vm0, %v2809_v0  ;;  %v400_v5 = vld [vmem:[%s2934_s27 + $0x28] sm:$0xff]  ;;  %v399_v6 = vld [vmem:[%s2934_s27 + $0x20] sm:$0xff]  ;;  %vm2348_vm14 = vcmask 24576   ;;  %s288_s26 = scalar_lea.vmem %s4752_s6, %s4977_s22 }
  0x15   : > { %312 = vst.msk [vmem:[#allocation2 + $0xa8] sm:$0xff] %vm289_vm0, %v2809_v0  ;;  %313 = vst.msk [vmem:[#allocation2 + $0xb0] sm:$0xff] %vm289_vm0, %v2809_v0  ;;  %v402_v7 = vld [vmem:[%s2934_s27 + $0x38] sm:$0xff]  ;;  %v401_v8 = vld [vmem:[%s2934_s27 + $0x30] sm:$0xff] }
  0x16   : > { %315 = vst.msk [vmem:[#allocation2 + $0xc0] sm:$0xff] %vm289_vm0, %v2809_v0  ;;  %316 = vst.msk [vmem:[#allocation2 + $0xc8] sm:$0xff] %vm289_vm0, %v2809_v0  ;;  %v345_v9 = vld [vmem:[%s2950_s8] sm:$0xff]  ;;  %v404_v10 = vld [vmem:[%s2934_s27 + $0x48] sm:$0xff] }
  0x17   : > { %318 = vst.msk [vmem:[#allocation2 + $0xd8] sm:$0xff] %vm289_vm0, %v2809_v0  ;;  %319 = vst.msk [vmem:[#allocation2 + $0xe0] sm:$0xff] %vm289_vm0, %v2809_v0  ;;  %465 = vrot.lane.b32.xlu1 %v398_v3, %s2810_s28  ;;  %461 = vrot.lane.b32.xlu0 %v396_v4, %s2810_s28  ;;  %v403_v11 = vld [vmem:[%s2934_s27 + $0x40] sm:$0xff]  ;;  %v346_v12 = vld [vmem:[%s2950_s8 + $0x8] sm:$0xff] }
  0x18   : > { %321 = vst.msk [vmem:[#allocation2 + $0xf0] sm:$0xff] %vm289_vm0, %v2809_v0  ;;  %322 = vst.msk [vmem:[#allocation2 + $0xf8] sm:$0xff] %vm289_vm0, %v2809_v0  ;;  %v348_v13 = vld [vmem:[%s2950_s8 + $0x18] sm:$0xff]  ;;  %v347_v14 = vld [vmem:[%s2950_s8 + $0x10] sm:$0xff] }
  0x19   : > { %324 = vst.msk [vmem:[#allocation2 + $0x108] sm:$0xff] %vm289_vm0, %v2809_v0  ;;  %325 = vst.msk [vmem:[#allocation2 + $0x110] sm:$0xff] %vm289_vm0, %v2809_v0  ;;  %v350_v15 = vld [vmem:[%s2950_s8 + $0x28] sm:$0xff]  ;;  %v349_v16 = vld [vmem:[%s2950_s8 + $0x20] sm:$0xff] }
  0x1a   : > { %327 = vst.msk [vmem:[#allocation2 + $0x120] sm:$0xff] %vm289_vm0, %v2809_v0  ;;  %328 = vst.msk [vmem:[#allocation2 + $0x128] sm:$0xff] %vm289_vm0, %v2809_v0  ;;  %v352_v17 = vld [vmem:[%s2950_s8 + $0x38] sm:$0xff]  ;;  %v351_v18 = vld [vmem:[%s2950_s8 + $0x30] sm:$0xff] }
  0x1b   : > { %330 = vst.msk [vmem:[#allocation2 + $0x138] sm:$0xff] %vm289_vm0, %v2809_v0  ;;  %331 = vst.msk [vmem:[#allocation2 + $0x140] sm:$0xff] %vm289_vm0, %v2809_v0  ;;  %469 = vrot.lane.b32.xlu1 %v400_v5, %s2810_s28  ;;  %467 = vrot.lane.b32.xlu0 %v399_v6, %s2810_s28  ;;  %v406_v19 = vld [vmem:[%s2934_s27 + $0x58] sm:$0xff]  ;;  %v405_v20 = vld [vmem:[%s2934_s27 + $0x50] sm:$0xff] }
  0x1c   : > { %333 = vst.msk [vmem:[#allocation2 + $0x150] sm:$0xff] %vm289_vm0, %v2809_v0  ;;  %334 = vst.msk [vmem:[#allocation2 + $0x158] sm:$0xff] %vm289_vm0, %v2809_v0  ;;  %v354_v21 = vld [vmem:[%s2950_s8 + $0x48] sm:$0xff]  ;;  %v353_v22 = vld [vmem:[%s2950_s8 + $0x40] sm:$0xff] }
  0x1d   : > { %336 = vst.msk [vmem:[#allocation2 + $0x168] sm:$0xff] %vm289_vm0, %v2809_v0  ;;  %337 = vst.msk [vmem:[#allocation2 + $0x170] sm:$0xff] %vm289_vm0, %v2809_v0  ;;  %v408_v23 = vld [vmem:[%s2934_s27 + $0x68] sm:$0xff]  ;;  %v407_v24 = vld [vmem:[%s2934_s27 + $0x60] sm:$0xff] }
  0x1e   : > { %339 = vst.msk [vmem:[#allocation2 + $0x180] sm:$0xff] %vm289_vm0, %v2809_v0  ;;  %340 = vst.msk [vmem:[#allocation2 + $0x188] sm:$0xff] %vm289_vm0, %v2809_v0  ;;  %v410_v25 = vld [vmem:[%s2934_s27 + $0x78] sm:$0xff]  ;;  %v409_v26 = vld [vmem:[%s2934_s27 + $0x70] sm:$0xff] }
  0x1f   : > { %342 = vst.msk [vmem:[#allocation2 + $0x198] sm:$0xff] %vm289_vm0, %v2809_v0  ;;  %343 = vst.msk [vmem:[#allocation2 + $0x1a0] sm:$0xff] %vm289_vm0, %v2809_v0  ;;  %473 = vrot.lane.b32.xlu1 %v402_v7, %s2810_s28  ;;  %471 = vrot.lane.b32.xlu0 %v401_v8, %s2810_s28  ;;  %v356_v27 = vld [vmem:[%s2950_s8 + $0x58] sm:$0xff]  ;;  %v355_v28 = vld [vmem:[%s2950_s8 + $0x50] sm:$0xff] }
  0x20   : > { %299 = vst.msk [vmem:[#allocation2 + $0x40] sm:$0x3] %vm292_vm1, %v2809_v0  ;;  %293 = vst.msk [vmem:[#allocation2 + $0x10] sm:$0x3] %vm292_vm1, %v2809_v0  ;;  %v412_v29 = vld [vmem:[%s2934_s27 + $0x88] sm:$0xff]  ;;  %v411_v30 = vld [vmem:[%s2934_s27 + $0x80] sm:$0xff] }
  0x21   : > { %296 = vst.msk [vmem:[#allocation2 + $0x28] sm:$0x3] %vm292_vm1, %v2809_v0  ;;  %302 = vst.msk [vmem:[#allocation2 + $0x58] sm:$0x3] %vm292_vm1, %v2809_v0  ;;  %v414_v31 = vld [vmem:[%s2934_s27 + $0x98] sm:$0xff]  ;;  %v413_v32 = vld [vmem:[%s2934_s27 + $0x90] sm:$0xff] }
  0x22   : > { %305 = vst.msk [vmem:[#allocation2 + $0x70] sm:$0x3] %vm292_vm1, %v2809_v0  ;;  %308 = vst.msk [vmem:[#allocation2 + $0x88] sm:$0x3] %vm292_vm1, %v2809_v0  ;;  %v358_v33 = vld [vmem:[%s2950_s8 + $0x68] sm:$0xff]  ;;  %v357_v34 = vld [vmem:[%s2950_s8 + $0x60] sm:$0xff] }
  0x23   : > { %311 = vst.msk [vmem:[#allocation2 + $0xa0] sm:$0x3] %vm292_vm1, %v2809_v0  ;;  %314 = vst.msk [vmem:[#allocation2 + $0xb8] sm:$0x3] %vm292_vm1, %v2809_v0  ;;  %477 = vrot.lane.b32.xlu1 %v404_v10, %s2810_s28  ;;  %475 = vrot.lane.b32.xlu0 %v403_v11, %s2810_s28  ;;  %v416_v35 = vld [vmem:[%s2934_s27 + $0xa8] sm:$0xff]  ;;  %v415_v36 = vld [vmem:[%s2934_s27 + $0xa0] sm:$0xff] }
  0x24   : > { %317 = vst.msk [vmem:[#allocation2 + $0xd0] sm:$0x3] %vm292_vm1, %v2809_v0  ;;  %320 = vst.msk [vmem:[#allocation2 + $0xe8] sm:$0x3] %vm292_vm1, %v2809_v0  ;;  %v418_v37 = vld [vmem:[%s2934_s27 + $0xb8] sm:$0xff]  ;;  %v417_v38 = vld [vmem:[%s2934_s27 + $0xb0] sm:$0xff] }
  0x25   : > { %323 = vst.msk [vmem:[#allocation2 + $0x100] sm:$0x3] %vm292_vm1, %v2809_v0  ;;  %326 = vst.msk [vmem:[#allocation2 + $0x118] sm:$0x3] %vm292_vm1, %v2809_v0  ;;  %v360_v39 = vld [vmem:[%s2950_s8 + $0x78] sm:$0xff]  ;;  %v359_v40 = vld [vmem:[%s2950_s8 + $0x70] sm:$0xff] }
  0x26   : > { %329 = vst.msk [vmem:[#allocation2 + $0x130] sm:$0x3] %vm292_vm1, %v2809_v0  ;;  %332 = vst.msk [vmem:[#allocation2 + $0x148] sm:$0x3] %vm292_vm1, %v2809_v0  ;;  %v420_v41 = vld [vmem:[%s2934_s27 + $0xc8] sm:$0xff]  ;;  %v419_v42 = vld [vmem:[%s2934_s27 + $0xc0] sm:$0xff] }
  0x27   : > { %335 = vst.msk [vmem:[#allocation2 + $0x160] sm:$0x3] %vm292_vm1, %v2809_v0  ;;  %338 = vst.msk [vmem:[#allocation2 + $0x178] sm:$0x3] %vm292_vm1, %v2809_v0  ;;  %481 = vrot.lane.b32.xlu1 %v406_v19, %s2810_s28  ;;  %479 = vrot.lane.b32.xlu0 %v405_v20, %s2810_s28  ;;  %v422_v43 = vld [vmem:[%s2934_s27 + $0xd8] sm:$0xff]  ;;  %v421_v44 = vld [vmem:[%s2934_s27 + $0xd0] sm:$0xff] }
  0x28   : > { %341 = vst.msk [vmem:[#allocation2 + $0x190] sm:$0x3] %vm292_vm1, %v2809_v0  ;;  %344 = vst.msk [vmem:[#allocation2 + $0x1a8] sm:$0x3] %vm292_vm1, %v2809_v0  ;;  %v424_v45 = vld [vmem:[%s2934_s27 + $0xe8] sm:$0xff]  ;;  %v423_v46 = vld [vmem:[%s2934_s27 + $0xe0] sm:$0xff] }
  0x29   : > { %365 = vst.msk [vmem:[#allocation2 + $0x31] sm:$0xff] %vm362_vm2, %v345_v9  ;;  %363 = vst.msk [vmem:[#allocation2 + $0x19] sm:$0xff] %vm362_vm2, %v345_v9  ;;  %v588_v47 = vld [vmem:[#allocation2] sm:$0xff]  ;;  %v589_v48 = vld [vmem:[#allocation2 + $0x8] sm:$0xff] }
  0x2a   : > { %366 = vst.msk [vmem:[#allocation2 + $0x39] sm:$0xff] %vm362_vm2, %v346_v12  ;;  %364 = vst.msk [vmem:[#allocation2 + $0x21] sm:$0xff] %vm362_vm2, %v346_v12  ;;  %v590_v49 = vld [vmem:[#allocation2 + $0x10] sm:$0x3]  ;;  %v426_v51 = vld [vmem:[%s2934_s27 + $0xf8] sm:$0xff]  ;;  %v691_v52 = vrot.slane %v588_v47, 1 }
  0x2b   : > { %368 = vst.msk [vmem:[#allocation2 + $0x51] sm:$0xff] %vm362_vm2, %v348_v13  ;;  %370 = vst.msk [vmem:[#allocation2 + $0x69] sm:$0xff] %vm362_vm2, %v348_v13  ;;  %485 = vrot.lane.b32.xlu1 %v408_v23, %s2810_s28  ;;  %483 = vrot.lane.b32.xlu0 %v407_v24, %s2810_s28  ;;  %v425_v50 = vld [vmem:[%s2934_s27 + $0xf0] sm:$0xff]  ;;  %v692_v53 = vrot.slane %v589_v48, 1  ;;  %v694_v54 = vrot.slane %v590_v49, 1  ;;  %v772_v55 = vrot.slane %v588_v47, 2 }
  0x2c   : > { %367 = vst.msk [vmem:[#allocation2 + $0x49] sm:$0xff] %vm362_vm2, %v347_v14  ;;  %369 = vst.msk [vmem:[#allocation2 + $0x61] sm:$0xff] %vm362_vm2, %v347_v14  ;;  %v773_v58 = vrot.slane %v589_v48, 2  ;;  %v775_v59 = vrot.slane %v590_v49, 2 }
  0x2d   : > { %372 = vst.msk [vmem:[#allocation2 + $0x81] sm:$0xff] %vm362_vm2, %v350_v15  ;;  %374 = vst.msk [vmem:[#allocation2 + $0x99] sm:$0xff] %vm362_vm2, %v350_v15  ;;  %v693_v56 = vsel %vm690_vm3, %v691_v52, %v692_v53  ;;  %v695_v57 = vsel %vm690_vm3, %v692_v53, %v694_v54 }
  0x2e   : > { %371 = vst.msk [vmem:[#allocation2 + $0x79] sm:$0xff] %vm362_vm2, %v349_v16  ;;  %373 = vst.msk [vmem:[#allocation2 + $0x91] sm:$0xff] %vm362_vm2, %v349_v16  ;;  %v774_v60 = vsel %vm771_vm4, %v772_v55, %v773_v58  ;;  %v776_v61 = vsel %vm771_vm4, %v773_v58, %v775_v59 }
  0x2f   : > { %376 = vst.msk [vmem:[#allocation2 + $0xb1] sm:$0xff] %vm362_vm2, %v352_v17  ;;  %378 = vst.msk [vmem:[#allocation2 + $0xc9] sm:$0xff] %vm362_vm2, %v352_v17  ;;  %489 = vrot.lane.b32.xlu1 %v410_v25, %s2810_s28  ;;  %487 = vrot.lane.b32.xlu0 %v409_v26, %s2810_s28 }
  0x30   : > { %375 = vst.msk [vmem:[#allocation2 + $0xa9] sm:$0xff] %vm362_vm2, %v351_v18  ;;  %377 = vst.msk [vmem:[#allocation2 + $0xc1] sm:$0xff] %vm362_vm2, %v351_v18 }
  0x31   : > { %380 = vst.msk [vmem:[#allocation2 + $0xe1] sm:$0xff] %vm362_vm2, %v354_v21  ;;  %382 = vst.msk [vmem:[#allocation2 + $0xf9] sm:$0xff] %vm362_vm2, %v354_v21 }
  0x32   : > { %379 = vst.msk [vmem:[#allocation2 + $0xd9] sm:$0xff] %vm362_vm2, %v353_v22  ;;  %381 = vst.msk [vmem:[#allocation2 + $0xf1] sm:$0xff] %vm362_vm2, %v353_v22 }
  0x33   : > { %384 = vst.msk [vmem:[#allocation2 + $0x111] sm:$0xff] %vm362_vm2, %v356_v27  ;;  %386 = vst.msk [vmem:[#allocation2 + $0x129] sm:$0xff] %vm362_vm2, %v356_v27  ;;  %493 = vrot.lane.b32.xlu1 %v412_v29, %s2810_s28  ;;  %491 = vrot.lane.b32.xlu0 %v411_v30, %s2810_s28 }
  0x34   : > { %383 = vst.msk [vmem:[#allocation2 + $0x109] sm:$0xff] %vm362_vm2, %v355_v28  ;;  %385 = vst.msk [vmem:[#allocation2 + $0x121] sm:$0xff] %vm362_vm2, %v355_v28 }
  0x35   : > { %388 = vst.msk [vmem:[#allocation2 + $0x141] sm:$0xff] %vm362_vm2, %v358_v33  ;;  %390 = vst.msk [vmem:[#allocation2 + $0x159] sm:$0xff] %vm362_vm2, %v358_v33 }
  0x36   : > { %387 = vst.msk [vmem:[#allocation2 + $0x139] sm:$0xff] %vm362_vm2, %v357_v34  ;;  %389 = vst.msk [vmem:[#allocation2 + $0x151] sm:$0xff] %vm362_vm2, %v357_v34 }
  0x37   : > { %497 = vrot.lane.b32.xlu1 %v414_v31, %s2810_s28  ;;  %495 = vrot.lane.b32.xlu0 %v413_v32, %s2810_s28  ;;  %392 = vst.msk [vmem:[#allocation2 + $0x171] sm:$0xff] %vm362_vm2, %v360_v39  ;;  %394 = vst.msk [vmem:[#allocation2 + $0x189] sm:$0xff] %vm362_vm2, %v360_v39 }
  0x38   : > { %391 = vst.msk [vmem:[#allocation2 + $0x169] sm:$0xff] %vm362_vm2, %v359_v40  ;;  %393 = vst.msk [vmem:[#allocation2 + $0x181] sm:$0xff] %vm362_vm2, %v359_v40 }
  0x3b   : > { %501 = vrot.lane.b32.xlu1 %v416_v35, %s2810_s28  ;;  %499 = vrot.lane.b32.xlu0 %v415_v36, %s2810_s28 }
  0x3f   : > { %505 = vrot.lane.b32.xlu1 %v418_v37, %s2810_s28  ;;  %503 = vrot.lane.b32.xlu0 %v417_v38, %s2810_s28 }
  0x43   : > { %509 = vrot.lane.b32.xlu1 %v420_v41, %s2810_s28  ;;  %507 = vrot.lane.b32.xlu0 %v419_v42, %s2810_s28 }
  0x47   : > { %513 = vrot.lane.b32.xlu1 %v422_v43, %s2810_s28  ;;  %511 = vrot.lane.b32.xlu0 %v421_v44, %s2810_s28 }
  0x4b   : > { %517 = vrot.lane.b32.xlu1 %v424_v45, %s2810_s28  ;;  %515 = vrot.lane.b32.xlu0 %v423_v46, %s2810_s28 }
  0x4f   : > { %519 = vrot.lane.b32.xlu0 %v425_v50, %s2810_s28  ;;  %521 = vrot.lane.b32.xlu1 %v426_v51, %s2810_s28  ;;  %s2815_s28 = smov 40  }
  0x53   : > { %878 = vrot.lane.b32.xlu0 %v693_v56, %s2811_s9  ;;  %880 = vrot.lane.b32.xlu1 %v695_v57, %s2811_s9 }
  0x57   : > { %974 = vrot.lane.b32.xlu0 %v774_v60, %s2812_s10  ;;  %976 = vrot.lane.b32.xlu1 %v776_v61, %s2812_s10 }
  0x85   : > { %v464_v62 = vpop.permute.xlu1 %463  ;;  %v460_v63 = vpop.permute.xlu0 %459 }
  0x86   : > { %558 = vst.msk [vmem:[#allocation2 + $0x31] sm:$0xff] %vm555_vm5, %v464_v62  ;;  %556 = vst.msk [vmem:[#allocation2 + $0x19] sm:$0xff] %vm555_vm5, %v460_v63 }
  0x89   : > { %v466_v0 = vpop.permute.xlu1 %465  ;;  %v462_v1 = vpop.permute.xlu0 %461 }
  0x8a   : > { %559 = vst.msk [vmem:[#allocation2 + $0x39] sm:$0xff] %vm555_vm5, %v466_v0  ;;  %557 = vst.msk [vmem:[#allocation2 + $0x21] sm:$0xff] %vm555_vm5, %v462_v1 }
  0x8d   : > { %v470_v2 = vpop.permute.xlu1 %469  ;;  %v468_v3 = vpop.permute.xlu0 %467  ;;  %v3068_v4 = vld [vmem:[#allocation2 + $0x18] sm:$0xff]  ;;  %v3070_v5 = vld [vmem:[#allocation2 + $0x30] sm:$0xff] }
  0x8e   : > { %561 = vst.msk [vmem:[#allocation2 + $0x51] sm:$0xff] %vm555_vm5, %v470_v2  ;;  %560 = vst.msk [vmem:[#allocation2 + $0x49] sm:$0xff] %vm555_vm5, %v468_v3  ;;  %v696_v13 = vrot.slane %v3068_v4, 1  ;;  %v701_v15 = vrot.slane %v3070_v5, 1 }
  0x91   : > { %v474_v6 = vpop.permute.xlu1 %473  ;;  %v472_v7 = vpop.permute.xlu0 %471  ;;  %v3072_v8 = vld [vmem:[#allocation2 + $0x20] sm:$0xff]  ;;  %v3074_v9 = vld [vmem:[#allocation2 + $0x28] sm:$0x3]  ;;  %v3076_v10 = vld [vmem:[#allocation2 + $0x38] sm:$0xff] }
  0x92   : > { %563 = vst.msk [vmem:[#allocation2 + $0x69] sm:$0xff] %vm555_vm5, %v474_v6  ;;  %562 = vst.msk [vmem:[#allocation2 + $0x61] sm:$0xff] %vm555_vm5, %v472_v7  ;;  %v697_v11 = vrot.slane %v3072_v8, 1  ;;  %v699_v12 = vrot.slane %v3074_v9, 1  ;;  %v3083_v14 = vld [vmem:[#allocation2 + $0x40] sm:$0x3] }
  0x93   : > { %v702_v18 = vrot.slane %v3076_v10, 1  ;;  %v704_v19 = vrot.slane %v3083_v14, 1 }
  0x94   : > { %v3087_v16 = vsel %vm690_vm3, %v697_v11, %v699_v12  ;;  %v3090_v17 = vsel %vm690_vm3, %v696_v13, %v697_v11 }
  0x95   : > { %884 = vrot.lane.b32.xlu1 %v3087_v16, %s2811_s9  ;;  %882 = vrot.lane.b32.xlu0 %v3090_v17, %s2811_s9  ;;  %v478_v20 = vpop.permute.xlu1 %477  ;;  %v476_v21 = vpop.permute.xlu0 %475  ;;  %v3098_v22 = vld [vmem:[#allocation2 + $0x50] sm:$0xff]  ;;  %v3100_v23 = vld [vmem:[#allocation2 + $0x58] sm:$0x3]  ;;  %v3102_v24 = vld [vmem:[#allocation2 + $0x48] sm:$0xff]  ;;  %v3110_v28 = vsel %vm690_vm3, %v702_v18, %v704_v19  ;;  %v3113_v29 = vsel %vm690_vm3, %v701_v15, %v702_v18 }
  0x96   : > { %565 = vst.msk [vmem:[#allocation2 + $0x81] sm:$0xff] %vm555_vm5, %v478_v20  ;;  %564 = vst.msk [vmem:[#allocation2 + $0x79] sm:$0xff] %vm555_vm5, %v476_v21  ;;  %v707_v25 = vrot.slane %v3098_v22, 1  ;;  %v709_v26 = vrot.slane %v3100_v23, 1  ;;  %v706_v27 = vrot.slane %v3102_v24, 1 }
  0x98   : > { %v3120_v32 = vsel %vm690_vm3, %v707_v25, %v709_v26  ;;  %v3131_v36 = vsel %vm690_vm3, %v706_v27, %v707_v25 }
  0x99   : > { %888 = vrot.lane.b32.xlu1 %v3110_v28, %s2811_s9  ;;  %886 = vrot.lane.b32.xlu0 %v3113_v29, %s2811_s9  ;;  %v482_v30 = vpop.permute.xlu1 %481  ;;  %v480_v31 = vpop.permute.xlu0 %479  ;;  %v3122_v33 = vld [vmem:[#allocation2 + $0x68] sm:$0xff]  ;;  %v3124_v34 = vld [vmem:[#allocation2 + $0x70] sm:$0x3]  ;;  %v3126_v35 = vld [vmem:[#allocation2 + $0x60] sm:$0xff] }
  0x9a   : > { %567 = vst.msk [vmem:[#allocation2 + $0x99] sm:$0xff] %vm555_vm5, %v482_v30  ;;  %566 = vst.msk [vmem:[#allocation2 + $0x91] sm:$0xff] %vm555_vm5, %v480_v31  ;;  %v712_v37 = vrot.slane %v3122_v33, 1  ;;  %v714_v38 = vrot.slane %v3124_v34, 1  ;;  %v711_v39 = vrot.slane %v3126_v35, 1 }
  0x9c   : > { %v3141_v42 = vsel %vm690_vm3, %v712_v37, %v714_v38  ;;  %v3152_v46 = vsel %vm690_vm3, %v711_v39, %v712_v37 }
  0x9d   : > { %892 = vrot.lane.b32.xlu1 %v3120_v32, %s2811_s9  ;;  %890 = vrot.lane.b32.xlu0 %v3131_v36, %s2811_s9  ;;  %v486_v40 = vpop.permute.xlu1 %485  ;;  %v484_v41 = vpop.permute.xlu0 %483  ;;  %4824 = vst [vmem:[#allocation3_spill] sm:$0xff] %v3141_v42  ;;  %v3143_v43 = vld [vmem:[#allocation2 + $0x80] sm:$0xff]  ;;  %v3145_v44 = vld [vmem:[#allocation2 + $0x88] sm:$0x3]  ;;  %v3147_v45 = vld [vmem:[#allocation2 + $0x78] sm:$0xff] }
  0x9e   : > { %569 = vst.msk [vmem:[#allocation2 + $0xb1] sm:$0xff] %vm555_vm5, %v486_v40  ;;  %568 = vst.msk [vmem:[#allocation2 + $0xa9] sm:$0xff] %vm555_vm5, %v484_v41  ;;  %v717_v47 = vrot.slane %v3143_v43, 1  ;;  %v719_v48 = vrot.slane %v3145_v44, 1  ;;  %v716_v49 = vrot.slane %v3147_v45, 1 }
  0xa0   : > { %v3162_v52 = vsel %vm690_vm3, %v717_v47, %v719_v48  ;;  %v3173_v56 = vsel %vm690_vm3, %v716_v49, %v717_v47 }
  0xa1   : > { %896 = vrot.lane.b32.xlu1 %v3141_v42, %s2811_s9  ;;  %894 = vrot.lane.b32.xlu0 %v3152_v46, %s2811_s9  ;;  %v490_v50 = vpop.permute.xlu1 %489  ;;  %v488_v51 = vpop.permute.xlu0 %487  ;;  %4825 = vst [vmem:[#allocation4_spill] sm:$0xff] %v3162_v52  ;;  %v3164_v53 = vld [vmem:[#allocation2 + $0x98] sm:$0xff]  ;;  %v3166_v54 = vld [vmem:[#allocation2 + $0xa0] sm:$0x3]  ;;  %v3168_v55 = vld [vmem:[#allocation2 + $0x90] sm:$0xff] }
  0xa2   : > { %571 = vst.msk [vmem:[#allocation2 + $0xc9] sm:$0xff] %vm555_vm5, %v490_v50  ;;  %570 = vst.msk [vmem:[#allocation2 + $0xc1] sm:$0xff] %vm555_vm5, %v488_v51  ;;  %v722_v57 = vrot.slane %v3164_v53, 1  ;;  %v724_v58 = vrot.slane %v3166_v54, 1  ;;  %v721_v59 = vrot.slane %v3168_v55, 1 }
  0xa3   : > { %4826 = vst [vmem:[#allocation5_spill] sm:$0xff] %v3173_v56 }
  0xa4   : > { %v3183_v62 = vsel %vm690_vm3, %v722_v57, %v724_v58  ;;  %v3194_v2 = vsel %vm690_vm3, %v721_v59, %v722_v57 }
  0xa5   : > { %900 = vrot.lane.b32.xlu1 %v3162_v52, %s2811_s9  ;;  %898 = vrot.lane.b32.xlu0 %v3173_v56, %s2811_s9  ;;  %v494_v60 = vpop.permute.xlu1 %493  ;;  %v492_v61 = vpop.permute.xlu0 %491  ;;  %4827 = vst [vmem:[#allocation6_spill] sm:$0xff] %v3183_v62  ;;  %v3185_v63 = vld [vmem:[#allocation2 + $0xb0] sm:$0xff]  ;;  %v3187_v0 = vld [vmem:[#allocation2 + $0xb8] sm:$0x3]  ;;  %v3189_v1 = vld [vmem:[#allocation2 + $0xa8] sm:$0xff] }
  0xa6   : > { %573 = vst.msk [vmem:[#allocation2 + $0xe1] sm:$0xff] %vm555_vm5, %v494_v60  ;;  %572 = vst.msk [vmem:[#allocation2 + $0xd9] sm:$0xff] %vm555_vm5, %v492_v61  ;;  %v727_v3 = vrot.slane %v3185_v63, 1  ;;  %v729_v6 = vrot.slane %v3187_v0, 1  ;;  %v726_v7 = vrot.slane %v3189_v1, 1 }
  0xa7   : > { %4828 = vst [vmem:[#allocation7_spill] sm:$0xff] %v3194_v2 }
  0xa8   : > { %v3204_v13 = vsel %vm690_vm3, %v727_v3, %v729_v6  ;;  %v3215_v20 = vsel %vm690_vm3, %v726_v7, %v727_v3 }
  0xa9   : > { %904 = vrot.lane.b32.xlu1 %v3183_v62, %s2811_s9  ;;  %902 = vrot.lane.b32.xlu0 %v3194_v2, %s2811_s9  ;;  %v498_v11 = vpop.permute.xlu1 %497  ;;  %v496_v12 = vpop.permute.xlu0 %495  ;;  %4829 = vst [vmem:[#allocation8_spill] sm:$0xff] %v3204_v13  ;;  %v3206_v15 = vld [vmem:[#allocation2 + $0xc8] sm:$0xff]  ;;  %v3208_v18 = vld [vmem:[#allocation2 + $0xd0] sm:$0x3]  ;;  %v3210_v19 = vld [vmem:[#allocation2 + $0xc0] sm:$0xff] }
  0xaa   : > { %4830 = vst [vmem:[#allocation9_spill] sm:$0xff] %v3206_v15  ;;  %4831 = vst [vmem:[#allocation10_spill] sm:$0xff] %v3210_v19  ;;  %v732_v21 = vrot.slane %v3206_v15, 1  ;;  %v734_v25 = vrot.slane %v3208_v18, 1  ;;  %v731_v26 = vrot.slane %v3210_v19, 1 }
  0xab   : > { %575 = vst.msk [vmem:[#allocation2 + $0xf9] sm:$0xff] %vm555_vm5, %v498_v11  ;;  %574 = vst.msk [vmem:[#allocation2 + $0xf1] sm:$0xff] %vm555_vm5, %v496_v12 }
  0xac   : > { %4832 = vst [vmem:[#allocation11_spill] sm:$0xff] %v3215_v20  ;;  %v3225_v31 = vsel %vm690_vm3, %v732_v21, %v734_v25  ;;  %v3236_v40 = vsel %vm690_vm3, %v731_v26, %v732_v21 }
  0xad   : > { %908 = vrot.lane.b32.xlu1 %v3204_v13, %s2811_s9  ;;  %906 = vrot.lane.b32.xlu0 %v3215_v20, %s2811_s9  ;;  %v502_v27 = vpop.permute.xlu1 %501  ;;  %v500_v30 = vpop.permute.xlu0 %499  ;;  %4833 = vst [vmem:[#allocation12_spill] sm:$0xff] %v3225_v31  ;;  %v3227_v37 = vld [vmem:[#allocation2 + $0xe0] sm:$0xff]  ;;  %v3229_v38 = vld [vmem:[#allocation2 + $0xe8] sm:$0x3]  ;;  %v3231_v39 = vld [vmem:[#allocation2 + $0xd8] sm:$0xff] }
  0xae   : > { %577 = vst.msk [vmem:[#allocation2 + $0x111] sm:$0xff] %vm555_vm5, %v502_v27  ;;  %576 = vst.msk [vmem:[#allocation2 + $0x109] sm:$0xff] %vm555_vm5, %v500_v30  ;;  %v737_v41 = vrot.slane %v3227_v37, 1  ;;  %v739_v47 = vrot.slane %v3229_v38, 1  ;;  %v736_v48 = vrot.slane %v3231_v39, 1 }
  0xaf   : > { %4834 = vst [vmem:[#allocation13_spill] sm:$0xff] %v3236_v40 }
  0xb0   : > { %v3246_v51 = vsel %vm690_vm3, %v737_v41, %v739_v47  ;;  %v3257_v60 = vsel %vm690_vm3, %v736_v48, %v737_v41 }
  0xb1   : > { %912 = vrot.lane.b32.xlu1 %v3225_v31, %s2811_s9  ;;  %910 = vrot.lane.b32.xlu0 %v3236_v40, %s2811_s9  ;;  %v506_v49 = vpop.permute.xlu1 %505  ;;  %v504_v50 = vpop.permute.xlu0 %503  ;;  %4835 = vst [vmem:[#allocation14_spill] sm:$0xff] %v3246_v51  ;;  %4838 = vst [vmem:[#allocation17_spill] sm:$0xff] %v3257_v60 }
  0xb2   : > { %v3248_v57 = vld [vmem:[#allocation2 + $0xf8] sm:$0xff]  ;;  %v3250_v58 = vld [vmem:[#allocation2 + $0x100] sm:$0x3]  ;;  %v3252_v59 = vld [vmem:[#allocation2 + $0xf0] sm:$0xff]  ;;  %579 = vst.msk [vmem:[#allocation2 + $0x129] sm:$0xff] %vm555_vm5, %v506_v49 }
  0xb3   : > { %4836 = vst [vmem:[#allocation15_spill] sm:$0xff] %v3248_v57  ;;  %4837 = vst [vmem:[#allocation16_spill] sm:$0xff] %v3252_v59  ;;  %v742_v61 = vrot.slane %v3248_v57, 1  ;;  %v744_v3 = vrot.slane %v3250_v58, 1  ;;  %v741_v6 = vrot.slane %v3252_v59, 1 }
  0xb4   : > { %578 = vst.msk [vmem:[#allocation2 + $0x121] sm:$0xff] %vm555_vm5, %v504_v50 }
  0xb5   : > { %916 = vrot.lane.b32.xlu1 %v3246_v51, %s2811_s9  ;;  %914 = vrot.lane.b32.xlu0 %v3257_v60, %s2811_s9  ;;  %v510_v7 = vpop.permute.xlu1 %509  ;;  %v508_v11 = vpop.permute.xlu0 %507  ;;  %v3267_v12 = vsel %vm690_vm3, %v742_v61, %v744_v3  ;;  %v3269_v21 = vld [vmem:[#allocation2 + $0x110] sm:$0xff]  ;;  %v3271_v25 = vld [vmem:[#allocation2 + $0x118] sm:$0x3]  ;;  %v3273_v26 = vld [vmem:[#allocation2 + $0x108] sm:$0xff]  ;;  %v3278_v27 = vsel %vm690_vm3, %v741_v6, %v742_v61 }
  0xb6   : > { %4839 = vst [vmem:[#allocation18_spill] sm:$0xff] %v3267_v12  ;;  %581 = vst.msk [vmem:[#allocation2 + $0x141] sm:$0xff] %vm555_vm5, %v510_v7  ;;  %v747_v30 = vrot.slane %v3269_v21, 1  ;;  %v749_v41 = vrot.slane %v3271_v25, 1  ;;  %v746_v47 = vrot.slane %v3273_v26, 1 }
  0xb7   : > { %580 = vst.msk [vmem:[#allocation2 + $0x139] sm:$0xff] %vm555_vm5, %v508_v11  ;;  %4840 = vst [vmem:[#allocation19_spill] sm:$0xff] %v3278_v27 }
  0xb8   : > { %v3288_v50 = vsel %vm690_vm3, %v747_v30, %v749_v41  ;;  %v3299_v7 = vsel %vm690_vm3, %v746_v47, %v747_v30 }
  0xb9   : > { %920 = vrot.lane.b32.xlu1 %v3267_v12, %s2811_s9  ;;  %918 = vrot.lane.b32.xlu0 %v3278_v27, %s2811_s9  ;;  %v514_v48 = vpop.permute.xlu1 %513  ;;  %v512_v49 = vpop.permute.xlu0 %511  ;;  %4841 = vst [vmem:[#allocation20_spill] sm:$0xff] %v3288_v50  ;;  %v3292_v61 = vld [vmem:[#allocation2 + $0x130] sm:$0x3]  ;;  %4842 = vst [vmem:[#allocation21_spill] sm:$0xff] %v3299_v7 }
  0xba   : > { %583 = vst.msk [vmem:[#allocation2 + $0x159] sm:$0xff] %vm555_vm5, %v514_v48  ;;  %582 = vst.msk [vmem:[#allocation2 + $0x151] sm:$0xff] %vm555_vm5, %v512_v49  ;;  %v754_v12 = vrot.slane %v3292_v61, 1 }
  0xbb   : > { %v3290_v3 = vld [vmem:[#allocation2 + $0x128] sm:$0xff]  ;;  %v3294_v6 = vld [vmem:[#allocation2 + $0x120] sm:$0xff] }
  0xbc   : > { %v752_v11 = vrot.slane %v3290_v3, 1  ;;  %v751_v41 = vrot.slane %v3294_v6, 1 }
  0xbd   : > { %924 = vrot.lane.b32.xlu1 %v3288_v50, %s2811_s9  ;;  %922 = vrot.lane.b32.xlu0 %v3299_v7, %s2811_s9  ;;  %v518_v27 = vpop.permute.xlu1 %517  ;;  %v516_v51 = vpop.permute.xlu0 %515  ;;  %v3313_v30 = vld [vmem:[#allocation2 + $0x148] sm:$0x3] }
  0xbe   : > { %v3309_v48 = vsel %vm690_vm3, %v752_v11, %v754_v12  ;;  %v3311_v49 = vld [vmem:[#allocation2 + $0x140] sm:$0xff]  ;;  %v3315_v47 = vld [vmem:[#allocation2 + $0x138] sm:$0xff]  ;;  %585 = vst.msk [vmem:[#allocation2 + $0x171] sm:$0xff] %vm555_vm5, %v518_v27  ;;  %584 = vst.msk [vmem:[#allocation2 + $0x169] sm:$0xff] %vm555_vm5, %v516_v51  ;;  %v3320_v50 = vsel %vm690_vm3, %v751_v41, %v752_v11  ;;  %v759_v60 = vrot.slane %v3313_v30, 1 }
  0xbf   : > { %4843 = vst [vmem:[#allocation22_spill] sm:$0xff] %v3309_v48  ;;  %4844 = vst [vmem:[#allocation23_spill] sm:$0xff] %v3320_v50  ;;  %v757_v7 = vrot.slane %v3311_v49, 1  ;;  %v756_v12 = vrot.slane %v3315_v47, 1 }
  0xc1   : > { %928 = vrot.lane.b32.xlu1 %v3309_v48, %s2811_s9  ;;  %926 = vrot.lane.b32.xlu0 %v3320_v50, %s2811_s9  ;;  %v3330_v31 = vsel %vm690_vm3, %v757_v7, %v759_v60  ;;  %v3332_v27 = vld [vmem:[#allocation2 + $0x158] sm:$0xff]  ;;  %v3334_v51 = vld [vmem:[#allocation2 + $0x160] sm:$0x3]  ;;  %v3336_v11 = vld [vmem:[#allocation2 + $0x150] sm:$0xff]  ;;  %v520_v41 = vpop.permute.xlu0 %519  ;;  %v522_v40 = vpop.permute.xlu1 %521  ;;  %v3339_v13 = vsel %vm690_vm3, %v756_v12, %v757_v7 }
  0xc2   : > { %4845 = vst [vmem:[#allocation24_spill] sm:$0xff] %v3330_v31  ;;  %4846 = vst [vmem:[#allocation25_spill] sm:$0xff] %v3339_v13  ;;  %v762_v20 = vrot.slane %v3332_v27, 1  ;;  %v764_v48 = vrot.slane %v3334_v51, 1  ;;  %v761_v50 = vrot.slane %v3336_v11, 1 }
  0xc3   : > { %586 = vst.msk [vmem:[#allocation2 + $0x181] sm:$0xff] %vm555_vm5, %v520_v41  ;;  %587 = vst.msk [vmem:[#allocation2 + $0x189] sm:$0xff] %vm555_vm5, %v522_v40 }
  0xc4   : > { %v3351_v60 = vsel %vm690_vm3, %v762_v20, %v764_v48  ;;  %v3360_v2 = vsel %vm690_vm3, %v761_v50, %v762_v20  ;;  %v778_v20 = vrot.slane %v3072_v8, 2  ;;  %v780_v50 = vrot.slane %v3074_v9, 2 }
  0xc5   : > { %932 = vrot.lane.b32.xlu1 %v3330_v31, %s2811_s9  ;;  %930 = vrot.lane.b32.xlu0 %v3339_v13, %s2811_s9  ;;  %4847 = vst [vmem:[#allocation26_spill] sm:$0xff] %v3351_v60  ;;  %v3353_v7 = vld [vmem:[#allocation2 + $0x170] sm:$0xff]  ;;  %v3355_v12 = vld [vmem:[#allocation2 + $0x178] sm:$0x3]  ;;  %v3357_v62 = vld [vmem:[#allocation2 + $0x168] sm:$0xff]  ;;  %v782_v9 = vrot.slane %v3070_v5, 2 }
  0xc6   : > { %4848 = vst [vmem:[#allocation27_spill] sm:$0xff] %v3360_v2  ;;  %v767_v40 = vrot.slane %v3353_v7, 1  ;;  %v769_v41 = vrot.slane %v3355_v12, 1  ;;  %v766_v31 = vrot.slane %v3357_v62, 1  ;;  %v3385_v52 = vsel %vm771_vm4, %v778_v20, %v780_v50 }
  0xc7   : > { %v790_v50 = vrot.slane %v3100_v23, 2  ;;  %v792_v23 = vrot.slane %v3126_v35, 2 }
  0xc8   : > { %v3370_v48 = vsel %vm690_vm3, %v767_v40, %v769_v41  ;;  %v3373_v13 = vsel %vm690_vm3, %v766_v31, %v767_v40  ;;  %v785_v41 = vrot.slane %v3083_v14, 2  ;;  %v788_v14 = vrot.slane %v3098_v22, 2 }
  0xc9   : > { %936 = vrot.lane.b32.xlu1 %v3351_v60, %s2811_s9  ;;  %934 = vrot.lane.b32.xlu0 %v3360_v2, %s2811_s9  ;;  %4849 = vst [vmem:[#allocation28_spill] sm:$0xff] %v3370_v48  ;;  %4850 = vst [vmem:[#allocation29_spill] sm:$0xff] %v3373_v13  ;;  %v777_v60 = vrot.slane %v3068_v4, 2  ;;  %v783_v2 = vrot.slane %v3076_v10, 2 }
  0xcb   : > { %v3388_v31 = vsel %vm771_vm4, %v777_v60, %v778_v20  ;;  %v3396_v40 = vsel %vm771_vm4, %v783_v2, %v785_v41  ;;  %v787_v60 = vrot.slane %v3102_v24, 2  ;;  %v793_v20 = vrot.slane %v3122_v33, 2 }
  0xcc   : > { %v795_v41 = vrot.slane %v3124_v34, 2  ;;  %v798_v34 = vrot.slane %v3143_v43, 2 }
  0xcd   : > { %940 = vrot.lane.b32.xlu1 %v3370_v48, %s2811_s9  ;;  %938 = vrot.lane.b32.xlu0 %v3373_v13, %s2811_s9  ;;  %v3399_v48 = vsel %vm771_vm4, %v782_v9, %v783_v2  ;;  %v3411_v13 = vsel %vm771_vm4, %v788_v14, %v790_v50  ;;  %v3414_v2 = vsel %vm771_vm4, %v787_v60, %v788_v14  ;;  %v800_v50 = vrot.slane %v3145_v44, 2  ;;  %s2816_s9 = smov 48  }
  0xce   : > { %v3422_v9 = vsel %vm771_vm4, %v793_v20, %v795_v41  ;;  %v3425_v56 = vsel %vm771_vm4, %v792_v23, %v793_v20  ;;  %v797_v14 = vrot.slane %v3147_v45, 2  ;;  %v803_v60 = vrot.slane %v3164_v53, 2 }
  0xcf   : > { %4851 = vst [vmem:[#allocation30_spill] sm:$0xff] %v3422_v9  ;;  %v805_v41 = vrot.slane %v3166_v54, 2  ;;  %v3437_v42 = vsel %vm771_vm4, %v798_v34, %v800_v50  ;;  %v802_v44 = vrot.slane %v3168_v55, 2  ;;  %v808_v54 = vrot.slane %v3185_v63, 2 }
  0xd0   : > { %4852 = vst [vmem:[#allocation31_spill] sm:$0xff] %v3437_v42  ;;  %v3440_v20 = vsel %vm771_vm4, %v797_v14, %v798_v34  ;;  %v810_v50 = vrot.slane %v3187_v0, 2  ;;  %v807_v34 = vrot.slane %v3189_v1, 2  ;;  %v813_v14 = vrot.slane %v3206_v15, 2 }
  0xd1   : > { %980 = vrot.lane.b32.xlu1 %v3385_v52, %s2812_s10  ;;  %978 = vrot.lane.b32.xlu0 %v3388_v31, %s2812_s10  ;;  %v3448_v23 = vsel %vm771_vm4, %v803_v60, %v805_v41  ;;  %v815_v41 = vrot.slane %v3208_v18, 2  ;;  %v812_v0 = vrot.slane %v3210_v19, 2  ;;  %v818_v18 = vrot.slane %v3227_v37, 2 }
  0xd3   : > { %v3477_v15 = vsel %vm771_vm4, %v812_v0, %v813_v14 }
  0xd5   : > { %984 = vrot.lane.b32.xlu1 %v3396_v40, %s2812_s10  ;;  %982 = vrot.lane.b32.xlu0 %v3399_v48, %s2812_s10 }
  0xd9   : > { %988 = vrot.lane.b32.xlu1 %v3411_v13, %s2812_s10  ;;  %986 = vrot.lane.b32.xlu0 %v3414_v2, %s2812_s10 }
  0xdd   : > { %992 = vrot.lane.b32.xlu1 %v3422_v9, %s2812_s10  ;;  %990 = vrot.lane.b32.xlu0 %v3425_v56, %s2812_s10  ;;  %v3451_v9 = vsel %vm771_vm4, %v802_v44, %v803_v60  ;;  %v3466_v60 = vsel %vm771_vm4, %v807_v34, %v808_v54  ;;  %v3474_v44 = vsel %vm771_vm4, %v813_v14, %v815_v41  ;;  %v823_v34 = vrot.slane %v3248_v57, 2 }
  0xde   : > { %v825_v41 = vrot.slane %v3250_v58, 2  ;;  %v828_v58 = vrot.slane %v3269_v21, 2  ;;  %v832_v21 = vrot.slane %v3294_v6, 2  ;;  %v3536_v6 = vpop.permute.xlu1 %880 }
  0xe0   : > { %v3500_v0 = vsel %vm771_vm4, %v823_v34, %v825_v41  ;;  %v835_v41 = vrot.slane %v3292_v61, 2  ;;  %v840_v61 = vrot.slane %v3313_v30, 2 }
  0xe1   : > { %996 = vrot.lane.b32.xlu1 %v3437_v42, %s2812_s10  ;;  %994 = vrot.lane.b32.xlu0 %v3440_v20, %s2812_s10  ;;  %v3463_v42 = vsel %vm771_vm4, %v808_v54, %v810_v50  ;;  %v820_v50 = vrot.slane %v3229_v38, 2  ;;  %v817_v54 = vrot.slane %v3231_v39, 2  ;;  %v822_v38 = vrot.slane %v3252_v59, 2 }
  0xe3   : > { %v3489_v19 = vsel %vm771_vm4, %v818_v18, %v820_v50  ;;  %v3492_v14 = vsel %vm771_vm4, %v817_v54, %v818_v18  ;;  %v3503_v57 = vsel %vm771_vm4, %v822_v38, %v823_v34  ;;  %v830_v50 = vrot.slane %v3271_v25, 2 }
  0xe4   : > { %v827_v18 = vrot.slane %v3273_v26, 2  ;;  %v833_v54 = vrot.slane %v3290_v3, 2  ;;  %v838_v3 = vrot.slane %v3311_v49, 2  ;;  %v837_v38 = vrot.slane %v3315_v47, 2 }
  0xe5   : > { %1000 = vrot.lane.b32.xlu1 %v3448_v23, %s2812_s10  ;;  %998 = vrot.lane.b32.xlu0 %v3451_v9, %s2812_s10  ;;  %v3515_v59 = vsel %vm771_vm4, %v828_v58, %v830_v50  ;;  %v843_v50 = vrot.slane %v3332_v27, 2  ;;  %v842_v47 = vrot.slane %v3336_v11, 2  ;;  %v850_v11 = vrot.slane %v3355_v12, 2 }
  0xe6   : > { %v3518_v34 = vsel %vm771_vm4, %v827_v18, %v828_v58  ;;  %v3526_v25 = vsel %vm771_vm4, %v833_v54, %v835_v41  ;;  %v3529_v26 = vsel %vm771_vm4, %v832_v21, %v833_v54  ;;  %v3534_v58 = vpop.permute.xlu0 %878  ;;  %v845_v18 = vrot.slane %v3334_v51, 2  ;;  %v3557_v41 = vpop.permute.xlu1 %976 }
  0xe7   : > { %v3545_v49 = vsel %vm771_vm4, %v838_v3, %v840_v61  ;;  %v3548_v30 = vsel %vm771_vm4, %v837_v38, %v838_v3  ;;  %v3563_v51 = vsel %vm771_vm4, %v842_v47, %v843_v50  ;;  %v848_v21 = vrot.slane %v3353_v7, 2 }
  0xe8   : > { %4853 = vst [vmem:[#allocation32_spill] sm:$0xff] %v3545_v49  ;;  %4854 = vst [vmem:[#allocation33_spill] sm:$0xff] %v3548_v30  ;;  %v3560_v27 = vsel %vm771_vm4, %v843_v50, %v845_v18  ;;  %v847_v3 = vrot.slane %v3357_v62, 2 }
  0xe9   : > { %1004 = vrot.lane.b32.xlu1 %v3463_v42, %s2812_s10  ;;  %1002 = vrot.lane.b32.xlu0 %v3466_v60, %s2812_s10  ;;  %4855 = vst [vmem:[#allocation34_spill] sm:$0xff] %v3560_v27  ;;  %4856 = vst [vmem:[#allocation35_spill] sm:$0xff] %v3563_v51  ;;  %v3577_v18 = vsel %vm771_vm4, %v848_v21, %v850_v11 }
  0xea   : > { %v3555_v54 = vpop.permute.xlu0 %974  ;;  %4857 = vst [vmem:[#allocation36_spill] sm:$0xff] %v3577_v18  ;;  %v3580_v50 = vsel %vm771_vm4, %v847_v3, %v848_v21 }
  0xeb   : > { %4858 = vst [vmem:[#allocation37_spill] sm:$0xff] %v3580_v50 }
  0xed   : > { %1008 = vrot.lane.b32.xlu1 %v3474_v44, %s2812_s10  ;;  %1006 = vrot.lane.b32.xlu0 %v3477_v15, %s2812_s10 }
  0xf1   : > { %1012 = vrot.lane.b32.xlu1 %v3489_v19, %s2812_s10  ;;  %1010 = vrot.lane.b32.xlu0 %v3492_v14, %s2812_s10 }
  0xf5   : > { %1016 = vrot.lane.b32.xlu1 %v3500_v0, %s2812_s10  ;;  %1014 = vrot.lane.b32.xlu0 %v3503_v57, %s2812_s10 }
  0xf9   : > { %1020 = vrot.lane.b32.xlu1 %v3515_v59, %s2812_s10  ;;  %1018 = vrot.lane.b32.xlu0 %v3518_v34, %s2812_s10 }
  0xfd   : > { %1024 = vrot.lane.b32.xlu1 %v3526_v25, %s2812_s10  ;;  %1022 = vrot.lane.b32.xlu0 %v3529_v26, %s2812_s10 }
 0x101   : > { %1028 = vrot.lane.b32.xlu1 %v3545_v49, %s2812_s10  ;;  %1026 = vrot.lane.b32.xlu0 %v3548_v30, %s2812_s10 }
 0x105   : > { %1032 = vrot.lane.b32.xlu1 %v3560_v27, %s2812_s10  ;;  %1030 = vrot.lane.b32.xlu0 %v3563_v51, %s2812_s10  ;;  %v1910_v27 = vld [vmem:[%s4748_s2 + $0x8] sm:$0xff] }
 0x107   : > { %v3572_v61 = vpop.permute.xlu1 %884  ;;  %v3574_v38 = vpop.permute.xlu0 %882 }
 0x109   : > { %1036 = vrot.lane.b32.xlu1 %v3577_v18, %s2812_s10  ;;  %1034 = vrot.lane.b32.xlu0 %v3580_v50, %s2812_s10  ;;  %v1909_v50 = vld [vmem:[%s4748_s2] sm:$0xff] }
 0x10a   : > { %v2725_v51 = vpack.c.bf16 %v1910_v27, %v1909_v50  ;;  %v1912_v27 = vld [vmem:[%s4748_s2 + $0x18] sm:$0xff] }
 0x10b   : > { %v3586_v62 = vpop.permute.xlu1 %888  ;;  %v3588_v7 = vpop.permute.xlu0 %886 }
 0x10c   : > { %2726 = vmatprep.subr.bf16.mxu0 %v2725_v51  ;;  %2741 = vmatprep.subr.bf16.mxu1 %v2725_v51 }
 0x10d   : > { %1072 = vrot.lane.b32.xlu1 %v3072_v8, %s2813_s11  ;;  %1070 = vrot.lane.b32.xlu0 %v3068_v4, %s2813_s11 }
 0x10e   : > { %2728 = vmatpush3.bf16.msra.mxu0 %v2725_v51  ;;  %2746 = vmatpush3.bf16.msra.mxu1 %v2725_v51  ;;  %v1914_v51 = vld [vmem:[%s4748_s2 + $0x28] sm:$0xff] }
 0x10f   : > { %v3594_v12 = vpop.permute.xlu1 %892  ;;  %v3596_v47 = vpop.permute.xlu0 %890 }
 0x111   : > { %1076 = vrot.lane.b32.xlu1 %v3076_v10, %s2813_s11  ;;  %1074 = vrot.lane.b32.xlu0 %v3070_v5, %s2813_s11 }
 0x113   : > { %v3602_v21 = vpop.permute.xlu1 %896  ;;  %v3604_v11 = vpop.permute.xlu0 %894 }
 0x115   : > { %1080 = vrot.lane.b32.xlu1 %v3098_v22, %s2813_s11  ;;  %1078 = vrot.lane.b32.xlu0 %v3102_v24, %s2813_s11 }
 0x117   : > { %v3610_v4 = vpop.permute.xlu1 %900  ;;  %v3612_v8 = vpop.permute.xlu0 %898 }
 0x119   : > { %1084 = vrot.lane.b32.xlu1 %v3122_v33, %s2813_s11  ;;  %1082 = vrot.lane.b32.xlu0 %v3126_v35, %s2813_s11 }
 0x11b   : > { %v3618_v3 = vpop.permute.xlu1 %904  ;;  %v3620_v18 = vpop.permute.xlu0 %902 }
 0x11c   : > { %4859 = vst [vmem:[#allocation38_spill] sm:$0xff] %v3618_v3  ;;  %4860 = vst [vmem:[#allocation39_spill] sm:$0xff] %v3620_v18  ;;  %v1911_v3 = vld [vmem:[%s4748_s2 + $0x10] sm:$0xff]  ;;  %v1913_v18 = vld [vmem:[%s4748_s2 + $0x20] sm:$0xff] }
 0x11d   : > { %1088 = vrot.lane.b32.xlu1 %v3143_v43, %s2813_s11  ;;  %1086 = vrot.lane.b32.xlu0 %v3147_v45, %s2813_s11  ;;  %v2729_v50 = vpack.c.bf16 %v1912_v27, %v1911_v3  ;;  %v2733_v3 = vpack.c.bf16 %v1914_v51, %v1913_v18  ;;  %v1916_v18 = vld [vmem:[%s4748_s2 + $0x38] sm:$0xff] }
 0x11f   : > { %v3632_v49 = vpop.permute.xlu1 %908  ;;  %v3634_v30 = vpop.permute.xlu0 %906  ;;  %2730 = vmatprep.subr.bf16.mxu0 %v2729_v50  ;;  %2742 = vmatprep.subr.bf16.mxu1 %v2729_v50 }
 0x120   : > { %4861 = vst [vmem:[#allocation40_spill] sm:$0xff] %v3632_v49  ;;  %4862 = vst [vmem:[#allocation41_spill] sm:$0xff] %v3634_v30  ;;  %2732 = vmatpush3.bf16.msra.mxu0 %v2729_v50  ;;  %2747 = vmatpush3.bf16.msra.mxu1 %v2729_v50 }
 0x121   : > { %1092 = vrot.lane.b32.xlu1 %v3164_v53, %s2813_s11  ;;  %1090 = vrot.lane.b32.xlu0 %v3168_v55, %s2813_s11 }
 0x122   : > { %2734 = vmatprep.subr.bf16.mxu0 %v2733_v3  ;;  %2743 = vmatprep.subr.bf16.mxu1 %v2733_v3 }
 0x123   : > { %v3646_v49 = vpop.permute.xlu1 %912  ;;  %v3648_v30 = vpop.permute.xlu0 %910 }
 0x124   : > { %4863 = vst [vmem:[#allocation42_spill] sm:$0xff] %v3646_v49  ;;  %4864 = vst [vmem:[#allocation43_spill] sm:$0xff] %v3648_v30  ;;  %2736 = vmatpush3.bf16.msra.mxu0 %v2733_v3  ;;  %2748 = vmatpush3.bf16.msra.mxu1 %v2733_v3 }
 0x125   : > { %1166 = vrot.lane.b32.xlu1 %v3090_v17, %s2814_s20  ;;  %1094 = vrot.lane.b32.xlu0 %v3189_v1, %s2813_s11  ;;  %v1915_v17 = vld [vmem:[%s4748_s2 + $0x30] sm:$0xff] }
 0x126   : > { %v2737_v50 = vpack.c.bf16 %v1916_v18, %v1915_v17 }
 0x127   : > { %v3660_v27 = vpop.permute.xlu1 %916  ;;  %v3662_v49 = vpop.permute.xlu0 %914 }
 0x128   : > { %4865 = vst [vmem:[#allocation44_spill] sm:$0xff] %v3660_v27  ;;  %4866 = vst [vmem:[#allocation45_spill] sm:$0xff] %v3662_v49  ;;  %2738 = vmatprep.subr.bf16.mxu0 %v2737_v50  ;;  %2744 = vmatprep.subr.bf16.mxu1 %v2737_v50  ;;  %v4908_v49 = vld [vmem:[#allocation8_spill] sm:$0xff] }
 0x129   : > { %1262 = vrot.lane.b32.xlu1 %v3388_v31, %s2815_s28  ;;  %1168 = vrot.lane.b32.xlu0 %v3087_v16, %s2814_s20  ;;  %v1917_v16 = vld [vmem:[%s4748_s2 + $0x40] sm:$0xff] }
 0x12a   : > { %2740 = vmatpush3.bf16.msra.mxu0 %v2737_v50  ;;  %2749 = vmatpush3.bf16.msra.mxu1 %v2737_v50 }
 0x12b   : > { %v3674_v51 = vpop.permute.xlu1 %920  ;;  %v3676_v27 = vpop.permute.xlu0 %918  ;;  %2675 = vmatprep.subr.mxu0 %v1917_v16  ;;  %2745 = vmatprep.subr.mxu1 %v1917_v16 }
 0x12c   : > { %4867 = vst [vmem:[#allocation46_spill] sm:$0xff] %v3674_v51  ;;  %4868 = vst [vmem:[#allocation47_spill] sm:$0xff] %v3676_v27  ;;  %v4893_v27 = vld [vmem:[#allocation5_spill] sm:$0xff] }
 0x12d   : > { %1358 = vrot.lane.b32.xlu1 %v3070_v5, %s2816_s9  ;;  %1264 = vrot.lane.b32.xlu0 %v3385_v52, %s2815_s28 }
 0x12e   : > { %2676 = vmatpush3.msra.mxu0 %v1917_v16  ;;  %2750 = vmatpush3.msra.mxu1 %v1917_v16 }
 0x12f   : > { %v3685_v31 = vpop.permute.xlu1 %924  ;;  %v3687_v3 = vpop.permute.xlu0 %922 }
 0x130   : > { %4869 = vst [vmem:[#allocation48_spill] sm:$0xff] %v3685_v31  ;;  %4870 = vst [vmem:[#allocation49_spill] sm:$0xff] %v3687_v3  ;;  %v4888_v31 = vld [vmem:[#allocation30_spill] sm:$0xff] }
 0x131   : > { %1454 = vrot.lane.b32.xlu1 %v3113_v29, %s2817_s13  ;;  %1360 = vrot.lane.b32.xlu0 %v3076_v10, %s2816_s9 }
 0x133   : > { %v3693_v5 = vpop.permute.xlu1 %928  ;;  %v3695_v52 = vpop.permute.xlu0 %926 }
 0x134   : > { %4871 = vst [vmem:[#allocation50_spill] sm:$0xff] %v3693_v5  ;;  %4872 = vst [vmem:[#allocation51_spill] sm:$0xff] %v3695_v52  ;;  %v4883_v5 = vld [vmem:[#allocation3_spill] sm:$0xff] }
 0x135   : > { %1456 = vrot.lane.b32.xlu1 %v3110_v28, %s2817_s13  ;;  %1170 = vrot.lane.b32.xlu0 %v3113_v29, %s2814_s20 }
 0x137   : > { %v3701_v17 = vpop.permute.xlu1 %932  ;;  %v3703_v18 = vpop.permute.xlu0 %930 }
 0x138   : > { %4873 = vst [vmem:[#allocation52_spill] sm:$0xff] %v3701_v17  ;;  %4874 = vst [vmem:[#allocation53_spill] sm:$0xff] %v3703_v18 }
 0x139   : > { %1172 = vrot.lane.b32.xlu1 %v3110_v28, %s2814_s20  ;;  %1550 = vrot.lane.b32.xlu0 %v3399_v48, %s2818_s14 }
 0x13b   : > { %v3709_v10 = vpop.permute.xlu1 %936  ;;  %v3711_v50 = vpop.permute.xlu0 %934 }
 0x13c   : > { %4875 = vst [vmem:[#allocation54_spill] sm:$0xff] %v3709_v10  ;;  %4876 = vst [vmem:[#allocation55_spill] sm:$0xff] %v3711_v50 }
 0x13d   : > { %1552 = vrot.lane.b32.xlu1 %v3396_v40, %s2818_s14  ;;  %1266 = vrot.lane.b32.xlu0 %v3399_v48, %s2815_s28 }
 0x13f   : > { %v3717_v29 = vpop.permute.xlu1 %940  ;;  %v3719_v16 = vpop.permute.xlu0 %938 }
 0x140   : > { %4877 = vst [vmem:[#allocation56_spill] sm:$0xff] %v3717_v29  ;;  %4878 = vst [vmem:[#allocation57_spill] sm:$0xff] %v3719_v16 }
 0x141   : > { %1362 = vrot.lane.b32.xlu1 %v3102_v24, %s2816_s9  ;;  %1268 = vrot.lane.b32.xlu0 %v3396_v40, %s2815_s28 }
 0x143   : > { %v3725_v28 = vpop.permute.xlu1 %980  ;;  %v3727_v10 = vpop.permute.xlu0 %978 }
 0x145   : > { %1458 = vrot.lane.b32.xlu1 %v3131_v36, %s2817_s13  ;;  %1364 = vrot.lane.b32.xlu0 %v3098_v22, %s2816_s9 }
 0x147   : > { %v3733_v48 = vpop.permute.xlu1 %984  ;;  %v3735_v29 = vpop.permute.xlu0 %982 }
 0x149   : > { %1460 = vrot.lane.b32.xlu1 %v3120_v32, %s2817_s13  ;;  %1174 = vrot.lane.b32.xlu0 %v3131_v36, %s2814_s20 }
 0x14b   : > { %v3741_v24 = vpop.permute.xlu1 %988  ;;  %v3743_v40 = vpop.permute.xlu0 %986 }
 0x14d   : > { %1176 = vrot.lane.b32.xlu1 %v3120_v32, %s2814_s20  ;;  %1554 = vrot.lane.b32.xlu0 %v3414_v2, %s2818_s14 }
 0x14f   : > { %v3749_v22 = vpop.permute.xlu1 %992  ;;  %v3751_v16 = vpop.permute.xlu0 %990 }
 0x151   : > { %1556 = vrot.lane.b32.xlu1 %v3411_v13, %s2818_s14  ;;  %1270 = vrot.lane.b32.xlu0 %v3414_v2, %s2815_s28 }
 0x153   : > { %v3757_v36 = vpop.permute.xlu1 %996  ;;  %v3759_v50 = vpop.permute.xlu0 %994 }
 0x155   : > { %1366 = vrot.lane.b32.xlu1 %v3126_v35, %s2816_s9  ;;  %1272 = vrot.lane.b32.xlu0 %v3411_v13, %s2815_s28 }
 0x157   : > { %v3765_v32 = vpop.permute.xlu1 %1000  ;;  %v3767_v17 = vpop.permute.xlu0 %998 }
 0x158   : > { %4879 = vst [vmem:[#allocation58_spill] sm:$0xff] %v3765_v32  ;;  %4880 = vst [vmem:[#allocation59_spill] sm:$0xff] %v3767_v17 }
 0x159   : > { %1462 = vrot.lane.b32.xlu1 %v3152_v46, %s2817_s13  ;;  %1368 = vrot.lane.b32.xlu0 %v3122_v33, %s2816_s9 }
 0x15b   : > { %v3773_v2 = vpop.permute.xlu1 %1004  ;;  %v3775_v18 = vpop.permute.xlu0 %1002 }
 0x15c   : > { %4881 = vst [vmem:[#allocation60_spill] sm:$0xff] %v3773_v2  ;;  %4882 = vst [vmem:[#allocation61_spill] sm:$0xff] %v3775_v18 }
 0x15d   : > { %1464 = vrot.lane.b32.xlu1 %v4883_v5, %s2817_s13  ;;  %1178 = vrot.lane.b32.xlu0 %v3152_v46, %s2814_s20 }
 0x15f   : > { %v3781_v35 = vpop.permute.xlu1 %1008  ;;  %v3783_v13 = vpop.permute.xlu0 %1006 }
 0x160   : > { %4884 = vst [vmem:[#allocation3_spill] sm:$0xff] %v3781_v35  ;;  %4885 = vst [vmem:[#allocation62_spill] sm:$0xff] %v3783_v13 }
 0x161   : > { %1180 = vrot.lane.b32.xlu1 %v4883_v5, %s2814_s20  ;;  %1558 = vrot.lane.b32.xlu0 %v3425_v56, %s2818_s14 }
 0x163   : > { %v3789_v33 = vpop.permute.xlu1 %1012  ;;  %v3791_v52 = vpop.permute.xlu0 %1010 }
 0x164   : > { %4886 = vst [vmem:[#allocation63_spill] sm:$0xff] %v3789_v33  ;;  %4887 = vst [vmem:[#allocation64_spill] sm:$0xff] %v3791_v52  ;;  %v4906_v33 = vld [vmem:[#allocation11_spill] sm:$0xff] }
 0x165   : > { %1560 = vrot.lane.b32.xlu1 %v4888_v31, %s2818_s14  ;;  %1274 = vrot.lane.b32.xlu0 %v3425_v56, %s2815_s28 }
 0x167   : > { %v3797_v46 = vpop.permute.xlu1 %1016  ;;  %v3799_v3 = vpop.permute.xlu0 %1014 }
 0x168   : > { %4889 = vst [vmem:[#allocation30_spill] sm:$0xff] %v3797_v46  ;;  %4890 = vst [vmem:[#allocation65_spill] sm:$0xff] %v3799_v3  ;;  %v4896_v3 = vld [vmem:[#allocation4_spill] sm:$0xff] }
 0x169   : > { %1370 = vrot.lane.b32.xlu1 %v3147_v45, %s2816_s9  ;;  %1276 = vrot.lane.b32.xlu0 %v4888_v31, %s2815_s28 }
 0x16b   : > { %v3805_v5 = vpop.permute.xlu1 %1020  ;;  %v3807_v51 = vpop.permute.xlu0 %1018 }
 0x16c   : > { %4891 = vst [vmem:[#allocation66_spill] sm:$0xff] %v3805_v5  ;;  %4892 = vst [vmem:[#allocation67_spill] sm:$0xff] %v3807_v51 }
 0x16d   : > { %1466 = vrot.lane.b32.xlu1 %v4893_v27, %s2817_s13  ;;  %1372 = vrot.lane.b32.xlu0 %v3143_v43, %s2816_s9 }
 0x16f   : > { %v3813_v56 = vpop.permute.xlu1 %1024  ;;  %v3815_v46 = vpop.permute.xlu0 %1022 }
 0x170   : > { %4894 = vst [vmem:[#allocation5_spill] sm:$0xff] %v3813_v56  ;;  %4895 = vst [vmem:[#allocation68_spill] sm:$0xff] %v3815_v46  ;;  %v4901_v46 = vld [vmem:[#allocation31_spill] sm:$0xff] }
 0x171   : > { %1468 = vrot.lane.b32.xlu1 %v4896_v3, %s2817_s13  ;;  %1182 = vrot.lane.b32.xlu0 %v4893_v27, %s2814_s20 }
 0x173   : > { %v3821_v45 = vpop.permute.xlu1 %1028  ;;  %v3823_v31 = vpop.permute.xlu0 %1026 }
 0x174   : > { %4897 = vst [vmem:[#allocation4_spill] sm:$0xff] %v3821_v45  ;;  %4898 = vst [vmem:[#allocation69_spill] sm:$0xff] %v3823_v31 }
 0x175   : > { %1184 = vrot.lane.b32.xlu1 %v4896_v3, %s2814_s20  ;;  %1562 = vrot.lane.b32.xlu0 %v3440_v20, %s2818_s14 }
 0x177   : > { %v3829_v43 = vpop.permute.xlu1 %1032  ;;  %v3831_v56 = vpop.permute.xlu0 %1030 }
 0x178   : > { %4899 = vst [vmem:[#allocation70_spill] sm:$0xff] %v3829_v43  ;;  %4900 = vst [vmem:[#allocation71_spill] sm:$0xff] %v3831_v56  ;;  %v4904_v56 = vld [vmem:[#allocation7_spill] sm:$0xff] }
 0x179   : > { %1564 = vrot.lane.b32.xlu1 %v4901_v46, %s2818_s14  ;;  %1278 = vrot.lane.b32.xlu0 %v3440_v20, %s2815_s28 }
 0x17b   : > { %v3837_v27 = vpop.permute.xlu1 %1036  ;;  %v3839_v45 = vpop.permute.xlu0 %1034 }
 0x17c   : > { %4902 = vst [vmem:[#allocation31_spill] sm:$0xff] %v3837_v27  ;;  %4903 = vst [vmem:[#allocation72_spill] sm:$0xff] %v3839_v45  ;;  %v4905_v45 = vld [vmem:[#allocation6_spill] sm:$0xff] }
 0x17d   : > { %1374 = vrot.lane.b32.xlu1 %v3168_v55, %s2816_s9  ;;  %1280 = vrot.lane.b32.xlu0 %v4901_v46, %s2815_s28 }
 0x17f   : > { %v1073_v3 = vpop.permute.xlu1 %1072  ;;  %v1071_v43 = vpop.permute.xlu0 %1070 }
 0x181   : > { %1470 = vrot.lane.b32.xlu1 %v4904_v56, %s2817_s13  ;;  %1376 = vrot.lane.b32.xlu0 %v3164_v53, %s2816_s9 }
 0x183   : > { %v3849_v31 = vpop.permute.xlu1 %1076  ;;  %v3851_v20 = vpop.permute.xlu0 %1074 }
 0x185   : > { %1472 = vrot.lane.b32.xlu1 %v4905_v45, %s2817_s13  ;;  %1186 = vrot.lane.b32.xlu0 %v4904_v56, %s2814_s20 }
 0x187   : > { %v3857_v55 = vpop.permute.xlu1 %1080  ;;  %v3859_v46 = vpop.permute.xlu0 %1078 }
 0x189   : > { %1188 = vrot.lane.b32.xlu1 %v4905_v45, %s2814_s20  ;;  %1566 = vrot.lane.b32.xlu0 %v3451_v9, %s2818_s14 }
 0x18b   : > { %v3865_v53 = vpop.permute.xlu1 %1084  ;;  %v3867_v27 = vpop.permute.xlu0 %1082 }
 0x18d   : > { %1568 = vrot.lane.b32.xlu1 %v3448_v23, %s2818_s14  ;;  %1282 = vrot.lane.b32.xlu0 %v3451_v9, %s2815_s28 }
 0x18f   : > { %v3873_v56 = vpop.permute.xlu1 %1088  ;;  %v3875_v5 = vpop.permute.xlu0 %1086 }
 0x191   : > { %1378 = vrot.lane.b32.xlu1 %v3189_v1, %s2816_s9  ;;  %1284 = vrot.lane.b32.xlu0 %v3448_v23, %s2815_s28 }
 0x193   : > { %v3881_v45 = vpop.permute.xlu1 %1092  ;;  %v3883_v51 = vpop.permute.xlu0 %1090 }
 0x195   : > { %1474 = vrot.lane.b32.xlu1 %v4906_v33, %s2817_s13  ;;  %1380 = vrot.lane.b32.xlu0 %v3185_v63, %s2816_s9 }
 0x197   : > { %v1167_v9 = vpop.permute.xlu1 %1166  ;;  %v3889_v52 = vpop.permute.xlu0 %1094 }
 0x198   : > { %4907 = vst [vmem:[#allocation7_spill] sm:$0xff] %v3889_v52 }
 0x199   : > { %1190 = vrot.lane.b32.xlu1 %v4906_v33, %s2814_s20  ;;  %1096 = vrot.lane.b32.xlu0 %v3185_v63, %s2813_s11  ;;  %v2769_v33 = vld [vmem:[#allocation2] sm:$0xff] }
 0x19a   : > { %v1646_v63 = vsel %vm289_vm0, %v2769_v33, %v3534_v58 }
 0x19b   : > { %v1263_v1 = vpop.permute.xlu1 %1262  ;;  %v1169_v23 = vpop.permute.xlu0 %1168 }
 0x19d   : > { %1570 = vrot.lane.b32.xlu1 %v3466_v60, %s2818_s14  ;;  %1476 = vrot.lane.b32.xlu0 %v4908_v49, %s2817_s13 }
 0x19f   : > { %v1359_v35 = vpop.permute.xlu1 %1358  ;;  %v1265_v13 = vpop.permute.xlu0 %1264 }
 0x1a1   : > { %1286 = vrot.lane.b32.xlu1 %v3466_v60, %s2815_s28  ;;  %1192 = vrot.lane.b32.xlu0 %v4908_v49, %s2814_s20  ;;  %v1679_v60 = vsel %vm1678_vm6, %v1646_v63, %v3555_v54  ;;  %v2770_v49 = vld [vmem:[#allocation2 + $0x8] sm:$0xff] }
 0x1a2   : > { %v1647_v18 = vsel %vm289_vm0, %v2770_v49, %v3536_v6  ;;  %v1712_v58 = vsel %vm1711_vm7, %v1679_v60, %v1071_v43 }
 0x1a3   : > { %v1455_v30 = vpop.permute.xlu1 %1454  ;;  %v1361_v2 = vpop.permute.xlu0 %1360  ;;  %v1745_v52 = vsel %vm1744_vm8, %v1712_v58, %v1167_v9  ;;  %v1680_v6 = vsel %vm1678_vm6, %v1647_v18, %v3557_v41  ;;  %v4910_v58 = vld [vmem:[#allocation13_spill] sm:$0xff] }
 0x1a4   : > { %v1778_v17 = vsel %vm1777_vm9, %v1745_v52, %v1263_v1  ;;  %v1713_v43 = vsel %vm1711_vm7, %v1680_v6, %v1073_v3  ;;  %v4911_v41 = vld [vmem:[#allocation9_spill] sm:$0xff]  ;;  %v2771_v6 = vld [vmem:[#allocation2 + $0x18] sm:$0xff] }
 0x1a5   : > { %1288 = vrot.lane.b32.xlu1 %v3463_v42, %s2815_s28  ;;  %1572 = vrot.lane.b32.xlu0 %v3463_v42, %s2818_s14  ;;  %v4909_v42 = vld [vmem:[#allocation10_spill] sm:$0xff]  ;;  %v1811_v54 = vsel %vm1810_vm10, %v1778_v17, %v1359_v35  ;;  %v1746_v52 = vsel %vm1744_vm8, %v1713_v43, %v1169_v23 }
 0x1a6   : > { %v1844_v63 = vsel %vm1843_vm11, %v1811_v54, %v1455_v30  ;;  %v1779_v49 = vsel %vm1777_vm9, %v1746_v52, %v1265_v13  ;;  %v1648_v54 = vsel %vm289_vm0, %v2771_v6, %v3574_v38  ;;  %v4914_v6 = vld [vmem:[#allocation14_spill] sm:$0xff] }
 0x1a7   : > { %v1457_v33 = vpop.permute.xlu1 %1456  ;;  %v1171_v32 = vpop.permute.xlu0 %1170  ;;  %v1812_v17 = vsel %vm1810_vm10, %v1779_v49, %v1361_v2  ;;  %v4912_v2 = vld [vmem:[#allocation12_spill] sm:$0xff]  ;;  %v1681_v43 = vsel %vm1678_vm6, %v1648_v54, %v3727_v10  ;;  %v2772_v49 = vld [vmem:[#allocation2 + $0x20] sm:$0xff] }
 0x1a8   : > { %v1845_v30 = vsel %vm1843_vm11, %v1812_v17, %v1457_v33  ;;  %v1649_v38 = vsel %vm289_vm0, %v2772_v49, %v3572_v61 }
 0x1a9   : > { %1098 = vrot.lane.b32.xlu1 %v4909_v42, %s2813_s11  ;;  %1382 = vrot.lane.b32.xlu0 %v4909_v42, %s2816_s9 }
 0x1ab   : > { %v1173_v9 = vpop.permute.xlu1 %1172  ;;  %v1551_v60 = vpop.permute.xlu0 %1550 }
 0x1ac   : > { %v1877_v1 = vsel %vm1876_vm12, %v1844_v63, %v1551_v60  ;;  %v1714_v63 = vsel %vm1711_vm7, %v1681_v43, %v3851_v20 }
 0x1ad   : > { %1478 = vrot.lane.b32.xlu1 %v4910_v58, %s2817_s13  ;;  %1384 = vrot.lane.b32.xlu0 %v4911_v41, %s2816_s9 }
 0x1ae   : > { %2677 = vmatprep.mubr.msk.f32.mxu0 %vm1925_vm13, %v1877_v1  ;;  %v1747_v1 = vsel %vm1744_vm8, %v1714_v63, %v1171_v32 }
 0x1af   : > { %v1553_v18 = vpop.permute.xlu1 %1552  ;;  %v1267_v35 = vpop.permute.xlu0 %1266 }
 0x1b0   : > { %v1878_v3 = vsel %vm1876_vm12, %v1845_v30, %v1553_v18 }
 0x1b1   : > { %1194 = vrot.lane.b32.xlu1 %v4910_v58, %s2814_s20  ;;  %1100 = vrot.lane.b32.xlu0 %v4911_v41, %s2813_s11  ;;  %v1780_v58 = vsel %vm1777_vm9, %v1747_v1, %v1267_v35  ;;  %v2774_v1 = vld [vmem:[#allocation2 + $0x38] sm:$0xff] }
 0x1b2   : > { %2678 = vmatmul.mubr.msk.f32.vlgmr.msra.gmra.mrb[0].mxu0 %vm1925_vm13, %v1878_v3  ;;  %v4913_v3 = vld [vmem:[#allocation17_spill] sm:$0xff] }
 0x1b3   : > { %v1363_v13 = vpop.permute.xlu1 %1362  ;;  %v1269_v23 = vpop.permute.xlu0 %1268 }
 0x1b4   : > { %v1813_v10 = vsel %vm1810_vm10, %v1780_v58, %v1363_v13 }
 0x1b5   : > { %1574 = vrot.lane.b32.xlu1 %v3477_v15, %s2818_s14  ;;  %1480 = vrot.lane.b32.xlu0 %v4912_v2, %s2817_s13 }
 0x1b7   : > { %v1459_v33 = vpop.permute.xlu1 %1458  ;;  %v1365_v42 = vpop.permute.xlu0 %1364 }
 0x1b8   : > { %v1846_v20 = vsel %vm1843_vm11, %v1813_v10, %v1459_v33  ;;  %v2773_v33 = vld [vmem:[#allocation2 + $0x30] sm:$0xff] }
 0x1b9   : > { %1290 = vrot.lane.b32.xlu1 %v3477_v15, %s2815_s28  ;;  %1196 = vrot.lane.b32.xlu0 %v4912_v2, %s2814_s20  ;;  %v1682_v15 = vsel %vm1678_vm6, %v1649_v38, %v3725_v28 }
 0x1ba   : > { %v1715_v32 = vsel %vm1711_vm7, %v1682_v15, %v3849_v31 }
 0x1bb   : > { %v1461_v60 = vpop.permute.xlu1 %1460  ;;  %v1175_v52 = vpop.permute.xlu0 %1174  ;;  %v1748_v17 = vsel %vm1744_vm8, %v1715_v32, %v1173_v9 }
 0x1bc   : > { %v1781_v18 = vsel %vm1777_vm9, %v1748_v17, %v1269_v23 }
 0x1bd   : > { %1292 = vrot.lane.b32.xlu1 %v3474_v44, %s2815_s28  ;;  %1576 = vrot.lane.b32.xlu0 %v3474_v44, %s2818_s14  ;;  %v1814_v44 = vsel %vm1810_vm10, %v1781_v18, %v1365_v42  ;;  %v1650_v42 = vsel %vm289_vm0, %v2773_v33, %v3588_v7  ;;  %v1651_v7 = vsel %vm289_vm0, %v2774_v1, %v3586_v62  ;;  %v4917_v18 = vld [vmem:[#allocation15_spill] sm:$0xff] }
 0x1be   : > { %v1847_v28 = vsel %vm1843_vm11, %v1814_v44, %v1461_v60  ;;  %v1683_v54 = vsel %vm1678_vm6, %v1650_v42, %v3735_v29  ;;  %v1684_v29 = vsel %vm1678_vm6, %v1651_v7, %v3733_v48  ;;  %v4918_v42 = vld [vmem:[#allocation18_spill] sm:$0xff] }
 0x1bf   : > { %v1177_v41 = vpop.permute.xlu1 %1176  ;;  %v1555_v61 = vpop.permute.xlu0 %1554  ;;  %v1716_v43 = vsel %vm1711_vm7, %v1683_v54, %v3859_v46 }
 0x1c0   : > { %v1879_v30 = vsel %vm1876_vm12, %v1846_v20, %v1555_v61  ;;  %v1749_v60 = vsel %vm1744_vm8, %v1716_v43, %v1175_v52  ;;  %v1717_v52 = vsel %vm1711_vm7, %v1684_v29, %v3857_v55  ;;  %v4915_v61 = vld [vmem:[#allocation16_spill] sm:$0xff] }
 0x1c1   : > { %1102 = vrot.lane.b32.xlu1 %v3231_v39, %s2813_s11  ;;  %1386 = vrot.lane.b32.xlu0 %v3231_v39, %s2816_s9  ;;  %v1750_v15 = vsel %vm1744_vm8, %v1717_v52, %v1177_v41 }
 0x1c2   : > { %2680 = vmatprep.mubr.msk.f32.mxu0 %vm1925_vm13, %v1879_v30  ;;  %v4916_v30 = vld [vmem:[#allocation19_spill] sm:$0xff] }
 0x1c3   : > { %v1557_v31 = vpop.permute.xlu1 %1556  ;;  %v1271_v35 = vpop.permute.xlu0 %1270 }
 0x1c4   : > { %v1880_v9 = vsel %vm1876_vm12, %v1847_v28, %v1557_v31  ;;  %v1782_v49 = vsel %vm1777_vm9, %v1749_v60, %v1271_v35  ;;  %v2775_v31 = vld [vmem:[#allocation2 + $0x48] sm:$0xff] }
 0x1c5   : > { %1482 = vrot.lane.b32.xlu1 %v4913_v3, %s2817_s13  ;;  %1388 = vrot.lane.b32.xlu0 %v3227_v37, %s2816_s9  ;;  %v1652_v35 = vsel %vm289_vm0, %v2775_v31, %v3596_v47 }
 0x1c6   : > { %2681 = vmatmul.mubr.msk.f32.gmra.mrb[2].mxu0 %vm1925_vm13, %v1880_v9  ;;  %v1685_v9 = vsel %vm1678_vm6, %v1652_v35, %v3743_v40 }
 0x1c7   : > { %v1367_v13 = vpop.permute.xlu1 %1366  ;;  %v1273_v39 = vpop.permute.xlu0 %1272 }
 0x1c8   : > { %v1815_v46 = vsel %vm1810_vm10, %v1782_v49, %v1367_v13 }
 0x1c9   : > { %1198 = vrot.lane.b32.xlu1 %v4913_v3, %s2814_s20  ;;  %1104 = vrot.lane.b32.xlu0 %v3227_v37, %s2813_s11  ;;  %v1718_v3 = vsel %vm1711_vm7, %v1685_v9, %v3867_v27 }
 0x1cb   : > { %v1463_v23 = vpop.permute.xlu1 %1462  ;;  %v1369_v2 = vpop.permute.xlu0 %1368 }
 0x1cc   : > { %v1848_v38 = vsel %vm1843_vm11, %v1815_v46, %v1463_v23  ;;  %v4073_v46 = vld [vmem:[#allocation2 + $0x108] sm:$0xff] }
 0x1cd   : > { %1578 = vrot.lane.b32.xlu1 %v3492_v14, %s2818_s14  ;;  %1484 = vrot.lane.b32.xlu0 %v4914_v6, %s2817_s13 }
 0x1cf   : > { %v1465_v63 = vpop.permute.xlu1 %1464  ;;  %v1179_v37 = vpop.permute.xlu0 %1178 }
 0x1d0   : > { %v1751_v23 = vsel %vm1744_vm8, %v1718_v3, %v1179_v37 }
 0x1d1   : > { %1294 = vrot.lane.b32.xlu1 %v3492_v14, %s2815_s28  ;;  %1200 = vrot.lane.b32.xlu0 %v4914_v6, %s2814_s20  ;;  %v1783_v14 = vsel %vm1777_vm9, %v1750_v15, %v1273_v39  ;;  %v4083_v15 = vld [vmem:[#allocation2 + $0x110] sm:$0xff] }
 0x1d2   : > { %v1816_v48 = vsel %vm1810_vm10, %v1783_v14, %v1369_v2  ;;  %v2776_v2 = vld [vmem:[#allocation2 + $0x50] sm:$0xff] }
 0x1d3   : > { %v1181_v58 = vpop.permute.xlu1 %1180  ;;  %v1559_v62 = vpop.permute.xlu0 %1558  ;;  %v1849_v55 = vsel %vm1843_vm11, %v1816_v48, %v1465_v63  ;;  %v1653_v47 = vsel %vm289_vm0, %v2776_v2, %v3594_v12  ;;  %v2781_v2 = vld [vmem:[#allocation2 + $0x78] sm:$0xff] }
 0x1d4   : > { %v1881_v10 = vsel %vm1876_vm12, %v1848_v38, %v1559_v62  ;;  %v1686_v40 = vsel %vm1678_vm6, %v1653_v47, %v3741_v24  ;;  %v1656_v47 = vsel %vm289_vm0, %v2781_v2, %v3612_v8 }
 0x1d5   : > { %1296 = vrot.lane.b32.xlu1 %v3489_v19, %s2815_s28  ;;  %1580 = vrot.lane.b32.xlu0 %v3489_v19, %s2818_s14  ;;  %v1719_v6 = vsel %vm1711_vm7, %v1686_v40, %v3865_v53 }
 0x1d6   : > { %2683 = vmatprep.mubr.msk.f32.mxu0 %vm1925_vm13, %v1881_v10  ;;  %v1752_v63 = vsel %vm1744_vm8, %v1719_v6, %v1181_v58  ;;  %v2778_v58 = vld [vmem:[#allocation2 + $0x60] sm:$0xff]  ;;  %v4921_v6 = vld [vmem:[#allocation23_spill] sm:$0xff] }
 0x1d7   : > { %v1561_v32 = vpop.permute.xlu1 %1560  ;;  %v1275_v20 = vpop.permute.xlu0 %1274  ;;  %v1654_v62 = vsel %vm289_vm0, %v2778_v58, %v3604_v11 }
 0x1d8   : > { %v1882_v41 = vsel %vm1876_vm12, %v1849_v55, %v1561_v32  ;;  %v1784_v33 = vsel %vm1777_vm9, %v1751_v23, %v1275_v20  ;;  %v1687_v10 = vsel %vm1678_vm6, %v1654_v62, %v3751_v16  ;;  %v2780_v20 = vld [vmem:[#allocation2 + $0x68] sm:$0xff] }
 0x1d9   : > { %1106 = vrot.lane.b32.xlu1 %v4915_v61, %s2813_s11  ;;  %1390 = vrot.lane.b32.xlu0 %v4915_v61, %s2816_s9  ;;  %v1720_v14 = vsel %vm1711_vm7, %v1687_v10, %v3875_v5  ;;  %v1655_v11 = vsel %vm289_vm0, %v2780_v20, %v3602_v21 }
 0x1da   : > { %2684 = vmatmul.mubr.msk.f32.gmra.mrb[4].mxu0 %vm1925_vm13, %v1882_v41  ;;  %v1688_v16 = vsel %vm1678_vm6, %v1655_v11, %v3749_v22  ;;  %v4920_v22 = vld [vmem:[#allocation20_spill] sm:$0xff]  ;;  %v4925_v11 = vld [vmem:[#allocation7_spill] sm:$0xff] }
 0x1db   : > { %v1371_v17 = vpop.permute.xlu1 %1370  ;;  %v1277_v19 = vpop.permute.xlu0 %1276  ;;  %v1721_v61 = vsel %vm1711_vm7, %v1688_v16, %v3873_v56 }
 0x1dc   : > { %v1817_v27 = vsel %vm1810_vm10, %v1784_v33, %v1371_v17  ;;  %v1785_v60 = vsel %vm1777_vm9, %v1752_v63, %v1277_v19  ;;  %v1689_v33 = vsel %vm1678_vm6, %v1656_v47, %v3759_v50  ;;  %v4929_v47 = vld [vmem:[#allocation33_spill] sm:$0xff] }
 0x1dd   : > { %1486 = vrot.lane.b32.xlu1 %v4916_v30, %s2817_s13  ;;  %1392 = vrot.lane.b32.xlu0 %v4917_v18, %s2816_s9 }
 0x1df   : > { %v1467_v44 = vpop.permute.xlu1 %1466  ;;  %v1373_v28 = vpop.permute.xlu0 %1372 }
 0x1e0   : > { %v1850_v54 = vsel %vm1843_vm11, %v1817_v27, %v1467_v44  ;;  %v1818_v24 = vsel %vm1810_vm10, %v1785_v60, %v1373_v28 }
 0x1e1   : > { %1202 = vrot.lane.b32.xlu1 %v4916_v30, %s2814_s20  ;;  %1108 = vrot.lane.b32.xlu0 %v4917_v18, %s2813_s11 }
 0x1e3   : > { %v1469_v13 = vpop.permute.xlu1 %1468  ;;  %v1183_v39 = vpop.permute.xlu0 %1182 }
 0x1e4   : > { %v1851_v53 = vsel %vm1843_vm11, %v1818_v24, %v1469_v13  ;;  %v1753_v32 = vsel %vm1744_vm8, %v1720_v14, %v1183_v39  ;;  %v2785_v14 = vld [vmem:[#allocation2 + $0x90] sm:$0xff] }
 0x1e5   : > { %1582 = vrot.lane.b32.xlu1 %v3503_v57, %s2818_s14  ;;  %1488 = vrot.lane.b32.xlu0 %v4918_v42, %s2817_s13 }
 0x1e7   : > { %v1185_v43 = vpop.permute.xlu1 %1184  ;;  %v1563_v12 = vpop.permute.xlu0 %1562 }
 0x1e8   : > { %v1883_v37 = vsel %vm1876_vm12, %v1850_v54, %v1563_v12  ;;  %v1754_v30 = vsel %vm1744_vm8, %v1721_v61, %v1185_v43  ;;  %v4143_v54 = vld [vmem:[#allocation2 + $0x128] sm:$0xff] }
 0x1e9   : > { %1298 = vrot.lane.b32.xlu1 %v3503_v57, %s2815_s28  ;;  %1204 = vrot.lane.b32.xlu0 %v4918_v42, %s2814_s20 }
 0x1ea   : > { %2686 = vmatprep.mubr.msk.f32.mxu0 %vm1925_vm13, %v1883_v37  ;;  %v2784_v37 = vld [vmem:[#allocation2 + $0x80] sm:$0xff] }
 0x1eb   : > { %v1565_v1 = vpop.permute.xlu1 %1564  ;;  %v1279_v7 = vpop.permute.xlu0 %1278  ;;  %v1657_v60 = vsel %vm289_vm0, %v2784_v37, %v3610_v4  ;;  %v4932_v37 = vld [vmem:[#allocation41_spill] sm:$0xff] }
 0x1ec   : > { %v1884_v49 = vsel %vm1876_vm12, %v1851_v53, %v1565_v1  ;;  %v1786_v41 = vsel %vm1777_vm9, %v1753_v32, %v1279_v7  ;;  %v1690_v24 = vsel %vm1678_vm6, %v1657_v60, %v3757_v36  ;;  %v4924_v32 = vld [vmem:[#allocation59_spill] sm:$0xff] }
 0x1ed   : > { %1300 = vrot.lane.b32.xlu1 %v3500_v0, %s2815_s28  ;;  %1584 = vrot.lane.b32.xlu0 %v3500_v0, %s2818_s14  ;;  %v4919_v0 = vld [vmem:[#allocation21_spill] sm:$0xff]  ;;  %v1723_v53 = vsel %vm1711_vm7, %v1690_v24, %v3881_v45  ;;  %v4235_v24 = vld [vmem:[#allocation2 + $0x150] sm:$0xff] }
 0x1ee   : > { %2687 = vmatmul.mubr.msk.f32.gmra.mrb[6].mxu0 %vm1925_vm13, %v1884_v49 }
 0x1ef   : > { %v1375_v57 = vpop.permute.xlu1 %1374  ;;  %v1281_v29 = vpop.permute.xlu0 %1280 }
 0x1f0   : > { %v1819_v5 = vsel %vm1810_vm10, %v1786_v41, %v1375_v57  ;;  %v1787_v44 = vsel %vm1777_vm9, %v1754_v30, %v1281_v29  ;;  %v4922_v57 = vld [vmem:[#allocation22_spill] sm:$0xff] }
 0x1f1   : > { %1110 = vrot.lane.b32.xlu1 %v4073_v46, %s2813_s11  ;;  %1394 = vrot.lane.b32.xlu0 %v4073_v46, %s2816_s9 }
 0x1f3   : > { %v1471_v52 = vpop.permute.xlu1 %1470  ;;  %v1377_v38 = vpop.permute.xlu0 %1376 }
 0x1f4   : > { %v1852_v17 = vsel %vm1843_vm11, %v1819_v5, %v1471_v52  ;;  %v1820_v28 = vsel %vm1810_vm10, %v1787_v44, %v1377_v38 }
 0x1f5   : > { %1490 = vrot.lane.b32.xlu1 %v4919_v0, %s2817_s13  ;;  %1396 = vrot.lane.b32.xlu0 %v4083_v15, %s2816_s9 }
 0x1f7   : > { %v1473_v48 = vpop.permute.xlu1 %1472  ;;  %v1187_v55 = vpop.permute.xlu0 %1186 }
 0x1f8   : > { %v1853_v56 = vsel %vm1843_vm11, %v1820_v28, %v1473_v48  ;;  %v4923_v48 = vld [vmem:[#allocation39_spill] sm:$0xff]  ;;  %v2788_v28 = vld [vmem:[#allocation2 + $0x98] sm:$0xff] }
 0x1f9   : > { %1206 = vrot.lane.b32.xlu1 %v4919_v0, %s2814_s20  ;;  %1112 = vrot.lane.b32.xlu0 %v4083_v15, %s2813_s11 }
 0x1fb   : > { %v1189_v19 = vpop.permute.xlu1 %1188  ;;  %v1567_v21 = vpop.permute.xlu0 %1566 }
 0x1fc   : > { %v1885_v18 = vsel %vm1876_vm12, %v1852_v17, %v1567_v21  ;;  %v1756_v49 = vsel %vm1744_vm8, %v1723_v53, %v1189_v19  ;;  %v4926_v17 = vld [vmem:[#allocation25_spill] sm:$0xff] }
 0x1fd   : > { %1586 = vrot.lane.b32.xlu1 %v3518_v34, %s2818_s14  ;;  %1492 = vrot.lane.b32.xlu0 %v4920_v22, %s2817_s13  ;;  %v4197_v19 = vld [vmem:[#allocation2 + $0x140] sm:$0xff] }
 0x1fe   : > { %2689 = vmatprep.mubr.msk.f32.mxu0 %vm1925_vm13, %v1885_v18  ;;  %v4933_v53 = vld [vmem:[#allocation61_spill] sm:$0xff] }
 0x1ff   : > { %v1569_v31 = vpop.permute.xlu1 %1568  ;;  %v1283_v35 = vpop.permute.xlu0 %1282 }
 0x200   : > { %v1886_v9 = vsel %vm1876_vm12, %v1853_v56, %v1569_v31  ;;  %v4927_v56 = vld [vmem:[#allocation38_spill] sm:$0xff] }
 0x201   : > { %1302 = vrot.lane.b32.xlu1 %v3518_v34, %s2815_s28  ;;  %1208 = vrot.lane.b32.xlu0 %v4920_v22, %s2814_s20  ;;  %v4127_v34 = vld [vmem:[#allocation2 + $0x120] sm:$0xff]  ;;  %v1659_v31 = vsel %vm289_vm0, %v2788_v28, %v4927_v56  ;;  %v4939_v56 = vld [vmem:[#allocation34_spill] sm:$0xff] }
 0x202   : > { %2690 = vmatmul.mubr.msk.f32.gmra.mrb[8].mxu0 %vm1925_vm13, %v1886_v9 }
 0x203   : > { %v1379_v3 = vpop.permute.xlu1 %1378  ;;  %v1285_v13 = vpop.permute.xlu0 %1284 }
 0x204   : > { %v1789_v4 = vsel %vm1777_vm9, %v1756_v49, %v1285_v13 }
 0x205   : > { %1304 = vrot.lane.b32.xlu1 %v3515_v59, %s2815_s28  ;;  %1588 = vrot.lane.b32.xlu0 %v3515_v59, %s2818_s14  ;;  %v1722_v59 = vsel %vm1711_vm7, %v1689_v33, %v3883_v51  ;;  %v4930_v33 = vld [vmem:[#allocation24_spill] sm:$0xff] }
 0x206   : > { %v1755_v27 = vsel %vm1744_vm8, %v1722_v59, %v1187_v55  ;;  %v1658_v55 = vsel %vm289_vm0, %v2785_v14, %v4923_v48  ;;  %v4935_v14 = vld [vmem:[#allocation40_spill] sm:$0xff] }
 0x207   : > { %v1475_v39 = vpop.permute.xlu1 %1474  ;;  %v1381_v23 = vpop.permute.xlu0 %1380  ;;  %v1788_v8 = vsel %vm1777_vm9, %v1755_v27, %v1283_v35  ;;  %v1691_v20 = vsel %vm1678_vm6, %v1658_v55, %v4924_v32  ;;  %v4928_v35 = vld [vmem:[#allocation58_spill] sm:$0xff]  ;;  %v4936_v55 = vld [vmem:[#allocation60_spill] sm:$0xff] }
 0x208   : > { %v1821_v50 = vsel %vm1810_vm10, %v1788_v8, %v1379_v3  ;;  %v1822_v29 = vsel %vm1810_vm10, %v1789_v4, %v1381_v23  ;;  %v1692_v9 = vsel %vm1678_vm6, %v1659_v31, %v4928_v35 }
 0x209   : > { %1114 = vrot.lane.b32.xlu1 %v4127_v34, %s2813_s11  ;;  %1398 = vrot.lane.b32.xlu0 %v4127_v34, %s2816_s9  ;;  %v1854_v43 = vsel %vm1843_vm11, %v1821_v50, %v1475_v39 }
 0x20b   : > { %v1191_v42 = vpop.permute.xlu1 %1190  ;;  %v4137_v40 = vpop.permute.xlu0 %1096 }
 0x20c   : > { %v1725_v3 = vsel %vm1711_vm7, %v1692_v9, %v4137_v40  ;;  %v2793_v9 = vld [vmem:[#allocation2 + $0xc0] sm:$0xff] }
 0x20d   : > { %1494 = vrot.lane.b32.xlu1 %v4921_v6, %s2817_s13  ;;  %1400 = vrot.lane.b32.xlu0 %v4143_v54, %s2816_s9 }
 0x20f   : > { %v1571_v51 = vpop.permute.xlu1 %1570  ;;  %v1477_v12 = vpop.permute.xlu0 %1476 }
 0x210   : > { %v1887_v63 = vsel %vm1876_vm12, %v1854_v43, %v1571_v51  ;;  %v1855_v36 = vsel %vm1843_vm11, %v1822_v29, %v1477_v12  ;;  %v4931_v43 = vld [vmem:[#allocation32_spill] sm:$0xff] }
 0x211   : > { %1210 = vrot.lane.b32.xlu1 %v4921_v6, %s2814_s20  ;;  %1116 = vrot.lane.b32.xlu0 %v4143_v54, %s2813_s11 }
 0x212   : > { %2692 = vmatprep.mubr.msk.f32.mxu0 %vm1925_vm13, %v1887_v63  ;;  %v2789_v63 = vld [vmem:[#allocation2 + $0xa8] sm:$0xff] }
 0x213   : > { %v1287_v1 = vpop.permute.xlu1 %1286  ;;  %v1193_v7 = vpop.permute.xlu0 %1192  ;;  %v1660_v60 = vsel %vm289_vm0, %v2789_v63, %v4932_v37  ;;  %v2796_v63 = vld [vmem:[#allocation2 + $0xc8] sm:$0xff] }
 0x214   : > { %v1758_v23 = vsel %vm1744_vm8, %v1725_v3, %v1193_v7  ;;  %v4940_v3 = vld [vmem:[#allocation43_spill] sm:$0xff]  ;;  %v4943_v37 = vld [vmem:[#allocation42_spill] sm:$0xff] }
 0x215   : > { %1590 = vrot.lane.b32.xlu1 %v3529_v26, %s2818_s14  ;;  %1496 = vrot.lane.b32.xlu0 %v4922_v57, %s2817_s13 }
 0x217   : > { %v1289_v52 = vpop.permute.xlu1 %1288  ;;  %v1573_v38 = vpop.permute.xlu0 %1572 }
 0x218   : > { %v1888_v45 = vsel %vm1876_vm12, %v1855_v36, %v1573_v38  ;;  %v1791_v2 = vsel %vm1777_vm9, %v1758_v23, %v1289_v52  ;;  %v4934_v36 = vld [vmem:[#allocation27_spill] sm:$0xff]  ;;  %v4250_v52 = vld [vmem:[#allocation2 + $0x158] sm:$0xff]  ;;  %v4941_v23 = vld [vmem:[#allocation62_spill] sm:$0xff] }
 0x219   : > { %1306 = vrot.lane.b32.xlu1 %v3529_v26, %s2815_s28  ;;  %1212 = vrot.lane.b32.xlu0 %v4922_v57, %s2814_s20  ;;  %v4181_v26 = vld [vmem:[#allocation2 + $0x138] sm:$0xff] }
 0x21a   : > { %2693 = vmatmul.mubr.msk.f32.gmra.mrb[10].mxu0 %vm1925_vm13, %v1888_v45 }
 0x21b   : > { %v1099_v58 = vpop.permute.xlu1 %1098  ;;  %v1383_v62 = vpop.permute.xlu0 %1382 }
 0x21d   : > { %1308 = vrot.lane.b32.xlu1 %v3526_v25, %s2815_s28  ;;  %1592 = vrot.lane.b32.xlu0 %v3526_v25, %s2818_s14  ;;  %v1724_v25 = vsel %vm1711_vm7, %v1691_v20, %v4925_v11 }
 0x21e   : > { %v1757_v5 = vsel %vm1744_vm8, %v1724_v25, %v1191_v42 }
 0x21f   : > { %v1479_v0 = vpop.permute.xlu1 %1478  ;;  %v1385_v10 = vpop.permute.xlu0 %1384  ;;  %v1790_v61 = vsel %vm1777_vm9, %v1757_v5, %v1287_v1  ;;  %v1693_v1 = vsel %vm1678_vm6, %v1660_v60, %v4933_v53  ;;  %v1663_v60 = vsel %vm289_vm0, %v2796_v63, %v4943_v37  ;;  %v4944_v53 = vld [vmem:[#allocation3_spill] sm:$0xff] }
 0x220   : > { %v1823_v21 = vsel %vm1810_vm10, %v1790_v61, %v1383_v62  ;;  %v1824_v59 = vsel %vm1810_vm10, %v1791_v2, %v1385_v10  ;;  %v1726_v7 = vsel %vm1711_vm7, %v1693_v1, %v1099_v58  ;;  %v2792_v10 = vld [vmem:[#allocation2 + $0xb0] sm:$0xff]  ;;  %v1696_v1 = vsel %vm1678_vm6, %v1663_v60, %v4944_v53 }
 0x221   : > { %1118 = vrot.lane.b32.xlu1 %v4181_v26, %s2813_s11  ;;  %1402 = vrot.lane.b32.xlu0 %v4181_v26, %s2816_s9  ;;  %v1856_v30 = vsel %vm1843_vm11, %v1823_v21, %v1479_v0  ;;  %v1661_v48 = vsel %vm289_vm0, %v2792_v10, %v4935_v14  ;;  %v4937_v61 = vld [vmem:[#allocation35_spill] sm:$0xff] }
 0x222   : > { %v1694_v32 = vsel %vm1678_vm6, %v1661_v48, %v4936_v55  ;;  %v4947_v55 = vld [vmem:[#allocation36_spill] sm:$0xff] }
 0x223   : > { %v1195_v41 = vpop.permute.xlu1 %1194  ;;  %v4191_v16 = vpop.permute.xlu0 %1100 }
 0x224   : > { %v1759_v57 = vsel %vm1744_vm8, %v1726_v7, %v1195_v41  ;;  %v1727_v20 = vsel %vm1711_vm7, %v1694_v32, %v4191_v16  ;;  %v636_v32 = vld [vmem:[#allocation2 + $0x180] sm:$0xff] }
 0x225   : > { %1498 = vrot.lane.b32.xlu1 %v4926_v17, %s2817_s13  ;;  %1404 = vrot.lane.b32.xlu0 %v4197_v19, %s2816_s9 }
 0x227   : > { %v1575_v18 = vpop.permute.xlu1 %1574  ;;  %v1481_v44 = vpop.permute.xlu0 %1480 }
 0x228   : > { %v1889_v22 = vsel %vm1876_vm12, %v1856_v30, %v1575_v18  ;;  %v1857_v42 = vsel %vm1843_vm11, %v1824_v59, %v1481_v44 }
 0x229   : > { %1214 = vrot.lane.b32.xlu1 %v4926_v17, %s2814_s20  ;;  %1120 = vrot.lane.b32.xlu0 %v4197_v19, %s2813_s11  ;;  %v4938_v17 = vld [vmem:[#allocation26_spill] sm:$0xff] }
 0x22a   : > { %2695 = vmatprep.mubr.msk.f32.mxu0 %vm1925_vm13, %v1889_v22 }
 0x22b   : > { %v1291_v13 = vpop.permute.xlu1 %1290  ;;  %v1197_v39 = vpop.permute.xlu0 %1196 }
 0x22c   : > { %v1792_v29 = vsel %vm1777_vm9, %v1759_v57, %v1291_v13  ;;  %v1760_v41 = vsel %vm1744_vm8, %v1727_v20, %v1197_v39  ;;  %v1662_v13 = vsel %vm289_vm0, %v2793_v9, %v4940_v3  ;;  %v4288_v39 = vld [vmem:[#allocation2 + $0x168] sm:$0xff]  ;;  %v638_v9 = vld [vmem:[#allocation2 + $0x190] sm:$0x3] }
 0x22d   : > { %1594 = vrot.lane.b32.xlu1 %v4929_v47, %s2818_s14  ;;  %1500 = vrot.lane.b32.xlu0 %v4930_v33, %s2817_s13  ;;  %v1695_v2 = vsel %vm1678_vm6, %v1662_v13, %v4941_v23  ;;  %v637_v20 = vld [vmem:[#allocation2 + $0x188] sm:$0xff] }
 0x22f   : > { %v1293_v27 = vpop.permute.xlu1 %1292  ;;  %v1577_v8 = vpop.permute.xlu0 %1576 }
 0x230   : > { %v1890_v40 = vsel %vm1876_vm12, %v1857_v42, %v1577_v8  ;;  %v1793_v5 = vsel %vm1777_vm9, %v1760_v41, %v1293_v27  ;;  %v4942_v8 = vld [vmem:[#allocation29_spill] sm:$0xff]  ;;  %v855_v41 = vrot.slane %v636_v32, 1 }
 0x231   : > { %1310 = vrot.lane.b32.xlu1 %v4929_v47, %s2815_s28  ;;  %1216 = vrot.lane.b32.xlu0 %v4930_v33, %s2814_s20 }
 0x232   : > { %2696 = vmatmul.mubr.msk.f32.gmra.mrb[12].mxu0 %vm1925_vm13, %v1890_v40  ;;  %v4303_v40 = vld [vmem:[#allocation2 + $0x170] sm:$0xff] }
 0x233   : > { %v1103_v6 = vpop.permute.xlu1 %1102  ;;  %v1387_v50 = vpop.permute.xlu0 %1386 }
 0x234   : > { %v1825_v38 = vsel %vm1810_vm10, %v1792_v29, %v1387_v50  ;;  %v1728_v47 = vsel %vm1711_vm7, %v1695_v2, %v1103_v6  ;;  %v860_v2 = vrot.slane %v636_v32, 2 }
 0x235   : > { %1312 = vrot.lane.b32.xlu1 %v4931_v43, %s2815_s28  ;;  %1596 = vrot.lane.b32.xlu0 %v4931_v43, %s2818_s14 }
 0x237   : > { %v1483_v51 = vpop.permute.xlu1 %1482  ;;  %v1389_v12 = vpop.permute.xlu0 %1388 }
 0x238   : > { %v1858_v45 = vsel %vm1843_vm11, %v1825_v38, %v1483_v51  ;;  %v1826_v21 = vsel %vm1810_vm10, %v1793_v5, %v1389_v12  ;;  %v4945_v38 = vld [vmem:[#allocation37_spill] sm:$0xff]  ;;  %v856_v5 = vrot.slane %v637_v20, 1 }
 0x239   : > { %1122 = vrot.lane.b32.xlu1 %v4235_v24, %s2813_s11  ;;  %1406 = vrot.lane.b32.xlu0 %v4235_v24, %s2816_s9 }
 0x23b   : > { %v1199_v49 = vpop.permute.xlu1 %1198  ;;  %v4244_v4 = vpop.permute.xlu0 %1104 }
 0x23c   : > { %v1761_v42 = vsel %vm1744_vm8, %v1728_v47, %v1199_v49  ;;  %v1729_v7 = vsel %vm1711_vm7, %v1696_v1, %v4244_v4 }
 0x23d   : > { %1502 = vrot.lane.b32.xlu1 %v4934_v36, %s2817_s13  ;;  %1408 = vrot.lane.b32.xlu0 %v4250_v52, %s2816_s9 }
 0x23f   : > { %v1579_v58 = vpop.permute.xlu1 %1578  ;;  %v1485_v62 = vpop.permute.xlu0 %1484 }
 0x240   : > { %v1891_v0 = vsel %vm1876_vm12, %v1858_v45, %v1579_v58  ;;  %v1859_v30 = vsel %vm1843_vm11, %v1826_v21, %v1485_v62  ;;  %v4946_v45 = vld [vmem:[#allocation28_spill] sm:$0xff] }
 0x241   : > { %1218 = vrot.lane.b32.xlu1 %v4934_v36, %s2814_s20  ;;  %1124 = vrot.lane.b32.xlu0 %v4250_v52, %s2813_s11 }
 0x242   : > { %2698 = vmatprep.mubr.msk.f32.mxu0 %vm1925_vm13, %v1891_v0 }
 0x243   : > { %v1295_v11 = vpop.permute.xlu1 %1294  ;;  %v1201_v25 = vpop.permute.xlu0 %1200 }
 0x244   : > { %v1794_v27 = vsel %vm1777_vm9, %v1761_v42, %v1295_v11  ;;  %v1762_v29 = vsel %vm1744_vm8, %v1729_v7, %v1201_v25  ;;  %v861_v42 = vrot.slane %v637_v20, 2 }
 0x245   : > { %1598 = vrot.lane.b32.xlu1 %v4937_v61, %s2818_s14  ;;  %1504 = vrot.lane.b32.xlu0 %v4938_v17, %s2817_s13 }
 0x246   : > { %v862_v60 = vsel %vm771_vm4, %v860_v2, %v861_v42 }
 0x247   : > { %v1297_v18 = vpop.permute.xlu1 %1296  ;;  %v1581_v44 = vpop.permute.xlu0 %1580 }
 0x248   : > { %v1892_v16 = vsel %vm1876_vm12, %v1859_v30, %v1581_v44  ;;  %v1795_v36 = vsel %vm1777_vm9, %v1762_v29, %v1297_v18  ;;  %v4949_v30 = vld [vmem:[#allocation64_spill] sm:$0xff] }
 0x249   : > { %1314 = vrot.lane.b32.xlu1 %v4937_v61, %s2815_s28  ;;  %1220 = vrot.lane.b32.xlu0 %v4938_v17, %s2814_s20  ;;  %v2797_v61 = vld [vmem:[#allocation2 + $0xd8] sm:$0xff]  ;;  %v4948_v17 = vld [vmem:[#allocation45_spill] sm:$0xff] }
 0x24a   : > { %2699 = vmatmul.mubr.msk.f32.gmra.mrb[14].mxu0 %vm1925_vm13, %v1892_v16  ;;  %v1664_v21 = vsel %vm289_vm0, %v2797_v61, %v4948_v17 }
 0x24b   : > { %v1107_v22 = vpop.permute.xlu1 %1106  ;;  %v1391_v28 = vpop.permute.xlu0 %1390  ;;  %v1697_v18 = vsel %vm1678_vm6, %v1664_v21, %v4949_v30 }
 0x24c   : > { %v1827_v50 = vsel %vm1810_vm10, %v1794_v27, %v1391_v28  ;;  %v1730_v44 = vsel %vm1711_vm7, %v1697_v18, %v1107_v22  ;;  %v2798_v27 = vld [vmem:[#allocation2 + $0xe0] sm:$0xff] }
 0x24d   : > { %1316 = vrot.lane.b32.xlu1 %v4939_v56, %s2815_s28  ;;  %1600 = vrot.lane.b32.xlu0 %v4939_v56, %s2818_s14 }
 0x24f   : > { %v1487_v31 = vpop.permute.xlu1 %1486  ;;  %v1393_v35 = vpop.permute.xlu0 %1392 }
 0x250   : > { %v1860_v43 = vsel %vm1843_vm11, %v1827_v50, %v1487_v31  ;;  %v1828_v58 = vsel %vm1810_vm10, %v1795_v36, %v1393_v35  ;;  %v857_v31 = vsel %vm690_vm3, %v855_v41, %v856_v5 }
 0x251   : > { %1126 = vrot.lane.b32.xlu1 %v4288_v39, %s2813_s11  ;;  %1410 = vrot.lane.b32.xlu0 %v4288_v39, %s2816_s9 }
 0x253   : > { %v1203_v33 = vpop.permute.xlu1 %1202  ;;  %v4297_v59 = vpop.permute.xlu0 %1108 }
 0x254   : > { %v1763_v56 = vsel %vm1744_vm8, %v1730_v44, %v1203_v33  ;;  %v858_v33 = vrot.slane %v638_v9, 1 }
 0x255   : > { %1506 = vrot.lane.b32.xlu1 %v4942_v8, %s2817_s13  ;;  %1412 = vrot.lane.b32.xlu0 %v4303_v40, %s2816_s9 }
 0x256   : > { %v859_v53 = vsel %vm690_vm3, %v856_v5, %v858_v33  ;;  %v4953_v5 = vld [vmem:[#allocation65_spill] sm:$0xff] }
 0x257   : > { %v1583_v6 = vpop.permute.xlu1 %1582  ;;  %v1489_v51 = vpop.permute.xlu0 %1488 }
 0x258   : > { %v1893_v12 = vsel %vm1876_vm12, %v1860_v43, %v1583_v6  ;;  %v1861_v62 = vsel %vm1843_vm11, %v1828_v58, %v1489_v51  ;;  %v4951_v43 = vld [vmem:[#allocation63_spill] sm:$0xff]  ;;  %v640_v58 = vld [vmem:[#allocation2 + $0x1a0] sm:$0xff] }
 0x259   : > { %1222 = vrot.lane.b32.xlu1 %v4942_v8, %s2814_s20  ;;  %1128 = vrot.lane.b32.xlu0 %v4303_v40, %s2813_s11  ;;  %v4950_v8 = vld [vmem:[#allocation44_spill] sm:$0xff]  ;;  %v874_v17 = vrot.slane %v640_v58, 2 }
 0x25a   : > { %2701 = vmatprep.mubr.msk.f32.mxu1 %vm1925_vm13, %v1893_v12  ;;  %v1665_v50 = vsel %vm289_vm0, %v2798_v27, %v4950_v8 }
 0x25b   : > { %v1299_v49 = vpop.permute.xlu1 %1298  ;;  %v1205_v57 = vpop.permute.xlu0 %1204  ;;  %v1698_v6 = vsel %vm1678_vm6, %v1665_v50, %v4951_v43 }
 0x25c   : > { %v1796_v35 = vsel %vm1777_vm9, %v1763_v56, %v1299_v49  ;;  %v1731_v51 = vsel %vm1711_vm7, %v1698_v6, %v4297_v59 }
 0x25d   : > { %1602 = vrot.lane.b32.xlu1 %v4945_v38, %s2818_s14  ;;  %1508 = vrot.lane.b32.xlu0 %v4946_v45, %s2817_s13  ;;  %v1764_v37 = vsel %vm1744_vm8, %v1731_v51, %v1205_v57  ;;  %v863_v57 = vrot.slane %v638_v9, 2  ;;  %v4405_v9 = vld [vmem:[%s4749_s3] ss:$0 sm:$0xff]  ;;  %v2800_v51 = vld [vmem:[#allocation2 + $0xf8] sm:$0xff] }
 0x25f   : > { %v1301_v0 = vpop.permute.xlu1 %1300  ;;  %v1585_v10 = vpop.permute.xlu0 %1584 }
 0x260   : > { %v1894_v4 = vsel %vm1876_vm12, %v1861_v62, %v1585_v10  ;;  %v1797_v1 = vsel %vm1777_vm9, %v1764_v37, %v1301_v0  ;;  %v639_v62 = vld [vmem:[#allocation2 + $0x198] sm:$0xff]  ;;  %v641_v0 = vld [vmem:[#allocation2 + $0x1a8] sm:$0x3]  ;;  %v864_v10 = vsel %vm771_vm4, %v861_v42, %v863_v57 }
 0x261   : > { %1318 = vrot.lane.b32.xlu1 %v4945_v38, %s2815_s28  ;;  %1224 = vrot.lane.b32.xlu0 %v4946_v45, %s2814_s20  ;;  %v873_v21 = vrot.slane %v639_v62, 2  ;;  %v876_v44 = vrot.slane %v641_v0, 2 }
 0x262   : > { %2702 = vmatmul.mubr.msk.f32.vlgmr.msra.gmra.mrb[0].mxu1 %vm1925_vm13, %v1894_v4  ;;  %v869_v4 = vrot.slane %v640_v58, 1 }
 0x263   : > { %v4335_v14 = vpop.permute.xlu1 %1110  ;;  %v1395_v48 = vpop.permute.xlu0 %1394  ;;  %v877_v2 = vsel %vm771_vm4, %v874_v17, %v876_v44 }
 0x264   : > { %v1829_v3 = vsel %vm1810_vm10, %v1796_v35, %v1395_v48  ;;  %v868_v48 = vrot.slane %v639_v62, 1 }
 0x265   : > { %1320 = vrot.lane.b32.xlu1 %v4947_v55, %s2815_s28  ;;  %1604 = vrot.lane.b32.xlu0 %v4947_v55, %s2818_s14  ;;  %v871_v55 = vrot.slane %v641_v0, 1 }
 0x266   : > { %v870_v18 = vsel %vm690_vm3, %v868_v48, %v869_v4 }
 0x267   : > { %v1491_v11 = vpop.permute.xlu1 %1490  ;;  %v1397_v25 = vpop.permute.xlu0 %1396  ;;  %v872_v30 = vsel %vm690_vm3, %v869_v4, %v871_v55 }
 0x268   : > { %v1862_v13 = vsel %vm1843_vm11, %v1829_v3, %v1491_v11  ;;  %v1830_v7 = vsel %vm1810_vm10, %v1797_v1, %v1397_v25  ;;  %v2799_v11 = vld [vmem:[#allocation2 + $0xf0] sm:$0xff]  ;;  %v4955_v1 = vld [vmem:[#allocation30_spill] sm:$0xff] }
 0x269   : > { %1130 = vrot.lane.b32.xlu1 %v636_v32, %s2813_s11  ;;  %1414 = vrot.lane.b32.xlu0 %v636_v32, %s2816_s9  ;;  %v4952_v25 = vld [vmem:[#allocation47_spill] sm:$0xff] }
 0x26a   : > { %v1666_v41 = vsel %vm289_vm0, %v2799_v11, %v4952_v25 }
 0x26b   : > { %v4348_v16 = vpop.permute.xlu1 %1206  ;;  %v4350_v28 = vpop.permute.xlu0 %1112  ;;  %v1699_v61 = vsel %vm1678_vm6, %v1666_v41, %v4953_v5  ;;  %v4956_v5 = vld [vmem:[#allocation49_spill] sm:$0xff] }
 0x26c   : > { %v1732_v56 = vsel %vm1711_vm7, %v1699_v61, %v4335_v14  ;;  %v4957_v61 = vld [vmem:[#allocation67_spill] sm:$0xff] }
 0x26d   : > { %1510 = vrot.lane.b32.xlu1 %v857_v31, %s2817_s13  ;;  %1416 = vrot.lane.b32.xlu0 %v637_v20, %s2816_s9  ;;  %v1765_v3 = vsel %vm1744_vm8, %v1732_v56, %v4348_v16 }
 0x26f   : > { %v1587_v22 = vpop.permute.xlu1 %1586  ;;  %v1493_v23 = vpop.permute.xlu0 %1492 }
 0x270   : > { %v1895_v47 = vsel %vm1876_vm12, %v1862_v13, %v1587_v22  ;;  %v1863_v49 = vsel %vm1843_vm11, %v1830_v7, %v1493_v23 }
 0x271   : > { %1226 = vrot.lane.b32.xlu1 %v857_v31, %s2814_s20  ;;  %1132 = vrot.lane.b32.xlu0 %v637_v20, %s2813_s11 }
 0x272   : > { %2704 = vmatprep.mubr.msk.f32.mxu1 %vm1925_vm13, %v1895_v47  ;;  %v875_v47 = vsel %vm771_vm4, %v873_v21, %v874_v17 }
 0x273   : > { %v1303_v12 = vpop.permute.xlu1 %1302  ;;  %v4369_v63 = vpop.permute.xlu0 %1208 }
 0x274   : > { %v1798_v14 = vsel %vm1777_vm9, %v1765_v3, %v1303_v12  ;;  %v4954_v12 = vld [vmem:[#allocation46_spill] sm:$0xff] }
 0x275   : > { %1606 = vrot.lane.b32.xlu1 %v862_v60, %s2818_s14  ;;  %1512 = vrot.lane.b32.xlu0 %v859_v53, %s2817_s13  ;;  %v1667_v37 = vsel %vm289_vm0, %v2800_v51, %v4954_v12  ;;  %v4959_v12 = vld [vmem:[#allocation66_spill] sm:$0xff] }
 0x276   : > { %v1700_v7 = vsel %vm1678_vm6, %v1667_v37, %v4955_v1 }
 0x277   : > { %v4379_v59 = vpop.permute.xlu1 %1304  ;;  %v1589_v29 = vpop.permute.xlu0 %1588 }
 0x278   : > { %v1896_v36 = vsel %vm1876_vm12, %v1863_v49, %v1589_v29 }
 0x279   : > { %1322 = vrot.lane.b32.xlu1 %v862_v60, %s2815_s28  ;;  %1228 = vrot.lane.b32.xlu0 %v859_v53, %s2814_s20  ;;  %s285_s20 = scalar_lea.vmem %s4751_s5, %s4977_s22 }
 0x27a   : > { %2705 = vmatmul.mubr.msk.f32.gmra.mrb[2].mxu1 %vm1925_vm13, %v1896_v36  ;;  %v1733_v36 = vsel %vm1711_vm7, %v1700_v7, %v4350_v28 }
 0x27b   : > { %v4385_v38 = vpop.permute.xlu1 %1114  ;;  %v1399_v45 = vpop.permute.xlu0 %1398 }
 0x27c   : > { %v1831_v22 = vsel %vm1810_vm10, %v1798_v14, %v1399_v45 }
 0x27d   : > { %1324 = vrot.lane.b32.xlu1 %v864_v10, %s2815_s28  ;;  %1608 = vrot.lane.b32.xlu0 %v864_v10, %s2818_s14 }
 0x27f   : > { %v1495_v32 = vpop.permute.xlu1 %1494  ;;  %v1401_v20 = vpop.permute.xlu0 %1400 }
 0x280   : > { %v1864_v42 = vsel %vm1843_vm11, %v1831_v22, %v1495_v32 }
 0x281   : > { %1420 = vrot.lane.b32.xlu1 %v640_v58, %s2816_s9  ;;  %1418 = vrot.lane.b32.xlu0 %v639_v62, %s2816_s9  ;;  %v1766_v62 = vsel %vm1744_vm8, %v1733_v36, %v4369_v63 }
 0x282   : > { %v1799_v10 = vsel %vm1777_vm9, %v1766_v62, %v4379_v59  ;;  %v1668_v59 = vsel %vm289_vm0, %v4073_v46, %v4956_v5 }
 0x283   : > { %v1211_v31 = vpop.permute.xlu1 %1210  ;;  %v4400_v35 = vpop.permute.xlu0 %1116  ;;  %v1832_v4 = vsel %vm1810_vm10, %v1799_v10, %v1401_v20  ;;  %v1701_v17 = vsel %vm1678_vm6, %v1668_v59, %v4957_v61  ;;  %v4961_v59 = vld [vmem:[#allocation68_spill] sm:$0xff] }
 0x285   : > { %v2679_v13 = vpop.f32.mrb[0].mxu0  ;;  %1516 = vrot.lane.b32.xlu1 %v872_v30, %s2817_s13  ;;  %1514 = vrot.lane.b32.xlu0 %v870_v18, %s2817_s13  ;;  %v1734_v18 = vsel %vm1711_vm7, %v1701_v17, %v4385_v38 }
 0x286   : > { %v2094_v23 = vadd.f32 %v2679_v13, %v4405_v9  ;;  %v2088_v16 = vpop.f32.mrb[1].mxu0  ;;  %v1767_v14 = vsel %vm1744_vm8, %v1734_v18, %v1211_v31 }
 0x287   : > { %v2089_v33 = vadd.f32 %v4405_v9, %v2088_v16  ;;  %v1591_v27 = vpop.permute.xlu1 %1590  ;;  %v1497_v8 = vpop.permute.xlu0 %1496 }
 0x288   : > { %2248 = vst.msk [vmem:[%s4414_s18 + $0x8] sm:$0xff] %vm362_vm2, %v2094_v23  ;;  %v2280_v50 = vsel %vm362_vm2, %v2094_v23, 0.0  ;;  %v2351_v43 = vmul.f32 %v2094_v23, %v2094_v23  ;;  %v1897_v6 = vsel %vm1876_vm12, %v1864_v42, %v1591_v27  ;;  %v1865_v48 = vsel %vm1843_vm11, %v1832_v4, %v1497_v8 }
 0x289   : > { %2247 = vst.msk [vmem:[%s4414_s18] sm:$0xff] %vm362_vm2, %v2089_v33  ;;  %v2279_v60 = vsel %vm362_vm2, %v2089_v33, 0.0  ;;  %v2350_v53 = vmul.f32 %v2089_v33, %v2089_v33  ;;  %1612 = vrot.lane.b32.xlu1 %v877_v2, %s2818_s14  ;;  %1610 = vrot.lane.b32.xlu0 %v875_v47, %s2818_s14 }
 0x28a   : > { %v2383_v49 = vsel %vm362_vm2, %v2351_v43, 0.0  ;;  %v2281_v29 = vadd.f32 %v2280_v50, %v2279_v60  ;;  %2707 = vmatprep.mubr.msk.f32.mxu1 %vm1925_vm13, %v1897_v6  ;;  %v4958_v43 = vld [vmem:[#allocation48_spill] sm:$0xff] }
 0x28b   : > { %v2382_v57 = vsel %vm362_vm2, %v2350_v53, 0.0  ;;  %v1307_v45 = vpop.permute.xlu1 %1306  ;;  %v1213_v58 = vpop.permute.xlu0 %1212  ;;  %v1669_v6 = vsel %vm289_vm0, %v4083_v15, %v4958_v43 }
 0x28c   : > { %v2384_v0 = vadd.f32 %v2383_v49, %v2382_v57  ;;  %v1800_v46 = vsel %vm1777_vm9, %v1767_v14, %v1307_v45  ;;  %v1702_v37 = vsel %vm1678_vm6, %v1669_v6, %v4959_v12 }
 0x28d   : > { %v1735_v53 = vsel %vm1711_vm7, %v1702_v37, %v4400_v35 }
 0x28e   : > { %v1768_v49 = vsel %vm1744_vm8, %v1735_v53, %v1213_v58 }
 0x28f   : > { %v1309_v55 = vpop.permute.xlu1 %1308  ;;  %v1593_v32 = vpop.permute.xlu0 %1592 }
 0x290   : > { %v1898_v11 = vsel %vm1876_vm12, %v1865_v48, %v1593_v32 }
 0x291   : > { %2708 = vmatmul.mubr.msk.f32.gmra.mrb[4].mxu1 %vm1925_vm13, %v1898_v11  ;;  %v4960_v11 = vld [vmem:[#allocation51_spill] sm:$0xff] }
 0x293   : > { %v4451_v28 = vpop.permute.xlu1 %1118  ;;  %v1403_v25 = vpop.permute.xlu0 %1402 }
 0x294   : > { %v1833_v16 = vsel %vm1810_vm10, %v1800_v46, %v1403_v25  ;;  %v1670_v25 = vsel %vm289_vm0, %v4127_v34, %v4960_v11 }
 0x297   : > { %v1499_v63 = vpop.permute.xlu1 %1498  ;;  %v1405_v41 = vpop.permute.xlu0 %1404 }
 0x298   : > { %v1866_v2 = vsel %vm1843_vm11, %v1833_v16, %v1499_v63 }
 0x299   : > { %v2682_v20 = vpop.f32.mrb[2].mxu0 }
 0x29a   : > { %v2104_v21 = vadd.f32 %v2682_v20, %v4405_v9  ;;  %v2098_v30 = vpop.f32.mrb[3].mxu0  ;;  %v1703_v20 = vsel %vm1678_vm6, %v1670_v25, %v4961_v59  ;;  %v4965_v25 = vld [vmem:[#allocation69_spill] sm:$0xff] }
 0x29b   : > { %v2099_v44 = vadd.f32 %v4405_v9, %v2098_v30  ;;  %v1215_v56 = vpop.permute.xlu1 %1214  ;;  %v4462_v3 = vpop.permute.xlu0 %1120  ;;  %v1736_v17 = vsel %vm1711_vm7, %v1703_v20, %v4451_v28 }
 0x29c   : > { %2250 = vst.msk [vmem:[%s4414_s18 + $0x18] sm:$0xff] %vm362_vm2, %v2104_v21  ;;  %v2353_v13 = vmul.f32 %v2104_v21, %v2104_v21  ;;  %v2284_v47 = vsel %vm362_vm2, %v2104_v21, 0.0  ;;  %v1769_v34 = vsel %vm1744_vm8, %v1736_v17, %v1215_v56  ;;  %v4963_v56 = vld [vmem:[#allocation5_spill] sm:$0xff] }
 0x29d   : > { %2249 = vst.msk [vmem:[%s4414_s18 + $0x10] sm:$0xff] %vm362_vm2, %v2099_v44  ;;  %v2282_v22 = vsel %vm362_vm2, %v2099_v44, 0.0  ;;  %v2352_v23 = vmul.f32 %v2099_v44, %v2099_v44 }
 0x29e   : > { %v2283_v38 = vadd.f32 %v2282_v22, %v2281_v29  ;;  %v2387_v51 = vsel %vm362_vm2, %v2353_v13, 0.0  ;;  %v1801_v29 = vsel %vm1777_vm9, %v1768_v49, %v1309_v55 }
 0x29f   : > { %v2385_v42 = vsel %vm362_vm2, %v2352_v23, 0.0  ;;  %v1595_v31 = vpop.permute.xlu1 %1594  ;;  %v1501_v33 = vpop.permute.xlu0 %1500  ;;  %v1834_v15 = vsel %vm1810_vm10, %v1801_v29, %v1405_v41 }
 0x2a0   : > { %v2386_v27 = vadd.f32 %v2385_v42, %v2384_v0  ;;  %v1899_v8 = vsel %vm1876_vm12, %v1866_v2, %v1595_v31  ;;  %v2285_v50 = vadd.f32 %v2284_v47, %v2283_v38  ;;  %v1867_v36 = vsel %vm1843_vm11, %v1834_v15, %v1501_v33  ;;  %v4962_v42 = vld [vmem:[#allocation50_spill] sm:$0xff] }
 0x2a1   : > { %2710 = vmatprep.mubr.msk.f32.mxu1 %vm1925_vm13, %v1899_v8  ;;  %v1671_v31 = vsel %vm289_vm0, %v4143_v54, %v4962_v42 }
 0x2a2   : > { %v2388_v60 = vadd.f32 %v2387_v51, %v2386_v27  ;;  %v1704_v33 = vsel %vm1678_vm6, %v1671_v31, %v4963_v56 }
 0x2a3   : > { %v1311_v1 = vpop.permute.xlu1 %1310  ;;  %v1217_v7 = vpop.permute.xlu0 %1216  ;;  %v1737_v27 = vsel %vm1711_vm7, %v1704_v33, %v4462_v3 }
 0x2a4   : > { %v1802_v13 = vsel %vm1777_vm9, %v1769_v34, %v1311_v1  ;;  %v1770_v43 = vsel %vm1744_vm8, %v1737_v27, %v1217_v7 }
 0x2a7   : > { %v1313_v57 = vpop.permute.xlu1 %1312  ;;  %v1597_v45 = vpop.permute.xlu0 %1596 }
 0x2a8   : > { %v1900_v62 = vsel %vm1876_vm12, %v1867_v36, %v1597_v45  ;;  %v1803_v6 = vsel %vm1777_vm9, %v1770_v43, %v1313_v57 }
 0x2a9   : > { %2711 = vmatmul.mubr.msk.f32.gmra.mrb[6].mxu1 %vm1925_vm13, %v1900_v62 }
 0x2ab   : > { %v4491_v0 = vpop.permute.xlu1 %1122  ;;  %v1407_v35 = vpop.permute.xlu0 %1406 }
 0x2ac   : > { %v1835_v23 = vsel %vm1810_vm10, %v1802_v13, %v1407_v35 }
 0x2ad   : > { %v2685_v10 = vpop.f32.mrb[4].mxu0 }
 0x2ae   : > { %v2114_v58 = vadd.f32 %v2685_v10, %v4405_v9  ;;  %v2108_v4 = vpop.f32.mrb[5].mxu0 }
 0x2af   : > { %v2109_v48 = vadd.f32 %v4405_v9, %v2108_v4  ;;  %v1503_v55 = vpop.permute.xlu1 %1502  ;;  %v1409_v32 = vpop.permute.xlu0 %1408 }
 0x2b0   : > { %2252 = vst.msk [vmem:[%s4414_s18 + $0x28] sm:$0xff] %vm362_vm2, %v2114_v58  ;;  %v2355_v63 = vmul.f32 %v2114_v58, %v2114_v58  ;;  %v2288_v21 = vsel %vm362_vm2, %v2114_v58, 0.0  ;;  %v1868_v38 = vsel %vm1843_vm11, %v1835_v23, %v1503_v55  ;;  %v1836_v51 = vsel %vm1810_vm10, %v1803_v6, %v1409_v32  ;;  %v4964_v55 = vld [vmem:[#allocation53_spill] sm:$0xff] }
 0x2b1   : > { %2251 = vst.msk [vmem:[%s4414_s18 + $0x20] sm:$0xff] %vm362_vm2, %v2109_v48  ;;  %v2286_v41 = vsel %vm362_vm2, %v2109_v48, 0.0  ;;  %v2354_v5 = vmul.f32 %v2109_v48, %v2109_v48  ;;  %v1672_v32 = vsel %vm289_vm0, %v4181_v26, %v4964_v55 }
 0x2b2   : > { %v2287_v61 = vadd.f32 %v2286_v41, %v2285_v50  ;;  %v2391_v22 = vsel %vm362_vm2, %v2355_v63, 0.0  ;;  %v1705_v63 = vsel %vm1678_vm6, %v1672_v32, %v4965_v25  ;;  %v4970_v25 = vld [vmem:[#allocation54_spill] sm:$0xff] }
 0x2b3   : > { %v2389_v30 = vsel %vm362_vm2, %v2354_v5, 0.0  ;;  %v1219_v18 = vpop.permute.xlu1 %1218  ;;  %v1125_v44 = vpop.permute.xlu0 %1124  ;;  %v1738_v5 = vsel %vm1711_vm7, %v1705_v63, %v4491_v0  ;;  %v4967_v0 = vld [vmem:[#allocation4_spill] sm:$0xff]  ;;  %v1675_v63 = vsel %vm289_vm0, %v4250_v52, %v4970_v25 }
 0x2b4   : > { %v2390_v14 = vadd.f32 %v2389_v30, %v2388_v60  ;;  %v2289_v46 = vadd.f32 %v2288_v21, %v2287_v61  ;;  %v1771_v61 = vsel %vm1744_vm8, %v1738_v5, %v1219_v18 }
 0x2b6   : > { %v2392_v16 = vadd.f32 %v2391_v22, %v2390_v14 }
 0x2b7   : > { %v1599_v28 = vpop.permute.xlu1 %1598  ;;  %v1505_v2 = vpop.permute.xlu0 %1504 }
 0x2b8   : > { %v1901_v47 = vsel %vm1876_vm12, %v1868_v38, %v1599_v28  ;;  %v1869_v54 = vsel %vm1843_vm11, %v1836_v51, %v1505_v2 }
 0x2b9   : > { %2713 = vmatprep.mubr.msk.f32.mxu1 %vm1925_vm13, %v1901_v47 }
 0x2bb   : > { %v1315_v8 = vpop.permute.xlu1 %1314  ;;  %v1221_v50 = vpop.permute.xlu0 %1220 }
 0x2bc   : > { %v1804_v17 = vsel %vm1777_vm9, %v1771_v61, %v1315_v8 }
 0x2bf   : > { %v1317_v12 = vpop.permute.xlu1 %1316  ;;  %v1601_v37 = vpop.permute.xlu0 %1600 }
 0x2c0   : > { %v1902_v60 = vsel %vm1876_vm12, %v1869_v54, %v1601_v37 }
 0x2c1   : > { %v2688_v53 = vpop.f32.mrb[6].mxu0  ;;  %2714 = vmatmul.mubr.msk.f32.gmra.mrb[8].mxu1 %vm1925_vm13, %v1902_v60 }
 0x2c2   : > { %v2124_v3 = vadd.f32 %v2688_v53, %v4405_v9  ;;  %v2118_v1 = vpop.f32.mrb[7].mxu0 }
 0x2c3   : > { %v2119_v49 = vadd.f32 %v4405_v9, %v2118_v1  ;;  %v4531_v7 = vpop.permute.xlu1 %1126  ;;  %v1411_v29 = vpop.permute.xlu0 %1410 }
 0x2c4   : > { %2254 = vst.msk [vmem:[%s4414_s18 + $0x38] sm:$0xff] %vm362_vm2, %v2124_v3  ;;  %v2357_v15 = vmul.f32 %v2124_v3, %v2124_v3  ;;  %v2292_v62 = vsel %vm362_vm2, %v2124_v3, 0.0  ;;  %v1837_v21 = vsel %vm1810_vm10, %v1804_v17, %v1411_v29 }
 0x2c5   : > { %2253 = vst.msk [vmem:[%s4414_s18 + $0x30] sm:$0xff] %vm362_vm2, %v2119_v49  ;;  %v2290_v36 = vsel %vm362_vm2, %v2119_v49, 0.0  ;;  %v2356_v57 = vmul.f32 %v2119_v49, %v2119_v49 }
 0x2c6   : > { %v2291_v45 = vadd.f32 %v2290_v36, %v2289_v46  ;;  %v2395_v11 = vsel %vm362_vm2, %v2357_v15, 0.0  ;;  %v4966_v46 = vld [vmem:[#allocation52_spill] sm:$0xff]  ;;  %v4968_v15 = vld [vmem:[#allocation55_spill] sm:$0xff] }
 0x2c7   : > { %v2393_v35 = vsel %vm362_vm2, %v2356_v57, 0.0  ;;  %v1507_v10 = vpop.permute.xlu1 %1506  ;;  %v1413_v58 = vpop.permute.xlu0 %1412  ;;  %v1673_v13 = vsel %vm289_vm0, %v4197_v19, %v4966_v46  ;;  %v1674_v36 = vsel %vm289_vm0, %v4235_v24, %v4968_v15  ;;  %v4969_v57 = vld [vmem:[#allocation71_spill] sm:$0xff] }
 0x2c8   : > { %v2394_v4 = vadd.f32 %v2393_v35, %v2392_v16  ;;  %v2293_v48 = vadd.f32 %v2292_v62, %v2291_v45  ;;  %v1870_v30 = vsel %vm1843_vm11, %v1837_v21, %v1507_v10  ;;  %v1706_v18 = vsel %vm1678_vm6, %v1673_v13, %v4967_v0 }
 0x2c9   : > { %v1739_v22 = vsel %vm1711_vm7, %v1706_v18, %v1125_v44  ;;  %v1707_v45 = vsel %vm1678_vm6, %v1674_v36, %v4969_v57 }
 0x2ca   : > { %v2396_v41 = vadd.f32 %v2395_v11, %v2394_v4  ;;  %v1772_v38 = vsel %vm1744_vm8, %v1739_v22, %v1221_v50  ;;  %v1740_v62 = vsel %vm1711_vm7, %v1707_v45, %v4531_v7  ;;  %v4971_v7 = vld [vmem:[#allocation70_spill] sm:$0xff] }
 0x2cb   : > { %v1223_v59 = vpop.permute.xlu1 %1222  ;;  %v1129_v20 = vpop.permute.xlu0 %1128  ;;  %v1805_v28 = vsel %vm1777_vm9, %v1772_v38, %v1317_v12 }
 0x2cc   : > { %v1838_v47 = vsel %vm1810_vm10, %v1805_v28, %v1413_v58  ;;  %v1773_v58 = vsel %vm1744_vm8, %v1740_v62, %v1223_v59 }
 0x2cf   : > { %v1603_v26 = vpop.permute.xlu1 %1602  ;;  %v1509_v34 = vpop.permute.xlu0 %1508 }
 0x2d0   : > { %v1903_v14 = vsel %vm1876_vm12, %v1870_v30, %v1603_v26  ;;  %v1871_v31 = vsel %vm1843_vm11, %v1838_v47, %v1509_v34 }
 0x2d1   : > { %2716 = vmatprep.mubr.msk.f32.mxu1 %vm1925_vm13, %v1903_v14 }
 0x2d3   : > { %v1319_v23 = vpop.permute.xlu1 %1318  ;;  %v1225_v16 = vpop.permute.xlu0 %1224 }
 0x2d4   : > { %v1806_v4 = vsel %vm1777_vm9, %v1773_v58, %v1319_v23 }
 0x2d5   : > { %v2691_v2 = vpop.f32.mrb[8].mxu0 }
 0x2d6   : > { %v2134_v19 = vadd.f32 %v2691_v2, %v4405_v9  ;;  %v2128_v42 = vpop.f32.mrb[9].mxu0 }
 0x2d7   : > { %v2129_v56 = vadd.f32 %v4405_v9, %v2128_v42  ;;  %v1321_v33 = vpop.permute.xlu1 %1320  ;;  %v1605_v27 = vpop.permute.xlu0 %1604 }
 0x2d8   : > { %2256 = vst.msk [vmem:[%s4414_s18 + $0x48] sm:$0xff] %vm362_vm2, %v2134_v19  ;;  %v1904_v44 = vsel %vm1876_vm12, %v1871_v31, %v1605_v27  ;;  %v2359_v8 = vmul.f32 %v2134_v19, %v2134_v19  ;;  %v2296_v51 = vsel %vm362_vm2, %v2134_v19, 0.0  ;;  %v4972_v31 = vld [vmem:[#allocation56_spill] sm:$0xff] }
 0x2d9   : > { %2255 = vst.msk [vmem:[%s4414_s18 + $0x40] sm:$0xff] %vm362_vm2, %v2129_v56  ;;  %v2294_v50 = vsel %vm362_vm2, %v2129_v56, 0.0  ;;  %v2358_v43 = vmul.f32 %v2129_v56, %v2129_v56  ;;  %2717 = vmatmul.mubr.msk.f32.gmra.mrb[10].mxu1 %vm1925_vm13, %v1904_v44  ;;  %v1677_v56 = vsel %vm289_vm0, %v4303_v40, %v4972_v31 }
 0x2da   : > { %v2295_v6 = vadd.f32 %v2294_v50, %v2293_v48  ;;  %v2399_v3 = vsel %vm362_vm2, %v2359_v8, 0.0  ;;  %v4974_v8 = vld [vmem:[#allocation31_spill] sm:$0xff] }
 0x2db   : > { %v2397_v54 = vsel %vm362_vm2, %v2358_v43, 0.0  ;;  %v1131_v12 = vpop.permute.xlu1 %1130  ;;  %v1415_v37 = vpop.permute.xlu0 %1414  ;;  %v1710_v50 = vsel %vm1678_vm6, %v1677_v56, %v4974_v8  ;;  %v4975_v43 = vld [vmem:[#allocation72_spill] sm:$0xff] }
 0x2dc   : > { %v2398_v60 = vadd.f32 %v2397_v54, %v2396_v41  ;;  %v2297_v53 = vadd.f32 %v2296_v51, %v2295_v6  ;;  %v1839_v48 = vsel %vm1810_vm10, %v1806_v4, %v1415_v37  ;;  %v1708_v41 = vsel %vm1678_vm6, %v1675_v63, %v4971_v7 }
 0x2dd   : > { %v1741_v5 = vsel %vm1711_vm7, %v1708_v41, %v1129_v20 }
 0x2de   : > { %v2400_v1 = vadd.f32 %v2399_v3, %v2398_v60  ;;  %v1774_v17 = vsel %vm1744_vm8, %v1741_v5, %v1225_v16 }
 0x2df   : > { %v1511_v49 = vpop.permute.xlu1 %1510  ;;  %v1417_v29 = vpop.permute.xlu0 %1416  ;;  %v1807_v21 = vsel %vm1777_vm9, %v1774_v17, %v1321_v33  ;;  %v4973_v33 = vld [vmem:[#allocation57_spill] sm:$0xff] }
 0x2e0   : > { %v1872_v55 = vsel %vm1843_vm11, %v1839_v48, %v1511_v49  ;;  %v1840_v26 = vsel %vm1810_vm10, %v1807_v21, %v1417_v29  ;;  %v1676_v27 = vsel %vm289_vm0, %v4288_v39, %v4973_v33 }
 0x2e1   : > { %v1709_v6 = vsel %vm1678_vm6, %v1676_v27, %v4975_v43 }
 0x2e2   : > { %v1742_v54 = vsel %vm1711_vm7, %v1709_v6, %v1131_v12 }
 0x2e3   : > { %v1227_v35 = vpop.permute.xlu1 %1226  ;;  %v1133_v10 = vpop.permute.xlu0 %1132 }
 0x2e4   : > { %v1743_v37 = vsel %vm1711_vm7, %v1710_v50, %v1133_v10  ;;  %v1775_v40 = vsel %vm1744_vm8, %v1742_v54, %v1227_v35 }
 0x2e7   : > { %v1607_v32 = vpop.permute.xlu1 %1606  ;;  %v1513_v11 = vpop.permute.xlu0 %1512 }
 0x2e8   : > { %v1905_v24 = vsel %vm1876_vm12, %v1872_v55, %v1607_v32  ;;  %v1873_v14 = vsel %vm1843_vm11, %v1840_v26, %v1513_v11 }
 0x2e9   : > { %2719 = vmatprep.mubr.msk.f32.mxu1 %vm1925_vm13, %v1905_v24 }
 0x2eb   : > { %v1323_v59 = vpop.permute.xlu1 %1322  ;;  %v1229_v61 = vpop.permute.xlu0 %1228 }
 0x2ec   : > { %v1776_v3 = vsel %vm1744_vm8, %v1743_v37, %v1229_v61  ;;  %v1808_v39 = vsel %vm1777_vm9, %v1775_v40, %v1323_v59 }
 0x2ed   : > { %v2694_v30 = vpop.f32.mrb[10].mxu0 }
 0x2ee   : > { %v2144_v52 = vadd.f32 %v2694_v30, %v4405_v9  ;;  %v2138_v34 = vpop.f32.mrb[11].mxu0 }
 0x2ef   : > { %v2139_v46 = vadd.f32 %v4405_v9, %v2138_v34  ;;  %v1325_v13 = vpop.permute.xlu1 %1324  ;;  %v1609_v0 = vpop.permute.xlu0 %1608 }
 0x2f0   : > { %2258 = vst.msk [vmem:[%s4414_s18 + $0x58] sm:$0xff] %vm362_vm2, %v2144_v52  ;;  %v1906_v20 = vsel %vm1876_vm12, %v1873_v14, %v1609_v0  ;;  %v2361_v18 = vmul.f32 %v2144_v52, %v2144_v52  ;;  %v2300_v38 = vsel %vm362_vm2, %v2144_v52, 0.0 }
 0x2f1   : > { %2257 = vst.msk [vmem:[%s4414_s18 + $0x50] sm:$0xff] %vm362_vm2, %v2139_v46  ;;  %v2298_v22 = vsel %vm362_vm2, %v2139_v46, 0.0  ;;  %v2360_v23 = vmul.f32 %v2139_v46, %v2139_v46  ;;  %2720 = vmatmul.mubr.msk.f32.gmra.mrb[12].mxu1 %vm1925_vm13, %v1906_v20 }
 0x2f2   : > { %v2299_v16 = vadd.f32 %v2298_v22, %v2297_v53  ;;  %v2403_v44 = vsel %vm362_vm2, %v2361_v18, 0.0 }
 0x2f3   : > { %v2401_v28 = vsel %vm362_vm2, %v2360_v23, 0.0  ;;  %v1421_v2 = vpop.permute.xlu1 %1420  ;;  %v1419_v47 = vpop.permute.xlu0 %1418 }
 0x2f4   : > { %v2402_v19 = vadd.f32 %v2401_v28, %v2400_v1  ;;  %v2301_v42 = vadd.f32 %v2300_v38, %v2299_v16  ;;  %v1809_v1 = vsel %vm1777_vm9, %v1776_v3, %v1325_v13  ;;  %v1841_v29 = vsel %vm1810_vm10, %v1808_v39, %v1419_v47 }
 0x2f5   : > { %v1842_v49 = vsel %vm1810_vm10, %v1809_v1, %v1421_v2 }
 0x2f6   : > { %v2404_v51 = vadd.f32 %v2403_v44, %v2402_v19 }
 0x2f7   : > { %v1517_v60 = vpop.permute.xlu1 %1516  ;;  %v1515_v53 = vpop.permute.xlu0 %1514 }
 0x2f8   : > { %v1875_v12 = vsel %vm1843_vm11, %v1842_v49, %v1517_v60  ;;  %v1874_v15 = vsel %vm1843_vm11, %v1841_v29, %v1515_v53 }
 0x2fb   : > { %v1613_v36 = vpop.permute.xlu1 %1612  ;;  %v1611_v57 = vpop.permute.xlu0 %1610 }
 0x2fc   : > { %v1908_v45 = vsel %vm1876_vm12, %v1875_v12, %v1613_v36  ;;  %v1907_v62 = vsel %vm1876_vm12, %v1874_v15, %v1611_v57 }
 0x2fd   : > { %2722 = vmatprep.mubr.msk.f32.mxu1 %vm1925_vm13, %v1907_v62 }
 0x2fe   : > { %2723 = vmatmul.mubr.msk.f32.gmra.mrb[14].mxu1 %vm1925_vm13, %v1908_v45 }
 0x305   : > { %v2697_v35 = vpop.f32.mrb[12].mxu0 }
 0x306   : > { %v2154_v10 = vadd.f32 %v2697_v35, %v4405_v9  ;;  %v2148_v58 = vpop.f32.mrb[13].mxu0 }
 0x307   : > { %v2149_v4 = vadd.f32 %v4405_v9, %v2148_v58 }
 0x308   : > { %2260 = vst.msk [vmem:[%s4414_s18 + $0x68] sm:$0xff] %vm362_vm2, %v2154_v10  ;;  %v2363_v48 = vmul.f32 %v2154_v10, %v2154_v10  ;;  %v2304_v24 = vsel %vm362_vm2, %v2154_v10, 0.0 }
 0x309   : > { %2259 = vst.msk [vmem:[%s4414_s18 + $0x60] sm:$0xff] %vm362_vm2, %v2149_v4  ;;  %v2302_v55 = vsel %vm362_vm2, %v2149_v4, 0.0  ;;  %v2362_v32 = vmul.f32 %v2149_v4, %v2149_v4 }
 0x30a   : > { %v2303_v11 = vadd.f32 %v2302_v55, %v2301_v42  ;;  %v2407_v41 = vsel %vm362_vm2, %v2363_v48, 0.0 }
 0x30b   : > { %v2405_v25 = vsel %vm362_vm2, %v2362_v32, 0.0 }
 0x30c   : > { %v2406_v63 = vadd.f32 %v2405_v25, %v2404_v51  ;;  %v2305_v7 = vadd.f32 %v2304_v24, %v2303_v11 }
 0x30e   : > { %v2408_v5 = vadd.f32 %v2407_v41, %v2406_v63 }
 0x31d   : > { %v2700_v59 = vpop.f32.mrb[14].mxu0 }
 0x31e   : > { %v2164_v61 = vadd.f32 %v2700_v59, %v4405_v9  ;;  %v2158_v17 = vpop.f32.mrb[15].mxu0 }
 0x31f   : > { %v2159_v21 = vadd.f32 %v4405_v9, %v2158_v17 }
 0x320   : > { %2262 = vst.msk [vmem:[%s4414_s18 + $0x78] sm:$0xff] %vm362_vm2, %v2164_v61  ;;  %v2365_v30 = vmul.f32 %v2164_v61, %v2164_v61  ;;  %v2308_v14 = vsel %vm362_vm2, %v2164_v61, 0.0 }
 0x321   : > { %2261 = vst.msk [vmem:[%s4414_s18 + $0x70] sm:$0xff] %vm362_vm2, %v2159_v21  ;;  %v2306_v26 = vsel %vm362_vm2, %v2159_v21, 0.0  ;;  %v2364_v52 = vmul.f32 %v2159_v21, %v2159_v21 }
 0x322   : > { %v2307_v34 = vadd.f32 %v2306_v26, %v2305_v7  ;;  %v2411_v20 = vsel %vm362_vm2, %v2365_v30, 0.0 }
 0x323   : > { %v2409_v46 = vsel %vm362_vm2, %v2364_v52, 0.0 }
 0x324   : > { %v2410_v13 = vadd.f32 %v2409_v46, %v2408_v5  ;;  %v2309_v0 = vadd.f32 %v2308_v14, %v2307_v34 }
 0x326   : > { %v2412_v18 = vadd.f32 %v2411_v20, %v2410_v13 }
 0x335   : > { %v2703_v22 = vpop.f32.mrb[0].mxu1 }
 0x336   : > { %v2174_v23 = vadd.f32 %v2703_v22, %v4405_v9  ;;  %v2168_v16 = vpop.f32.mrb[1].mxu1 }
 0x337   : > { %v2169_v38 = vadd.f32 %v4405_v9, %v2168_v16 }
 0x338   : > { %2264 = vst.msk [vmem:[%s4414_s18 + $0x88] sm:$0xff] %vm362_vm2, %v2174_v23  ;;  %v2367_v28 = vmul.f32 %v2174_v23, %v2174_v23  ;;  %v2312_v42 = vsel %vm362_vm2, %v2174_v23, 0.0 }
 0x339   : > { %2263 = vst.msk [vmem:[%s4414_s18 + $0x80] sm:$0xff] %vm362_vm2, %v2169_v38  ;;  %v2310_v2 = vsel %vm362_vm2, %v2169_v38, 0.0  ;;  %v2366_v47 = vmul.f32 %v2169_v38, %v2169_v38 }
 0x33a   : > { %v2311_v19 = vadd.f32 %v2310_v2, %v2309_v0  ;;  %v2415_v27 = vsel %vm362_vm2, %v2367_v28, 0.0 }
 0x33b   : > { %v2413_v31 = vsel %vm362_vm2, %v2366_v47, 0.0 }
 0x33c   : > { %v2414_v56 = vadd.f32 %v2413_v31, %v2412_v18  ;;  %v2313_v33 = vadd.f32 %v2312_v42, %v2311_v19 }
 0x33e   : > { %v2416_v44 = vadd.f32 %v2415_v27, %v2414_v56 }
 0x34d   : > { %v2706_v8 = vpop.f32.mrb[2].mxu1 }
 0x34e   : > { %v2184_v50 = vadd.f32 %v2706_v8, %v4405_v9  ;;  %v2178_v43 = vpop.f32.mrb[3].mxu1 }
 0x34f   : > { %v2179_v6 = vadd.f32 %v4405_v9, %v2178_v43 }
 0x350   : > { %2266 = vst.msk [vmem:[%s4414_s18 + $0x98] sm:$0xff] %vm362_vm2, %v2184_v50  ;;  %v2369_v51 = vmul.f32 %v2184_v50, %v2184_v50  ;;  %v2316_v53 = vsel %vm362_vm2, %v2184_v50, 0.0 }
 0x351   : > { %2265 = vst.msk [vmem:[%s4414_s18 + $0x90] sm:$0xff] %vm362_vm2, %v2179_v6  ;;  %v2314_v54 = vsel %vm362_vm2, %v2179_v6, 0.0  ;;  %v2368_v37 = vmul.f32 %v2179_v6, %v2179_v6 }
 0x352   : > { %v2315_v60 = vadd.f32 %v2314_v54, %v2313_v33  ;;  %v2419_v1 = vsel %vm362_vm2, %v2369_v51, 0.0 }
 0x353   : > { %v2417_v40 = vsel %vm362_vm2, %v2368_v37, 0.0 }
 0x354   : > { %v2418_v3 = vadd.f32 %v2417_v40, %v2416_v44  ;;  %v2317_v39 = vadd.f32 %v2316_v53, %v2315_v60 }
 0x356   : > { %v2420_v49 = vadd.f32 %v2419_v1, %v2418_v3 }
 0x364   : > { %v2709_v29 = vpop.f32.mrb[4].mxu1 }
 0x365   : > { %v2194_v12 = vadd.f32 %v2709_v29, %v4405_v9  ;;  %v2188_v15 = vpop.f32.mrb[5].mxu1 }
 0x366   : > { %v2189_v36 = vadd.f32 %v4405_v9, %v2188_v15 }
 0x367   : > { %2268 = vst.msk [vmem:[%s4414_s18 + $0xa8] sm:$0xff] %vm362_vm2, %v2194_v12  ;;  %v2371_v57 = vmul.f32 %v2194_v12, %v2194_v12  ;;  %v2320_v10 = vsel %vm362_vm2, %v2194_v12, 0.0 }
 0x368   : > { %2267 = vst.msk [vmem:[%s4414_s18 + $0xa0] sm:$0xff] %vm362_vm2, %v2189_v36  ;;  %v2318_v45 = vsel %vm362_vm2, %v2189_v36, 0.0  ;;  %v2370_v62 = vmul.f32 %v2189_v36, %v2189_v36 }
 0x369   : > { %v2319_v35 = vadd.f32 %v2318_v45, %v2317_v39  ;;  %v2423_v55 = vsel %vm362_vm2, %v2371_v57, 0.0 }
 0x36a   : > { %v2421_v58 = vsel %vm362_vm2, %v2370_v62, 0.0 }
 0x36b   : > { %v2422_v4 = vadd.f32 %v2421_v58, %v2420_v49  ;;  %v2321_v48 = vadd.f32 %v2320_v10, %v2319_v35 }
 0x36d   : > { %v2424_v32 = vadd.f32 %v2423_v55, %v2422_v4 }
 0x37c   : > { %v2712_v11 = vpop.f32.mrb[6].mxu1 }
 0x37d   : > { %v2204_v24 = vadd.f32 %v2712_v11, %v4405_v9  ;;  %v2198_v25 = vpop.f32.mrb[7].mxu1 }
 0x37e   : > { %v2199_v63 = vadd.f32 %v4405_v9, %v2198_v25 }
 0x37f   : > { %2270 = vst.msk [vmem:[%s4414_s18 + $0xb8] sm:$0xff] %vm362_vm2, %v2204_v24  ;;  %v2373_v7 = vmul.f32 %v2204_v24, %v2204_v24  ;;  %v2324_v61 = vsel %vm362_vm2, %v2204_v24, 0.0 }
 0x380   : > { %2269 = vst.msk [vmem:[%s4414_s18 + $0xb0] sm:$0xff] %vm362_vm2, %v2199_v63  ;;  %v2322_v41 = vsel %vm362_vm2, %v2199_v63, 0.0  ;;  %v2372_v5 = vmul.f32 %v2199_v63, %v2199_v63 }
 0x381   : > { %v2323_v59 = vadd.f32 %v2322_v41, %v2321_v48  ;;  %v2427_v26 = vsel %vm362_vm2, %v2373_v7, 0.0 }
 0x382   : > { %v2425_v17 = vsel %vm362_vm2, %v2372_v5, 0.0 }
 0x383   : > { %v2426_v21 = vadd.f32 %v2425_v17, %v2424_v32  ;;  %v2325_v30 = vadd.f32 %v2324_v61, %v2323_v59 }
 0x385   : > { %v2428_v52 = vadd.f32 %v2427_v26, %v2426_v21 }
 0x394   : > { %v2715_v34 = vpop.f32.mrb[8].mxu1 }
 0x395   : > { %v2214_v14 = vadd.f32 %v2715_v34, %v4405_v9  ;;  %v2208_v46 = vpop.f32.mrb[9].mxu1 }
 0x396   : > { %v2209_v13 = vadd.f32 %v4405_v9, %v2208_v46 }
 0x397   : > { %2272 = vst.msk [vmem:[%s4414_s18 + $0xc8] sm:$0xff] %vm362_vm2, %v2214_v14  ;;  %v2375_v0 = vmul.f32 %v2214_v14, %v2214_v14  ;;  %v2328_v23 = vsel %vm362_vm2, %v2214_v14, 0.0 }
 0x398   : > { %2271 = vst.msk [vmem:[%s4414_s18 + $0xc0] sm:$0xff] %vm362_vm2, %v2209_v13  ;;  %v2326_v20 = vsel %vm362_vm2, %v2209_v13, 0.0  ;;  %v2374_v18 = vmul.f32 %v2209_v13, %v2209_v13 }
 0x399   : > { %v2327_v22 = vadd.f32 %v2326_v20, %v2325_v30  ;;  %v2431_v2 = vsel %vm362_vm2, %v2375_v0, 0.0 }
 0x39a   : > { %v2429_v16 = vsel %vm362_vm2, %v2374_v18, 0.0 }
 0x39b   : > { %v2430_v38 = vadd.f32 %v2429_v16, %v2428_v52  ;;  %v2329_v28 = vadd.f32 %v2328_v23, %v2327_v22 }
 0x39d   : > { %v2432_v47 = vadd.f32 %v2431_v2, %v2430_v38 }
 0x3ac   : > { %v2718_v19 = vpop.f32.mrb[10].mxu1 }
 0x3ad   : > { %v2224_v42 = vadd.f32 %v2718_v19, %v4405_v9  ;;  %v2218_v31 = vpop.f32.mrb[11].mxu1 }
 0x3ae   : > { %v2219_v56 = vadd.f32 %v4405_v9, %v2218_v31 }
 0x3af   : > { %2274 = vst.msk [vmem:[%s4414_s18 + $0xd8] sm:$0xff] %vm362_vm2, %v2224_v42  ;;  %v2377_v33 = vmul.f32 %v2224_v42, %v2224_v42  ;;  %v2332_v50 = vsel %vm362_vm2, %v2224_v42, 0.0 }
 0x3b0   : > { %2273 = vst.msk [vmem:[%s4414_s18 + $0xd0] sm:$0xff] %vm362_vm2, %v2219_v56  ;;  %v2330_v27 = vsel %vm362_vm2, %v2219_v56, 0.0  ;;  %v2376_v44 = vmul.f32 %v2219_v56, %v2219_v56 }
 0x3b1   : > { %v2331_v8 = vadd.f32 %v2330_v27, %v2329_v28  ;;  %v2435_v54 = vsel %vm362_vm2, %v2377_v33, 0.0 }
 0x3b2   : > { %v2433_v43 = vsel %vm362_vm2, %v2376_v44, 0.0 }
 0x3b3   : > { %v2434_v6 = vadd.f32 %v2433_v43, %v2432_v47  ;;  %v2333_v51 = vadd.f32 %v2332_v50, %v2331_v8 }
 0x3b5   : > { %v2436_v37 = vadd.f32 %v2435_v54, %v2434_v6 }
 0x3c4   : > { %v2721_v60 = vpop.f32.mrb[12].mxu1 }
 0x3c5   : > { %v2234_v53 = vadd.f32 %v2721_v60, %v4405_v9  ;;  %v2228_v40 = vpop.f32.mrb[13].mxu1 }
 0x3c6   : > { %v2229_v3 = vadd.f32 %v4405_v9, %v2228_v40 }
 0x3c7   : > { %2276 = vst.msk [vmem:[%s4414_s18 + $0xe8] sm:$0xff] %vm362_vm2, %v2234_v53  ;;  %v2379_v39 = vmul.f32 %v2234_v53, %v2234_v53  ;;  %v2336_v12 = vsel %vm362_vm2, %v2234_v53, 0.0 }
 0x3c8   : > { %2275 = vst.msk [vmem:[%s4414_s18 + $0xe0] sm:$0xff] %vm362_vm2, %v2229_v3  ;;  %v2334_v1 = vsel %vm362_vm2, %v2229_v3, 0.0  ;;  %v2378_v49 = vmul.f32 %v2229_v3, %v2229_v3 }
 0x3c9   : > { %v2335_v29 = vadd.f32 %v2334_v1, %v2333_v51  ;;  %v2439_v45 = vsel %vm362_vm2, %v2379_v39, 0.0 }
 0x3ca   : > { %v2437_v15 = vsel %vm362_vm2, %v2378_v49, 0.0 }
 0x3cb   : > { %v2438_v36 = vadd.f32 %v2437_v15, %v2436_v37  ;;  %v2337_v57 = vadd.f32 %v2336_v12, %v2335_v29 }
 0x3cd   : > { %v2440_v62 = vadd.f32 %v2439_v45, %v2438_v36 }
 0x3d1   : > { %v2724_v35 = vpop.f32.mrb[14].mxu1 }
 0x3d2   : > { %v2244_v10 = vadd.f32 %v2724_v35, %v4405_v9  ;;  %v2238_v58 = vpop.f32.mrb[15].mxu1 }
 0x3d3   : > { %v2239_v4 = vadd.f32 %v4405_v9, %v2238_v58 }
 0x3d4   : > { %2278 = vst.msk [vmem:[%s4414_s18 + $0xf8] sm:$0xff] %vm362_vm2, %v2244_v10  ;;  %v2381_v48 = vmul.f32 %v2244_v10, %v2244_v10  ;;  %v2340_v24 = vsel %vm362_vm2, %v2244_v10, 0.0 }
 0x3d5   : > { %2277 = vst.msk [vmem:[%s4414_s18 + $0xf0] sm:$0xff] %vm362_vm2, %v2239_v4  ;;  %v2338_v55 = vsel %vm362_vm2, %v2239_v4, 0.0  ;;  %v2380_v32 = vmul.f32 %v2239_v4, %v2239_v4 }
 0x3d6   : > { %v2339_v11 = vadd.f32 %v2338_v55, %v2337_v57  ;;  %v2443_v41 = vsel %vm362_vm2, %v2381_v48, 0.0 }
 0x3d7   : > { %v2441_v25 = vsel %vm362_vm2, %v2380_v32, 0.0 }
 0x3d8   : > { %v2341_v63 = vadd.f32 %v2340_v24, %v2339_v11  ;;  %v2442_v7 = vadd.f32 %v2441_v25, %v2440_v62 }
 0x3da   : > { %v2342_v9 = vrot.slane %v2341_v63, 4  ;;  %v2444_v5 = vadd.f32 %v2443_v41, %v2442_v7 }
 0x3dc   : > { %v2343_v59 = vadd.f32 %v2342_v9, %v2341_v63  ;;  %v2445_v61 = vrot.slane %v2444_v5, 4 }
 0x3de   : > { %v2344_v17 = vrot.slane %v2343_v59, 2  ;;  %v2446_v21 = vadd.f32 %v2445_v61, %v2444_v5 }
 0x3e0   : > { %v2345_v30 = vadd.f32 %v2344_v17, %v2343_v59  ;;  %v2447_v26 = vrot.slane %v2446_v21, 2 }
 0x3e2   : > { %v2346_v52 = vrot.slane %v2345_v30, 1  ;;  %v2448_v34 = vadd.f32 %v2447_v26, %v2446_v21 }
 0x3e4   : > { %v2347_v14 = vadd.f32 %v2346_v52, %v2345_v30  ;;  %v2449_v46 = vrot.slane %v2448_v34, 1 }
 0x3e6   : > { %2349 = vst.msk [vmem:[%s285_s20] sm:$0x1] %vm2348_vm14, %v2347_v14  ;;  %v2450_v13 = vadd.f32 %v2449_v46, %v2448_v34 }
 0x3e8   : > { %2451 = vst.msk [vmem:[%s288_s26] sm:$0x1] %vm2348_vm14, %v2450_v13 }
 0x3e9 PF: > { %s17_s21 = sadd.s32 1, %s2807_s21  }
 0x3ea   : > { %p14_p4 = scmp.ge.s32.totalorder %s17_s21, 4  }
 0x3ec   :  { %16 = sbr.rel (!%p14_p4) target bundleno = 1 (0x1), region = 94 }

// kernel: up_forward.4
= control target key start
LH: loop header
LB: loop body
LE: loop exit
PB: predicated region body
PF: predicated region fallthrough
CT: control target
= control target key end

     0   :  { %s2762_s24 = smov 0   ;;  %s4647_s0 = inlined_call_operand.vmem [shape: f32[2,16,16,4], index: 0, kind: input, shape index: {}]   ;;  %s4648_s1 = inlined_call_operand.vmem [shape: f32[1,4], index: 1, kind: input, shape index: {}]   ;;  %s4649_s2 = inlined_call_operand.vmem [shape: f32[1,4], index: 2, kind: input, shape index: {}]   ;;  %s4650_s3 = inlined_call_operand.vmem [shape: f32[36,4], index: 3, kind: input, shape index: {}]   ;;  %s4651_s4 = inlined_call_operand.vmem [shape: f32[1,4], index: 4, kind: input, shape index: {}]   ;;  %s4652_s5 = inlined_call_operand.vmem [shape: f32[2,16,16,4], index: 5, kind: output, shape index: {0}]   ;;  %s4653_s6 = inlined_call_operand.vmem [shape: f32[2,1,4], index: 6, kind: output, shape index: {1}]   ;;  %s4654_s7 = inlined_call_operand.vmem [shape: f32[2,1,4], index: 7, kind: output, shape index: {2}]  }
   0x1 LB: > { %s2496_s25 = sadd.s32 4294967295, %s2711_s24   ;;  %p2500_p0 = scmp.ge.s32.totalorder %s2711_s24, 1  ;;  %s2711_s24 = sphi %s2762_s24, %s18_s24  }
   0x2   : > { %p242_p1 = scmp.lt.s32.totalorder %s2711_s24, 3 }
   0x4   : > { %p243_p2 = pnand %p2500_p0, %p242_p1 }
   0x6   : > { %246 = sbr.rel (%p243_p2) target bundleno = 912 (0x390), region = 40 }
   0xd   : > { %vm296_vm0 = vcmask 31744   ;;  %vm299_vm1 = vcmask 25600   ;;  %p2772_p3 = scmp.lt.s32.totalorder %s2496_s25, 1  ;;  %v2713_v0 = vmov 0.0   ;;  %v2840_v1 = vld [vmem:[%s4648_s1] ss:$0 sm:$0xff] }
   0xe   : > { %297 = vst.msk [vmem:[#allocation2] sm:$0xff] %vm296_vm0, %v2713_v0  ;;  %298 = vst.msk [vmem:[#allocation2 + $0x8] sm:$0xff] %vm296_vm0, %v2713_v0  ;;  %v2852_v2 = vld [vmem:[%s4649_s2] ss:$0 sm:$0xff]  ;;  %vm629_vm2 = vcmask 1046528   ;;  %s2714_s12 = smov 4  }
   0xf   : > { %301 = vst.msk [vmem:[#allocation2 + $0x18] sm:$0xff] %vm296_vm0, %v2713_v0  ;;  %302 = vst.msk [vmem:[#allocation2 + $0x20] sm:$0xff] %vm296_vm0, %v2713_v0  ;;  %s4883_s25 = smov (!%p2772_p3, %s2496_s25), 1  ;;  %vm710_vm3 = vcmask 1045504   ;;  %s2715_s13 = smov 8   ;;  %vm1957_vm4 = vcmask 1043456  }
  0x10   : > { %304 = vst.msk [vmem:[#allocation2 + $0x30] sm:$0xff] %vm296_vm0, %v2713_v0  ;;  %305 = vst.msk [vmem:[#allocation2 + $0x38] sm:$0xff] %vm296_vm0, %v2713_v0  ;;  %s2543_s27 = sshll.u32 %s4883_s25, 8  ;;  %s2716_s14 = smov 12   ;;  %vm1617_vm5 = vcmask 64512   ;;  %vm1650_vm6 = vcmask 97280  }
  0x11   : > { %307 = vst.msk [vmem:[#allocation2 + $0x48] sm:$0xff] %vm296_vm0, %v2713_v0  ;;  %308 = vst.msk [vmem:[#allocation2 + $0x50] sm:$0xff] %vm296_vm0, %v2713_v0  ;;  %s2847_s9 = scalar_lea.vmem %s4647_s0, %s2543_s27  ;;  %s2717_s15 = smov 16   ;;  %vm1683_vm7 = vcmask 130048   ;;  %vm1716_vm8 = vcmask 162816   ;;  %vm1782_vm9 = vcmask 228352  }
  0x12   : > { %310 = vst.msk [vmem:[#allocation2 + $0x60] sm:$0xff] %vm296_vm0, %v2713_v0  ;;  %311 = vst.msk [vmem:[#allocation2 + $0x68] sm:$0xff] %vm296_vm0, %v2713_v0  ;;  %v354_v3 = vld [vmem:[%s2847_s9 + $0x10] sm:$0xff]  ;;  %v355_v4 = vld [vmem:[%s2847_s9 + $0x18] sm:$0xff]  ;;  %s2718_s20 = smov 20   ;;  %s2719_s28 = smov 24  }
  0x13   : > { %313 = vst.msk [vmem:[#allocation2 + $0x78] sm:$0xff] %vm296_vm0, %v2713_v0  ;;  %314 = vst.msk [vmem:[#allocation2 + $0x80] sm:$0xff] %vm296_vm0, %v2713_v0  ;;  %v352_v5 = vld [vmem:[%s2847_s9] sm:$0xff]  ;;  %v393_v6 = vmul.f32 %v2840_v1, %v354_v3  ;;  %v394_v7 = vmul.f32 %v2840_v1, %v355_v4  ;;  %v353_v8 = vld [vmem:[%s2847_s9 + $0x8] sm:$0xff]  ;;  %s2720_s8 = smov 32   ;;  %s2721_s10 = smov 28  }
  0x14   : > { %316 = vst.msk [vmem:[#allocation2 + $0x90] sm:$0xff] %vm296_vm0, %v2713_v0  ;;  %317 = vst.msk [vmem:[#allocation2 + $0x98] sm:$0xff] %vm296_vm0, %v2713_v0  ;;  %v391_v9 = vmul.f32 %v2840_v1, %v352_v5  ;;  %v356_v10 = vld [vmem:[%s2847_s9 + $0x20] sm:$0xff]  ;;  %v357_v11 = vld [vmem:[%s2847_s9 + $0x28] sm:$0xff]  ;;  %v392_v15 = vmul.f32 %v2840_v1, %v353_v8  ;;  %vm1749_vm10 = vcmask 195584   ;;  %vm1815_vm11 = vcmask 261120   ;;  %s4326_s18 = scalar_lea.vmem %s4652_s5, %s2543_s27  ;;  %s295_s23 = scalar_lea.vmem %s4654_s7, %s4883_s25 }
  0x15   : > { %319 = vst.msk [vmem:[#allocation2 + $0xa8] sm:$0xff] %vm296_vm0, %v2713_v0  ;;  %320 = vst.msk [vmem:[#allocation2 + $0xb0] sm:$0xff] %vm296_vm0, %v2713_v0  ;;  %v2863_v12 = vld [vmem:[#allocation2] sm:$0xff]  ;;  %v2865_v13 = vld [vmem:[#allocation2 + $0x8] sm:$0xff]  ;;  %v395_v16 = vmul.f32 %v2840_v1, %v356_v10  ;;  %v396_v17 = vmul.f32 %v2840_v1, %v357_v11  ;;  %v432_v21 = vadd.f32 %v2852_v2, %v393_v6  ;;  %vm1860_vm12 = vcmask 293888  }
  0x16   : > { %322 = vst.msk [vmem:[#allocation2 + $0xc0] sm:$0xff] %vm296_vm0, %v2713_v0  ;;  %323 = vst.msk [vmem:[#allocation2 + $0xc8] sm:$0xff] %vm296_vm0, %v2713_v0  ;;  %v630_v18 = vrot.slane %v2863_v12, 1  ;;  %v631_v19 = vrot.slane %v2865_v13, 1  ;;  %v358_v22 = vld [vmem:[%s2847_s9 + $0x30] sm:$0xff]  ;;  %v433_v23 = vadd.f32 %v2852_v2, %v394_v7  ;;  %v430_v24 = vadd.f32 %v2852_v2, %v391_v9  ;;  %v359_v27 = vld [vmem:[%s2847_s9 + $0x38] sm:$0xff] }
  0x17   : > { %325 = vst.msk [vmem:[#allocation2 + $0xd8] sm:$0xff] %vm296_vm0, %v2713_v0  ;;  %326 = vst.msk [vmem:[#allocation2 + $0xe0] sm:$0xff] %vm296_vm0, %v2713_v0  ;;  %v431_v25 = vadd.f32 %v2852_v2, %v392_v15  ;;  %v434_v26 = vadd.f32 %v2852_v2, %v395_v16  ;;  %v360_v28 = vld [vmem:[%s2847_s9 + $0x40] sm:$0xff]  ;;  %v361_v29 = vld [vmem:[%s2847_s9 + $0x48] sm:$0xff]  ;;  %v464_v32 = vmax.f32 %v432_v21, 0.0  ;;  %v435_v33 = vadd.f32 %v2852_v2, %v396_v17 }
  0x18   : > { %328 = vst.msk [vmem:[#allocation2 + $0xf0] sm:$0xff] %vm296_vm0, %v2713_v0  ;;  %329 = vst.msk [vmem:[#allocation2 + $0xf8] sm:$0xff] %vm296_vm0, %v2713_v0  ;;  %v632_v30 = vsel %vm629_vm2, %v630_v18, %v631_v19  ;;  %v362_v34 = vld [vmem:[%s2847_s9 + $0x50] sm:$0xff]  ;;  %v363_v35 = vld [vmem:[%s2847_s9 + $0x58] sm:$0xff]  ;;  %v465_v37 = vmax.f32 %v433_v23, 0.0  ;;  %v462_v38 = vmax.f32 %v430_v24, 0.0  ;;  %v397_v43 = vmul.f32 %v2840_v1, %v358_v22 }
  0x19   : > { %331 = vst.msk [vmem:[#allocation2 + $0x108] sm:$0xff] %vm296_vm0, %v2713_v0  ;;  %332 = vst.msk [vmem:[#allocation2 + $0x110] sm:$0xff] %vm296_vm0, %v2713_v0  ;;  %v364_v36 = vld [vmem:[%s2847_s9 + $0x60] sm:$0xff]  ;;  %817 = vrot.lane.b32.xlu0 %v632_v30, %s2714_s12  ;;  %v463_v39 = vmax.f32 %v431_v25, 0.0  ;;  %v466_v40 = vmax.f32 %v434_v26, 0.0  ;;  %v365_v41 = vld [vmem:[%s2847_s9 + $0x68] sm:$0xff]  ;;  %v398_v44 = vmul.f32 %v2840_v1, %v359_v27  ;;  %v399_v45 = vmul.f32 %v2840_v1, %v360_v28 }
  0x1a   : > { %334 = vst.msk [vmem:[#allocation2 + $0x120] sm:$0xff] %vm296_vm0, %v2713_v0  ;;  %335 = vst.msk [vmem:[#allocation2 + $0x128] sm:$0xff] %vm296_vm0, %v2713_v0  ;;  %v467_v42 = vmax.f32 %v435_v33, 0.0  ;;  %v400_v46 = vmul.f32 %v2840_v1, %v361_v29  ;;  %v401_v47 = vmul.f32 %v2840_v1, %v362_v34  ;;  %v402_v48 = vmul.f32 %v2840_v1, %v363_v35  ;;  %v366_v58 = vld [vmem:[%s2847_s9 + $0x70] sm:$0xff]  ;;  %v367_v59 = vld [vmem:[%s2847_s9 + $0x78] sm:$0xff] }
  0x1b   : > { %337 = vst.msk [vmem:[#allocation2 + $0x138] sm:$0xff] %vm296_vm0, %v2713_v0  ;;  %338 = vst.msk [vmem:[#allocation2 + $0x140] sm:$0xff] %vm296_vm0, %v2713_v0  ;;  %v403_v49 = vmul.f32 %v2840_v1, %v364_v36  ;;  %v436_v50 = vadd.f32 %v2852_v2, %v397_v43  ;;  %v437_v51 = vadd.f32 %v2852_v2, %v398_v44  ;;  %v368_v60 = vld [vmem:[%s2847_s9 + $0x80] sm:$0xff]  ;;  %v369_v3 = vld [vmem:[%s2847_s9 + $0x88] sm:$0xff]  ;;  %vm2287_vm13 = vcmask 24576  }
  0x1c   : > { %340 = vst.msk [vmem:[#allocation2 + $0x150] sm:$0xff] %vm296_vm0, %v2713_v0  ;;  %341 = vst.msk [vmem:[#allocation2 + $0x158] sm:$0xff] %vm296_vm0, %v2713_v0  ;;  %v438_v52 = vadd.f32 %v2852_v2, %v399_v45  ;;  %v404_v53 = vmul.f32 %v2840_v1, %v365_v41  ;;  %v439_v54 = vadd.f32 %v2852_v2, %v400_v46  ;;  %v370_v4 = vld [vmem:[%s2847_s9 + $0x90] sm:$0xff]  ;;  %v371_v18 = vld [vmem:[%s2847_s9 + $0x98] sm:$0xff] }
  0x1d   : > { %343 = vst.msk [vmem:[#allocation2 + $0x168] sm:$0xff] %vm296_vm0, %v2713_v0  ;;  %344 = vst.msk [vmem:[#allocation2 + $0x170] sm:$0xff] %vm296_vm0, %v2713_v0  ;;  %v440_v55 = vadd.f32 %v2852_v2, %v401_v47  ;;  %v441_v56 = vadd.f32 %v2852_v2, %v402_v48  ;;  %v442_v57 = vadd.f32 %v2852_v2, %v403_v49  ;;  %v468_v61 = vmax.f32 %v436_v50, 0.0  ;;  %v372_v41 = vld [vmem:[%s2847_s9 + $0xa0] sm:$0xff]  ;;  %v373_v47 = vld [vmem:[%s2847_s9 + $0xa8] sm:$0xff] }
  0x1e   : > { %346 = vst.msk [vmem:[#allocation2 + $0x180] sm:$0xff] %vm296_vm0, %v2713_v0  ;;  %347 = vst.msk [vmem:[#allocation2 + $0x188] sm:$0xff] %vm296_vm0, %v2713_v0  ;;  %v469_v62 = vmax.f32 %v437_v51, 0.0  ;;  %v470_v63 = vmax.f32 %v438_v52, 0.0  ;;  %v471_v5 = vmax.f32 %v439_v54, 0.0  ;;  %v405_v10 = vmul.f32 %v2840_v1, %v366_v58 }
  0x1f   : > { %349 = vst.msk [vmem:[#allocation2 + $0x198] sm:$0xff] %vm296_vm0, %v2713_v0  ;;  %350 = vst.msk [vmem:[#allocation2 + $0x1a0] sm:$0xff] %vm296_vm0, %v2713_v0  ;;  %v472_v6 = vmax.f32 %v440_v55, 0.0  ;;  %v473_v7 = vmax.f32 %v441_v56, 0.0  ;;  %v474_v8 = vmax.f32 %v442_v57, 0.0  ;;  %v406_v11 = vmul.f32 %v2840_v1, %v367_v59 }
  0x20   : > { %300 = vst.msk [vmem:[#allocation2 + $0x10] sm:$0x3] %vm299_vm1, %v2713_v0  ;;  %303 = vst.msk [vmem:[#allocation2 + $0x28] sm:$0x3] %vm299_vm1, %v2713_v0  ;;  %v407_v15 = vmul.f32 %v2840_v1, %v368_v60  ;;  %v408_v17 = vmul.f32 %v2840_v1, %v369_v3  ;;  %v444_v24 = vadd.f32 %v2852_v2, %v405_v10  ;;  %v375_v10 = vld [vmem:[%s2847_s9 + $0xb8] sm:$0xff] }
  0x21   : > { %306 = vst.msk [vmem:[#allocation2 + $0x40] sm:$0x3] %vm299_vm1, %v2713_v0  ;;  %309 = vst.msk [vmem:[#allocation2 + $0x58] sm:$0x3] %vm299_vm1, %v2713_v0  ;;  %v445_v25 = vadd.f32 %v2852_v2, %v406_v11  ;;  %v411_v60 = vmul.f32 %v2840_v1, %v372_v41  ;;  %v376_v11 = vld [vmem:[%s2847_s9 + $0xc0] sm:$0xff] }
  0x22   : > { %312 = vst.msk [vmem:[#allocation2 + $0x70] sm:$0x3] %vm299_vm1, %v2713_v0  ;;  %315 = vst.msk [vmem:[#allocation2 + $0x88] sm:$0x3] %vm299_vm1, %v2713_v0  ;;  %v446_v26 = vadd.f32 %v2852_v2, %v407_v15  ;;  %v476_v44 = vmax.f32 %v444_v24, 0.0 }
  0x23   : > { %318 = vst.msk [vmem:[#allocation2 + $0xa0] sm:$0x3] %vm299_vm1, %v2713_v0  ;;  %321 = vst.msk [vmem:[#allocation2 + $0xb8] sm:$0x3] %vm299_vm1, %v2713_v0  ;;  %v477_v45 = vmax.f32 %v445_v25, 0.0 }
  0x24   : > { %324 = vst.msk [vmem:[#allocation2 + $0xd0] sm:$0x3] %vm299_vm1, %v2713_v0  ;;  %327 = vst.msk [vmem:[#allocation2 + $0xe8] sm:$0x3] %vm299_vm1, %v2713_v0 }
  0x25   : > { %330 = vst.msk [vmem:[#allocation2 + $0x100] sm:$0x3] %vm299_vm1, %v2713_v0  ;;  %333 = vst.msk [vmem:[#allocation2 + $0x118] sm:$0x3] %vm299_vm1, %v2713_v0 }
  0x26   : > { %336 = vst.msk [vmem:[#allocation2 + $0x130] sm:$0x3] %vm299_vm1, %v2713_v0  ;;  %339 = vst.msk [vmem:[#allocation2 + $0x148] sm:$0x3] %vm299_vm1, %v2713_v0 }
  0x27   : > { %342 = vst.msk [vmem:[#allocation2 + $0x160] sm:$0x3] %vm299_vm1, %v2713_v0  ;;  %345 = vst.msk [vmem:[#allocation2 + $0x178] sm:$0x3] %vm299_vm1, %v2713_v0  ;;  %v2867_v14 = vld [vmem:[#allocation2 + $0x10] sm:$0x3] }
  0x28   : > { %348 = vst.msk [vmem:[#allocation2 + $0x190] sm:$0x3] %vm299_vm1, %v2713_v0  ;;  %351 = vst.msk [vmem:[#allocation2 + $0x1a8] sm:$0x3] %vm299_vm1, %v2713_v0  ;;  %v633_v20 = vrot.slane %v2867_v14, 1  ;;  %v443_v0 = vadd.f32 %v2852_v2, %v404_v53  ;;  %v478_v53 = vmax.f32 %v446_v26, 0.0 }
  0x29   : > { %497 = vst.msk [vmem:[#allocation2 + $0x31] sm:$0xff] %vm296_vm0, %v464_v32  ;;  %498 = vst.msk [vmem:[#allocation2 + $0x39] sm:$0xff] %vm296_vm0, %v465_v37  ;;  %v447_v32 = vadd.f32 %v2852_v2, %v408_v17  ;;  %v410_v37 = vmul.f32 %v2840_v1, %v371_v18 }
  0x2a   : > { %v634_v31 = vsel %vm629_vm2, %v631_v19, %v633_v20  ;;  %495 = vst.msk [vmem:[#allocation2 + $0x19] sm:$0xff] %vm296_vm0, %v462_v38  ;;  %496 = vst.msk [vmem:[#allocation2 + $0x21] sm:$0xff] %vm296_vm0, %v463_v39  ;;  %v475_v9 = vmax.f32 %v443_v0, 0.0  ;;  %v409_v19 = vmul.f32 %v2840_v1, %v370_v4 }
  0x2b   : > { %499 = vst.msk [vmem:[#allocation2 + $0x49] sm:$0xff] %vm296_vm0, %v466_v40  ;;  %500 = vst.msk [vmem:[#allocation2 + $0x51] sm:$0xff] %vm296_vm0, %v467_v42  ;;  %819 = vrot.lane.b32.xlu0 %v634_v31, %s2714_s12  ;;  %v479_v54 = vmax.f32 %v447_v32, 0.0  ;;  %v449_v58 = vadd.f32 %v2852_v2, %v410_v37  ;;  %v414_v37 = vmul.f32 %v2840_v1, %v375_v10 }
  0x2c   : > { %501 = vst.msk [vmem:[#allocation2 + $0x61] sm:$0xff] %vm296_vm0, %v468_v61  ;;  %502 = vst.msk [vmem:[#allocation2 + $0x69] sm:$0xff] %vm296_vm0, %v469_v62  ;;  %v448_v46 = vadd.f32 %v2852_v2, %v409_v19  ;;  %v412_v61 = vmul.f32 %v2840_v1, %v373_v47  ;;  %v378_v47 = vld [vmem:[%s2847_s9 + $0xd0] sm:$0xff] }
  0x2d   : > { %503 = vst.msk [vmem:[#allocation2 + $0x79] sm:$0xff] %vm296_vm0, %v470_v63  ;;  %504 = vst.msk [vmem:[#allocation2 + $0x81] sm:$0xff] %vm296_vm0, %v471_v5 }
  0x2e   : > { %505 = vst.msk [vmem:[#allocation2 + $0x91] sm:$0xff] %vm296_vm0, %v472_v6  ;;  %506 = vst.msk [vmem:[#allocation2 + $0x99] sm:$0xff] %vm296_vm0, %v473_v7  ;;  %v480_v3 = vmax.f32 %v448_v46, 0.0  ;;  %v451_v24 = vadd.f32 %v2852_v2, %v412_v61 }
  0x2f   : > { %507 = vst.msk [vmem:[#allocation2 + $0xa9] sm:$0xff] %vm296_vm0, %v474_v8  ;;  %508 = vst.msk [vmem:[#allocation2 + $0xb1] sm:$0xff] %vm296_vm0, %v475_v9  ;;  %v374_v8 = vld [vmem:[%s2847_s9 + $0xb0] sm:$0xff]  ;;  %v481_v9 = vmax.f32 %v449_v58, 0.0 }
  0x30   : > { %v2926_v16 = vld [vmem:[#allocation2 + $0x30] sm:$0xff]  ;;  %v2935_v20 = vld [vmem:[#allocation2 + $0x38] sm:$0xff]  ;;  %v2958_v36 = vld [vmem:[#allocation2 + $0x40] sm:$0x3]  ;;  %509 = vst.msk [vmem:[#allocation2 + $0xc1] sm:$0xff] %vm296_vm0, %v476_v44 }
  0x31   : > { %v640_v21 = vrot.slane %v2926_v16, 1  ;;  %v2938_v22 = vld [vmem:[#allocation2 + $0x18] sm:$0xff]  ;;  %v2940_v23 = vld [vmem:[#allocation2 + $0x20] sm:$0xff]  ;;  %v641_v27 = vrot.slane %v2935_v20, 1  ;;  %v2956_v35 = vld [vmem:[#allocation2 + $0x28] sm:$0x3] }
  0x32   : > { %v635_v28 = vrot.slane %v2938_v22, 1  ;;  %v636_v29 = vrot.slane %v2940_v23, 1  ;;  %v2949_v30 = vld [vmem:[#allocation2 + $0x48] sm:$0xff]  ;;  %v2951_v31 = vld [vmem:[#allocation2 + $0x50] sm:$0xff]  ;;  %v638_v40 = vrot.slane %v2956_v35, 1  ;;  %v643_v42 = vrot.slane %v2958_v36, 1 }
  0x33   : > { %v645_v33 = vrot.slane %v2949_v30, 1  ;;  %v646_v34 = vrot.slane %v2951_v31, 1  ;;  %v2962_v38 = vsel %vm629_vm2, %v640_v21, %v641_v27  ;;  %v2974_v43 = vld [vmem:[#allocation2 + $0x58] sm:$0x3]  ;;  %v2984_v50 = vld [vmem:[#allocation2 + $0x60] sm:$0xff]  ;;  %v2986_v51 = vld [vmem:[#allocation2 + $0x68] sm:$0xff]  ;;  %v450_v21 = vadd.f32 %v2852_v2, %v411_v60 }
  0x34   : > { %v2965_v39 = vsel %vm629_vm2, %v635_v28, %v636_v29  ;;  %825 = vrot.lane.b32.xlu0 %v2962_v38, %s2714_s12  ;;  %v2982_v49 = vsel %vm629_vm2, %v636_v29, %v638_v40  ;;  %v2988_v52 = vld [vmem:[#allocation2 + $0x78] sm:$0xff]  ;;  %v650_v55 = vrot.slane %v2984_v50, 1  ;;  %v651_v56 = vrot.slane %v2986_v51, 1  ;;  %v2992_v57 = vld [vmem:[#allocation2 + $0x80] sm:$0xff]  ;;  %510 = vst.msk [vmem:[#allocation2 + $0xc9] sm:$0xff] %vm296_vm0, %v477_v45  ;;  %511 = vst.msk [vmem:[#allocation2 + $0xd9] sm:$0xff] %vm296_vm0, %v478_v53 }
  0x35   : > { %821 = vrot.lane.b32.xlu1 %v2965_v39, %s2714_s12  ;;  %v2979_v48 = vsel %vm629_vm2, %v645_v33, %v646_v34  ;;  %v648_v59 = vrot.slane %v2974_v43, 1  ;;  %512 = vst.msk [vmem:[#allocation2 + $0xe1] sm:$0xff] %vm296_vm0, %v479_v54  ;;  %v655_v62 = vrot.slane %v2988_v52, 1  ;;  %v656_v63 = vrot.slane %v2992_v57, 1  ;;  %v3008_v0 = vld [vmem:[#allocation2 + $0x90] sm:$0xff]  ;;  %v3016_v6 = vld [vmem:[#allocation2 + $0x98] sm:$0xff] }
  0x36   : > { %4728 = vst [vmem:[#allocation3_spill] sm:$0xff] %v2979_v48  ;;  %v3011_v4 = vsel %vm629_vm2, %v650_v55, %v651_v56  ;;  %v3014_v5 = vsel %vm629_vm2, %v641_v27, %v643_v42  ;;  %v3018_v7 = vld [vmem:[#allocation2 + $0x70] sm:$0x3]  ;;  %513 = vst.msk [vmem:[#allocation2 + $0xf1] sm:$0xff] %vm296_vm0, %v480_v3  ;;  %v660_v17 = vrot.slane %v3008_v0, 1  ;;  %v3028_v18 = vld [vmem:[#allocation2 + $0xa8] sm:$0xff]  ;;  %v413_v28 = vmul.f32 %v2840_v1, %v374_v8 }
  0x37   : > { %4729 = vst [vmem:[#allocation4_spill] sm:$0xff] %v3011_v4  ;;  %v3025_v15 = vsel %vm629_vm2, %v646_v34, %v648_v59  ;;  %v3030_v19 = vld [vmem:[#allocation2 + $0xb0] sm:$0xff]  ;;  %v3041_v25 = vsel %vm629_vm2, %v655_v62, %v656_v63  ;;  %v661_v26 = vrot.slane %v3016_v6, 1  ;;  %v653_v27 = vrot.slane %v3018_v7, 1  ;;  %514 = vst.msk [vmem:[#allocation2 + $0xf9] sm:$0xff] %vm296_vm0, %v481_v9  ;;  %v377_v29 = vld [vmem:[%s2847_s9 + $0xc8] sm:$0xff] }
  0x38   : > { %829 = vrot.lane.b32.xlu0 %v2979_v48, %s2714_s12  ;;  %4730 = vst [vmem:[#allocation5_spill] sm:$0xff] %v3025_v15  ;;  %4731 = vst [vmem:[#allocation6_spill] sm:$0xff] %v3030_v19  ;;  %v3048_v32 = vld [vmem:[#allocation2 + $0x88] sm:$0x3]  ;;  %v482_v33 = vmax.f32 %v450_v21, 0.0  ;;  %v483_v34 = vmax.f32 %v451_v24, 0.0  ;;  %v415_v40 = vmul.f32 %v2840_v1, %v376_v11  ;;  %v452_v44 = vadd.f32 %v2852_v2, %v413_v28 }
  0x39   : > { %823 = vrot.lane.b32.xlu1 %v2982_v49, %s2714_s12  ;;  %4732 = vst [vmem:[#allocation7_spill] sm:$0xff] %v3041_v25  ;;  %v665_v41 = vrot.slane %v3028_v18, 1  ;;  %v666_v42 = vrot.slane %v3030_v19, 1  ;;  %v453_v45 = vadd.f32 %v2852_v2, %v414_v37  ;;  %v416_v46 = vmul.f32 %v2840_v1, %v377_v29  ;;  %v379_v53 = vld [vmem:[%s2847_s9 + $0xd8] sm:$0xff]  ;;  %v380_v59 = vld [vmem:[%s2847_s9 + $0xe0] sm:$0xff]  ;;  %v381_v60 = vld [vmem:[%s2847_s9 + $0xe8] sm:$0xff] }
  0x3a   : > { %515 = vst.msk [vmem:[#allocation2 + $0x109] sm:$0xff] %vm296_vm0, %v482_v33  ;;  %516 = vst.msk [vmem:[#allocation2 + $0x111] sm:$0xff] %vm296_vm0, %v483_v34  ;;  %v3068_v54 = vsel %vm629_vm2, %v660_v17, %v661_v26  ;;  %v658_v55 = vrot.slane %v3048_v32, 1  ;;  %v484_v58 = vmax.f32 %v452_v44, 0.0  ;;  %v3074_v61 = vsel %vm629_vm2, %v651_v56, %v653_v27  ;;  %v3076_v62 = vld [vmem:[#allocation2 + $0xa0] sm:$0x3] }
  0x3b   : > { %4733 = vst [vmem:[#allocation8_spill] sm:$0xff] %v3068_v54  ;;  %4734 = vst [vmem:[#allocation9_spill] sm:$0xff] %v3074_v61  ;;  %v485_v3 = vmax.f32 %v453_v45, 0.0  ;;  %v454_v8 = vadd.f32 %v2852_v2, %v415_v40  ;;  %v455_v9 = vadd.f32 %v2852_v2, %v416_v46  ;;  %v3083_v10 = vsel %vm629_vm2, %v665_v41, %v666_v42  ;;  %v3085_v11 = vld [vmem:[#allocation2 + $0xc0] sm:$0xff]  ;;  %v3087_v17 = vld [vmem:[#allocation2 + $0xc8] sm:$0xff] }
  0x3c   : > { %833 = vrot.lane.b32.xlu0 %v3011_v4, %s2714_s12  ;;  %4735 = vst [vmem:[#allocation10_spill] sm:$0xff] %v3083_v10  ;;  %517 = vst.msk [vmem:[#allocation2 + $0x121] sm:$0xff] %vm296_vm0, %v484_v58  ;;  %v417_v56 = vmul.f32 %v2840_v1, %v378_v47  ;;  %v418_v21 = vmul.f32 %v2840_v1, %v379_v53  ;;  %v419_v28 = vmul.f32 %v2840_v1, %v380_v59  ;;  %v3109_v44 = vld [vmem:[#allocation2 + $0xb8] sm:$0x3]  ;;  %v3117_v47 = vld [vmem:[#allocation2 + $0xe0] sm:$0xff] }
  0x3d   : > { %827 = vrot.lane.b32.xlu1 %v3014_v5, %s2714_s12  ;;  %518 = vst.msk [vmem:[#allocation2 + $0x129] sm:$0xff] %vm296_vm0, %v485_v3  ;;  %v486_v24 = vmax.f32 %v454_v8, 0.0  ;;  %v487_v27 = vmax.f32 %v455_v9, 0.0  ;;  %v420_v29 = vmul.f32 %v2840_v1, %v381_v60  ;;  %v3102_v33 = vsel %vm629_vm2, %v656_v63, %v658_v55  ;;  %v3115_v46 = vld [vmem:[#allocation2 + $0xd8] sm:$0xff] }
  0x3e   : > { %4736 = vst [vmem:[#allocation11_spill] sm:$0xff] %v3102_v33  ;;  %v663_v34 = vrot.slane %v3076_v62, 1  ;;  %v456_v37 = vadd.f32 %v2852_v2, %v417_v56  ;;  %v457_v40 = vadd.f32 %v2852_v2, %v418_v21  ;;  %v670_v41 = vrot.slane %v3085_v11, 1  ;;  %4737 = vst [vmem:[#allocation12_spill] sm:$0xff] %v3115_v46  ;;  %v3136_v56 = vld [vmem:[#allocation2 + $0xd0] sm:$0x3] }
  0x3f   : > { %v671_v1 = vrot.slane %v3087_v17, 1  ;;  %519 = vst.msk [vmem:[#allocation2 + $0x139] sm:$0xff] %vm296_vm0, %v486_v24  ;;  %520 = vst.msk [vmem:[#allocation2 + $0x141] sm:$0xff] %vm296_vm0, %v487_v27  ;;  %v458_v45 = vadd.f32 %v2852_v2, %v419_v28  ;;  %v459_v63 = vadd.f32 %v2852_v2, %v420_v29  ;;  %v668_v59 = vrot.slane %v3109_v44, 1  ;;  %v3139_v21 = vld [vmem:[#allocation2 + $0xf0] sm:$0xff]  ;;  %v3141_v24 = vld [vmem:[#allocation2 + $0xf8] sm:$0xff] }
  0x40   : > { %837 = vrot.lane.b32.xlu0 %v3041_v25, %s2714_s12  ;;  %v488_v53 = vmax.f32 %v456_v37, 0.0  ;;  %v489_v55 = vmax.f32 %v457_v40, 0.0  ;;  %v3132_v3 = vsel %vm629_vm2, %v661_v26, %v663_v34  ;;  %v675_v8 = vrot.slane %v3115_v46, 1  ;;  %4740 = vst [vmem:[#allocation15_spill] sm:$0xff] %v3139_v21 }
  0x41   : > { %831 = vrot.lane.b32.xlu1 %v3025_v15, %s2714_s12  ;;  %v490_v58 = vmax.f32 %v458_v45, 0.0  ;;  %v491_v2 = vmax.f32 %v459_v63, 0.0  ;;  %v3127_v60 = vsel %vm629_vm2, %v670_v41, %v671_v1  ;;  %4739 = vst [vmem:[#allocation14_spill] sm:$0xff] %v3132_v3  ;;  %v676_v9 = vrot.slane %v3117_v47, 1  ;;  %v3159_v37 = vld [vmem:[#allocation2 + $0x108] sm:$0xff]  ;;  %v3161_v40 = vld [vmem:[#allocation2 + $0x110] sm:$0xff] }
  0x42   : > { %521 = vst.msk [vmem:[#allocation2 + $0x151] sm:$0xff] %vm296_vm0, %v488_v53  ;;  %522 = vst.msk [vmem:[#allocation2 + $0x159] sm:$0xff] %vm296_vm0, %v489_v55  ;;  %v673_v26 = vrot.slane %v3136_v56, 1  ;;  %v3155_v28 = vsel %vm629_vm2, %v666_v42, %v668_v59  ;;  %v680_v29 = vrot.slane %v3139_v21, 1  ;;  %v681_v34 = vrot.slane %v3141_v24, 1 }
  0x43   : > { %4738 = vst [vmem:[#allocation13_spill] sm:$0xff] %v3127_v60  ;;  %523 = vst.msk [vmem:[#allocation2 + $0x169] sm:$0xff] %vm296_vm0, %v490_v58  ;;  %v3150_v27 = vsel %vm629_vm2, %v675_v8, %v676_v9  ;;  %v3163_v41 = vld [vmem:[#allocation2 + $0xe8] sm:$0x3]  ;;  %v685_v63 = vrot.slane %v3159_v37, 1  ;;  %v686_v53 = vrot.slane %v3161_v40, 1 }
  0x44   : > { %841 = vrot.lane.b32.xlu0 %v3068_v54, %s2714_s12  ;;  %524 = vst.msk [vmem:[#allocation2 + $0x171] sm:$0xff] %vm296_vm0, %v491_v2  ;;  %4741 = vst [vmem:[#allocation16_spill] sm:$0xff] %v3150_v27  ;;  %v3170_v45 = vsel %vm629_vm2, %v671_v1, %v673_v26  ;;  %v3173_v42 = vsel %vm629_vm2, %v680_v29, %v681_v34  ;;  %v678_v55 = vrot.slane %v3163_v41, 1  ;;  %v3178_v58 = vld [vmem:[#allocation2 + $0x100] sm:$0x3]  ;;  %v3182_v2 = vld [vmem:[#allocation2 + $0x128] sm:$0xff] }
  0x45   : > { %835 = vrot.lane.b32.xlu1 %v3074_v61, %s2714_s12  ;;  %4742 = vst [vmem:[#allocation17_spill] sm:$0xff] %v3155_v28  ;;  %4743 = vst [vmem:[#allocation18_spill] sm:$0xff] %v3170_v45  ;;  %v3180_v59 = vld [vmem:[#allocation2 + $0x120] sm:$0xff]  ;;  %v683_v1 = vrot.slane %v3178_v58, 1  ;;  %v3190_v8 = vsel %vm629_vm2, %v685_v63, %v686_v53 }
  0x46   : > { %4744 = vst [vmem:[#allocation19_spill] sm:$0xff] %v3173_v42  ;;  %4745 = vst [vmem:[#allocation20_spill] sm:$0xff] %v3190_v8  ;;  %v3193_v26 = vsel %vm629_vm2, %v676_v9, %v678_v55  ;;  %v690_v29 = vrot.slane %v3180_v59, 1 }
  0x47   : > { %4746 = vst [vmem:[#allocation21_spill] sm:$0xff] %v3193_v26  ;;  %v3208_v63 = vsel %vm629_vm2, %v681_v34, %v683_v1 }
  0x48   : > { %845 = vrot.lane.b32.xlu0 %v3083_v10, %s2714_s12  ;;  %v3199_v10 = vld [vmem:[#allocation2 + $0x140] sm:$0xff]  ;;  %4747 = vst [vmem:[#allocation22_spill] sm:$0xff] %v3208_v63 }
  0x49   : > { %839 = vrot.lane.b32.xlu1 %v3102_v33, %s2714_s12  ;;  %v3218_v54 = vld [vmem:[#allocation2 + $0x150] sm:$0xff]  ;;  %v3254_v15 = vld [vmem:[#allocation2 + $0x160] sm:$0x3] }
  0x4a   : > { %v3235_v25 = vld [vmem:[#allocation2 + $0x168] sm:$0xff] }
  0x4b   : > { %v3237_v61 = vld [vmem:[#allocation2 + $0x170] sm:$0xff]  ;;  %v3269_v48 = vld [vmem:[#allocation2 + $0x178] sm:$0x3] }
  0x4c   : > { %849 = vrot.lane.b32.xlu0 %v3127_v60, %s2714_s12  ;;  %v3197_v60 = vld [vmem:[#allocation2 + $0x138] sm:$0xff] }
  0x4d   : > { %843 = vrot.lane.b32.xlu1 %v3132_v3, %s2714_s12  ;;  %v695_v55 = vrot.slane %v3197_v60, 1  ;;  %v3216_v3 = vld [vmem:[#allocation2 + $0x130] sm:$0x3] }
  0x4e   : > { %v693_v34 = vrot.slane %v3216_v3, 1 }
  0x50   : > { %853 = vrot.lane.b32.xlu0 %v3150_v27, %s2714_s12  ;;  %v691_v27 = vrot.slane %v3182_v2, 1 }
  0x51   : > { %847 = vrot.lane.b32.xlu1 %v3155_v28, %s2714_s12 }
  0x52   : > { %v3211_v9 = vsel %vm629_vm2, %v690_v29, %v691_v27 }
  0x53   : > { %4748 = vst [vmem:[#allocation23_spill] sm:$0xff] %v3211_v9 }
  0x54   : > { %857 = vrot.lane.b32.xlu0 %v3173_v42, %s2714_s12  ;;  %v3201_v42 = vld [vmem:[#allocation2 + $0x118] sm:$0x3] }
  0x55   : > { %851 = vrot.lane.b32.xlu1 %v3170_v45, %s2714_s12  ;;  %v696_v45 = vrot.slane %v3199_v10, 1  ;;  %v688_v28 = vrot.slane %v3201_v42, 1 }
  0x57   : > { %v3228_v1 = vsel %vm629_vm2, %v695_v55, %v696_v45  ;;  %v3231_v29 = vsel %vm629_vm2, %v686_v53, %v688_v28  ;;  %v3246_v55 = vsel %vm629_vm2, %v691_v27, %v693_v34  ;;  %v705_v53 = vrot.slane %v3235_v25, 1 }
  0x58   : > { %861 = vrot.lane.b32.xlu0 %v3190_v8, %s2714_s12  ;;  %v3220_v8 = vld [vmem:[#allocation2 + $0x158] sm:$0xff]  ;;  %4749 = vst [vmem:[#allocation24_spill] sm:$0xff] %v3228_v1  ;;  %4750 = vst [vmem:[#allocation25_spill] sm:$0xff] %v3231_v29  ;;  %v711_v27 = vrot.slane %v2863_v12, 2  ;;  %v716_v12 = vrot.slane %v2938_v22, 2 }
  0x59   : > { %855 = vrot.lane.b32.xlu1 %v3193_v26, %s2714_s12  ;;  %v700_v26 = vrot.slane %v3218_v54, 1  ;;  %v701_v33 = vrot.slane %v3220_v8, 1  ;;  %4751 = vst [vmem:[#allocation26_spill] sm:$0xff] %v3246_v55 }
  0x5b   : > { %v3249_v28 = vsel %vm629_vm2, %v700_v26, %v701_v33 }
  0x5c   : > { %865 = vrot.lane.b32.xlu0 %v3211_v9, %s2714_s12  ;;  %v3239_v9 = vld [vmem:[#allocation2 + $0x148] sm:$0x3]  ;;  %4752 = vst [vmem:[#allocation27_spill] sm:$0xff] %v3249_v28 }
  0x5d   : > { %859 = vrot.lane.b32.xlu1 %v3208_v63, %s2714_s12  ;;  %v706_v63 = vrot.slane %v3237_v61, 1  ;;  %v698_v4 = vrot.slane %v3239_v9, 1 }
  0x5f   : > { %v3262_v34 = vsel %vm629_vm2, %v705_v53, %v706_v63  ;;  %v3265_v26 = vsel %vm629_vm2, %v696_v45, %v698_v4  ;;  %v708_v45 = vrot.slane %v3269_v48, 1 }
  0x60   : > { %869 = vrot.lane.b32.xlu0 %v3228_v1, %s2714_s12  ;;  %4753 = vst [vmem:[#allocation28_spill] sm:$0xff] %v3262_v34  ;;  %4754 = vst [vmem:[#allocation29_spill] sm:$0xff] %v3265_v26  ;;  %v712_v1 = vrot.slane %v2865_v13, 2  ;;  %v717_v13 = vrot.slane %v2940_v23, 2 }
  0x61   : > { %863 = vrot.lane.b32.xlu1 %v3231_v29, %s2714_s12  ;;  %v703_v29 = vrot.slane %v3254_v15, 1 }
  0x62   : > { %v713_v53 = vsel %vm710_vm3, %v711_v27, %v712_v1  ;;  %v3290_v27 = vsel %vm629_vm2, %v706_v63, %v708_v45  ;;  %v719_v45 = vrot.slane %v2956_v35, 2  ;;  %v736_v35 = vrot.slane %v2988_v52, 2 }
  0x63   : > { %v3278_v4 = vsel %vm629_vm2, %v701_v33, %v703_v29  ;;  %4756 = vst [vmem:[#allocation31_spill] sm:$0xff] %v3290_v27  ;;  %v722_v33 = vrot.slane %v2935_v20, 2  ;;  %v714_v29 = vrot.slane %v2867_v14, 2 }
  0x64   : > { %873 = vrot.lane.b32.xlu0 %v3249_v28, %s2714_s12  ;;  %4755 = vst [vmem:[#allocation30_spill] sm:$0xff] %v3278_v4  ;;  %v3287_v28 = vsel %vm710_vm3, %v716_v12, %v717_v13 }
  0x65   : > { %867 = vrot.lane.b32.xlu1 %v3246_v55, %s2714_s12  ;;  %v715_v63 = vsel %vm710_vm3, %v712_v1, %v714_v29  ;;  %v724_v55 = vrot.slane %v2958_v36, 2  ;;  %v737_v1 = vrot.slane %v2992_v57, 2 }
  0x67   : > { %v3335_v36 = vsel %vm710_vm3, %v736_v35, %v737_v1 }
  0x68   : > { %877 = vrot.lane.b32.xlu0 %v3262_v34, %s2714_s12  ;;  %v721_v34 = vrot.slane %v2926_v16, 2  ;;  %4757 = vst [vmem:[#allocation32_spill] sm:$0xff] %v3335_v36 }
  0x69   : > { %871 = vrot.lane.b32.xlu1 %v3265_v26, %s2714_s12  ;;  %v731_v26 = vrot.slane %v2984_v50, 2 }
  0x6a   : > { %v3301_v12 = vsel %vm710_vm3, %v721_v34, %v722_v33  ;;  %v732_v34 = vrot.slane %v2986_v51, 2 }
  0x6c   : > { %913 = vrot.lane.b32.xlu0 %v713_v53, %s2715_s13  ;;  %v726_v53 = vrot.slane %v2949_v30, 2  ;;  %v3324_v29 = vsel %vm710_vm3, %v731_v26, %v732_v34  ;;  %v741_v26 = vrot.slane %v3008_v0, 2 }
  0x6d   : > { %875 = vrot.lane.b32.xlu1 %v3278_v4, %s2714_s12  ;;  %v727_v4 = vrot.slane %v2951_v31, 2 }
  0x6f   : > { %v3309_v14 = vsel %vm710_vm3, %v726_v53, %v727_v4  ;;  %v729_v53 = vrot.slane %v2974_v43, 2  ;;  %v746_v43 = vrot.slane %v3028_v18, 2 }
  0x70   : > { %917 = vrot.lane.b32.xlu0 %v3287_v28, %s2715_s13 }
  0x71   : > { %879 = vrot.lane.b32.xlu1 %v3290_v27, %s2714_s12  ;;  %v3312_v27 = vsel %vm710_vm3, %v717_v13, %v719_v45  ;;  %v3327_v13 = vsel %vm710_vm3, %v722_v33, %v724_v55  ;;  %v742_v45 = vrot.slane %v3016_v6, 2  ;;  %v734_v55 = vrot.slane %v3018_v7, 2 }
  0x72   : > { %v747_v33 = vrot.slane %v3030_v19, 2  ;;  %v752_v19 = vrot.slane %v3087_v17, 2 }
  0x73   : > { %v3350_v35 = vsel %vm710_vm3, %v741_v26, %v742_v45  ;;  %v751_v26 = vrot.slane %v3085_v11, 2 }
  0x74   : > { %921 = vrot.lane.b32.xlu0 %v3301_v12, %s2715_s13  ;;  %v3361_v7 = vsel %vm710_vm3, %v746_v43, %v747_v33  ;;  %v757_v43 = vrot.slane %v3117_v47, 2 }
  0x75   : > { %915 = vrot.lane.b32.xlu1 %v715_v63, %s2715_s13  ;;  %v3338_v63 = vsel %vm710_vm3, %v727_v4, %v729_v53  ;;  %v3353_v4 = vsel %vm710_vm3, %v732_v34, %v734_v55  ;;  %v739_v53 = vrot.slane %v3048_v32, 2  ;;  %v744_v34 = vrot.slane %v3076_v62, 2 }
  0x76   : > { %v756_v32 = vrot.slane %v3115_v46, 2  ;;  %v3375_v55 = vsel %vm710_vm3, %v751_v26, %v752_v19  ;;  %v761_v62 = vrot.slane %v3139_v21, 2 }
  0x78   : > { %925 = vrot.lane.b32.xlu0 %v3309_v14, %s2715_s13  ;;  %v3388_v46 = vsel %vm710_vm3, %v756_v32, %v757_v43 }
  0x79   : > { %919 = vrot.lane.b32.xlu1 %v3312_v27, %s2715_s13 }
  0x7c   : > { %929 = vrot.lane.b32.xlu0 %v3324_v29, %s2715_s13 }
  0x7d   : > { %923 = vrot.lane.b32.xlu1 %v3327_v13, %s2715_s13 }
  0x80   : > { %933 = vrot.lane.b32.xlu0 %v3335_v36, %s2715_s13  ;;  %v3364_v36 = vsel %vm710_vm3, %v737_v1, %v739_v53  ;;  %v3378_v1 = vsel %vm710_vm3, %v742_v45, %v744_v34  ;;  %v749_v53 = vrot.slane %v3109_v44, 2  ;;  %v762_v45 = vrot.slane %v3141_v24, 2 }
  0x81   : > { %927 = vrot.lane.b32.xlu1 %v3338_v63, %s2715_s13  ;;  %v754_v34 = vrot.slane %v3136_v56, 2  ;;  %v766_v44 = vrot.slane %v3159_v37, 2  ;;  %v771_v56 = vrot.slane %v3180_v59, 2 }
  0x82   : > { %v3391_v26 = vsel %vm710_vm3, %v747_v33, %v749_v53  ;;  %v3401_v21 = vsel %vm710_vm3, %v761_v62, %v762_v45  ;;  %v767_v33 = vrot.slane %v3161_v40, 2  ;;  %v759_v53 = vrot.slane %v3163_v41, 2 }
  0x83   : > { %v3404_v32 = vsel %vm710_vm3, %v752_v19, %v754_v34  ;;  %v772_v19 = vrot.slane %v3182_v2, 2  ;;  %v764_v40 = vrot.slane %v3178_v58, 2  ;;  %v776_v41 = vrot.slane %v3197_v60, 2 }
  0x84   : > { %937 = vrot.lane.b32.xlu0 %v3350_v35, %s2715_s13  ;;  %v3414_v37 = vsel %vm710_vm3, %v766_v44, %v767_v33  ;;  %v3417_v62 = vsel %vm710_vm3, %v757_v43, %v759_v53  ;;  %v777_v43 = vrot.slane %v3199_v10, 2  ;;  %v769_v2 = vrot.slane %v3201_v42, 2 }
  0x85   : > { %931 = vrot.lane.b32.xlu1 %v3353_v4, %s2715_s13  ;;  %v3427_v59 = vsel %vm710_vm3, %v771_v56, %v772_v19  ;;  %v3430_v34 = vsel %vm710_vm3, %v762_v45, %v764_v40  ;;  %v781_v60 = vrot.slane %v3218_v54, 2  ;;  %v782_v10 = vrot.slane %v3220_v8, 2 }
  0x86   : > { %v3442_v58 = vsel %vm710_vm3, %v776_v41, %v777_v43  ;;  %v3445_v45 = vsel %vm710_vm3, %v767_v33, %v769_v2  ;;  %v774_v42 = vrot.slane %v3216_v3, 2  ;;  %v786_v54 = vrot.slane %v3235_v25, 2 }
  0x87   : > { %4758 = vst [vmem:[#allocation33_spill] sm:$0xff] %v3442_v58  ;;  %v3457_v56 = vsel %vm710_vm3, %v781_v60, %v782_v10  ;;  %v787_v8 = vrot.slane %v3237_v61, 2  ;;  %v779_v3 = vrot.slane %v3239_v9, 2  ;;  %v784_v41 = vrot.slane %v3254_v15, 2 }
  0x88   : > { %941 = vrot.lane.b32.xlu0 %v3361_v7, %s2715_s13  ;;  %4759 = vst [vmem:[#allocation34_spill] sm:$0xff] %v3457_v56  ;;  %v3460_v33 = vsel %vm710_vm3, %v772_v19, %v774_v42  ;;  %v789_v9 = vrot.slane %v3269_v48, 2 }
  0x89   : > { %935 = vrot.lane.b32.xlu1 %v3364_v36, %s2715_s13  ;;  %v3469_v40 = vsel %vm710_vm3, %v786_v54, %v787_v8  ;;  %v3472_v25 = vsel %vm710_vm3, %v777_v43, %v779_v3  ;;  %v3484_v61 = vsel %vm710_vm3, %v782_v10, %v784_v41 }
  0x8a   : > { %4760 = vst [vmem:[#allocation35_spill] sm:$0xff] %v3469_v40  ;;  %4761 = vst [vmem:[#allocation36_spill] sm:$0xff] %v3472_v25  ;;  %v3496_v15 = vsel %vm710_vm3, %v787_v8, %v789_v9 }
  0x8b   : > { %v3434_v44 = vpop.permute.xlu0 %817  ;;  %4762 = vst [vmem:[#allocation37_spill] sm:$0xff] %v3484_v61  ;;  %4763 = vst [vmem:[#allocation38_spill] sm:$0xff] %v3496_v15 }
  0x8c   : > { %945 = vrot.lane.b32.xlu0 %v3375_v55, %s2715_s13 }
  0x8d   : > { %939 = vrot.lane.b32.xlu1 %v3378_v1, %s2715_s13 }
  0x90   : > { %949 = vrot.lane.b32.xlu0 %v3388_v46, %s2715_s13 }
  0x91   : > { %943 = vrot.lane.b32.xlu1 %v3391_v26, %s2715_s13 }
  0x94   : > { %953 = vrot.lane.b32.xlu0 %v3401_v21, %s2715_s13 }
  0x95   : > { %947 = vrot.lane.b32.xlu1 %v3404_v32, %s2715_s13 }
  0x98   : > { %957 = vrot.lane.b32.xlu0 %v3414_v37, %s2715_s13 }
  0x99   : > { %951 = vrot.lane.b32.xlu1 %v3417_v62, %s2715_s13 }
  0x9c   : > { %961 = vrot.lane.b32.xlu0 %v3427_v59, %s2715_s13 }
  0x9d   : > { %955 = vrot.lane.b32.xlu1 %v3430_v34, %s2715_s13  ;;  %v3453_v53 = vpop.permute.xlu0 %819 }
  0xa0   : > { %965 = vrot.lane.b32.xlu0 %v3442_v58, %s2715_s13  ;;  %v4816_v58 = vld [vmem:[#allocation10_spill] sm:$0xff] }
  0xa1   : > { %959 = vrot.lane.b32.xlu1 %v3445_v45, %s2715_s13 }
  0xa4   : > { %969 = vrot.lane.b32.xlu0 %v3457_v56, %s2715_s13 }
  0xa5   : > { %963 = vrot.lane.b32.xlu1 %v3460_v33, %s2715_s13 }
  0xa6   : > { %v3475_v19 = vpop.permute.xlu0 %825 }
  0xa7   : > { %v3477_v2 = vpop.permute.xlu1 %821 }
  0xa8   : > { %973 = vrot.lane.b32.xlu0 %v3469_v40, %s2715_s13 }
  0xa9   : > { %967 = vrot.lane.b32.xlu1 %v3472_v25, %s2715_s13 }
  0xaa   : > { %v3487_v60 = vpop.permute.xlu0 %829 }
  0xab   : > { %v3489_v43 = vpop.permute.xlu1 %823 }
  0xac   : > { %1009 = vrot.lane.b32.xlu0 %v2938_v22, %s2716_s14 }
  0xad   : > { %971 = vrot.lane.b32.xlu1 %v3484_v61, %s2715_s13 }
  0xae   : > { %v3498_v42 = vpop.permute.xlu0 %833 }
  0xaf   : > { %v3500_v10 = vpop.permute.xlu1 %827 }
  0xb0   : > { %1013 = vrot.lane.b32.xlu0 %v2926_v16, %s2716_s14 }
  0xb1   : > { %975 = vrot.lane.b32.xlu1 %v3496_v15, %s2715_s13 }
  0xb2   : > { %v3506_v48 = vpop.permute.xlu0 %837 }
  0xb3   : > { %v3508_v54 = vpop.permute.xlu1 %831 }
  0xb4   : > { %1017 = vrot.lane.b32.xlu0 %v2949_v30, %s2716_s14 }
  0xb5   : > { %1011 = vrot.lane.b32.xlu1 %v2940_v23, %s2716_s14 }
  0xb6   : > { %v3514_v22 = vpop.permute.xlu0 %841 }
  0xb7   : > { %4764 = vst [vmem:[#allocation39_spill] sm:$0xff] %v3514_v22  ;;  %v3516_v8 = vpop.permute.xlu1 %835 }
  0xb8   : > { %1021 = vrot.lane.b32.xlu0 %v2984_v50, %s2716_s14 }
  0xb9   : > { %1015 = vrot.lane.b32.xlu1 %v2935_v20, %s2716_s14 }
  0xba   : > { %v3522_v3 = vpop.permute.xlu0 %845 }
  0xbb   : > { %4765 = vst [vmem:[#allocation40_spill] sm:$0xff] %v3522_v3  ;;  %v3524_v41 = vpop.permute.xlu1 %839  ;;  %v1851_v3 = vld [vmem:[%s4650_s3 + $0x18] sm:$0xff] }
  0xbc   : > { %1025 = vrot.lane.b32.xlu0 %v2988_v52, %s2716_s14 }
  0xbd   : > { %1019 = vrot.lane.b32.xlu1 %v2951_v31, %s2716_s14 }
  0xbe   : > { %v3530_v23 = vpop.permute.xlu0 %849 }
  0xbf   : > { %4766 = vst [vmem:[#allocation41_spill] sm:$0xff] %v3530_v23  ;;  %v3532_v9 = vpop.permute.xlu1 %843 }
  0xc0   : > { %4767 = vst [vmem:[#allocation42_spill] sm:$0xff] %v3532_v9  ;;  %1029 = vrot.lane.b32.xlu0 %v3008_v0, %s2716_s14 }
  0xc1   : > { %1023 = vrot.lane.b32.xlu1 %v2986_v51, %s2716_s14 }
  0xc2   : > { %v3538_v40 = vpop.permute.xlu0 %853 }
  0xc3   : > { %4768 = vst [vmem:[#allocation43_spill] sm:$0xff] %v3538_v40  ;;  %v3540_v15 = vpop.permute.xlu1 %847 }
  0xc4   : > { %4769 = vst [vmem:[#allocation44_spill] sm:$0xff] %v3540_v15  ;;  %1033 = vrot.lane.b32.xlu0 %v3028_v18, %s2716_s14  ;;  %v1848_v15 = vld [vmem:[%s4650_s3] sm:$0xff] }
  0xc5   : > { %1027 = vrot.lane.b32.xlu1 %v2992_v57, %s2716_s14 }
  0xc6   : > { %v3546_v56 = vpop.permute.xlu0 %857 }
  0xc7   : > { %4770 = vst [vmem:[#allocation45_spill] sm:$0xff] %v3546_v56  ;;  %v3548_v23 = vpop.permute.xlu1 %851  ;;  %v1849_v56 = vld [vmem:[%s4650_s3 + $0x8] sm:$0xff] }
  0xc8   : > { %4771 = vst [vmem:[#allocation46_spill] sm:$0xff] %v3548_v23  ;;  %1107 = vrot.lane.b32.xlu0 %v2982_v49, %s2717_s15  ;;  %v2640_v49 = vpack.c.bf16 %v1849_v56, %v1848_v15 }
  0xc9   : > { %1031 = vrot.lane.b32.xlu1 %v3016_v6, %s2716_s14 }
  0xca   : > { %v3554_v40 = vpop.permute.xlu0 %861  ;;  %2641 = vmatprep.subr.bf16.mxu0 %v2640_v49  ;;  %2648 = vmatprep.subr.bf16.mxu1 %v2640_v49 }
  0xcb   : > { %4772 = vst [vmem:[#allocation47_spill] sm:$0xff] %v3554_v40  ;;  %v3556_v61 = vpop.permute.xlu1 %855  ;;  %2643 = vmatpush3.bf16.msra.mxu0 %v2640_v49  ;;  %2651 = vmatpush3.bf16.msra.mxu1 %v2640_v49 }
  0xcc   : > { %4773 = vst [vmem:[#allocation48_spill] sm:$0xff] %v3556_v61  ;;  %1203 = vrot.lane.b32.xlu0 %v3312_v27, %s2718_s20  ;;  %v1850_v61 = vld [vmem:[%s4650_s3 + $0x10] sm:$0xff] }
  0xcd   : > { %1105 = vrot.lane.b32.xlu1 %v2965_v39, %s2717_s15  ;;  %v2644_v39 = vpack.c.bf16 %v1851_v3, %v1850_v61 }
  0xce   : > { %v3568_v23 = vpop.permute.xlu0 %865 }
  0xcf   : > { %4774 = vst [vmem:[#allocation49_spill] sm:$0xff] %v3568_v23  ;;  %v3570_v40 = vpop.permute.xlu1 %859  ;;  %2645 = vmatprep.subr.bf16.mxu0 %v2644_v39  ;;  %2649 = vmatprep.subr.bf16.mxu1 %v2644_v39  ;;  %v4788_v23 = vld [vmem:[#allocation4_spill] sm:$0xff] }
  0xd0   : > { %4775 = vst [vmem:[#allocation50_spill] sm:$0xff] %v3570_v40  ;;  %1299 = vrot.lane.b32.xlu0 %v2935_v20, %s2719_s28  ;;  %2647 = vmatpush3.bf16.msra.mxu0 %v2644_v39  ;;  %v1852_v20 = vld [vmem:[%s4650_s3 + $0x20] sm:$0xf] }
  0xd1   : > { %1201 = vrot.lane.b32.xlu1 %v3287_v28, %s2718_s20  ;;  %2652 = vmatpush3.bf16.msra.mxu1 %v2644_v39 }
  0xd2   : > { %v3582_v27 = vpop.permute.xlu0 %869  ;;  %2590 = vmatprep.subr.msk.mxu0 %vm1957_vm4, %v1852_v20  ;;  %2650 = vmatprep.subr.msk.mxu1 %vm1957_vm4, %v1852_v20 }
  0xd3   : > { %4776 = vst [vmem:[#allocation51_spill] sm:$0xff] %v3582_v27  ;;  %v3584_v56 = vpop.permute.xlu1 %863 }
  0xd4   : > { %4777 = vst [vmem:[#allocation52_spill] sm:$0xff] %v3584_v56  ;;  %1109 = vrot.lane.b32.xlu0 %v2962_v38, %s2717_s15  ;;  %2591 = vmatpush3.msk.msra.mxu0 %vm1957_vm4, %v1852_v20  ;;  %v4793_v56 = vld [vmem:[#allocation9_spill] sm:$0xff] }
  0xd5   : > { %1297 = vrot.lane.b32.xlu1 %v2926_v16, %s2719_s28  ;;  %2653 = vmatpush3.msk.msra.mxu1 %vm1957_vm4, %v1852_v20 }
  0xd6   : > { %v3593_v28 = vpop.permute.xlu0 %873 }
  0xd7   : > { %4778 = vst [vmem:[#allocation53_spill] sm:$0xff] %v3593_v28  ;;  %v3595_v61 = vpop.permute.xlu1 %867 }
  0xd8   : > { %4779 = vst [vmem:[#allocation54_spill] sm:$0xff] %v3595_v61  ;;  %1489 = vrot.lane.b32.xlu0 %v3301_v12, %s2720_s8 }
  0xd9   : > { %1393 = vrot.lane.b32.xlu1 %v2962_v38, %s2721_s10 }
  0xda   : > { %v3601_v16 = vpop.permute.xlu0 %877 }
  0xdb   : > { %4780 = vst [vmem:[#allocation55_spill] sm:$0xff] %v3601_v16  ;;  %v3603_v15 = vpop.permute.xlu1 %871  ;;  %v4784_v16 = vld [vmem:[#allocation3_spill] sm:$0xff] }
  0xdc   : > { %4781 = vst [vmem:[#allocation56_spill] sm:$0xff] %v3603_v15  ;;  %1205 = vrot.lane.b32.xlu0 %v3301_v12, %s2718_s20 }
  0xdd   : > { %1395 = vrot.lane.b32.xlu1 %v3014_v5, %s2721_s10 }
  0xde   : > { %v3609_v3 = vpop.permute.xlu0 %913 }
  0xdf   : > { %v3611_v49 = vpop.permute.xlu1 %875 }
  0xe0   : > { %4782 = vst [vmem:[#allocation57_spill] sm:$0xff] %v3611_v49  ;;  %1207 = vrot.lane.b32.xlu0 %v3327_v13, %s2718_s20 }
  0xe1   : > { %1111 = vrot.lane.b32.xlu1 %v3014_v5, %s2717_s15 }
  0xe2   : > { %v3617_v38 = vpop.permute.xlu0 %917 }
  0xe3   : > { %v3619_v39 = vpop.permute.xlu1 %879 }
  0xe4   : > { %4783 = vst [vmem:[#allocation58_spill] sm:$0xff] %v3619_v39  ;;  %1303 = vrot.lane.b32.xlu0 %v2951_v31, %s2719_s28  ;;  %v4785_v39 = vld [vmem:[#allocation5_spill] sm:$0xff] }
  0xe5   : > { %1491 = vrot.lane.b32.xlu1 %v3327_v13, %s2720_s8 }
  0xe6   : > { %v3625_v12 = vpop.permute.xlu0 %921 }
  0xe7   : > { %v3627_v20 = vpop.permute.xlu1 %915 }
  0xe8   : > { %1113 = vrot.lane.b32.xlu0 %v4784_v16, %s2717_s15 }
  0xe9   : > { %1301 = vrot.lane.b32.xlu1 %v2949_v30, %s2719_s28 }
  0xea   : > { %v3633_v5 = vpop.permute.xlu0 %925 }
  0xeb   : > { %v3635_v28 = vpop.permute.xlu1 %919 }
  0xec   : > { %1493 = vrot.lane.b32.xlu0 %v3309_v14, %s2720_s8 }
  0xed   : > { %1397 = vrot.lane.b32.xlu1 %v4784_v16, %s2721_s10 }
  0xee   : > { %v3641_v31 = vpop.permute.xlu0 %929 }
  0xef   : > { %v3643_v13 = vpop.permute.xlu1 %923 }
  0xf0   : > { %1209 = vrot.lane.b32.xlu0 %v3309_v14, %s2718_s20 }
  0xf1   : > { %1399 = vrot.lane.b32.xlu1 %v4785_v39, %s2721_s10 }
  0xf2   : > { %v3649_v30 = vpop.permute.xlu0 %933 }
  0xf3   : > { %v3651_v49 = vpop.permute.xlu1 %927 }
  0xf4   : > { %1211 = vrot.lane.b32.xlu0 %v3338_v63, %s2718_s20 }
  0xf5   : > { %1115 = vrot.lane.b32.xlu1 %v4785_v39, %s2717_s15 }
  0xf6   : > { %v3657_v16 = vpop.permute.xlu0 %937 }
  0xf7   : > { %4786 = vst [vmem:[#allocation3_spill] sm:$0xff] %v3657_v16  ;;  %v3659_v15 = vpop.permute.xlu1 %931 }
  0xf8   : > { %1307 = vrot.lane.b32.xlu0 %v2986_v51, %s2719_s28 }
  0xf9   : > { %1495 = vrot.lane.b32.xlu1 %v3338_v63, %s2720_s8 }
  0xfa   : > { %v3665_v14 = vpop.permute.xlu0 %941 }
  0xfb   : > { %4787 = vst [vmem:[#allocation5_spill] sm:$0xff] %v3665_v14  ;;  %v3667_v27 = vpop.permute.xlu1 %935  ;;  %v4815_v14 = vld [vmem:[#allocation17_spill] sm:$0xff] }
  0xfc   : > { %1117 = vrot.lane.b32.xlu0 %v4788_v23, %s2717_s15 }
  0xfd   : > { %1305 = vrot.lane.b32.xlu1 %v2984_v50, %s2719_s28 }
  0xfe   : > { %v3673_v39 = vpop.permute.xlu0 %945 }
  0xff   : > { %4789 = vst [vmem:[#allocation4_spill] sm:$0xff] %v3673_v39  ;;  %v3675_v61 = vpop.permute.xlu1 %939 }
 0x100   : > { %4790 = vst [vmem:[#allocation59_spill] sm:$0xff] %v3675_v61  ;;  %1497 = vrot.lane.b32.xlu0 %v3324_v29, %s2720_s8 }
 0x101   : > { %1401 = vrot.lane.b32.xlu1 %v4788_v23, %s2721_s10 }
 0x102   : > { %v3681_v51 = vpop.permute.xlu0 %949 }
 0x103   : > { %4791 = vst [vmem:[#allocation60_spill] sm:$0xff] %v3681_v51  ;;  %v3683_v63 = vpop.permute.xlu1 %943 }
 0x104   : > { %4792 = vst [vmem:[#allocation61_spill] sm:$0xff] %v3683_v63  ;;  %1213 = vrot.lane.b32.xlu0 %v3324_v29, %s2718_s20 }
 0x105   : > { %1403 = vrot.lane.b32.xlu1 %v4793_v56, %s2721_s10 }
 0x106   : > { %v3689_v50 = vpop.permute.xlu0 %953 }
 0x107   : > { %4794 = vst [vmem:[#allocation9_spill] sm:$0xff] %v3689_v50  ;;  %v3691_v40 = vpop.permute.xlu1 %947 }
 0x108   : > { %4795 = vst [vmem:[#allocation62_spill] sm:$0xff] %v3691_v40  ;;  %1215 = vrot.lane.b32.xlu0 %v3353_v4, %s2718_s20  ;;  %v4800_v40 = vld [vmem:[#allocation7_spill] sm:$0xff] }
 0x109   : > { %1119 = vrot.lane.b32.xlu1 %v4793_v56, %s2717_s15 }
 0x10a   : > { %v3697_v23 = vpop.permute.xlu0 %957 }
 0x10b   : > { %4796 = vst [vmem:[#allocation63_spill] sm:$0xff] %v3697_v23  ;;  %v3699_v51 = vpop.permute.xlu1 %951 }
 0x10c   : > { %4797 = vst [vmem:[#allocation64_spill] sm:$0xff] %v3699_v51  ;;  %1311 = vrot.lane.b32.xlu0 %v2992_v57, %s2719_s28  ;;  %v4803_v51 = vld [vmem:[#allocation32_spill] sm:$0xff] }
 0x10d   : > { %1499 = vrot.lane.b32.xlu1 %v3353_v4, %s2720_s8 }
 0x10e   : > { %v3705_v29 = vpop.permute.xlu0 %961 }
 0x10f   : > { %4798 = vst [vmem:[#allocation65_spill] sm:$0xff] %v3705_v29  ;;  %v3707_v50 = vpop.permute.xlu1 %955  ;;  %v4806_v29 = vld [vmem:[#allocation11_spill] sm:$0xff] }
 0x110   : > { %4799 = vst [vmem:[#allocation66_spill] sm:$0xff] %v3707_v50  ;;  %1121 = vrot.lane.b32.xlu0 %v4800_v40, %s2717_s15  ;;  %v4813_v50 = vld [vmem:[#allocation6_spill] sm:$0xff] }
 0x111   : > { %1309 = vrot.lane.b32.xlu1 %v2988_v52, %s2719_s28 }
 0x112   : > { %v3713_v56 = vpop.permute.xlu0 %965 }
 0x113   : > { %4801 = vst [vmem:[#allocation7_spill] sm:$0xff] %v3713_v56  ;;  %v3715_v23 = vpop.permute.xlu1 %959 }
 0x114   : > { %4802 = vst [vmem:[#allocation67_spill] sm:$0xff] %v3715_v23  ;;  %1501 = vrot.lane.b32.xlu0 %v4803_v51, %s2720_s8 }
 0x115   : > { %1405 = vrot.lane.b32.xlu1 %v4800_v40, %s2721_s10 }
 0x116   : > { %v3721_v57 = vpop.permute.xlu0 %969 }
 0x117   : > { %4804 = vst [vmem:[#allocation32_spill] sm:$0xff] %v3721_v57  ;;  %v3723_v4 = vpop.permute.xlu1 %963 }
 0x118   : > { %4805 = vst [vmem:[#allocation68_spill] sm:$0xff] %v3723_v4  ;;  %1217 = vrot.lane.b32.xlu0 %v4803_v51, %s2718_s20 }
 0x119   : > { %1407 = vrot.lane.b32.xlu1 %v4806_v29, %s2721_s10 }
 0x11a   : > { %v3729_v52 = vpop.permute.xlu0 %973 }
 0x11b   : > { %4807 = vst [vmem:[#allocation11_spill] sm:$0xff] %v3729_v52  ;;  %v3731_v56 = vpop.permute.xlu1 %967 }
 0x11c   : > { %4808 = vst [vmem:[#allocation69_spill] sm:$0xff] %v3731_v56  ;;  %1219 = vrot.lane.b32.xlu0 %v3364_v36, %s2718_s20  ;;  %v4811_v56 = vld [vmem:[#allocation8_spill] sm:$0xff] }
 0x11d   : > { %1123 = vrot.lane.b32.xlu1 %v4806_v29, %s2717_s15 }
 0x11e   : > { %v1010_v40 = vpop.permute.xlu0 %1009 }
 0x11f   : > { %v3737_v57 = vpop.permute.xlu1 %971 }
 0x120   : > { %4809 = vst [vmem:[#allocation70_spill] sm:$0xff] %v3737_v57  ;;  %1315 = vrot.lane.b32.xlu0 %v3016_v6, %s2719_s28 }
 0x121   : > { %1503 = vrot.lane.b32.xlu1 %v3364_v36, %s2720_s8 }
 0x122   : > { %v3743_v51 = vpop.permute.xlu0 %1013 }
 0x123   : > { %v3745_v52 = vpop.permute.xlu1 %975 }
 0x124   : > { %4810 = vst [vmem:[#allocation71_spill] sm:$0xff] %v3745_v52  ;;  %1125 = vrot.lane.b32.xlu0 %v4811_v56, %s2717_s15  ;;  %v4812_v52 = vld [vmem:[#allocation14_spill] sm:$0xff] }
 0x125   : > { %1313 = vrot.lane.b32.xlu1 %v3008_v0, %s2719_s28 }
 0x126   : > { %v3751_v29 = vpop.permute.xlu0 %1017 }
 0x127   : > { %v3753_v4 = vpop.permute.xlu1 %1011 }
 0x128   : > { %1505 = vrot.lane.b32.xlu0 %v3350_v35, %s2720_s8 }
 0x129   : > { %1409 = vrot.lane.b32.xlu1 %v4811_v56, %s2721_s10 }
 0x12a   : > { %v3759_v6 = vpop.permute.xlu0 %1021 }
 0x12b   : > { %v3761_v36 = vpop.permute.xlu1 %1015 }
 0x12c   : > { %1221 = vrot.lane.b32.xlu0 %v3350_v35, %s2718_s20 }
 0x12d   : > { %1411 = vrot.lane.b32.xlu1 %v4812_v52, %s2721_s10 }
 0x12e   : > { %v3767_v0 = vpop.permute.xlu0 %1025 }
 0x12f   : > { %v3769_v57 = vpop.permute.xlu1 %1019 }
 0x130   : > { %1223 = vrot.lane.b32.xlu0 %v3378_v1, %s2718_s20 }
 0x131   : > { %1127 = vrot.lane.b32.xlu1 %v4812_v52, %s2717_s15 }
 0x132   : > { %v3775_v56 = vpop.permute.xlu0 %1029 }
 0x133   : > { %v3777_v23 = vpop.permute.xlu1 %1023 }
 0x134   : > { %1319 = vrot.lane.b32.xlu0 %v4813_v50, %s2719_s28 }
 0x135   : > { %1507 = vrot.lane.b32.xlu1 %v3378_v1, %s2720_s8 }
 0x136   : > { %v3783_v35 = vpop.permute.xlu0 %1033 }
 0x137   : > { %4814 = vst [vmem:[#allocation8_spill] sm:$0xff] %v3783_v35  ;;  %v3785_v39 = vpop.permute.xlu1 %1027 }
 0x138   : > { %1035 = vrot.lane.b32.xlu0 %v4813_v50, %s2716_s14 }
 0x139   : > { %1317 = vrot.lane.b32.xlu1 %v3028_v18, %s2719_s28  ;;  %v2671_v18 = vld [vmem:[#allocation2] sm:$0xff] }
 0x13a   : > { %v1108_v52 = vpop.permute.xlu0 %1107  ;;  %v1585_v61 = vsel %vm296_vm0, %v2671_v18, %v3434_v44 }
 0x13b   : > { %v3791_v63 = vpop.permute.xlu1 %1031 }
 0x13c   : > { %1415 = vrot.lane.b32.xlu0 %v4815_v14, %s2721_s10 }
 0x13d   : > { %1413 = vrot.lane.b32.xlu1 %v4816_v58, %s2721_s10 }
 0x13e   : > { %v1204_v1 = vpop.permute.xlu0 %1203 }
 0x13f   : > { %v1106_v25 = vpop.permute.xlu1 %1105 }
 0x140   : > { %1131 = vrot.lane.b32.xlu0 %v4815_v14, %s2717_s15  ;;  %v1618_v14 = vsel %vm1617_vm5, %v1585_v61, %v3609_v3 }
 0x141   : > { %1129 = vrot.lane.b32.xlu1 %v4816_v58, %s2717_s15  ;;  %v1651_v58 = vsel %vm1650_vm6, %v1618_v14, %v1010_v40 }
 0x142   : > { %v1300_v50 = vpop.permute.xlu0 %1299  ;;  %v1684_v22 = vsel %vm1683_vm7, %v1651_v58, %v1106_v25 }
 0x143   : > { %v1202_v35 = vpop.permute.xlu1 %1201 }
 0x144   : > { %1511 = vrot.lane.b32.xlu0 %v3391_v26, %s2720_s8  ;;  %v1717_v44 = vsel %vm1716_vm8, %v1684_v22, %v1202_v35  ;;  %v2672_v35 = vld [vmem:[#allocation2 + $0x8] sm:$0xff] }
 0x145   : > { %1509 = vrot.lane.b32.xlu1 %v3361_v7, %s2720_s8 }
 0x146   : > { %v1110_v16 = vpop.permute.xlu0 %1109 }
 0x147   : > { %v1298_v9 = vpop.permute.xlu1 %1297 }
 0x148   : > { %1321 = vrot.lane.b32.xlu0 %v3085_v11, %s2719_s28  ;;  %v1750_v61 = vsel %vm1749_vm10, %v1717_v44, %v1298_v9  ;;  %v1586_v9 = vsel %vm296_vm0, %v2672_v35, %v3453_v53  ;;  %v4817_v53 = vld [vmem:[#allocation18_spill] sm:$0xff] }
 0x149   : > { %1225 = vrot.lane.b32.xlu1 %v3361_v7, %s2718_s20  ;;  %v1619_v14 = vsel %vm1617_vm5, %v1586_v9, %v3627_v20 }
 0x14a   : > { %v1490_v3 = vpop.permute.xlu0 %1489 }
 0x14b   : > { %v1394_v18 = vpop.permute.xlu1 %1393 }
 0x14c   : > { %v1783_v40 = vsel %vm1782_vm9, %v1750_v61, %v1394_v18  ;;  %1323 = vrot.lane.b32.xlu0 %v3087_v17, %s2719_s28 }
 0x14d   : > { %1227 = vrot.lane.b32.xlu1 %v3391_v26, %s2718_s20  ;;  %v1816_v7 = vsel %vm1815_vm11, %v1783_v40, %v1490_v3  ;;  %v1652_v26 = vsel %vm1650_vm6, %v1619_v14, %v3753_v4 }
 0x14e   : > { %2592 = vmatprep.mubr.msk.f32.mxu0 %vm1860_vm12, %v1816_v7  ;;  %v1206_v25 = vpop.permute.xlu0 %1205  ;;  %v1685_v61 = vsel %vm1683_vm7, %v1652_v26, %v1108_v52  ;;  %v2673_v52 = vld [vmem:[#allocation2 + $0x18] sm:$0xff] }
 0x14f   : > { %v1396_v22 = vpop.permute.xlu1 %1395  ;;  %v1718_v3 = vsel %vm1716_vm8, %v1685_v61, %v1204_v1  ;;  %v1587_v1 = vsel %vm296_vm0, %v2673_v52, %v3477_v2 }
 0x150   : > { %1039 = vrot.lane.b32.xlu0 %v3087_v17, %s2716_s14  ;;  %v4818_v17 = vld [vmem:[#allocation13_spill] sm:$0xff] }
 0x151   : > { %1037 = vrot.lane.b32.xlu1 %v3085_v11, %s2716_s14  ;;  %v1751_v11 = vsel %vm1749_vm10, %v1718_v3, %v1300_v50  ;;  %v1620_v50 = vsel %vm1617_vm5, %v1587_v1, %v3617_v38  ;;  %v4819_v3 = vld [vmem:[#allocation12_spill] sm:$0xff] }
 0x152   : > { %v1208_v58 = vpop.permute.xlu0 %1207  ;;  %v1784_v18 = vsel %vm1782_vm9, %v1751_v11, %v1396_v22  ;;  %v1653_v35 = vsel %vm1650_vm6, %v1620_v50, %v3743_v51  ;;  %v2674_v51 = vld [vmem:[#allocation2 + $0x20] sm:$0xff]  ;;  %v4821_v50 = vld [vmem:[#allocation16_spill] sm:$0xff] }
 0x153   : > { %v1112_v44 = vpop.permute.xlu1 %1111  ;;  %v1686_v9 = vsel %vm1683_vm7, %v1653_v35, %v1110_v16 }
 0x154   : > { %1419 = vrot.lane.b32.xlu0 %v4817_v53, %s2721_s10  ;;  %v1719_v2 = vsel %vm1716_vm8, %v1686_v9, %v1206_v25  ;;  %v1588_v25 = vsel %vm296_vm0, %v2674_v51, %v3489_v43 }
 0x155   : > { %1417 = vrot.lane.b32.xlu1 %v4818_v17, %s2721_s10  ;;  %v1621_v11 = vsel %vm1617_vm5, %v1588_v25, %v3635_v28 }
 0x156   : > { %v1304_v20 = vpop.permute.xlu0 %1303 }
 0x157   : > { %v1492_v40 = vpop.permute.xlu1 %1491 }
 0x158   : > { %v1817_v4 = vsel %vm1815_vm11, %v1784_v18, %v1492_v40  ;;  %1135 = vrot.lane.b32.xlu0 %v4817_v53, %s2717_s15  ;;  %v1654_v18 = vsel %vm1650_vm6, %v1621_v11, %v3761_v36 }
 0x159   : > { %1133 = vrot.lane.b32.xlu1 %v4818_v17, %s2717_s15  ;;  %2593 = vmatmul.mubr.msk.f32.vlgmr.msra.gmra.mrb[0].mxu0 %vm1860_vm12, %v1817_v4 }
 0x15a   : > { %v1114_v7 = vpop.permute.xlu0 %1113 }
 0x15b   : > { %v1302_v22 = vpop.permute.xlu1 %1301 }
 0x15c   : > { %1515 = vrot.lane.b32.xlu0 %v3404_v32, %s2720_s8  ;;  %v1752_v14 = vsel %vm1749_vm10, %v1719_v2, %v1302_v22 }
 0x15d   : > { %1513 = vrot.lane.b32.xlu1 %v3375_v55, %s2720_s8 }
 0x15e   : > { %v1494_v26 = vpop.permute.xlu0 %1493 }
 0x15f   : > { %v1398_v61 = vpop.permute.xlu1 %1397 }
 0x160   : > { %v1785_v38 = vsel %vm1782_vm9, %v1752_v14, %v1398_v61  ;;  %1325 = vrot.lane.b32.xlu0 %v4819_v3, %s2719_s28 }
 0x161   : > { %1229 = vrot.lane.b32.xlu1 %v3375_v55, %s2718_s20  ;;  %v1818_v16 = vsel %vm1815_vm11, %v1785_v38, %v1494_v26  ;;  %v1687_v55 = vsel %vm1683_vm7, %v1654_v18, %v1112_v44  ;;  %v4820_v44 = vld [vmem:[#allocation21_spill] sm:$0xff] }
 0x162   : > { %2595 = vmatprep.mubr.msk.f32.mxu0 %vm1860_vm12, %v1818_v16  ;;  %v1210_v53 = vpop.permute.xlu0 %1209  ;;  %v1720_v43 = vsel %vm1716_vm8, %v1687_v55, %v1208_v58  ;;  %v2675_v58 = vld [vmem:[#allocation2 + $0x30] sm:$0xff]  ;;  %v2677_v55 = vld [vmem:[%s4648_s1] ss:$0 sm:$0xff] }
 0x163   : > { %v1400_v17 = vpop.permute.xlu1 %1399  ;;  %v1753_v28 = vsel %vm1749_vm10, %v1720_v43, %v1304_v20 }
 0x164   : > { %1327 = vrot.lane.b32.xlu0 %v3117_v47, %s2719_s28  ;;  %v1786_v36 = vsel %vm1782_vm9, %v1753_v28, %v1400_v17 }
 0x165   : > { %1231 = vrot.lane.b32.xlu1 %v3404_v32, %s2718_s20 }
 0x166   : > { %v1212_v40 = vpop.permute.xlu0 %1211 }
 0x167   : > { %v1116_v4 = vpop.permute.xlu1 %1115 }
 0x168   : > { %1043 = vrot.lane.b32.xlu0 %v3117_v47, %s2716_s14  ;;  %v1589_v47 = vsel %vm296_vm0, %v2675_v58, %v3475_v19 }
 0x169   : > { %1041 = vrot.lane.b32.xlu1 %v4819_v3, %s2716_s14  ;;  %v1622_v20 = vsel %vm1617_vm5, %v1589_v47, %v3625_v12 }
 0x16a   : > { %v1308_v52 = vpop.permute.xlu0 %1307  ;;  %v1655_v9 = vsel %vm1650_vm6, %v1622_v20, %v3751_v29 }
 0x16b   : > { %v1496_v1 = vpop.permute.xlu1 %1495  ;;  %v1688_v2 = vsel %vm1683_vm7, %v1655_v9, %v1114_v7  ;;  %v2676_v7 = vld [vmem:[#allocation2 + $0x38] sm:$0xff] }
 0x16c   : > { %v1819_v32 = vsel %vm1815_vm11, %v1786_v36, %v1496_v1  ;;  %1423 = vrot.lane.b32.xlu0 %v4820_v44, %s2721_s10  ;;  %v1721_v19 = vsel %vm1716_vm8, %v1688_v2, %v1210_v53  ;;  %v1590_v38 = vsel %vm296_vm0, %v2676_v7, %v3500_v10  ;;  %v4822_v53 = vld [vmem:[#allocation15_spill] sm:$0xff] }
 0x16d   : > { %1421 = vrot.lane.b32.xlu1 %v4821_v50, %s2721_s10  ;;  %2596 = vmatmul.mubr.msk.f32.gmra.mrb[2].mxu0 %vm1860_vm12, %v1819_v32  ;;  %v1623_v51 = vsel %vm1617_vm5, %v1590_v38, %v3643_v13  ;;  %v382_v10 = vld [vmem:[%s2847_s9 + $0xf0] sm:$0xff]  ;;  %v383_v32 = vld [vmem:[%s2847_s9 + $0xf8] sm:$0xff] }
 0x16e   : > { %v1118_v22 = vpop.permute.xlu0 %1117  ;;  %v1656_v25 = vsel %vm1650_vm6, %v1623_v51, %v3769_v57  ;;  %v421_v13 = vmul.f32 %v2677_v55, %v382_v10  ;;  %v2678_v57 = vld [vmem:[%s4649_s2] ss:$0 sm:$0xff] }
 0x16f   : > { %v1306_v35 = vpop.permute.xlu1 %1305  ;;  %v1689_v17 = vsel %vm1683_vm7, %v1656_v25, %v1116_v4 }
 0x170   : > { %1139 = vrot.lane.b32.xlu0 %v4820_v44, %s2717_s15  ;;  %v1754_v14 = vsel %vm1749_vm10, %v1721_v19, %v1306_v35  ;;  %v1722_v43 = vsel %vm1716_vm8, %v1689_v17, %v1212_v40  ;;  %v460_v4 = vadd.f32 %v2678_v57, %v421_v13  ;;  %v4823_v19 = vld [vmem:[#allocation22_spill] sm:$0xff]  ;;  %v3987_v13 = vld [vmem:[#allocation2 + $0x110] sm:$0xff] }
 0x171   : > { %1137 = vrot.lane.b32.xlu1 %v4821_v50, %s2717_s15  ;;  %v422_v50 = vmul.f32 %v2677_v55, %v383_v32  ;;  %v3978_v17 = vld [vmem:[#allocation2 + $0x108] sm:$0xff]  ;;  %v4825_v32 = vld [vmem:[#allocation25_spill] sm:$0xff] }
 0x172   : > { %v1498_v26 = vpop.permute.xlu0 %1497  ;;  %v492_v44 = vmax.f32 %v460_v4, 0.0 }
 0x173   : > { %v1402_v61 = vpop.permute.xlu1 %1401  ;;  %v461_v58 = vadd.f32 %v2678_v57, %v422_v50 }
 0x174   : > { %v1787_v12 = vsel %vm1782_vm9, %v1754_v14, %v1402_v61  ;;  %1519 = vrot.lane.b32.xlu0 %v3417_v62, %s2720_s8  ;;  %525 = vst.msk [vmem:[#allocation2 + $0x181] sm:$0xff] %vm296_vm0, %v492_v44  ;;  %v2684_v44 = vld [vmem:[#allocation2 + $0x68] sm:$0xff] }
 0x175   : > { %1517 = vrot.lane.b32.xlu1 %v3388_v46, %s2720_s8  ;;  %v1820_v29 = vsel %vm1815_vm11, %v1787_v12, %v1498_v26  ;;  %v493_v9 = vmax.f32 %v461_v58, 0.0  ;;  %v1594_v50 = vsel %vm296_vm0, %v2684_v44, %v3516_v8  ;;  %v4831_v44 = vld [vmem:[#allocation3_spill] sm:$0xff] }
 0x176   : > { %2598 = vmatprep.mubr.msk.f32.mxu0 %vm1860_vm12, %v1820_v29  ;;  %v1214_v3 = vpop.permute.xlu0 %1213  ;;  %v1627_v58 = vsel %vm1617_vm5, %v1594_v50, %v3659_v15 }
 0x177   : > { %v1404_v16 = vpop.permute.xlu1 %1403  ;;  %526 = vst.msk [vmem:[#allocation2 + $0x189] sm:$0xff] %vm296_vm0, %v493_v9 }
 0x178   : > { %1329 = vrot.lane.b32.xlu0 %v4822_v53, %s2719_s28 }
 0x179   : > { %1233 = vrot.lane.b32.xlu1 %v3388_v46, %s2718_s20  ;;  %v1755_v46 = vsel %vm1749_vm10, %v1722_v43, %v1308_v52 }
 0x17a   : > { %v1216_v11 = vpop.permute.xlu0 %1215  ;;  %v1788_v28 = vsel %vm1782_vm9, %v1755_v46, %v1404_v16 }
 0x17b   : > { %v1120_v18 = vpop.permute.xlu1 %1119 }
 0x17c   : > { %1331 = vrot.lane.b32.xlu0 %v3141_v24, %s2719_s28 }
 0x17d   : > { %1235 = vrot.lane.b32.xlu1 %v3417_v62, %s2718_s20  ;;  %v2679_v62 = vld [vmem:[#allocation2 + $0x48] sm:$0xff] }
 0x17e   : > { %v1312_v36 = vpop.permute.xlu0 %1311  ;;  %v1591_v52 = vsel %vm296_vm0, %v2679_v62, %v3487_v60  ;;  %v4824_v60 = vld [vmem:[#allocation19_spill] sm:$0xff] }
 0x17f   : > { %v1500_v1 = vpop.permute.xlu1 %1499  ;;  %v1624_v47 = vsel %vm1617_vm5, %v1591_v52, %v3633_v5 }
 0x180   : > { %v1821_v40 = vsel %vm1815_vm11, %v1788_v28, %v1500_v1  ;;  %1047 = vrot.lane.b32.xlu0 %v3141_v24, %s2716_s14  ;;  %v1657_v24 = vsel %vm1650_vm6, %v1624_v47, %v3759_v6  ;;  %v1660_v47 = vsel %vm1650_vm6, %v1627_v58, %v3785_v39  ;;  %v4833_v58 = vld [vmem:[#allocation8_spill] sm:$0xff] }
 0x181   : > { %1045 = vrot.lane.b32.xlu1 %v4822_v53, %s2716_s14  ;;  %2599 = vmatmul.mubr.msk.f32.gmra.mrb[4].mxu0 %vm1860_vm12, %v1821_v40  ;;  %v1690_v2 = vsel %vm1683_vm7, %v1657_v24, %v1118_v22  ;;  %v2680_v22 = vld [vmem:[#allocation2 + $0x50] sm:$0xff] }
 0x182   : > { %v1122_v20 = vpop.permute.xlu0 %1121  ;;  %v1723_v14 = vsel %vm1716_vm8, %v1690_v2, %v1214_v3  ;;  %v1592_v29 = vsel %vm296_vm0, %v2680_v22, %v3508_v54 }
 0x183   : > { %v1310_v35 = vpop.permute.xlu1 %1309  ;;  %v1625_v3 = vsel %vm1617_vm5, %v1592_v29, %v3651_v49  ;;  %v2688_v29 = vld [vmem:[#allocation2 + $0x78] sm:$0xff] }
 0x184   : > { %1427 = vrot.lane.b32.xlu0 %v4823_v19, %s2721_s10  ;;  %v1756_v5 = vsel %vm1749_vm10, %v1723_v14, %v1310_v35  ;;  %v1658_v16 = vsel %vm1650_vm6, %v1625_v3, %v3777_v23 }
 0x185   : > { %1425 = vrot.lane.b32.xlu1 %v4824_v60, %s2721_s10  ;;  %v1691_v51 = vsel %vm1683_vm7, %v1658_v16, %v1120_v18 }
 0x186   : > { %v1502_v26 = vpop.permute.xlu0 %1501  ;;  %v1724_v54 = vsel %vm1716_vm8, %v1691_v51, %v1216_v11  ;;  %v2683_v11 = vld [vmem:[#allocation2 + $0x60] sm:$0xff] }
 0x187   : > { %v1406_v61 = vpop.permute.xlu1 %1405  ;;  %v1757_v49 = vsel %vm1749_vm10, %v1724_v54, %v1312_v36 }
 0x188   : > { %v1789_v12 = vsel %vm1782_vm9, %v1756_v5, %v1406_v61  ;;  %1143 = vrot.lane.b32.xlu0 %v4823_v19, %s2717_s15  ;;  %v2687_v61 = vld [vmem:[#allocation2 + $0x80] sm:$0xff] }
 0x189   : > { %1141 = vrot.lane.b32.xlu1 %v4824_v60, %s2717_s15  ;;  %v1822_v6 = vsel %vm1815_vm11, %v1789_v12, %v1502_v26  ;;  %v4033_v60 = vld [vmem:[#allocation2 + $0x120] sm:$0xff]  ;;  %v4040_v26 = vld [vmem:[#allocation2 + $0x128] sm:$0xff]  ;;  %v1596_v12 = vsel %vm296_vm0, %v2687_v61, %v3524_v41 }
 0x18a   : > { %2601 = vmatprep.mubr.msk.f32.mxu0 %vm1860_vm12, %v1822_v6  ;;  %v1218_v7 = vpop.permute.xlu0 %1217 }
 0x18b   : > { %v1408_v38 = vpop.permute.xlu1 %1407 }
 0x18c   : > { %1523 = vrot.lane.b32.xlu0 %v3430_v34, %s2720_s8  ;;  %v1790_v23 = vsel %vm1782_vm9, %v1757_v49, %v1408_v38 }
 0x18d   : > { %1521 = vrot.lane.b32.xlu1 %v3401_v21, %s2720_s8 }
 0x18e   : > { %v1220_v25 = vpop.permute.xlu0 %1219 }
 0x18f   : > { %v1124_v53 = vpop.permute.xlu1 %1123 }
 0x190   : > { %1333 = vrot.lane.b32.xlu0 %v3978_v17, %s2719_s28 }
 0x191   : > { %1237 = vrot.lane.b32.xlu1 %v3401_v21, %s2718_s20  ;;  %v1593_v21 = vsel %vm296_vm0, %v2683_v11, %v3498_v42 }
 0x192   : > { %v1316_v10 = vpop.permute.xlu0 %1315  ;;  %v1626_v43 = vsel %vm1617_vm5, %v1593_v21, %v3641_v31 }
 0x193   : > { %v1504_v55 = vpop.permute.xlu1 %1503  ;;  %v1659_v4 = vsel %vm1650_vm6, %v1626_v43, %v3767_v0  ;;  %v4826_v0 = vld [vmem:[#allocation20_spill] sm:$0xff] }
 0x194   : > { %v1823_v18 = vsel %vm1815_vm11, %v1790_v23, %v1504_v55  ;;  %1335 = vrot.lane.b32.xlu0 %v3987_v13, %s2719_s28  ;;  %v1692_v28 = vsel %vm1683_vm7, %v1659_v4, %v1122_v20  ;;  %v1693_v20 = vsel %vm1683_vm7, %v1660_v47, %v1124_v53  ;;  %v4828_v53 = vld [vmem:[#allocation23_spill] sm:$0xff] }
 0x195   : > { %1239 = vrot.lane.b32.xlu1 %v3430_v34, %s2718_s20  ;;  %2602 = vmatmul.mubr.msk.f32.gmra.mrb[6].mxu0 %vm1860_vm12, %v1823_v18  ;;  %v1725_v34 = vsel %vm1716_vm8, %v1692_v28, %v1218_v7  ;;  %v1726_v8 = vsel %vm1716_vm8, %v1693_v20, %v1220_v25  ;;  %v1595_v7 = vsel %vm296_vm0, %v2688_v29, %v3506_v48  ;;  %v4827_v25 = vld [vmem:[#allocation26_spill] sm:$0xff] }
 0x196   : > { %v1126_v46 = vpop.permute.xlu0 %1125  ;;  %v1759_v15 = vsel %vm1749_vm10, %v1726_v8, %v1316_v10 }
 0x197   : > { %v1314_v57 = vpop.permute.xlu1 %1313 }
 0x198   : > { %1051 = vrot.lane.b32.xlu0 %v3987_v13, %s2716_s14  ;;  %v1758_v42 = vsel %vm1749_vm10, %v1725_v34, %v1314_v57  ;;  %v4086_v57 = vld [vmem:[#allocation2 + $0x138] sm:$0xff]  ;;  %v4092_v34 = vld [vmem:[#allocation2 + $0x140] sm:$0xff] }
 0x199   : > { %1049 = vrot.lane.b32.xlu1 %v3978_v17, %s2716_s14 }
 0x19a   : > { %v1506_v36 = vpop.permute.xlu0 %1505 }
 0x19b   : > { %v1410_v1 = vpop.permute.xlu1 %1409 }
 0x19c   : > { %v1791_v31 = vsel %vm1782_vm9, %v1758_v42, %v1410_v1  ;;  %1431 = vrot.lane.b32.xlu0 %v4825_v32, %s2721_s10  ;;  %v2691_v42 = vld [vmem:[#allocation2 + $0x90] sm:$0xff] }
 0x19d   : > { %1429 = vrot.lane.b32.xlu1 %v4826_v0, %s2721_s10  ;;  %v1824_v40 = vsel %vm1815_vm11, %v1791_v31, %v1506_v36  ;;  %v4829_v36 = vld [vmem:[#allocation39_spill] sm:$0xff]  ;;  %v2692_v31 = vld [vmem:[#allocation2 + $0x98] sm:$0xff] }
 0x19e   : > { %2604 = vmatprep.mubr.msk.f32.mxu0 %vm1860_vm12, %v1824_v40  ;;  %v1222_v62 = vpop.permute.xlu0 %1221  ;;  %v1597_v1 = vsel %vm296_vm0, %v2691_v42, %v4829_v36 }
 0x19f   : > { %v1412_v52 = vpop.permute.xlu1 %1411  ;;  %v1630_v50 = vsel %vm1617_vm5, %v1597_v1, %v4831_v44 }
 0x1a0   : > { %1147 = vrot.lane.b32.xlu0 %v4825_v32, %s2717_s15  ;;  %v1792_v39 = vsel %vm1782_vm9, %v1759_v15, %v1412_v52  ;;  %v4830_v32 = vld [vmem:[#allocation42_spill] sm:$0xff]  ;;  %v1663_v47 = vsel %vm1650_vm6, %v1630_v50, %v4833_v58 }
 0x1a1   : > { %1145 = vrot.lane.b32.xlu1 %v4826_v0, %s2717_s15  ;;  %v1598_v0 = vsel %vm296_vm0, %v2692_v31, %v4830_v32 }
 0x1a2   : > { %v1224_v35 = vpop.permute.xlu0 %1223 }
 0x1a3   : > { %v1128_v24 = vpop.permute.xlu1 %1127 }
 0x1a4   : > { %1527 = vrot.lane.b32.xlu0 %v3445_v45, %s2720_s8 }
 0x1a5   : > { %1525 = vrot.lane.b32.xlu1 %v3414_v37, %s2720_s8 }
 0x1a6   : > { %v1320_v9 = vpop.permute.xlu0 %1319 }
 0x1a7   : > { %v1508_v2 = vpop.permute.xlu1 %1507 }
 0x1a8   : > { %v1825_v19 = vsel %vm1815_vm11, %v1792_v39, %v1508_v2  ;;  %1337 = vrot.lane.b32.xlu0 %v4033_v60, %s2719_s28  ;;  %v4835_v2 = vld [vmem:[#allocation24_spill] sm:$0xff] }
 0x1a9   : > { %1241 = vrot.lane.b32.xlu1 %v3414_v37, %s2718_s20  ;;  %2605 = vmatmul.mubr.msk.f32.gmra.mrb[8].mxu0 %vm1860_vm12, %v1825_v19  ;;  %v1629_v37 = vsel %vm1617_vm5, %v1596_v12, %v3667_v27 }
 0x1aa   : > { %v1036_v14 = vpop.permute.xlu0 %1035  ;;  %v1662_v38 = vsel %vm1650_vm6, %v1629_v37, %v3791_v63 }
 0x1ab   : > { %v1318_v5 = vpop.permute.xlu1 %1317  ;;  %v1695_v41 = vsel %vm1683_vm7, %v1662_v38, %v1128_v24  ;;  %v4836_v38 = vld [vmem:[#allocation36_spill] sm:$0xff] }
 0x1ac   : > { %1339 = vrot.lane.b32.xlu0 %v4040_v26, %s2719_s28  ;;  %v1728_v51 = vsel %vm1716_vm8, %v1695_v41, %v1224_v35 }
 0x1ad   : > { %1243 = vrot.lane.b32.xlu1 %v3445_v45, %s2718_s20  ;;  %v1628_v45 = vsel %vm1617_vm5, %v1595_v7, %v3649_v30  ;;  %v1761_v30 = vsel %vm1749_vm10, %v1728_v51, %v1320_v9  ;;  %v4834_v9 = vld [vmem:[#allocation29_spill] sm:$0xff]  ;;  %v2695_v51 = vld [vmem:[#allocation2 + $0xa8] sm:$0xff] }
 0x1ae   : > { %v1416_v6 = vpop.permute.xlu0 %1415  ;;  %v1661_v27 = vsel %vm1650_vm6, %v1628_v45, %v3775_v56  ;;  %v4837_v45 = vld [vmem:[#allocation33_spill] sm:$0xff] }
 0x1af   : > { %v1414_v22 = vpop.permute.xlu1 %1413  ;;  %v1694_v48 = vsel %vm1683_vm7, %v1661_v27, %v1126_v46  ;;  %v1794_v56 = vsel %vm1782_vm9, %v1761_v30, %v1416_v6  ;;  %v2696_v30 = vld [vmem:[#allocation2 + $0xb0] sm:$0xff] }
 0x1b0   : > { %1055 = vrot.lane.b32.xlu0 %v4040_v26, %s2716_s14  ;;  %v1727_v63 = vsel %vm1716_vm8, %v1694_v48, %v1222_v62  ;;  %v4832_v62 = vld [vmem:[#allocation59_spill] sm:$0xff] }
 0x1b1   : > { %1053 = vrot.lane.b32.xlu1 %v4033_v60, %s2716_s14  ;;  %v1760_v54 = vsel %vm1749_vm10, %v1727_v63, %v1318_v5  ;;  %v1631_v52 = vsel %vm1617_vm5, %v1598_v0, %v4832_v62  ;;  %v4143_v63 = vld [vmem:[#allocation2 + $0x158] sm:$0xff] }
 0x1b2   : > { %v1132_v3 = vpop.permute.xlu0 %1131  ;;  %v1793_v49 = vsel %vm1782_vm9, %v1760_v54, %v1414_v22  ;;  %v4839_v54 = vld [vmem:[#allocation44_spill] sm:$0xff] }
 0x1b3   : > { %v1130_v16 = vpop.permute.xlu1 %1129 }
 0x1b4   : > { %1435 = vrot.lane.b32.xlu0 %v4827_v25, %s2721_s10  ;;  %v1696_v35 = vsel %vm1683_vm7, %v1663_v47, %v1130_v16 }
 0x1b5   : > { %1433 = vrot.lane.b32.xlu1 %v4828_v53, %s2721_s10 }
 0x1b6   : > { %v1512_v23 = vpop.permute.xlu0 %1511 }
 0x1b7   : > { %v1510_v10 = vpop.permute.xlu1 %1509  ;;  %v1827_v55 = vsel %vm1815_vm11, %v1794_v56, %v1512_v23  ;;  %v1600_v56 = vsel %vm296_vm0, %v2696_v30, %v4839_v54 }
 0x1b8   : > { %v1826_v18 = vsel %vm1815_vm11, %v1793_v49, %v1510_v10  ;;  %1151 = vrot.lane.b32.xlu0 %v4827_v25, %s2717_s15  ;;  %v4838_v25 = vld [vmem:[#allocation40_spill] sm:$0xff]  ;;  %v4840_v10 = vld [vmem:[#allocation5_spill] sm:$0xff] }
 0x1b9   : > { %1149 = vrot.lane.b32.xlu1 %v4828_v53, %s2717_s15  ;;  %2607 = vmatprep.mubr.msk.f32.mxu0 %vm1860_vm12, %v1826_v18  ;;  %v1599_v53 = vsel %vm296_vm0, %v2695_v51, %v4838_v25  ;;  %v4841_v18 = vld [vmem:[#allocation61_spill] sm:$0xff] }
 0x1ba   : > { %2608 = vmatmul.mubr.msk.f32.gmra.mrb[10].mxu0 %vm1860_vm12, %v1827_v55  ;;  %v1322_v11 = vpop.permute.xlu0 %1321  ;;  %v1632_v55 = vsel %vm1617_vm5, %v1599_v53, %v4840_v10 }
 0x1bb   : > { %v1226_v21 = vpop.permute.xlu1 %1225 }
 0x1bc   : > { %1531 = vrot.lane.b32.xlu0 %v3460_v33, %s2720_s8  ;;  %v1729_v24 = vsel %vm1716_vm8, %v1696_v35, %v1226_v21  ;;  %v4845_v35 = vld [vmem:[#allocation34_spill] sm:$0xff] }
 0x1bd   : > { %1529 = vrot.lane.b32.xlu1 %v3427_v59, %s2720_s8 }
 0x1be   : > { %v1324_v43 = vpop.permute.xlu0 %1323 }
 0x1bf   : > { %v1228_v46 = vpop.permute.xlu1 %1227 }
 0x1c0   : > { %1341 = vrot.lane.b32.xlu0 %v4086_v57, %s2719_s28 }
 0x1c1   : > { %1245 = vrot.lane.b32.xlu1 %v3427_v59, %s2718_s20 }
 0x1c2   : > { %v1040_v4 = vpop.permute.xlu0 %1039 }
 0x1c3   : > { %v1038_v28 = vpop.permute.xlu1 %1037 }
 0x1c4   : > { %1343 = vrot.lane.b32.xlu0 %v4092_v34, %s2719_s28 }
 0x1c5   : > { %1247 = vrot.lane.b32.xlu1 %v3460_v33, %s2718_s20  ;;  %v1664_v33 = vsel %vm1650_vm6, %v1631_v52, %v1036_v14  ;;  %v1762_v14 = vsel %vm1749_vm10, %v1729_v24, %v1322_v11  ;;  %v1633_v11 = vsel %vm1617_vm5, %v1600_v56, %v4841_v18 }
 0x1c6   : > { %v1420_v40 = vpop.permute.xlu0 %1419  ;;  %v1697_v20 = vsel %vm1683_vm7, %v1664_v33, %v1132_v3  ;;  %v4137_v3 = vld [vmem:[#allocation2 + $0x150] sm:$0xff]  ;;  %v1666_v21 = vsel %vm1650_vm6, %v1633_v11, %v1040_v4  ;;  %v4842_v4 = vld [vmem:[#allocation30_spill] sm:$0xff] }
 0x1c7   : > { %v1418_v59 = vpop.permute.xlu1 %1417  ;;  %v1730_v8 = vsel %vm1716_vm8, %v1697_v20, %v1228_v46  ;;  %v4844_v20 = vld [vmem:[#allocation37_spill] sm:$0xff] }
 0x1c8   : > { %1059 = vrot.lane.b32.xlu0 %v4092_v34, %s2716_s14  ;;  %v1763_v19 = vsel %vm1749_vm10, %v1730_v8, %v1324_v43  ;;  %v1795_v61 = vsel %vm1782_vm9, %v1762_v14, %v1418_v59  ;;  %v1665_v43 = vsel %vm1650_vm6, %v1632_v55, %v1038_v28  ;;  %v4843_v28 = vld [vmem:[#allocation27_spill] sm:$0xff]  ;;  %v4846_v14 = vld [vmem:[#allocation41_spill] sm:$0xff] }
 0x1c9   : > { %1057 = vrot.lane.b32.xlu1 %v4086_v57, %s2716_s14  ;;  %v1796_v5 = vsel %vm1782_vm9, %v1763_v19, %v1420_v40  ;;  %v2699_v19 = vld [vmem:[#allocation2 + $0xc0] sm:$0xff] }
 0x1ca   : > { %v1136_v15 = vpop.permute.xlu0 %1135 }
 0x1cb   : > { %v1134_v39 = vpop.permute.xlu1 %1133  ;;  %v1699_v46 = vsel %vm1683_vm7, %v1666_v21, %v1136_v15  ;;  %v4187_v15 = vld [vmem:[#allocation2 + $0x168] sm:$0xff] }
 0x1cc   : > { %1439 = vrot.lane.b32.xlu0 %v4834_v9, %s2721_s10  ;;  %v1698_v42 = vsel %vm1683_vm7, %v1665_v43, %v1134_v39 }
 0x1cd   : > { %1437 = vrot.lane.b32.xlu1 %v4835_v2, %s2721_s10 }
 0x1ce   : > { %v1516_v12 = vpop.permute.xlu0 %1515 }
 0x1cf   : > { %v1514_v6 = vpop.permute.xlu1 %1513  ;;  %v1829_v22 = vsel %vm1815_vm11, %v1796_v5, %v1516_v12  ;;  %v1601_v5 = vsel %vm296_vm0, %v2699_v19, %v4846_v14  ;;  %v4847_v12 = vld [vmem:[#allocation46_spill] sm:$0xff]  ;;  %v4856_v19 = vld [vmem:[#allocation60_spill] sm:$0xff] }
 0x1d0   : > { %v1828_v37 = vsel %vm1815_vm11, %v1795_v61, %v1514_v6  ;;  %1155 = vrot.lane.b32.xlu0 %v4834_v9, %s2717_s15  ;;  %v2700_v61 = vld [vmem:[#allocation2 + $0xc8] sm:$0xff] }
 0x1d1   : > { %1153 = vrot.lane.b32.xlu1 %v4835_v2, %s2717_s15  ;;  %2610 = vmatprep.mubr.msk.f32.mxu0 %vm1860_vm12, %v1828_v37  ;;  %v4197_v2 = vld [vmem:[#allocation2 + $0x170] sm:$0xff]  ;;  %v1602_v6 = vsel %vm296_vm0, %v2700_v61, %v4847_v12 }
 0x1d2   : > { %2611 = vmatmul.mubr.msk.f32.gmra.mrb[12].mxu0 %vm1860_vm12, %v1829_v22  ;;  %v1326_v29 = vpop.permute.xlu0 %1325 }
 0x1d3   : > { %v1230_v7 = vpop.permute.xlu1 %1229 }
 0x1d4   : > { %1535 = vrot.lane.b32.xlu0 %v4836_v38, %s2720_s8  ;;  %v1731_v36 = vsel %vm1716_vm8, %v1698_v42, %v1230_v7 }
 0x1d5   : > { %1533 = vrot.lane.b32.xlu1 %v4837_v45, %s2720_s8  ;;  %v1764_v40 = vsel %vm1749_vm10, %v1731_v36, %v1326_v29  ;;  %v4848_v29 = vld [vmem:[#allocation4_spill] sm:$0xff]  ;;  %v4852_v36 = vld [vmem:[#allocation38_spill] sm:$0xff] }
 0x1d6   : > { %v1328_v41 = vpop.permute.xlu0 %1327  ;;  %v1634_v7 = vsel %vm1617_vm5, %v1601_v5, %v4848_v29  ;;  %v4857_v5 = vld [vmem:[#allocation64_spill] sm:$0xff] }
 0x1d7   : > { %v1232_v27 = vpop.permute.xlu1 %1231 }
 0x1d8   : > { %1345 = vrot.lane.b32.xlu0 %v4137_v3, %s2719_s28  ;;  %v1732_v1 = vsel %vm1716_vm8, %v1699_v46, %v1232_v27 }
 0x1d9   : > { %1249 = vrot.lane.b32.xlu1 %v4837_v45, %s2718_s20  ;;  %v1765_v0 = vsel %vm1749_vm10, %v1732_v1, %v1328_v41  ;;  %v4853_v1 = vld [vmem:[#allocation35_spill] sm:$0xff] }
 0x1da   : > { %v1044_v16 = vpop.permute.xlu0 %1043 }
 0x1db   : > { %v1042_v48 = vpop.permute.xlu1 %1041 }
 0x1dc   : > { %1347 = vrot.lane.b32.xlu0 %v4143_v63, %s2719_s28  ;;  %v1667_v27 = vsel %vm1650_vm6, %v1634_v7, %v1042_v48  ;;  %v4851_v48 = vld [vmem:[#allocation28_spill] sm:$0xff] }
 0x1dd   : > { %1251 = vrot.lane.b32.xlu1 %v4836_v38, %s2718_s20  ;;  %v4849_v38 = vld [vmem:[#allocation62_spill] sm:$0xff] }
 0x1de   : > { %v1424_v49 = vpop.permute.xlu0 %1423  ;;  %v1635_v45 = vsel %vm1617_vm5, %v1602_v6, %v4849_v38 }
 0x1df   : > { %v1422_v23 = vpop.permute.xlu1 %1421  ;;  %v1798_v59 = vsel %vm1782_vm9, %v1765_v0, %v1424_v49  ;;  %v1668_v41 = vsel %vm1650_vm6, %v1635_v45, %v1044_v16  ;;  %v4850_v16 = vld [vmem:[#allocation31_spill] sm:$0xff] }
 0x1e0   : > { %1063 = vrot.lane.b32.xlu0 %v4143_v63, %s2716_s14  ;;  %v1797_v44 = vsel %vm1782_vm9, %v1764_v40, %v1422_v23 }
 0x1e1   : > { %1061 = vrot.lane.b32.xlu1 %v4137_v3, %s2716_s14 }
 0x1e2   : > { %v1140_v31 = vpop.permute.xlu0 %1139 }
 0x1e3   : > { %v1138_v32 = vpop.permute.xlu1 %1137  ;;  %v1701_v51 = vsel %vm1683_vm7, %v1668_v41, %v1140_v31  ;;  %v575_v31 = vld [vmem:[#allocation2 + $0x180] sm:$0xff] }
 0x1e4   : > { %1443 = vrot.lane.b32.xlu0 %v4842_v4, %s2721_s10  ;;  %v1700_v25 = vsel %vm1683_vm7, %v1667_v27, %v1138_v32  ;;  %v799_v27 = vrot.slane %v575_v31, 2 }
 0x1e5   : > { %1441 = vrot.lane.b32.xlu1 %v4843_v28, %s2721_s10 }
 0x1e6   : > { %v1520_v50 = vpop.permute.xlu0 %1519 }
 0x1e7   : > { %v1518_v62 = vpop.permute.xlu1 %1517  ;;  %v1831_v52 = vsel %vm1815_vm11, %v1798_v59, %v1520_v50  ;;  %v577_v59 = vld [vmem:[#allocation2 + $0x190] sm:$0x3] }
 0x1e8   : > { %v1830_v58 = vsel %vm1815_vm11, %v1797_v44, %v1518_v62  ;;  %1159 = vrot.lane.b32.xlu0 %v4842_v4, %s2717_s15  ;;  %v794_v44 = vrot.slane %v575_v31, 1  ;;  %v797_v62 = vrot.slane %v577_v59, 1 }
 0x1e9   : > { %1157 = vrot.lane.b32.xlu1 %v4843_v28, %s2717_s15  ;;  %2613 = vmatprep.mubr.msk.f32.mxu0 %vm1860_vm12, %v1830_v58  ;;  %v576_v28 = vld [vmem:[#allocation2 + $0x188] sm:$0xff]  ;;  %v4854_v58 = vld [vmem:[#allocation43_spill] sm:$0xff] }
 0x1ea   : > { %2614 = vmatmul.mubr.msk.f32.gmra.mrb[14].mxu0 %vm1860_vm12, %v1831_v52  ;;  %v1330_v47 = vpop.permute.xlu0 %1329  ;;  %v795_v50 = vrot.slane %v576_v28, 1  ;;  %v2701_v52 = vld [vmem:[#allocation2 + $0xd8] sm:$0xff] }
 0x1eb   : > { %v1234_v33 = vpop.permute.xlu1 %1233 }
 0x1ec   : > { %1539 = vrot.lane.b32.xlu0 %v4844_v20, %s2720_s8  ;;  %v1733_v53 = vsel %vm1716_vm8, %v1700_v25, %v1234_v33  ;;  %v2702_v33 = vld [vmem:[#allocation2 + $0xe0] sm:$0xff]  ;;  %v798_v29 = vsel %vm629_vm2, %v795_v50, %v797_v62  ;;  %v796_v7 = vsel %vm629_vm2, %v794_v44, %v795_v50  ;;  %v2703_v62 = vld [vmem:[#allocation2 + $0xf0] sm:$0xff] }
 0x1ed   : > { %1537 = vrot.lane.b32.xlu1 %v4845_v35, %s2720_s8  ;;  %v1766_v23 = vsel %vm1749_vm10, %v1733_v53, %v1330_v47  ;;  %v1603_v47 = vsel %vm296_vm0, %v2701_v52, %v4854_v58  ;;  %v802_v53 = vrot.slane %v577_v59, 2  ;;  %v580_v59 = vld [vmem:[#allocation2 + $0x1a8] sm:$0x3]  ;;  %v4858_v52 = vld [vmem:[#allocation45_spill] sm:$0xff] }
 0x1ee   : > { %v1332_v24 = vpop.permute.xlu0 %1331  ;;  %v1636_v14 = vsel %vm1617_vm5, %v1603_v47, %v4856_v19  ;;  %v810_v50 = vrot.slane %v580_v59, 1  ;;  %v1605_v58 = vsel %vm296_vm0, %v2703_v62, %v4858_v52  ;;  %v2704_v47 = vld [vmem:[#allocation2 + $0xf8] sm:$0xff] }
 0x1ef   : > { %v1236_v8 = vpop.permute.xlu1 %1235  ;;  %v4863_v62 = vld [vmem:[#allocation52_spill] sm:$0xff] }
 0x1f0   : > { %1349 = vrot.lane.b32.xlu0 %v4187_v15, %s2719_s28  ;;  %v1734_v30 = vsel %vm1716_vm8, %v1701_v51, %v1236_v8  ;;  %v1608_v52 = vsel %vm296_vm0, %v3987_v13, %v4863_v62 }
 0x1f1   : > { %1253 = vrot.lane.b32.xlu1 %v4845_v35, %s2718_s20  ;;  %v1767_v49 = vsel %vm1749_vm10, %v1734_v30, %v1332_v24 }
 0x1f2   : > { %v4193_v39 = vpop.permute.xlu0 %1047 }
 0x1f3   : > { %v4195_v9 = vpop.permute.xlu1 %1045 }
 0x1f4   : > { %1351 = vrot.lane.b32.xlu0 %v4197_v2, %s2719_s28  ;;  %v1669_v6 = vsel %vm1650_vm6, %v1636_v14, %v4195_v9  ;;  %v800_v9 = vrot.slane %v576_v28, 2  ;;  %v4861_v14 = vld [vmem:[#allocation66_spill] sm:$0xff] }
 0x1f5   : > { %1255 = vrot.lane.b32.xlu1 %v4844_v20, %s2718_s20  ;;  %v4855_v20 = vld [vmem:[#allocation48_spill] sm:$0xff] }
 0x1f6   : > { %v1428_v22 = vpop.permute.xlu0 %1427  ;;  %v1604_v35 = vsel %vm296_vm0, %v2702_v33, %v4855_v20  ;;  %v4859_v33 = vld [vmem:[#allocation50_spill] sm:$0xff] }
 0x1f7   : > { %v1426_v37 = vpop.permute.xlu1 %1425  ;;  %v1800_v10 = vsel %vm1782_vm9, %v1767_v49, %v1428_v22  ;;  %v1637_v61 = vsel %vm1617_vm5, %v1604_v35, %v4857_v5  ;;  %v1606_v20 = vsel %vm296_vm0, %v2704_v47, %v4859_v33  ;;  %v4864_v33 = vld [vmem:[#allocation63_spill] sm:$0xff] }
 0x1f8   : > { %1067 = vrot.lane.b32.xlu0 %v4197_v2, %s2716_s14  ;;  %v1799_v55 = vsel %vm1782_vm9, %v1766_v23, %v1426_v37  ;;  %v1670_v12 = vsel %vm1650_vm6, %v1637_v61, %v4193_v39  ;;  %v803_v23 = vsel %vm710_vm3, %v800_v9, %v802_v53  ;;  %v1639_v5 = vsel %vm1617_vm5, %v1606_v20, %v4861_v14 }
 0x1f9   : > { %1065 = vrot.lane.b32.xlu1 %v4187_v15, %s2716_s14 }
 0x1fa   : > { %v1144_v54 = vpop.permute.xlu0 %1143 }
 0x1fb   : > { %v1142_v56 = vpop.permute.xlu1 %1141  ;;  %v1703_v22 = vsel %vm1683_vm7, %v1670_v12, %v1144_v54 }
 0x1fc   : > { %1447 = vrot.lane.b32.xlu0 %v4850_v16, %s2721_s10  ;;  %v1702_v37 = vsel %vm1683_vm7, %v1669_v6, %v1142_v56 }
 0x1fd   : > { %1445 = vrot.lane.b32.xlu1 %v4851_v48, %s2721_s10 }
 0x1fe   : > { %v1524_v18 = vpop.permute.xlu0 %1523 }
 0x1ff   : > { %v1522_v11 = vpop.permute.xlu1 %1521  ;;  %v1833_v21 = vsel %vm1815_vm11, %v1800_v10, %v1524_v18  ;;  %v801_v10 = vsel %vm710_vm3, %v799_v27, %v800_v9 }
 0x200   : > { %v1832_v43 = vsel %vm1815_vm11, %v1799_v55, %v1522_v11  ;;  %1163 = vrot.lane.b32.xlu0 %v4850_v16, %s2717_s15  ;;  %v578_v11 = vld [vmem:[#allocation2 + $0x198] sm:$0xff] }
 0x201   : > { %1161 = vrot.lane.b32.xlu1 %v4851_v48, %s2717_s15  ;;  %2616 = vmatprep.mubr.msk.f32.mxu1 %vm1860_vm12, %v1832_v43  ;;  %v807_v43 = vrot.slane %v578_v11, 1 }
 0x202   : > { %2617 = vmatmul.mubr.msk.f32.vlgmr.msra.gmra.mrb[0].mxu1 %vm1860_vm12, %v1833_v21  ;;  %v1334_v46 = vpop.permute.xlu0 %1333  ;;  %v579_v21 = vld [vmem:[#allocation2 + $0x1a0] sm:$0xff] }
 0x203   : > { %v1238_v42 = vpop.permute.xlu1 %1237 }
 0x204   : > { %1543 = vrot.lane.b32.xlu0 %v4852_v36, %s2720_s8  ;;  %v1735_v38 = vsel %vm1716_vm8, %v1702_v37, %v1238_v42 }
 0x205   : > { %1541 = vrot.lane.b32.xlu1 %v4853_v1, %s2720_s8  ;;  %v1768_v25 = vsel %vm1749_vm10, %v1735_v38, %v1334_v46  ;;  %v808_v46 = vrot.slane %v579_v21, 1 }
 0x206   : > { %v1336_v32 = vpop.permute.xlu0 %1335 }
 0x207   : > { %v1240_v4 = vpop.permute.xlu1 %1239  ;;  %v811_v37 = vsel %vm629_vm2, %v808_v46, %v810_v50 }
 0x208   : > { %1353 = vrot.lane.b32.xlu0 %v575_v31, %s2719_s28  ;;  %v1736_v45 = vsel %vm1716_vm8, %v1703_v22, %v1240_v4 }
 0x209   : > { %1257 = vrot.lane.b32.xlu1 %v4853_v1, %s2718_s20  ;;  %v1769_v51 = vsel %vm1749_vm10, %v1736_v45, %v1336_v32  ;;  %v812_v1 = vrot.slane %v578_v11, 2  ;;  %v813_v32 = vrot.slane %v579_v21, 2 }
 0x20a   : > { %v4244_v0 = vpop.permute.xlu0 %1051 }
 0x20b   : > { %v4246_v40 = vpop.permute.xlu1 %1049  ;;  %v814_v44 = vsel %vm710_vm3, %v812_v1, %v813_v32  ;;  %v1672_v61 = vsel %vm1650_vm6, %v1639_v5, %v4244_v0 }
 0x20c   : > { %1355 = vrot.lane.b32.xlu0 %v576_v28, %s2719_s28 }
 0x20d   : > { %1259 = vrot.lane.b32.xlu1 %v4852_v36, %s2718_s20 }
 0x20e   : > { %v1432_v24 = vpop.permute.xlu0 %1431 }
 0x20f   : > { %v1430_v8 = vpop.permute.xlu1 %1429  ;;  %v1802_v30 = vsel %vm1782_vm9, %v1769_v51, %v1432_v24 }
 0x210   : > { %1071 = vrot.lane.b32.xlu0 %v576_v28, %s2716_s14  ;;  %v1801_v54 = vsel %vm1782_vm9, %v1768_v25, %v1430_v8  ;;  %v4860_v8 = vld [vmem:[#allocation9_spill] sm:$0xff] }
 0x211   : > { %1069 = vrot.lane.b32.xlu1 %v575_v31, %s2716_s14  ;;  %v809_v31 = vsel %vm629_vm2, %v807_v43, %v808_v46  ;;  %v1638_v19 = vsel %vm1617_vm5, %v1605_v58, %v4860_v8 }
 0x212   : > { %v1148_v39 = vpop.permute.xlu0 %1147  ;;  %v1671_v12 = vsel %vm1650_vm6, %v1638_v19, %v4246_v40  ;;  %v4319_v40 = vld [vmem:[%s4651_s4] ss:$0 sm:$0xff] }
 0x213   : > { %v1146_v41 = vpop.permute.xlu1 %1145  ;;  %v1705_v6 = vsel %vm1683_vm7, %v1672_v61, %v1148_v39 }
 0x214   : > { %1451 = vrot.lane.b32.xlu0 %v798_v29, %s2721_s10  ;;  %v1704_v22 = vsel %vm1683_vm7, %v1671_v12, %v1146_v41 }
 0x215   : > { %1449 = vrot.lane.b32.xlu1 %v796_v7, %s2721_s10 }
 0x216   : > { %v1528_v56 = vpop.permute.xlu0 %1527 }
 0x217   : > { %v1526_v16 = vpop.permute.xlu1 %1525  ;;  %v1835_v48 = vsel %vm1815_vm11, %v1802_v30, %v1528_v56 }
 0x218   : > { %v1834_v49 = vsel %vm1815_vm11, %v1801_v54, %v1526_v16  ;;  %1167 = vrot.lane.b32.xlu0 %v798_v29, %s2717_s15  ;;  %v815_v29 = vrot.slane %v580_v59, 2 }
 0x219   : > { %1165 = vrot.lane.b32.xlu1 %v796_v7, %s2717_s15  ;;  %2619 = vmatprep.mubr.msk.f32.mxu1 %vm1860_vm12, %v1834_v49 }
 0x21a   : > { %2620 = vmatmul.mubr.msk.f32.gmra.mrb[2].mxu1 %vm1860_vm12, %v1835_v48  ;;  %v1338_v55 = vpop.permute.xlu0 %1337  ;;  %v816_v25 = vsel %vm710_vm3, %v813_v32, %v815_v29 }
 0x21b   : > { %v1242_v18 = vpop.permute.xlu1 %1241 }
 0x21c   : > { %1547 = vrot.lane.b32.xlu0 %v803_v23, %s2720_s8  ;;  %v1737_v7 = vsel %vm1716_vm8, %v1704_v22, %v1242_v18 }
 0x21d   : > { %1545 = vrot.lane.b32.xlu1 %v801_v10, %s2720_s8  ;;  %v1770_v27 = vsel %vm1749_vm10, %v1737_v7, %v1338_v55 }
 0x21e   : > { %v1340_v42 = vpop.permute.xlu0 %1339 }
 0x21f   : > { %v1244_v36 = vpop.permute.xlu1 %1243 }
 0x220   : > { %1357 = vrot.lane.b32.xlu0 %v578_v11, %s2719_s28  ;;  %v1738_v38 = vsel %vm1716_vm8, %v1705_v6, %v1244_v36 }
 0x221   : > { %1261 = vrot.lane.b32.xlu1 %v801_v10, %s2718_s20  ;;  %v1771_v41 = vsel %vm1749_vm10, %v1738_v38, %v1340_v42 }
 0x222   : > { %v4290_v4 = vpop.permute.xlu0 %1055 }
 0x223   : > { %v4292_v28 = vpop.permute.xlu1 %1053 }
 0x224   : > { %1453 = vrot.lane.b32.xlu0 %v809_v31, %s2721_s10 }
 0x225   : > { %1263 = vrot.lane.b32.xlu1 %v803_v23, %s2718_s20  ;;  %s292_s20 = scalar_lea.vmem %s4653_s6, %s4883_s25 }
 0x226   : > { %v1436_v35 = vpop.permute.xlu0 %1435 }
 0x227   : > { %v1434_v24 = vpop.permute.xlu1 %1433  ;;  %v1804_v53 = vsel %vm1782_vm9, %v1771_v41, %v1436_v35  ;;  %v4865_v35 = vld [vmem:[#allocation67_spill] sm:$0xff] }
 0x228   : > { %1549 = vrot.lane.b32.xlu0 %v814_v44, %s2720_s8  ;;  %v1803_v30 = vsel %vm1782_vm9, %v1770_v27, %v1434_v24  ;;  %v4862_v44 = vld [vmem:[#allocation47_spill] sm:$0xff]  ;;  %v1641_v24 = vsel %vm1617_vm5, %v1608_v52, %v4865_v35 }
 0x229   : > { %1359 = vrot.lane.b32.xlu1 %v579_v21, %s2719_s28  ;;  %v1607_v50 = vsel %vm296_vm0, %v3978_v17, %v4862_v44  ;;  %v1674_v8 = vsel %vm1650_vm6, %v1641_v24, %v4290_v4  ;;  %v4868_v44 = vld [vmem:[#allocation68_spill] sm:$0xff] }
 0x22a   : > { %v1152_v45 = vpop.permute.xlu0 %1151  ;;  %v1640_v20 = vsel %vm1617_vm5, %v1607_v50, %v4864_v33 }
 0x22b   : > { %v1150_v0 = vpop.permute.xlu1 %1149  ;;  %v1673_v17 = vsel %vm1650_vm6, %v1640_v20, %v4292_v28  ;;  %v1707_v14 = vsel %vm1683_vm7, %v1674_v8, %v1152_v45 }
 0x22c   : > { %v2594_v39 = vpop.f32.mrb[0].mxu0  ;;  %v1706_v13 = vsel %vm1683_vm7, %v1673_v17, %v1150_v0 }
 0x22d   : > { %1455 = vrot.lane.b32.xlu1 %v811_v37, %s2721_s10  ;;  %v2033_v9 = vadd.f32 %v2594_v39, %v4319_v40  ;;  %v2027_v51 = vpop.f32.mrb[1].mxu0 }
 0x22e   : > { %v2028_v54 = vadd.f32 %v4319_v40, %v2027_v51  ;;  %v1532_v56 = vpop.permute.xlu0 %1531 }
 0x22f   : > { %v1530_v16 = vpop.permute.xlu1 %1529  ;;  %2187 = vst.msk [vmem:[%s4326_s18 + $0x8] sm:$0xff] %vm296_vm0, %v2033_v9  ;;  %v2219_v48 = vsel %vm296_vm0, %v2033_v9, 0.0  ;;  %v2290_v49 = vmul.f32 %v2033_v9, %v2033_v9  ;;  %v1837_v23 = vsel %vm1815_vm11, %v1804_v53, %v1532_v56 }
 0x230   : > { %v1836_v10 = vsel %vm1815_vm11, %v1803_v30, %v1530_v16  ;;  %2186 = vst.msk [vmem:[%s4326_s18] sm:$0xff] %vm296_vm0, %v2028_v54  ;;  %v2218_v55 = vsel %vm296_vm0, %v2028_v54, 0.0  ;;  %v2289_v18 = vmul.f32 %v2028_v54, %v2028_v54 }
 0x231   : > { %1551 = vrot.lane.b32.xlu1 %v816_v25, %s2720_s8  ;;  %2622 = vmatprep.mubr.msk.f32.mxu1 %vm1860_vm12, %v1836_v10  ;;  %v2322_v11 = vsel %vm296_vm0, %v2290_v49, 0.0  ;;  %v2220_v21 = vadd.f32 %v2219_v48, %v2218_v55 }
 0x232   : > { %2623 = vmatmul.mubr.msk.f32.gmra.mrb[4].mxu1 %vm1860_vm12, %v1837_v23  ;;  %v2321_v43 = vsel %vm296_vm0, %v2289_v18, 0.0  ;;  %v1342_v46 = vpop.permute.xlu0 %1341 }
 0x233   : > { %v1246_v42 = vpop.permute.xlu1 %1245  ;;  %v2323_v36 = vadd.f32 %v2322_v11, %v2321_v43  ;;  %v4866_v43 = vld [vmem:[#allocation54_spill] sm:$0xff] }
 0x234   : > { %v1739_v12 = vsel %vm1716_vm8, %v1706_v13, %v1246_v42 }
 0x235   : > { %v1772_v45 = vsel %vm1749_vm10, %v1739_v12, %v1342_v46  ;;  %v1610_v46 = vsel %vm296_vm0, %v4040_v26, %v4866_v43  ;;  %v4871_v43 = vld [vmem:[#allocation56_spill] sm:$0xff] }
 0x236   : > { %v1344_v1 = vpop.permute.xlu0 %1343  ;;  %v1643_v50 = vsel %vm1617_vm5, %v1610_v46, %v4868_v44  ;;  %v1612_v46 = vsel %vm296_vm0, %v4092_v34, %v4871_v43  ;;  %v4872_v44 = vld [vmem:[#allocation7_spill] sm:$0xff] }
 0x237   : > { %v1248_v31 = vpop.permute.xlu1 %1247 }
 0x238   : > { %v1740_v6 = vsel %vm1716_vm8, %v1707_v14, %v1248_v31 }
 0x239   : > { %v1773_v38 = vsel %vm1749_vm10, %v1740_v6, %v1344_v1  ;;  %v4867_v1 = vld [vmem:[#allocation49_spill] sm:$0xff] }
 0x23a   : > { %v1060_v32 = vpop.permute.xlu0 %1059  ;;  %v1609_v31 = vsel %vm296_vm0, %v4033_v60, %v4867_v1 }
 0x23b   : > { %v1058_v59 = vpop.permute.xlu1 %1057  ;;  %v1676_v20 = vsel %vm1650_vm6, %v1643_v50, %v1060_v32 }
 0x23e   : > { %v1440_v58 = vpop.permute.xlu0 %1439 }
 0x23f   : > { %v1438_v47 = vpop.permute.xlu1 %1437  ;;  %v1806_v39 = vsel %vm1782_vm9, %v1773_v38, %v1440_v58 }
 0x240   : > { %v2597_v19 = vpop.f32.mrb[2].mxu0  ;;  %v1805_v41 = vsel %vm1782_vm9, %v1772_v45, %v1438_v47  ;;  %v4869_v47 = vld [vmem:[#allocation65_spill] sm:$0xff] }
 0x241   : > { %v2043_v5 = vadd.f32 %v2597_v19, %v4319_v40  ;;  %v2037_v61 = vpop.f32.mrb[3].mxu0  ;;  %v1642_v33 = vsel %vm1617_vm5, %v1609_v31, %v4869_v47 }
 0x242   : > { %v2038_v22 = vadd.f32 %v4319_v40, %v2037_v61  ;;  %v1156_v37 = vpop.permute.xlu0 %1155  ;;  %v1675_v26 = vsel %vm1650_vm6, %v1642_v33, %v1058_v59 }
 0x243   : > { %v1154_v29 = vpop.permute.xlu1 %1153  ;;  %2189 = vst.msk [vmem:[%s4326_s18 + $0x18] sm:$0xff] %vm296_vm0, %v2043_v5  ;;  %v2292_v4 = vmul.f32 %v2043_v5, %v2043_v5  ;;  %v2223_v27 = vsel %vm296_vm0, %v2043_v5, 0.0  ;;  %v1709_v8 = vsel %vm1683_vm7, %v1676_v20, %v1156_v37 }
 0x244   : > { %2188 = vst.msk [vmem:[%s4326_s18 + $0x10] sm:$0xff] %vm296_vm0, %v2038_v22  ;;  %v2221_v28 = vsel %vm296_vm0, %v2038_v22, 0.0  ;;  %v2291_v7 = vmul.f32 %v2038_v22, %v2038_v22  ;;  %v1708_v17 = vsel %vm1683_vm7, %v1675_v26, %v1154_v29 }
 0x245   : > { %v2222_v0 = vadd.f32 %v2221_v28, %v2220_v21  ;;  %v2326_v16 = vsel %vm296_vm0, %v2292_v4, 0.0 }
 0x246   : > { %v2324_v9 = vsel %vm296_vm0, %v2291_v7, 0.0  ;;  %v1536_v51 = vpop.permute.xlu0 %1535 }
 0x247   : > { %v1534_v25 = vpop.permute.xlu1 %1533  ;;  %v2325_v53 = vadd.f32 %v2324_v9, %v2323_v36  ;;  %v1839_v30 = vsel %vm1815_vm11, %v1806_v39, %v1536_v51  ;;  %v2224_v56 = vadd.f32 %v2223_v27, %v2222_v0 }
 0x248   : > { %v1838_v54 = vsel %vm1815_vm11, %v1805_v41, %v1534_v25 }
 0x249   : > { %2625 = vmatprep.mubr.msk.f32.mxu1 %vm1860_vm12, %v1838_v54  ;;  %v2327_v48 = vadd.f32 %v2326_v16, %v2325_v53 }
 0x24a   : > { %2626 = vmatmul.mubr.msk.f32.gmra.mrb[6].mxu1 %vm1860_vm12, %v1839_v30  ;;  %v1346_v49 = vpop.permute.xlu0 %1345 }
 0x24b   : > { %v1250_v23 = vpop.permute.xlu1 %1249 }
 0x24c   : > { %v1741_v14 = vsel %vm1716_vm8, %v1708_v17, %v1250_v23 }
 0x24d   : > { %v1774_v37 = vsel %vm1749_vm10, %v1741_v14, %v1346_v49 }
 0x24e   : > { %v1348_v10 = vpop.permute.xlu0 %1347 }
 0x24f   : > { %v1252_v55 = vpop.permute.xlu1 %1251 }
 0x250   : > { %v1742_v13 = vsel %vm1716_vm8, %v1709_v8, %v1252_v55  ;;  %v4870_v55 = vld [vmem:[#allocation51_spill] sm:$0xff] }
 0x251   : > { %v1775_v4 = vsel %vm1749_vm10, %v1742_v13, %v1348_v10 }
 0x252   : > { %v4385_v18 = vpop.permute.xlu0 %1063 }
 0x253   : > { %v4387_v11 = vpop.permute.xlu1 %1061 }
 0x254   : > { %v2600_v21 = vpop.f32.mrb[4].mxu0 }
 0x255   : > { %v2053_v42 = vadd.f32 %v2600_v21, %v4319_v40  ;;  %v2047_v36 = vpop.f32.mrb[5].mxu0  ;;  %v1611_v21 = vsel %vm296_vm0, %v4086_v57, %v4870_v55 }
 0x256   : > { %v2048_v62 = vadd.f32 %v4319_v40, %v2047_v36  ;;  %v1444_v52 = vpop.permute.xlu0 %1443  ;;  %v1644_v50 = vsel %vm1617_vm5, %v1611_v21, %v4872_v44  ;;  %v4876_v21 = vld [vmem:[#allocation70_spill] sm:$0xff] }
 0x257   : > { %v1442_v58 = vpop.permute.xlu1 %1441  ;;  %2191 = vst.msk [vmem:[%s4326_s18 + $0x28] sm:$0xff] %vm296_vm0, %v2053_v42  ;;  %v2294_v35 = vmul.f32 %v2053_v42, %v2053_v42  ;;  %v2227_v32 = vsel %vm296_vm0, %v2053_v42, 0.0  ;;  %v1808_v28 = vsel %vm1782_vm9, %v1775_v4, %v1444_v52  ;;  %v1677_v34 = vsel %vm1650_vm6, %v1644_v50, %v4387_v11 }
 0x258   : > { %2190 = vst.msk [vmem:[%s4326_s18 + $0x20] sm:$0xff] %vm296_vm0, %v2048_v62  ;;  %v2225_v60 = vsel %vm296_vm0, %v2048_v62, 0.0  ;;  %v2293_v24 = vmul.f32 %v2048_v62, %v2048_v62  ;;  %v1807_v7 = vsel %vm1782_vm9, %v1774_v37, %v1442_v58  ;;  %v4873_v62 = vld [vmem:[#allocation69_spill] sm:$0xff] }
 0x259   : > { %v2226_v19 = vadd.f32 %v2225_v60, %v2224_v56  ;;  %v2330_v22 = vsel %vm296_vm0, %v2294_v35, 0.0  ;;  %v1645_v52 = vsel %vm1617_vm5, %v1612_v46, %v4873_v62  ;;  %v4877_v46 = vld [vmem:[#allocation32_spill] sm:$0xff] }
 0x25a   : > { %v2328_v5 = vsel %vm296_vm0, %v2293_v24, 0.0  ;;  %v1160_v59 = vpop.permute.xlu0 %1159  ;;  %v1678_v57 = vsel %vm1650_vm6, %v1645_v52, %v4385_v18 }
 0x25b   : > { %v1158_v61 = vpop.permute.xlu1 %1157  ;;  %v2329_v12 = vadd.f32 %v2328_v5, %v2327_v48  ;;  %v2228_v6 = vadd.f32 %v2227_v32, %v2226_v19  ;;  %v1711_v20 = vsel %vm1683_vm7, %v1678_v57, %v1160_v59 }
 0x25c   : > { %v1710_v26 = vsel %vm1683_vm7, %v1677_v34, %v1158_v61 }
 0x25d   : > { %v2331_v29 = vadd.f32 %v2330_v22, %v2329_v12 }
 0x25e   : > { %v1540_v38 = vpop.permute.xlu0 %1539 }
 0x25f   : > { %v1538_v45 = vpop.permute.xlu1 %1537  ;;  %v1841_v0 = vsel %vm1815_vm11, %v1808_v28, %v1540_v38 }
 0x260   : > { %v1840_v39 = vsel %vm1815_vm11, %v1807_v7, %v1538_v45 }
 0x261   : > { %2628 = vmatprep.mubr.msk.f32.mxu1 %vm1860_vm12, %v1840_v39 }
 0x262   : > { %2629 = vmatmul.mubr.msk.f32.gmra.mrb[8].mxu1 %vm1860_vm12, %v1841_v0  ;;  %v1350_v41 = vpop.permute.xlu0 %1349 }
 0x263   : > { %v1254_v27 = vpop.permute.xlu1 %1253 }
 0x264   : > { %v1743_v60 = vsel %vm1716_vm8, %v1710_v26, %v1254_v27 }
 0x265   : > { %v1776_v18 = vsel %vm1749_vm10, %v1743_v60, %v1350_v41 }
 0x266   : > { %v1352_v9 = vpop.permute.xlu0 %1351 }
 0x267   : > { %v1256_v51 = vpop.permute.xlu1 %1255 }
 0x268   : > { %v2603_v25 = vpop.f32.mrb[6].mxu0  ;;  %v1744_v24 = vsel %vm1716_vm8, %v1711_v20, %v1256_v51 }
 0x269   : > { %v2063_v53 = vadd.f32 %v2603_v25, %v4319_v40  ;;  %v2057_v30 = vpop.f32.mrb[7].mxu0  ;;  %v1777_v19 = vsel %vm1749_vm10, %v1744_v24, %v1352_v9 }
 0x26a   : > { %v2058_v54 = vadd.f32 %v4319_v40, %v2057_v30  ;;  %v4425_v56 = vpop.permute.xlu0 %1067 }
 0x26b   : > { %v4427_v16 = vpop.permute.xlu1 %1065  ;;  %2193 = vst.msk [vmem:[%s4326_s18 + $0x38] sm:$0xff] %vm296_vm0, %v2063_v53  ;;  %v2296_v48 = vmul.f32 %v2063_v53, %v2063_v53  ;;  %v2231_v42 = vsel %vm296_vm0, %v2063_v53, 0.0 }
 0x26c   : > { %2192 = vst.msk [vmem:[%s4326_s18 + $0x30] sm:$0xff] %vm296_vm0, %v2058_v54  ;;  %v2229_v49 = vsel %vm296_vm0, %v2058_v54, 0.0  ;;  %v2295_v23 = vmul.f32 %v2058_v54, %v2058_v54  ;;  %v4874_v54 = vld [vmem:[#allocation57_spill] sm:$0xff] }
 0x26d   : > { %v2230_v10 = vadd.f32 %v2229_v49, %v2228_v6  ;;  %v2334_v33 = vsel %vm296_vm0, %v2296_v48, 0.0  ;;  %v1614_v48 = vsel %vm296_vm0, %v4143_v63, %v4874_v54 }
 0x26e   : > { %v2332_v36 = vsel %vm296_vm0, %v2295_v23, 0.0  ;;  %v1448_v1 = vpop.permute.xlu0 %1447  ;;  %v1647_v43 = vsel %vm1617_vm5, %v1614_v48, %v4876_v21 }
 0x26f   : > { %v1446_v31 = vpop.permute.xlu1 %1445  ;;  %v2333_v58 = vadd.f32 %v2332_v36, %v2331_v29  ;;  %v2232_v47 = vadd.f32 %v2231_v42, %v2230_v10  ;;  %v1810_v14 = vsel %vm1782_vm9, %v1777_v19, %v1448_v1  ;;  %v4875_v10 = vld [vmem:[#allocation53_spill] sm:$0xff]  ;;  %v1680_v36 = vsel %vm1650_vm6, %v1647_v43, %v4425_v56  ;;  %v4878_v19 = vld [vmem:[#allocation55_spill] sm:$0xff] }
 0x270   : > { %v1809_v11 = vsel %vm1782_vm9, %v1776_v18, %v1446_v31  ;;  %v1613_v55 = vsel %vm296_vm0, %v4137_v3, %v4875_v10  ;;  %v1615_v18 = vsel %vm296_vm0, %v4187_v15, %v4878_v19 }
 0x271   : > { %v2335_v35 = vadd.f32 %v2334_v33, %v2333_v58  ;;  %v1646_v42 = vsel %vm1617_vm5, %v1613_v55, %v4877_v46 }
 0x272   : > { %v1164_v8 = vpop.permute.xlu0 %1163  ;;  %v1679_v1 = vsel %vm1650_vm6, %v1646_v42, %v4427_v16 }
 0x273   : > { %v1162_v17 = vpop.permute.xlu1 %1161  ;;  %v1713_v63 = vsel %vm1683_vm7, %v1680_v36, %v1164_v8 }
 0x274   : > { %v1712_v31 = vsel %vm1683_vm7, %v1679_v1, %v1162_v17 }
 0x276   : > { %v1544_v13 = vpop.permute.xlu0 %1543 }
 0x277   : > { %v1542_v32 = vpop.permute.xlu1 %1541  ;;  %v1843_v5 = vsel %vm1815_vm11, %v1810_v14, %v1544_v13  ;;  %v4879_v13 = vld [vmem:[#allocation11_spill] sm:$0xff] }
 0x278   : > { %v1842_v59 = vsel %vm1815_vm11, %v1809_v11, %v1542_v32  ;;  %v1648_v32 = vsel %vm1617_vm5, %v1615_v18, %v4879_v13 }
 0x279   : > { %2631 = vmatprep.mubr.msk.f32.mxu1 %vm1860_vm12, %v1842_v59 }
 0x27a   : > { %2632 = vmatmul.mubr.msk.f32.gmra.mrb[10].mxu1 %vm1860_vm12, %v1843_v5  ;;  %v1354_v61 = vpop.permute.xlu0 %1353 }
 0x27b   : > { %v1258_v12 = vpop.permute.xlu1 %1257 }
 0x27c   : > { %v2606_v6 = vpop.f32.mrb[8].mxu0  ;;  %v1745_v62 = vsel %vm1716_vm8, %v1712_v31, %v1258_v12 }
 0x27d   : > { %v2073_v22 = vadd.f32 %v2606_v6, %v4319_v40  ;;  %v2067_v4 = vpop.f32.mrb[9].mxu0 }
 0x27e   : > { %v2068_v37 = vadd.f32 %v4319_v40, %v2067_v4  ;;  %v1356_v29 = vpop.permute.xlu0 %1355 }
 0x27f   : > { %v1260_v28 = vpop.permute.xlu1 %1259  ;;  %2195 = vst.msk [vmem:[%s4326_s18 + $0x48] sm:$0xff] %vm296_vm0, %v2073_v22  ;;  %v2298_v7 = vmul.f32 %v2073_v22, %v2073_v22  ;;  %v2235_v39 = vsel %vm296_vm0, %v2073_v22, 0.0 }
 0x280   : > { %2194 = vst.msk [vmem:[%s4326_s18 + $0x40] sm:$0xff] %vm296_vm0, %v2068_v37  ;;  %v2233_v38 = vsel %vm296_vm0, %v2068_v37, 0.0  ;;  %v2297_v45 = vmul.f32 %v2068_v37, %v2068_v37  ;;  %v1746_v44 = vsel %vm1716_vm8, %v1713_v63, %v1260_v28 }
 0x281   : > { %v2234_v0 = vadd.f32 %v2233_v38, %v2232_v47  ;;  %v2338_v53 = vsel %vm296_vm0, %v2298_v7, 0.0  ;;  %v1779_v52 = vsel %vm1749_vm10, %v1746_v44, %v1356_v29  ;;  %v1778_v47 = vsel %vm1749_vm10, %v1745_v62, %v1354_v61 }
 0x282   : > { %v2336_v41 = vsel %vm296_vm0, %v2297_v45, 0.0  ;;  %v4472_v27 = vpop.permute.xlu0 %1071 }
 0x283   : > { %v1070_v9 = vpop.permute.xlu1 %1069  ;;  %v2337_v51 = vadd.f32 %v2336_v41, %v2335_v35  ;;  %v2236_v25 = vadd.f32 %v2235_v39, %v2234_v0 }
 0x284   : > { %v1681_v12 = vsel %vm1650_vm6, %v1648_v32, %v1070_v9  ;;  %v4880_v9 = vld [vmem:[#allocation58_spill] sm:$0xff] }
 0x285   : > { %v2339_v30 = vadd.f32 %v2338_v53, %v2337_v51  ;;  %v1616_v51 = vsel %vm296_vm0, %v4197_v2, %v4880_v9 }
 0x286   : > { %v1452_v49 = vpop.permute.xlu0 %1451 }
 0x287   : > { %v1450_v23 = vpop.permute.xlu1 %1449  ;;  %v1812_v56 = vsel %vm1782_vm9, %v1779_v52, %v1452_v49 }
 0x288   : > { %v1811_v33 = vsel %vm1782_vm9, %v1778_v47, %v1450_v23 }
 0x28a   : > { %v1168_v3 = vpop.permute.xlu0 %1167 }
 0x28b   : > { %v1166_v50 = vpop.permute.xlu1 %1165 }
 0x28c   : > { %v1714_v4 = vsel %vm1683_vm7, %v1681_v12, %v1166_v50 }
 0x28d   : > { %v2609_v58 = vpop.f32.mrb[10].mxu0 }
 0x28e   : > { %v2083_v16 = vadd.f32 %v2609_v58, %v4319_v40  ;;  %v2077_v57 = vpop.f32.mrb[11].mxu0  ;;  %v1548_v34 = vpop.permute.xlu0 %1547 }
 0x28f   : > { %v2078_v20 = vadd.f32 %v4319_v40, %v2077_v57  ;;  %v1845_v26 = vsel %vm1815_vm11, %v1812_v56, %v1548_v34  ;;  %v1546_v35 = vpop.permute.xlu1 %1545 }
 0x290   : > { %2197 = vst.msk [vmem:[%s4326_s18 + $0x58] sm:$0xff] %vm296_vm0, %v2083_v16  ;;  %v1844_v60 = vsel %vm1815_vm11, %v1811_v33, %v1546_v35  ;;  %v2300_v24 = vmul.f32 %v2083_v16, %v2083_v16  ;;  %v2239_v5 = vsel %vm296_vm0, %v2083_v16, 0.0 }
 0x291   : > { %2196 = vst.msk [vmem:[%s4326_s18 + $0x50] sm:$0xff] %vm296_vm0, %v2078_v20  ;;  %v2237_v8 = vsel %vm296_vm0, %v2078_v20, 0.0  ;;  %v2299_v17 = vmul.f32 %v2078_v20, %v2078_v20  ;;  %2634 = vmatprep.mubr.msk.f32.mxu1 %vm1860_vm12, %v1844_v60 }
 0x292   : > { %v2238_v14 = vadd.f32 %v2237_v8, %v2236_v25  ;;  %2635 = vmatmul.mubr.msk.f32.gmra.mrb[12].mxu1 %vm1860_vm12, %v1845_v26  ;;  %v1358_v11 = vpop.permute.xlu0 %1357  ;;  %v2342_v15 = vsel %vm296_vm0, %v2300_v24, 0.0  ;;  %v4881_v25 = vld [vmem:[#allocation71_spill] sm:$0xff] }
 0x293   : > { %v2340_v59 = vsel %vm296_vm0, %v2299_v17, 0.0  ;;  %v1262_v61 = vpop.permute.xlu1 %1261  ;;  %v1649_v53 = vsel %vm1617_vm5, %v1616_v51, %v4881_v25 }
 0x294   : > { %v2341_v6 = vadd.f32 %v2340_v59, %v2339_v30  ;;  %v2240_v22 = vadd.f32 %v2239_v5, %v2238_v14  ;;  %v1747_v37 = vsel %vm1716_vm8, %v1714_v4, %v1262_v61  ;;  %v1682_v30 = vsel %vm1650_vm6, %v1649_v53, %v4472_v27 }
 0x295   : > { %v1780_v38 = vsel %vm1749_vm10, %v1747_v37, %v1358_v11  ;;  %v1715_v48 = vsel %vm1683_vm7, %v1682_v30, %v1168_v3 }
 0x296   : > { %v1454_v29 = vpop.permute.xlu0 %1453  ;;  %v2343_v28 = vadd.f32 %v2342_v15, %v2341_v6 }
 0x297   : > { %v1264_v7 = vpop.permute.xlu1 %1263  ;;  %v1813_v45 = vsel %vm1782_vm9, %v1780_v38, %v1454_v29 }
 0x298   : > { %v1748_v49 = vsel %vm1716_vm8, %v1715_v48, %v1264_v7 }
 0x29a   : > { %v1550_v0 = vpop.permute.xlu0 %1549 }
 0x29b   : > { %v1846_v39 = vsel %vm1815_vm11, %v1813_v45, %v1550_v0  ;;  %v1360_v41 = vpop.permute.xlu1 %1359 }
 0x29c   : > { %2637 = vmatprep.mubr.msk.f32.mxu1 %vm1860_vm12, %v1846_v39  ;;  %v1781_v23 = vsel %vm1749_vm10, %v1748_v49, %v1360_v41 }
 0x29f   : > { %v1456_v54 = vpop.permute.xlu1 %1455 }
 0x2a0   : > { %v1814_v10 = vsel %vm1782_vm9, %v1781_v23, %v1456_v54 }
 0x2a3   : > { %v1552_v55 = vpop.permute.xlu1 %1551 }
 0x2a4   : > { %v1847_v21 = vsel %vm1815_vm11, %v1814_v10, %v1552_v55 }
 0x2a5   : > { %v2612_v2 = vpop.f32.mrb[12].mxu0  ;;  %2638 = vmatmul.mubr.msk.f32.gmra.mrb[14].mxu1 %vm1860_vm12, %v1847_v21 }
 0x2a6   : > { %v2093_v43 = vadd.f32 %v2612_v2, %v4319_v40  ;;  %v2087_v46 = vpop.f32.mrb[13].mxu0 }
 0x2a7   : > { %v2088_v27 = vadd.f32 %v4319_v40, %v2087_v46 }
 0x2a8   : > { %2199 = vst.msk [vmem:[%s4326_s18 + $0x68] sm:$0xff] %vm296_vm0, %v2093_v43  ;;  %v2302_v42 = vmul.f32 %v2093_v43, %v2093_v43  ;;  %v2243_v31 = vsel %vm296_vm0, %v2093_v43, 0.0 }
 0x2a9   : > { %2198 = vst.msk [vmem:[%s4326_s18 + $0x60] sm:$0xff] %vm296_vm0, %v2088_v27  ;;  %v2241_v36 = vsel %vm296_vm0, %v2088_v27, 0.0  ;;  %v2301_v1 = vmul.f32 %v2088_v27, %v2088_v27 }
 0x2aa   : > { %v2242_v63 = vadd.f32 %v2241_v36, %v2240_v22  ;;  %v2346_v62 = vsel %vm296_vm0, %v2302_v42, 0.0 }
 0x2ab   : > { %v2344_v44 = vsel %vm296_vm0, %v2301_v1, 0.0 }
 0x2ac   : > { %v2345_v3 = vadd.f32 %v2344_v44, %v2343_v28  ;;  %v2244_v50 = vadd.f32 %v2243_v31, %v2242_v63 }
 0x2ae   : > { %v2347_v52 = vadd.f32 %v2346_v62, %v2345_v3 }
 0x2bd   : > { %v2615_v58 = vpop.f32.mrb[14].mxu0 }
 0x2be   : > { %v2103_v56 = vadd.f32 %v2615_v58, %v4319_v40  ;;  %v2097_v47 = vpop.f32.mrb[15].mxu0 }
 0x2bf   : > { %v2098_v16 = vadd.f32 %v4319_v40, %v2097_v47 }
 0x2c0   : > { %2201 = vst.msk [vmem:[%s4326_s18 + $0x78] sm:$0xff] %vm296_vm0, %v2103_v56  ;;  %v2304_v57 = vmul.f32 %v2103_v56, %v2103_v56  ;;  %v2247_v26 = vsel %vm296_vm0, %v2103_v56, 0.0 }
 0x2c1   : > { %2200 = vst.msk [vmem:[%s4326_s18 + $0x70] sm:$0xff] %vm296_vm0, %v2098_v16  ;;  %v2245_v34 = vsel %vm296_vm0, %v2098_v16, 0.0  ;;  %v2303_v33 = vmul.f32 %v2098_v16, %v2098_v16 }
 0x2c2   : > { %v2246_v20 = vadd.f32 %v2245_v34, %v2244_v50  ;;  %v2350_v8 = vsel %vm296_vm0, %v2304_v57, 0.0 }
 0x2c3   : > { %v2348_v35 = vsel %vm296_vm0, %v2303_v33, 0.0 }
 0x2c4   : > { %v2349_v60 = vadd.f32 %v2348_v35, %v2347_v52  ;;  %v2248_v24 = vadd.f32 %v2247_v26, %v2246_v20 }
 0x2c6   : > { %v2351_v17 = vadd.f32 %v2350_v8, %v2349_v60 }
 0x2d5   : > { %v2618_v19 = vpop.f32.mrb[0].mxu1 }
 0x2d6   : > { %v2113_v18 = vadd.f32 %v2618_v19, %v4319_v40  ;;  %v2107_v14 = vpop.f32.mrb[1].mxu1 }
 0x2d7   : > { %v2108_v11 = vadd.f32 %v4319_v40, %v2107_v14 }
 0x2d8   : > { %2203 = vst.msk [vmem:[%s4326_s18 + $0x88] sm:$0xff] %vm296_vm0, %v2113_v18  ;;  %v2306_v13 = vmul.f32 %v2113_v18, %v2113_v18  ;;  %v2251_v61 = vsel %vm296_vm0, %v2113_v18, 0.0 }
 0x2d9   : > { %2202 = vst.msk [vmem:[%s4326_s18 + $0x80] sm:$0xff] %vm296_vm0, %v2108_v11  ;;  %v2249_v32 = vsel %vm296_vm0, %v2108_v11, 0.0  ;;  %v2305_v5 = vmul.f32 %v2108_v11, %v2108_v11 }
 0x2da   : > { %v2250_v59 = vadd.f32 %v2249_v32, %v2248_v24  ;;  %v2354_v4 = vsel %vm296_vm0, %v2306_v13, 0.0 }
 0x2db   : > { %v2352_v12 = vsel %vm296_vm0, %v2305_v5, 0.0 }
 0x2dc   : > { %v2353_v6 = vadd.f32 %v2352_v12, %v2351_v17  ;;  %v2252_v22 = vadd.f32 %v2251_v61, %v2250_v59 }
 0x2de   : > { %v2355_v15 = vadd.f32 %v2354_v4, %v2353_v6 }
 0x2ed   : > { %v2621_v37 = vpop.f32.mrb[2].mxu1 }
 0x2ee   : > { %v2123_v29 = vadd.f32 %v2621_v37, %v4319_v40  ;;  %v2117_v28 = vpop.f32.mrb[3].mxu1 }
 0x2ef   : > { %v2118_v7 = vadd.f32 %v4319_v40, %v2117_v28 }
 0x2f0   : > { %2205 = vst.msk [vmem:[%s4326_s18 + $0x98] sm:$0xff] %vm296_vm0, %v2123_v29  ;;  %v2308_v38 = vmul.f32 %v2123_v29, %v2123_v29  ;;  %v2255_v41 = vsel %vm296_vm0, %v2123_v29, 0.0 }
 0x2f1   : > { %2204 = vst.msk [vmem:[%s4326_s18 + $0x90] sm:$0xff] %vm296_vm0, %v2118_v7  ;;  %v2253_v45 = vsel %vm296_vm0, %v2118_v7, 0.0  ;;  %v2307_v0 = vmul.f32 %v2118_v7, %v2118_v7 }
 0x2f2   : > { %v2254_v39 = vadd.f32 %v2253_v45, %v2252_v22  ;;  %v2358_v53 = vsel %vm296_vm0, %v2308_v38, 0.0 }
 0x2f3   : > { %v2356_v9 = vsel %vm296_vm0, %v2307_v0, 0.0 }
 0x2f4   : > { %v2357_v51 = vadd.f32 %v2356_v9, %v2355_v15  ;;  %v2256_v25 = vadd.f32 %v2255_v41, %v2254_v39 }
 0x2f6   : > { %v2359_v30 = vadd.f32 %v2358_v53, %v2357_v51 }
 0x305   : > { %v2624_v54 = vpop.f32.mrb[4].mxu1 }
 0x306   : > { %v2133_v48 = vadd.f32 %v2624_v54, %v4319_v40  ;;  %v2127_v49 = vpop.f32.mrb[5].mxu1 }
 0x307   : > { %v2128_v23 = vadd.f32 %v4319_v40, %v2127_v49 }
 0x308   : > { %2207 = vst.msk [vmem:[%s4326_s18 + $0xa8] sm:$0xff] %vm296_vm0, %v2133_v48  ;;  %v2310_v10 = vmul.f32 %v2133_v48, %v2133_v48  ;;  %v2259_v43 = vsel %vm296_vm0, %v2133_v48, 0.0 }
 0x309   : > { %2206 = vst.msk [vmem:[%s4326_s18 + $0xa0] sm:$0xff] %vm296_vm0, %v2128_v23  ;;  %v2257_v55 = vsel %vm296_vm0, %v2128_v23, 0.0  ;;  %v2309_v21 = vmul.f32 %v2128_v23, %v2128_v23 }
 0x30a   : > { %v2258_v2 = vadd.f32 %v2257_v55, %v2256_v25  ;;  %v2362_v36 = vsel %vm296_vm0, %v2310_v10, 0.0 }
 0x30b   : > { %v2360_v46 = vsel %vm296_vm0, %v2309_v21, 0.0 }
 0x30c   : > { %v2361_v27 = vadd.f32 %v2360_v46, %v2359_v30  ;;  %v2260_v42 = vadd.f32 %v2259_v43, %v2258_v2 }
 0x30e   : > { %v2363_v1 = vadd.f32 %v2362_v36, %v2361_v27 }
 0x31d   : > { %v2627_v63 = vpop.f32.mrb[6].mxu1 }
 0x31e   : > { %v2143_v31 = vadd.f32 %v2627_v63, %v4319_v40  ;;  %v2137_v44 = vpop.f32.mrb[7].mxu1 }
 0x31f   : > { %v2138_v3 = vadd.f32 %v4319_v40, %v2137_v44 }
 0x320   : > { %2209 = vst.msk [vmem:[%s4326_s18 + $0xb8] sm:$0xff] %vm296_vm0, %v2143_v31  ;;  %v2312_v50 = vmul.f32 %v2143_v31, %v2143_v31  ;;  %v2263_v56 = vsel %vm296_vm0, %v2143_v31, 0.0 }
 0x321   : > { %2208 = vst.msk [vmem:[%s4326_s18 + $0xb0] sm:$0xff] %vm296_vm0, %v2138_v3  ;;  %v2261_v62 = vsel %vm296_vm0, %v2138_v3, 0.0  ;;  %v2311_v52 = vmul.f32 %v2138_v3, %v2138_v3 }
 0x322   : > { %v2262_v58 = vadd.f32 %v2261_v62, %v2260_v42  ;;  %v2366_v34 = vsel %vm296_vm0, %v2312_v50, 0.0 }
 0x323   : > { %v2364_v47 = vsel %vm296_vm0, %v2311_v52, 0.0 }
 0x324   : > { %v2365_v16 = vadd.f32 %v2364_v47, %v2363_v1  ;;  %v2264_v57 = vadd.f32 %v2263_v56, %v2262_v58 }
 0x326   : > { %v2367_v33 = vadd.f32 %v2366_v34, %v2365_v16 }
 0x335   : > { %v2630_v20 = vpop.f32.mrb[8].mxu1 }
 0x336   : > { %v2153_v26 = vadd.f32 %v2630_v20, %v4319_v40  ;;  %v2147_v35 = vpop.f32.mrb[9].mxu1 }
 0x337   : > { %v2148_v60 = vadd.f32 %v4319_v40, %v2147_v35 }
 0x338   : > { %2211 = vst.msk [vmem:[%s4326_s18 + $0xc8] sm:$0xff] %vm296_vm0, %v2153_v26  ;;  %v2314_v24 = vmul.f32 %v2153_v26, %v2153_v26  ;;  %v2267_v18 = vsel %vm296_vm0, %v2153_v26, 0.0 }
 0x339   : > { %2210 = vst.msk [vmem:[%s4326_s18 + $0xc0] sm:$0xff] %vm296_vm0, %v2148_v60  ;;  %v2265_v8 = vsel %vm296_vm0, %v2148_v60, 0.0  ;;  %v2313_v17 = vmul.f32 %v2148_v60, %v2148_v60 }
 0x33a   : > { %v2266_v19 = vadd.f32 %v2265_v8, %v2264_v57  ;;  %v2370_v32 = vsel %vm296_vm0, %v2314_v24, 0.0 }
 0x33b   : > { %v2368_v14 = vsel %vm296_vm0, %v2313_v17, 0.0 }
 0x33c   : > { %v2369_v11 = vadd.f32 %v2368_v14, %v2367_v33  ;;  %v2268_v13 = vadd.f32 %v2267_v18, %v2266_v19 }
 0x33e   : > { %v2371_v5 = vadd.f32 %v2370_v32, %v2369_v11 }
 0x34d   : > { %v2633_v59 = vpop.f32.mrb[10].mxu1 }
 0x34e   : > { %v2163_v61 = vadd.f32 %v2633_v59, %v4319_v40  ;;  %v2157_v12 = vpop.f32.mrb[11].mxu1 }
 0x34f   : > { %v2158_v6 = vadd.f32 %v4319_v40, %v2157_v12 }
 0x350   : > { %2213 = vst.msk [vmem:[%s4326_s18 + $0xd8] sm:$0xff] %vm296_vm0, %v2163_v61  ;;  %v2316_v22 = vmul.f32 %v2163_v61, %v2163_v61  ;;  %v2271_v29 = vsel %vm296_vm0, %v2163_v61, 0.0 }
 0x351   : > { %2212 = vst.msk [vmem:[%s4326_s18 + $0xd0] sm:$0xff] %vm296_vm0, %v2158_v6  ;;  %v2269_v4 = vsel %vm296_vm0, %v2158_v6, 0.0  ;;  %v2315_v15 = vmul.f32 %v2158_v6, %v2158_v6 }
 0x352   : > { %v2270_v37 = vadd.f32 %v2269_v4, %v2268_v13  ;;  %v2374_v45 = vsel %vm296_vm0, %v2316_v22, 0.0 }
 0x353   : > { %v2372_v28 = vsel %vm296_vm0, %v2315_v15, 0.0 }
 0x354   : > { %v2373_v7 = vadd.f32 %v2372_v28, %v2371_v5  ;;  %v2272_v38 = vadd.f32 %v2271_v29, %v2270_v37 }
 0x356   : > { %v2375_v0 = vadd.f32 %v2374_v45, %v2373_v7 }
 0x365   : > { %v2636_v39 = vpop.f32.mrb[12].mxu1 }
 0x366   : > { %v2173_v41 = vadd.f32 %v2636_v39, %v4319_v40  ;;  %v2167_v9 = vpop.f32.mrb[13].mxu1 }
 0x367   : > { %v2168_v51 = vadd.f32 %v4319_v40, %v2167_v9 }
 0x368   : > { %2215 = vst.msk [vmem:[%s4326_s18 + $0xe8] sm:$0xff] %vm296_vm0, %v2173_v41  ;;  %v2318_v25 = vmul.f32 %v2173_v41, %v2173_v41  ;;  %v2275_v48 = vsel %vm296_vm0, %v2173_v41, 0.0 }
 0x369   : > { %2214 = vst.msk [vmem:[%s4326_s18 + $0xe0] sm:$0xff] %vm296_vm0, %v2168_v51  ;;  %v2273_v53 = vsel %vm296_vm0, %v2168_v51, 0.0  ;;  %v2317_v30 = vmul.f32 %v2168_v51, %v2168_v51 }
 0x36a   : > { %v2274_v54 = vadd.f32 %v2273_v53, %v2272_v38  ;;  %v2378_v55 = vsel %vm296_vm0, %v2318_v25, 0.0 }
 0x36b   : > { %v2376_v49 = vsel %vm296_vm0, %v2317_v30, 0.0 }
 0x36c   : > { %v2377_v23 = vadd.f32 %v2376_v49, %v2375_v0  ;;  %v2276_v10 = vadd.f32 %v2275_v48, %v2274_v54 }
 0x36e   : > { %v2379_v21 = vadd.f32 %v2378_v55, %v2377_v23 }
 0x378   : > { %v2639_v2 = vpop.f32.mrb[14].mxu1 }
 0x379   : > { %v2183_v43 = vadd.f32 %v2639_v2, %v4319_v40  ;;  %v2177_v46 = vpop.f32.mrb[15].mxu1 }
 0x37a   : > { %v2178_v27 = vadd.f32 %v4319_v40, %v2177_v46 }
 0x37b   : > { %2217 = vst.msk [vmem:[%s4326_s18 + $0xf8] sm:$0xff] %vm296_vm0, %v2183_v43  ;;  %v2320_v42 = vmul.f32 %v2183_v43, %v2183_v43  ;;  %v2279_v31 = vsel %vm296_vm0, %v2183_v43, 0.0 }
 0x37c   : > { %2216 = vst.msk [vmem:[%s4326_s18 + $0xf0] sm:$0xff] %vm296_vm0, %v2178_v27  ;;  %v2277_v36 = vsel %vm296_vm0, %v2178_v27, 0.0  ;;  %v2319_v1 = vmul.f32 %v2178_v27, %v2178_v27 }
 0x37d   : > { %v2278_v63 = vadd.f32 %v2277_v36, %v2276_v10  ;;  %v2382_v62 = vsel %vm296_vm0, %v2320_v42, 0.0 }
 0x37e   : > { %v2380_v44 = vsel %vm296_vm0, %v2319_v1, 0.0 }
 0x37f   : > { %v2280_v3 = vadd.f32 %v2279_v31, %v2278_v63  ;;  %v2381_v50 = vadd.f32 %v2380_v44, %v2379_v21 }
 0x381   : > { %v2281_v40 = vrot.slane %v2280_v3, 4  ;;  %v2383_v52 = vadd.f32 %v2382_v62, %v2381_v50 }
 0x383   : > { %v2282_v58 = vadd.f32 %v2281_v40, %v2280_v3  ;;  %v2384_v56 = vrot.slane %v2383_v52, 4 }
 0x385   : > { %v2283_v47 = vrot.slane %v2282_v58, 2  ;;  %v2385_v16 = vadd.f32 %v2384_v56, %v2383_v52 }
 0x387   : > { %v2284_v57 = vadd.f32 %v2283_v47, %v2282_v58  ;;  %v2386_v34 = vrot.slane %v2385_v16, 2 }
 0x389   : > { %v2285_v33 = vrot.slane %v2284_v57, 1  ;;  %v2387_v20 = vadd.f32 %v2386_v34, %v2385_v16 }
 0x38b   : > { %v2286_v26 = vadd.f32 %v2285_v33, %v2284_v57  ;;  %v2388_v35 = vrot.slane %v2387_v20, 1 }
 0x38d   : > { %2288 = vst.msk [vmem:[%s292_s20] sm:$0x1] %vm2287_vm13, %v2286_v26  ;;  %v2389_v60 = vadd.f32 %v2388_v35, %v2387_v20 }
 0x38f   : > { %2390 = vst.msk [vmem:[%s295_s23] sm:$0x1] %vm2287_vm13, %v2389_v60 }
 0x390 PF: > { %s18_s24 = sadd.s32 1, %s2711_s24  }
 0x391   : > { %p15_p4 = scmp.ge.s32.totalorder %s18_s24, 4  }
 0x393   :  { %17 = sbr.rel (!%p15_p4) target bundleno = 1 (0x1), region = 95 }

</bundles_post_ra>
